<compile_context>
chip_gen: v7x
topology: tpu7x:2x2x1
jax: 0.10.0
libtpu: 0.0.40
codegen_flags: <defaults>
</compile_context>

<pallas_src>
import math

import jax
import jax.numpy as jnp
import numpy as np
from jax.experimental import pallas as pl
from jax.experimental.pallas import tpu as pltpu

# ---------------------------------------------------------------------------
# Architecture constants the PyTorch file assumed at module scope.
# ---------------------------------------------------------------------------
USE_DROPOUT = False          # dropout disabled -> forward is deterministic
DROPOUT_RATE = 0.1
BN_EPS = 1e-5
BN_MOMENTUM = 0.1
ENCODER_BLOCKS = [
    {"out_ch": 32,  "kernel": 3, "pad": 1, "stride": 1},
    {"out_ch": 64,  "kernel": 3, "pad": 1, "stride": 1},
    {"out_ch": 128, "kernel": 3, "pad": 1, "stride": 1},
]
DECODER_BLOCKS = [
    {"out_ch": 64, "kernel": 3, "pad": 1},
    {"out_ch": 32, "kernel": 3, "pad": 1},
    {"out_ch": 16, "kernel": 3, "pad": 1},
]
FINAL_KERNEL = 3
FINAL_PADDING = 1
ADAPT_POOL_OUTPUT_SIZE = 4
LATENT_SIZE = 16
ENCODER_OUT_CHANNELS = 128   # == ENCODER_BLOCKS[-1]['out_ch']


# ---------------------------------------------------------------------------
# In-kernel math helpers (traced values; whole batch folded into rows)
# ---------------------------------------------------------------------------
def _gelu(x):
    # TODO(synk): PyTorch nn.GELU() defaults to the exact erf form; the tanh
    # approximation used here (EUP-friendly) deviates at the ~1e-3 level.
    c0 = 0.7978845608028654  # sqrt(2/pi)
    return 0.5 * x * (1.0 + jnp.tanh(c0 * (x + 0.044715 * x * x * x)))


def _bn_train(y, gamma, beta):
    """Training-mode BatchNorm over channels (last axis), single pass."""
    inv_n = 1.0 / y.shape[0]
    s = jnp.sum(y, axis=0, keepdims=True)
    ss = jnp.sum(y * y, axis=0, keepdims=True)
    mean = s * inv_n
    var = jnp.maximum(ss * inv_n - mean * mean, 0.0)   # biased variance
    return (y - mean) * (jax.lax.rsqrt(var + BN_EPS) * gamma) + beta


def _tap_combine(y0, y1, y2, B, L):
    """Combine the three per-tap matmul outputs of a 'same' K=3/pad=1 conv on a
    batch-flattened (B*L, Cout) activation.  Length shifts are output rolls
    (XLU slot, non-negative shifts only) and padding / batch boundaries are
    zeroed with an in-kernel iota mask (no mask operands, no extra DMAs)."""
    rows = y0.shape[0]
    left = pltpu.roll(y0, shift=1, axis=0)            # left[r]  = y0[r-1]
    right = pltpu.roll(y2, shift=rows - 1, axis=0)    # right[r] = y2[r+1]  (== roll by -1)
    r = jax.lax.broadcasted_iota(jnp.int32, y0.shape, 0)
    keep_l = r != 0
    keep_r = r != (L - 1)
    for b in range(1, B):
        keep_l = jnp.logical_and(keep_l, r != b * L)
        keep_r = jnp.logical_and(keep_r, r != b * L + L - 1)
    return y1 + jnp.where(keep_l, left, 0.0) + jnp.where(keep_r, right, 0.0)


def _conv3(x, w_ref, B, L):
    """'same' Conv1d (K=3, pad=1, stride=1) on batch-flattened (B*L, Cin) rows."""
    y0 = jnp.dot(x, w_ref[0], preferred_element_type=jnp.float32)
    y1 = jnp.dot(x, w_ref[1], preferred_element_type=jnp.float32)
    y2 = jnp.dot(x, w_ref[2], preferred_element_type=jnp.float32)
    return _tap_combine(y0, y1, y2, B, L)


def _conv3_split(x, s, wx_ref, ws_ref, B, L):
    """Same conv, but the input is the channel-concat [x, skip]; the concat is
    avoided by splitting the weight host-side and summing per-tap matmuls."""
    y0 = (jnp.dot(x, wx_ref[0], preferred_element_type=jnp.float32)
          + jnp.dot(s, ws_ref[0], preferred_element_type=jnp.float32))
    y1 = (jnp.dot(x, wx_ref[1], preferred_element_type=jnp.float32)
          + jnp.dot(s, ws_ref[1], preferred_element_type=jnp.float32))
    y2 = (jnp.dot(x, wx_ref[2], preferred_element_type=jnp.float32)
          + jnp.dot(s, ws_ref[2], preferred_element_type=jnp.float32))
    return _tap_combine(y0, y1, y2, B, L)


# ---------------------------------------------------------------------------
# The single fused VAE kernel
# ---------------------------------------------------------------------------
def _make_vae_kernel(B, latent, cin, enc_cout, enc_conv_L,
                     dec_cout, dec_conv_L, final_L, enc_out_ch):
    n_enc = len(enc_cout)
    n_dec = len(dec_cout)

    def kernel(*args):
        o_recon, o_ml = args[-2:]
        it = iter(args[:-2])
        x_ref = next(it)
        eps_ref = next(it)
        vec_ref = next(it)                                   # packed (1,C) vectors
        enc_w = [next(it) for _ in range(n_enc)]
        pool = [next(it) for _ in range(n_enc)]
        ap_ref = next(it)
        wcat_ref = next(it)
        msel_ref = next(it)
        csum_ref = next(it)
        ssum_ref = next(it)
        adw_ref = next(it)
        bcast_ref = next(it)
        dec_w = [(next(it), next(it)) for _ in range(n_dec)]  # (wx, ws)
        up = [next(it) for _ in range(n_dec)]
        fin_ref = next(it)

        # packed per-channel vectors, consumed in a fixed order (matches host)
        vrow = iter(range(vec_ref.shape[0]))

        def vec(c):
            i = next(vrow)
            return vec_ref[i:i + 1, :c]                       # (1, c), offset-0 slice

        # -------- input BatchNorm1d (training-mode batch statistics) --------
        x = _bn_train(x_ref[...], vec(cin), vec(cin))

        # -------- encoder: [conv3 -> BN -> GELU -> AvgPool1d(2)] x n_enc --------
        skips = []
        for i in range(n_enc):
            # conv bias omitted: exactly cancelled by the training-mode BN mean.
            y = _conv3(x, enc_w[i], B, enc_conv_L[i])
            y = _gelu(_bn_train(y, vec(enc_cout[i]), vec(enc_cout[i])))
            x = jnp.dot(pool[i][...], y, preferred_element_type=jnp.float32)  # AvgPool1d(2)
            skips.append(x)

        # -------- adaptive avg-pool + flatten(1) + (mean|logvar) linears --------
        # flatten(1) + per-position weights expressed purely as matmuls with a
        # host-built block-selection mask: no in-kernel reshape / row slices.
        pooled = jnp.dot(ap_ref[...], x, preferred_element_type=jnp.float32)   # (B*P, C3)
        t = jnp.dot(pooled, wcat_ref[...], preferred_element_type=jnp.float32)  # (B*P, P*2Z)
        v = jnp.dot(t * msel_ref[...], csum_ref[...],
                    preferred_element_type=jnp.float32)                         # (B*P, 2Z)
        ml = jnp.dot(ssum_ref[...], v, preferred_element_type=jnp.float32) + vec(2 * latent)
        o_ml[...] = ml                                      # single (B, 2*latent) store

        # -------- reparameterize (with the module's clamps) --------
        mean = ml[:, :latent]
        logvar = ml[:, latent:]
        lv = jnp.clip(logvar, -10.0, 10.0)
        std = jnp.clip(jnp.exp(0.5 * lv), 1e-5, 10.0)
        z = mean + eps_ref[...] * std

        # -------- decoder --------
        h = jnp.dot(z, adw_ref[...], preferred_element_type=jnp.float32) + vec(enc_out_ch)
        h = jnp.maximum(h, 0.0)
        x = jnp.dot(bcast_ref[...], h, preferred_element_type=jnp.float32)      # L=1 -> L=skip[-1]

        for i in range(n_dec):
            s = skips[n_enc - 1 - i]                         # skip_connections[-(i+1)]
            y = _conv3_split(x, s, dec_w[i][0], dec_w[i][1], B, dec_conv_L[i])
            y = _gelu(_bn_train(y, vec(dec_cout[i]), vec(dec_cout[i])))
            x = jnp.dot(up[i][...], y, preferred_element_type=jnp.float32)      # Upsample x2

        # -------- decode_conv (+bias) + tanh --------
        y = _conv3(x, fin_ref, B, final_L) + vec(cin)
        o_recon[...] = jnp.tanh(y)                           # (B*length, Cout)

    return kernel


# ---------------------------------------------------------------------------
# Host-side helpers: resampling matrices, packing, params
# ---------------------------------------------------------------------------
def _interp_matrix(L_in, L_out):
    """F.interpolate(mode='linear', align_corners=True) as an (L_out, L_in) matrix."""
    M = np.zeros((L_out, L_in), np.float32)
    if L_in == 1:
        M[:, 0] = 1.0
        return M
    if L_out == 1:
        M[0, 0] = 1.0
        return M
    for j in range(L_out):
        pos = j * (L_in - 1) / (L_out - 1)
        lo = int(math.floor(pos))
        hi = min(lo + 1, L_in - 1)
        w = pos - lo
        M[j, lo] += 1.0 - w
        M[j, hi] += w
    return M


def _avgpool2_matrix(L_in):
    L_out = L_in // 2
    M = np.zeros((L_out, L_in), np.float32)
    for m in range(L_out):
        M[m, 2 * m] = 0.5
        M[m, 2 * m + 1] = 0.5
    return M


def _adaptive_avgpool_matrix(L_in, L_out):
    M = np.zeros((L_out, L_in), np.float32)
    for i in range(L_out):
        start = (i * L_in) // L_out
        end = -((-(i + 1) * L_in) // L_out)
        M[i, start:end] = 1.0 / (end - start)
    return M


def _kron_eye(M, B):
    """Block-diagonal matrix acting on batch-flattened (B*L, C) activations."""
    return np.kron(np.eye(B, dtype=np.float32), M.astype(np.float32))


def _pack_vecs(vecs, width=128):
    """Pack many small (1, C) vectors into one (N, width) array (one DMA)."""
    maxc = max(int(np.asarray(v).size) for v in vecs)
    width = max(width, -(-maxc // 128) * 128)
    out = np.zeros((len(vecs), width), np.float32)
    for i, v in enumerate(vecs):
        v = np.asarray(jax.device_get(v), np.float32).reshape(-1)
        out[i, :v.shape[0]] = v
    return jnp.asarray(out)


def init_params(key, in_channels, length,
                latent_size=LATENT_SIZE, encoder_out_channels=ENCODER_OUT_CHANNELS):
    keys = iter(jax.random.split(key, 64))

    def u(fan_in, shape):
        bound = 1.0 / math.sqrt(fan_in)
        return jax.random.uniform(next(keys), shape, jnp.float32, -bound, bound)

    params = {"length": length, "latent_size": latent_size}
    params["bn0_gamma"] = jnp.ones((1, in_channels), jnp.float32)
    params["bn0_beta"] = jnp.zeros((1, in_channels), jnp.float32)

    enc = []
    ch = in_channels
    for spec in ENCODER_BLOCKS:
        K, co = spec["kernel"], spec["out_ch"]
        fan = ch * K
        # conv bias kept for parity with nn.Conv1d, but it is exactly cancelled
        # by the following training-mode BatchNorm and never reaches the kernel.
        enc.append({"w": u(fan, (K, ch, co)), "b": u(fan, (1, co)),
                    "gamma": jnp.ones((1, co), jnp.float32),
                    "beta": jnp.zeros((1, co), jnp.float32)})
        ch = co
    params["enc_blocks"] = enc

    flat_dim = ADAPT_POOL_OUTPUT_SIZE * ch
    params["enc_mean_w"] = u(flat_dim, (flat_dim, latent_size))    # rows in torch c*P+p order
    params["enc_mean_b"] = u(flat_dim, (1, latent_size))
    params["enc_logvar_w"] = u(flat_dim, (flat_dim, latent_size))
    params["enc_logvar_b"] = u(flat_dim, (1, latent_size))

    params["adapt_w"] = u(latent_size, (latent_size, encoder_out_channels))
    params["adapt_b"] = u(latent_size, (1, encoder_out_channels))

    enc_chs = [spec["out_ch"] for spec in ENCODER_BLOCKS][::-1]
    dec = []
    ch = encoder_out_channels
    for idx, spec in enumerate(DECODER_BLOCKS):
        in_ch = ch + enc_chs[idx]
        K, co = spec["kernel"], spec["out_ch"]
        fan = in_ch * K
        dec.append({"w": u(fan, (K, in_ch, co)), "b": u(fan, (1, co)),
                    "gamma": jnp.ones((1, co), jnp.float32),
                    "beta": jnp.zeros((1, co), jnp.float32)})
        ch = co
    params["dec_blocks"] = dec

    fan = ch * FINAL_KERNEL
    params["final_w"] = u(fan, (FINAL_KERNEL, ch, in_channels))
    params["final_b"] = u(fan, (1, in_channels))
    return params


# ---------------------------------------------------------------------------
# Model builder: one pallas_call for the whole forward, jitted wrapper
# ---------------------------------------------------------------------------
def build_vae_forward(params, B, length, in_channels):
    latent = int(params["latent_size"])
    P = ADAPT_POOL_OUTPUT_SIZE
    n_enc, n_dec = len(ENCODER_BLOCKS), len(DECODER_BLOCKS)
    assert length % (2 ** n_enc) == 0, (
        "TODO(synk): lengths not divisible by 2**n_enc need explicit pre-block / "
        "final interpolation matrices (identity for this configuration).")

    enc_cout = [s["out_ch"] for s in ENCODER_BLOCKS]
    dec_cout = [s["out_ch"] for s in DECODER_BLOCKS]
    dec_cin_x = [ENCODER_OUT_CHANNELS] + dec_cout[:-1]         # x-channels before concat

    # ----- static length schedule -----
    enc_conv_L, skip_Ls = [], []
    L = length
    for spec in ENCODER_BLOCKS:
        assert spec["kernel"] == 3 and spec["pad"] == 1 and spec.get("stride", 1) == 1, \
            "TODO(synk): only kernel=3 / pad=1 / stride=1 conv blocks are implemented"
        enc_conv_L.append(L)
        L //= 2                                  # AvgPool1d(2)
        skip_Ls.append(L)
    dec_conv_L = []
    L = skip_Ls[-1]
    for i, spec in enumerate(DECODER_BLOCKS):
        assert spec["kernel"] == 3 and spec["pad"] == 1
        assert L == skip_Ls[-(i + 1)]            # pre-block F.interpolate is identity
        dec_conv_L.append(L)
        L *= 2                                   # Upsample(scale_factor=2)
    assert L == length                           # final F.interpolate is identity
    assert FINAL_KERNEL == 3 and FINAL_PADDING == 1
    C3 = enc_cout[-1]

    # ----- packed per-channel vectors (one DMA instead of ~17) -----
    b_ml = jnp.concatenate([params["enc_mean_b"], params["enc_logvar_b"]], axis=1)
    vecs = [params["bn0_gamma"], params["bn0_beta"]]
    for blk in params["enc_blocks"]:
        vecs += [blk["gamma"], blk["beta"]]
    vecs += [b_ml, params["adapt_b"]]
    for blk in params["dec_blocks"]:
        vecs += [blk["gamma"], blk["beta"]]
    vecs += [params["final_b"]]
    vec_pack = _pack_vecs(vecs)

    # ----- flatten(1)-linear re-expressed as matmuls (Wcat / Msel / Csum / Ssum) -----
    # torch: flat[b, c*P+p] = pooled[b, c, p]; kernel pooled rows are b*P+p.
    w_full = jnp.concatenate([params["enc_mean_w"], params["enc_logvar_w"]], axis=1)
    wcat = w_full.reshape(C3, P * 2 * latent)                 # Wcat[c, p*2Z+j] = W[c*P+p, j]
    msel = np.kron(np.ones((B, 1), np.float32),
                   np.kron(np.eye(P, dtype=np.float32),
                           np.ones((1, 2 * latent), np.float32)))     # (B*P, P*2Z)
    csum = np.kron(np.ones((P, 1), np.float32),
                   np.eye(2 * latent, dtype=np.float32))              # (P*2Z, 2Z)
    ssum = np.kron(np.eye(B, dtype=np.float32),
                   np.ones((1, P), np.float32))                       # (B, B*P)

    # ----- static operands -----
    ops = [vec_pack]
    ops += [blk["w"] for blk in params["enc_blocks"]]
    ops += [jnp.asarray(_kron_eye(_avgpool2_matrix(enc_conv_L[i]), B)) for i in range(n_enc)]
    ops += [jnp.asarray(_kron_eye(_adaptive_avgpool_matrix(skip_Ls[-1], P), B)),
            wcat, jnp.asarray(msel), jnp.asarray(csum), jnp.asarray(ssum),
            params["adapt_w"],
            jnp.asarray(_kron_eye(np.ones((skip_Ls[-1], 1), np.float32), B))]
    for i, blk in enumerate(params["dec_blocks"]):
        cx = dec_cin_x[i]
        ops += [blk["w"][:, :cx, :], blk["w"][:, cx:, :]]      # x-part / skip-part
    ops += [jnp.asarray(_kron_eye(_interp_matrix(dec_conv_L[i], 2 * dec_conv_L[i]), B))
            for i in range(n_dec)]
    ops += [params["final_w"]]

    kernel = _make_vae_kernel(B, latent, in_channels, enc_cout, enc_conv_L,
                              dec_cout, dec_conv_L, length, ENCODER_OUT_CHANNELS)
    n_in = 2 + len(ops)
    out_shape = (jax.ShapeDtypeStruct((B * length, in_channels), jnp.float32),
                 jax.ShapeDtypeStruct((B, 2 * latent), jnp.float32))

    fused = pl.pallas_call(
        kernel,
        out_shape=out_shape,
        in_specs=[pl.BlockSpec(memory_space=pltpu.MemorySpace.VMEM)] * n_in,
        out_specs=(pl.BlockSpec(memory_space=pltpu.MemorySpace.VMEM),
                   pl.BlockSpec(memory_space=pltpu.MemorySpace.VMEM)),
    )

    @jax.jit
    def forward(x, eps_key):
        # x: (B, length, in_channels) -- exactly what the PyTorch VAE.forward
        # receives before the Encoder's internal permute(0, 2, 1).
        x_flat = x.astype(jnp.float32).reshape(B * length, in_channels)
        eps = jax.random.normal(eps_key, (B, latent), jnp.float32)   # torch.randn_like
        recon_flat, ml = fused(x_flat, eps, *ops)
        mean, logvar = ml[:, :latent], ml[:, latent:]
        recon = recon_flat.reshape(B, length, in_channels).transpose(0, 2, 1)
        return recon, mean, logvar

    return forward


# ---------------------------------------------------------------------------
if __name__ == "__main__":
    key = jax.random.PRNGKey(0)
    pkey, xkey, ekey = jax.random.split(key, 3)

    B, length, in_channels = 2, 64, 4
    params = init_params(pkey, in_channels, length)
    forward = build_vae_forward(params, B, length, in_channels)

    x = jax.random.normal(xkey, (B, length, in_channels), jnp.float32)
    recon, mean, logvar = forward(x, ekey)
    jax.block_until_ready((recon, mean, logvar))

    assert recon.shape == (B, in_channels, length)
    assert mean.shape == (B, LATENT_SIZE) and logvar.shape == (B, LATENT_SIZE)
    assert bool(jnp.all(jnp.isfinite(recon)))
    assert bool(jnp.all(jnp.isfinite(mean))) and bool(jnp.all(jnp.isfinite(logvar)))
    print("KERNEL_OK")
</pallas_src>

<mosaic_0001>
module attributes {stable_mosaic.version = 11 : i64} {
  func.func @kernel(%arg0: memref<128x4xf32, #tpu.memory_space<vmem>>, %arg1: memref<2x16xf32, #tpu.memory_space<vmem>>, %arg2: memref<17x128xf32, #tpu.memory_space<vmem>>, %arg3: memref<3x4x32xf32, #tpu.memory_space<vmem>>, %arg4: memref<3x32x64xf32, #tpu.memory_space<vmem>>, %arg5: memref<3x64x128xf32, #tpu.memory_space<vmem>>, %arg6: memref<64x128xf32, #tpu.memory_space<vmem>>, %arg7: memref<32x64xf32, #tpu.memory_space<vmem>>, %arg8: memref<16x32xf32, #tpu.memory_space<vmem>>, %arg9: memref<8x16xf32, #tpu.memory_space<vmem>>, %arg10: memref<128x128xf32, #tpu.memory_space<vmem>>, %arg11: memref<8x128xf32, #tpu.memory_space<vmem>>, %arg12: memref<128x32xf32, #tpu.memory_space<vmem>>, %arg13: memref<2x8xf32, #tpu.memory_space<vmem>>, %arg14: memref<16x128xf32, #tpu.memory_space<vmem>>, %arg15: memref<16x2xf32, #tpu.memory_space<vmem>>, %arg16: memref<3x128x64xf32, #tpu.memory_space<vmem>>, %arg17: memref<3x128x64xf32, #tpu.memory_space<vmem>>, %arg18: memref<3x64x32xf32, #tpu.memory_space<vmem>>, %arg19: memref<3x64x32xf32, #tpu.memory_space<vmem>>, %arg20: memref<3x32x16xf32, #tpu.memory_space<vmem>>, %arg21: memref<3x32x16xf32, #tpu.memory_space<vmem>>, %arg22: memref<32x16xf32, #tpu.memory_space<vmem>>, %arg23: memref<64x32xf32, #tpu.memory_space<vmem>>, %arg24: memref<128x64xf32, #tpu.memory_space<vmem>>, %arg25: memref<3x16x4xf32, #tpu.memory_space<vmem>>, %arg26: memref<128x4xf32, #tpu.memory_space<vmem>>, %arg27: memref<2x32xf32, #tpu.memory_space<vmem>>) attributes {dimension_semantics = [], scalar_prefetch = 0 : i64, scratch_operands = 0 : i64, tpu.core_type = #tpu.core_type<tc>} {
    %c0 = arith.constant 0 : index
    %c0_0 = arith.constant 0 : index
    %0 = vector.load %arg0[%c0, %c0_0] : memref<128x4xf32, #tpu.memory_space<vmem>>, vector<128x4xf32>
    %c0_1 = arith.constant 0 : index
    %c0_2 = arith.constant 0 : index
    %1 = vector.load %arg2[%c0_1, %c0_2] : memref<17x128xf32, #tpu.memory_space<vmem>>, vector<1x4xf32>
    %c1 = arith.constant 1 : index
    %c0_3 = arith.constant 0 : index
    %2 = vector.load %arg2[%c1, %c0_3] : memref<17x128xf32, #tpu.memory_space<vmem>>, vector<1x4xf32>
    %cst = arith.constant dense<0.000000e+00> : vector<4xf32>
    %3 = vector.multi_reduction <add>, %0, %cst [0] : vector<128x4xf32> to vector<4xf32>
    %4 = vector.shape_cast %3 : vector<4xf32> to vector<1x4xf32>
    %5 = arith.mulf %0, %0 : vector<128x4xf32>
    %cst_4 = arith.constant dense<0.000000e+00> : vector<4xf32>
    %6 = vector.multi_reduction <add>, %5, %cst_4 [0] : vector<128x4xf32> to vector<4xf32>
    %7 = vector.shape_cast %6 : vector<4xf32> to vector<1x4xf32>
    %cst_5 = arith.constant 7.812500e-03 : f32
    %8 = vector.broadcast %cst_5 : f32 to vector<1x4xf32>
    %9 = arith.mulf %4, %8 : vector<1x4xf32>
    %cst_6 = arith.constant 7.812500e-03 : f32
    %10 = vector.broadcast %cst_6 : f32 to vector<1x4xf32>
    %11 = arith.mulf %7, %10 : vector<1x4xf32>
    %12 = arith.mulf %9, %9 : vector<1x4xf32>
    %13 = arith.subf %11, %12 : vector<1x4xf32>
    %cst_7 = arith.constant 0.000000e+00 : f32
    %14 = vector.broadcast %cst_7 : f32 to vector<1x4xf32>
    %15 = arith.maximumf %13, %14 : vector<1x4xf32>
    %16 = vector.broadcast %9 : vector<1x4xf32> to vector<128x4xf32>
    %17 = arith.subf %0, %16 : vector<128x4xf32>
    %cst_8 = arith.constant 9.99999974E-6 : f32
    %18 = vector.broadcast %cst_8 : f32 to vector<1x4xf32>
    %19 = arith.addf %15, %18 : vector<1x4xf32>
    %20 = math.rsqrt %19 : vector<1x4xf32>
    %21 = arith.mulf %20, %1 : vector<1x4xf32>
    %22 = vector.broadcast %21 : vector<1x4xf32> to vector<128x4xf32>
    %23 = arith.mulf %17, %22 : vector<128x4xf32>
    %24 = vector.broadcast %2 : vector<1x4xf32> to vector<128x4xf32>
    %25 = arith.addf %23, %24 : vector<128x4xf32>
    %c0_9 = arith.constant 0 : index
    %c0_10 = arith.constant 0 : index
    %c0_11 = arith.constant 0 : index
    %26 = vector.load %arg3[%c0_9, %c0_10, %c0_11] : memref<3x4x32xf32, #tpu.memory_space<vmem>>, vector<1x4x32xf32>
    %27 = vector.shape_cast %26 : vector<1x4x32xf32> to vector<4x32xf32>
    %cst_12 = arith.constant dense<0.000000e+00> : vector<128x32xf32>
    %28 = tpu.matmul %25, %27, %cst_12 {dimension_numbers = #tpu.dot_dimension_numbers<[1], [0], [0], [1], [0, 0, 1, 1], [], []>} : vector<128x4xf32>, vector<4x32xf32>, vector<128x32xf32> -> vector<128x32xf32>
    %c1_13 = arith.constant 1 : index
    %c0_14 = arith.constant 0 : index
    %c0_15 = arith.constant 0 : index
    %29 = vector.load %arg3[%c1_13, %c0_14, %c0_15] : memref<3x4x32xf32, #tpu.memory_space<vmem>>, vector<1x4x32xf32>
    %30 = vector.shape_cast %29 : vector<1x4x32xf32> to vector<4x32xf32>
    %cst_16 = arith.constant dense<0.000000e+00> : vector<128x32xf32>
    %31 = tpu.matmul %25, %30, %cst_16 {dimension_numbers = #tpu.dot_dimension_numbers<[1], [0], [0], [1], [0, 0, 1, 1], [], []>} : vector<128x4xf32>, vector<4x32xf32>, vector<128x32xf32> -> vector<128x32xf32>
    %c2 = arith.constant 2 : index
    %c0_17 = arith.constant 0 : index
    %c0_18 = arith.constant 0 : index
    %32 = vector.load %arg3[%c2, %c0_17, %c0_18] : memref<3x4x32xf32, #tpu.memory_space<vmem>>, vector<1x4x32xf32>
    %33 = vector.shape_cast %32 : vector<1x4x32xf32> to vector<4x32xf32>
    %cst_19 = arith.constant dense<0.000000e+00> : vector<128x32xf32>
    %34 = tpu.matmul %25, %33, %cst_19 {dimension_numbers = #tpu.dot_dimension_numbers<[1], [0], [0], [1], [0, 0, 1, 1], [], []>} : vector<128x4xf32>, vector<4x32xf32>, vector<128x32xf32> -> vector<128x32xf32>
    %c1_i32 = arith.constant 1 : i32
    %35 = tpu.dynamic_rotate %28 by %c1_i32 dim 0 : vector<128x32xf32>, i32 -> vector<128x32xf32>
    %c127_i32 = arith.constant 127 : i32
    %36 = tpu.dynamic_rotate %34 by %c127_i32 dim 0 : vector<128x32xf32>, i32 -> vector<128x32xf32>
    %37 = tpu.iota {dimensions = array<i32: 0>} : vector<128x32xi32>
    %c0_i32 = arith.constant 0 : i32
    %38 = vector.broadcast %c0_i32 : i32 to vector<128x32xi32>
    %39 = arith.cmpi ne, %37, %38 : vector<128x32xi32>
    %c63_i32 = arith.constant 63 : i32
    %40 = vector.broadcast %c63_i32 : i32 to vector<128x32xi32>
    %41 = arith.cmpi ne, %37, %40 : vector<128x32xi32>
    %c64_i32 = arith.constant 64 : i32
    %42 = vector.broadcast %c64_i32 : i32 to vector<128x32xi32>
    %43 = arith.cmpi ne, %37, %42 : vector<128x32xi32>
    %44 = arith.andi %39, %43 : vector<128x32xi1>
    %c127_i32_20 = arith.constant 127 : i32
    %45 = vector.broadcast %c127_i32_20 : i32 to vector<128x32xi32>
    %46 = arith.cmpi ne, %37, %45 : vector<128x32xi32>
    %47 = arith.andi %41, %46 : vector<128x32xi1>
    %cst_21 = arith.constant 0.000000e+00 : f32
    %48 = vector.broadcast %cst_21 : f32 to vector<128x32xf32>
    %49 = arith.select %44, %35, %48 : vector<128x32xi1>, vector<128x32xf32>
    %50 = arith.addf %31, %49 : vector<128x32xf32>
    %cst_22 = arith.constant 0.000000e+00 : f32
    %51 = vector.broadcast %cst_22 : f32 to vector<128x32xf32>
    %52 = arith.select %47, %36, %51 : vector<128x32xi1>, vector<128x32xf32>
    %53 = arith.addf %50, %52 : vector<128x32xf32>
    %c2_23 = arith.constant 2 : index
    %c0_24 = arith.constant 0 : index
    %54 = vector.load %arg2[%c2_23, %c0_24] : memref<17x128xf32, #tpu.memory_space<vmem>>, vector<1x32xf32>
    %c3 = arith.constant 3 : index
    %c0_25 = arith.constant 0 : index
    %55 = vector.load %arg2[%c3, %c0_25] : memref<17x128xf32, #tpu.memory_space<vmem>>, vector<1x32xf32>
    %cst_26 = arith.constant dense<0.000000e+00> : vector<32xf32>
    %56 = vector.multi_reduction <add>, %53, %cst_26 [0] : vector<128x32xf32> to vector<32xf32>
    %57 = vector.shape_cast %56 : vector<32xf32> to vector<1x32xf32>
    %58 = arith.mulf %53, %53 : vector<128x32xf32>
    %cst_27 = arith.constant dense<0.000000e+00> : vector<32xf32>
    %59 = vector.multi_reduction <add>, %58, %cst_27 [0] : vector<128x32xf32> to vector<32xf32>
    %60 = vector.shape_cast %59 : vector<32xf32> to vector<1x32xf32>
    %cst_28 = arith.constant 7.812500e-03 : f32
    %61 = vector.broadcast %cst_28 : f32 to vector<1x32xf32>
    %62 = arith.mulf %57, %61 : vector<1x32xf32>
    %cst_29 = arith.constant 7.812500e-03 : f32
    %63 = vector.broadcast %cst_29 : f32 to vector<1x32xf32>
    %64 = arith.mulf %60, %63 : vector<1x32xf32>
    %65 = arith.mulf %62, %62 : vector<1x32xf32>
    %66 = arith.subf %64, %65 : vector<1x32xf32>
    %cst_30 = arith.constant 0.000000e+00 : f32
    %67 = vector.broadcast %cst_30 : f32 to vector<1x32xf32>
    %68 = arith.maximumf %66, %67 : vector<1x32xf32>
    %69 = vector.broadcast %62 : vector<1x32xf32> to vector<128x32xf32>
    %70 = arith.subf %53, %69 : vector<128x32xf32>
    %cst_31 = arith.constant 9.99999974E-6 : f32
    %71 = vector.broadcast %cst_31 : f32 to vector<1x32xf32>
    %72 = arith.addf %68, %71 : vector<1x32xf32>
    %73 = math.rsqrt %72 : vector<1x32xf32>
    %74 = arith.mulf %73, %54 : vector<1x32xf32>
    %75 = vector.broadcast %74 : vector<1x32xf32> to vector<128x32xf32>
    %76 = arith.mulf %70, %75 : vector<128x32xf32>
    %77 = vector.broadcast %55 : vector<1x32xf32> to vector<128x32xf32>
    %78 = arith.addf %76, %77 : vector<128x32xf32>
    %cst_32 = arith.constant 5.000000e-01 : f32
    %79 = vector.broadcast %cst_32 : f32 to vector<128x32xf32>
    %80 = arith.mulf %79, %78 : vector<128x32xf32>
    %cst_33 = arith.constant 4.471500e-02 : f32
    %81 = vector.broadcast %cst_33 : f32 to vector<128x32xf32>
    %82 = arith.mulf %81, %78 : vector<128x32xf32>
    %83 = arith.mulf %82, %78 : vector<128x32xf32>
    %84 = arith.mulf %83, %78 : vector<128x32xf32>
    %85 = arith.addf %78, %84 : vector<128x32xf32>
    %cst_34 = arith.constant 0.797884583 : f32
    %86 = vector.broadcast %cst_34 : f32 to vector<128x32xf32>
    %87 = arith.mulf %86, %85 : vector<128x32xf32>
    %88 = math.tanh %87 : vector<128x32xf32>
    %cst_35 = arith.constant 1.000000e+00 : f32
    %89 = vector.broadcast %cst_35 : f32 to vector<128x32xf32>
    %90 = arith.addf %89, %88 : vector<128x32xf32>
    %91 = arith.mulf %80, %90 : vector<128x32xf32>
    %c0_36 = arith.constant 0 : index
    %c0_37 = arith.constant 0 : index
    %92 = vector.load %arg6[%c0_36, %c0_37] : memref<64x128xf32, #tpu.memory_space<vmem>>, vector<64x128xf32>
    %cst_38 = arith.constant dense<0.000000e+00> : vector<64x32xf32>
    %93 = tpu.matmul %92, %91, %cst_38 {dimension_numbers = #tpu.dot_dimension_numbers<[1], [0], [0], [1], [0, 0, 1, 1], [], []>} : vector<64x128xf32>, vector<128x32xf32>, vector<64x32xf32> -> vector<64x32xf32>
    %c0_39 = arith.constant 0 : index
    %c0_40 = arith.constant 0 : index
    %c0_41 = arith.constant 0 : index
    %94 = vector.load %arg4[%c0_39, %c0_40, %c0_41] : memref<3x32x64xf32, #tpu.memory_space<vmem>>, vector<1x32x64xf32>
    %95 = vector.shape_cast %94 : vector<1x32x64xf32> to vector<32x64xf32>
    %cst_42 = arith.constant dense<0.000000e+00> : vector<64x64xf32>
    %96 = tpu.matmul %93, %95, %cst_42 {dimension_numbers = #tpu.dot_dimension_numbers<[1], [0], [0], [1], [0, 0, 1, 1], [], []>} : vector<64x32xf32>, vector<32x64xf32>, vector<64x64xf32> -> vector<64x64xf32>
    %c1_43 = arith.constant 1 : index
    %c0_44 = arith.constant 0 : index
    %c0_45 = arith.constant 0 : index
    %97 = vector.load %arg4[%c1_43, %c0_44, %c0_45] : memref<3x32x64xf32, #tpu.memory_space<vmem>>, vector<1x32x64xf32>
    %98 = vector.shape_cast %97 : vector<1x32x64xf32> to vector<32x64xf32>
    %cst_46 = arith.constant dense<0.000000e+00> : vector<64x64xf32>
    %99 = tpu.matmul %93, %98, %cst_46 {dimension_numbers = #tpu.dot_dimension_numbers<[1], [0], [0], [1], [0, 0, 1, 1], [], []>} : vector<64x32xf32>, vector<32x64xf32>, vector<64x64xf32> -> vector<64x64xf32>
    %c2_47 = arith.constant 2 : index
    %c0_48 = arith.constant 0 : index
    %c0_49 = arith.constant 0 : index
    %100 = vector.load %arg4[%c2_47, %c0_48, %c0_49] : memref<3x32x64xf32, #tpu.memory_space<vmem>>, vector<1x32x64xf32>
    %101 = vector.shape_cast %100 : vector<1x32x64xf32> to vector<32x64xf32>
    %cst_50 = arith.constant dense<0.000000e+00> : vector<64x64xf32>
    %102 = tpu.matmul %93, %101, %cst_50 {dimension_numbers = #tpu.dot_dimension_numbers<[1], [0], [0], [1], [0, 0, 1, 1], [], []>} : vector<64x32xf32>, vector<32x64xf32>, vector<64x64xf32> -> vector<64x64xf32>
    %c1_i32_51 = arith.constant 1 : i32
    %103 = tpu.dynamic_rotate %96 by %c1_i32_51 dim 0 : vector<64x64xf32>, i32 -> vector<64x64xf32>
    %c63_i32_52 = arith.constant 63 : i32
    %104 = tpu.dynamic_rotate %102 by %c63_i32_52 dim 0 : vector<64x64xf32>, i32 -> vector<64x64xf32>
    %105 = tpu.iota {dimensions = array<i32: 0>} : vector<64x64xi32>
    %c0_i32_53 = arith.constant 0 : i32
    %106 = vector.broadcast %c0_i32_53 : i32 to vector<64x64xi32>
    %107 = arith.cmpi ne, %105, %106 : vector<64x64xi32>
    %c31_i32 = arith.constant 31 : i32
    %108 = vector.broadcast %c31_i32 : i32 to vector<64x64xi32>
    %109 = arith.cmpi ne, %105, %108 : vector<64x64xi32>
    %c32_i32 = arith.constant 32 : i32
    %110 = vector.broadcast %c32_i32 : i32 to vector<64x64xi32>
    %111 = arith.cmpi ne, %105, %110 : vector<64x64xi32>
    %112 = arith.andi %107, %111 : vector<64x64xi1>
    %c63_i32_54 = arith.constant 63 : i32
    %113 = vector.broadcast %c63_i32_54 : i32 to vector<64x64xi32>
    %114 = arith.cmpi ne, %105, %113 : vector<64x64xi32>
    %115 = arith.andi %109, %114 : vector<64x64xi1>
    %cst_55 = arith.constant 0.000000e+00 : f32
    %116 = vector.broadcast %cst_55 : f32 to vector<64x64xf32>
    %117 = arith.select %112, %103, %116 : vector<64x64xi1>, vector<64x64xf32>
    %118 = arith.addf %99, %117 : vector<64x64xf32>
    %cst_56 = arith.constant 0.000000e+00 : f32
    %119 = vector.broadcast %cst_56 : f32 to vector<64x64xf32>
    %120 = arith.select %115, %104, %119 : vector<64x64xi1>, vector<64x64xf32>
    %121 = arith.addf %118, %120 : vector<64x64xf32>
    %c4 = arith.constant 4 : index
    %c0_57 = arith.constant 0 : index
    %122 = vector.load %arg2[%c4, %c0_57] : memref<17x128xf32, #tpu.memory_space<vmem>>, vector<1x64xf32>
    %c5 = arith.constant 5 : index
    %c0_58 = arith.constant 0 : index
    %123 = vector.load %arg2[%c5, %c0_58] : memref<17x128xf32, #tpu.memory_space<vmem>>, vector<1x64xf32>
    %cst_59 = arith.constant dense<0.000000e+00> : vector<64xf32>
    %124 = vector.multi_reduction <add>, %121, %cst_59 [0] : vector<64x64xf32> to vector<64xf32>
    %125 = vector.shape_cast %124 : vector<64xf32> to vector<1x64xf32>
    %126 = arith.mulf %121, %121 : vector<64x64xf32>
    %cst_60 = arith.constant dense<0.000000e+00> : vector<64xf32>
    %127 = vector.multi_reduction <add>, %126, %cst_60 [0] : vector<64x64xf32> to vector<64xf32>
    %128 = vector.shape_cast %127 : vector<64xf32> to vector<1x64xf32>
    %cst_61 = arith.constant 1.562500e-02 : f32
    %129 = vector.broadcast %cst_61 : f32 to vector<1x64xf32>
    %130 = arith.mulf %125, %129 : vector<1x64xf32>
    %cst_62 = arith.constant 1.562500e-02 : f32
    %131 = vector.broadcast %cst_62 : f32 to vector<1x64xf32>
    %132 = arith.mulf %128, %131 : vector<1x64xf32>
    %133 = arith.mulf %130, %130 : vector<1x64xf32>
    %134 = arith.subf %132, %133 : vector<1x64xf32>
    %cst_63 = arith.constant 0.000000e+00 : f32
    %135 = vector.broadcast %cst_63 : f32 to vector<1x64xf32>
    %136 = arith.maximumf %134, %135 : vector<1x64xf32>
    %137 = vector.broadcast %130 : vector<1x64xf32> to vector<64x64xf32>
    %138 = arith.subf %121, %137 : vector<64x64xf32>
    %cst_64 = arith.constant 9.99999974E-6 : f32
    %139 = vector.broadcast %cst_64 : f32 to vector<1x64xf32>
    %140 = arith.addf %136, %139 : vector<1x64xf32>
    %141 = math.rsqrt %140 : vector<1x64xf32>
    %142 = arith.mulf %141, %122 : vector<1x64xf32>
    %143 = vector.broadcast %142 : vector<1x64xf32> to vector<64x64xf32>
    %144 = arith.mulf %138, %143 : vector<64x64xf32>
    %145 = vector.broadcast %123 : vector<1x64xf32> to vector<64x64xf32>
    %146 = arith.addf %144, %145 : vector<64x64xf32>
    %cst_65 = arith.constant 5.000000e-01 : f32
    %147 = vector.broadcast %cst_65 : f32 to vector<64x64xf32>
    %148 = arith.mulf %147, %146 : vector<64x64xf32>
    %cst_66 = arith.constant 4.471500e-02 : f32
    %149 = vector.broadcast %cst_66 : f32 to vector<64x64xf32>
    %150 = arith.mulf %149, %146 : vector<64x64xf32>
    %151 = arith.mulf %150, %146 : vector<64x64xf32>
    %152 = arith.mulf %151, %146 : vector<64x64xf32>
    %153 = arith.addf %146, %152 : vector<64x64xf32>
    %cst_67 = arith.constant 0.797884583 : f32
    %154 = vector.broadcast %cst_67 : f32 to vector<64x64xf32>
    %155 = arith.mulf %154, %153 : vector<64x64xf32>
    %156 = math.tanh %155 : vector<64x64xf32>
    %cst_68 = arith.constant 1.000000e+00 : f32
    %157 = vector.broadcast %cst_68 : f32 to vector<64x64xf32>
    %158 = arith.addf %157, %156 : vector<64x64xf32>
    %159 = arith.mulf %148, %158 : vector<64x64xf32>
    %c0_69 = arith.constant 0 : index
    %c0_70 = arith.constant 0 : index
    %160 = vector.load %arg7[%c0_69, %c0_70] : memref<32x64xf32, #tpu.memory_space<vmem>>, vector<32x64xf32>
    %cst_71 = arith.constant dense<0.000000e+00> : vector<32x64xf32>
    %161 = tpu.matmul %160, %159, %cst_71 {dimension_numbers = #tpu.dot_dimension_numbers<[1], [0], [0], [1], [0, 0, 1, 1], [], []>} : vector<32x64xf32>, vector<64x64xf32>, vector<32x64xf32> -> vector<32x64xf32>
    %c0_72 = arith.constant 0 : index
    %c0_73 = arith.constant 0 : index
    %c0_74 = arith.constant 0 : index
    %162 = vector.load %arg5[%c0_72, %c0_73, %c0_74] : memref<3x64x128xf32, #tpu.memory_space<vmem>>, vector<1x64x128xf32>
    %163 = vector.shape_cast %162 : vector<1x64x128xf32> to vector<64x128xf32>
    %cst_75 = arith.constant dense<0.000000e+00> : vector<32x128xf32>
    %164 = tpu.matmul %161, %163, %cst_75 {dimension_numbers = #tpu.dot_dimension_numbers<[1], [0], [0], [1], [0, 0, 1, 1], [], []>} : vector<32x64xf32>, vector<64x128xf32>, vector<32x128xf32> -> vector<32x128xf32>
    %c1_76 = arith.constant 1 : index
    %c0_77 = arith.constant 0 : index
    %c0_78 = arith.constant 0 : index
    %165 = vector.load %arg5[%c1_76, %c0_77, %c0_78] : memref<3x64x128xf32, #tpu.memory_space<vmem>>, vector<1x64x128xf32>
    %166 = vector.shape_cast %165 : vector<1x64x128xf32> to vector<64x128xf32>
    %cst_79 = arith.constant dense<0.000000e+00> : vector<32x128xf32>
    %167 = tpu.matmul %161, %166, %cst_79 {dimension_numbers = #tpu.dot_dimension_numbers<[1], [0], [0], [1], [0, 0, 1, 1], [], []>} : vector<32x64xf32>, vector<64x128xf32>, vector<32x128xf32> -> vector<32x128xf32>
    %c2_80 = arith.constant 2 : index
    %c0_81 = arith.constant 0 : index
    %c0_82 = arith.constant 0 : index
    %168 = vector.load %arg5[%c2_80, %c0_81, %c0_82] : memref<3x64x128xf32, #tpu.memory_space<vmem>>, vector<1x64x128xf32>
    %169 = vector.shape_cast %168 : vector<1x64x128xf32> to vector<64x128xf32>
    %cst_83 = arith.constant dense<0.000000e+00> : vector<32x128xf32>
    %170 = tpu.matmul %161, %169, %cst_83 {dimension_numbers = #tpu.dot_dimension_numbers<[1], [0], [0], [1], [0, 0, 1, 1], [], []>} : vector<32x64xf32>, vector<64x128xf32>, vector<32x128xf32> -> vector<32x128xf32>
    %c1_i32_84 = arith.constant 1 : i32
    %171 = tpu.dynamic_rotate %164 by %c1_i32_84 dim 0 : vector<32x128xf32>, i32 -> vector<32x128xf32>
    %c31_i32_85 = arith.constant 31 : i32
    %172 = tpu.dynamic_rotate %170 by %c31_i32_85 dim 0 : vector<32x128xf32>, i32 -> vector<32x128xf32>
    %173 = tpu.iota {dimensions = array<i32: 0>} : vector<32x128xi32>
    %c0_i32_86 = arith.constant 0 : i32
    %174 = vector.broadcast %c0_i32_86 : i32 to vector<32x128xi32>
    %175 = arith.cmpi ne, %173, %174 : vector<32x128xi32>
    %c15_i32 = arith.constant 15 : i32
    %176 = vector.broadcast %c15_i32 : i32 to vector<32x128xi32>
    %177 = arith.cmpi ne, %173, %176 : vector<32x128xi32>
    %c16_i32 = arith.constant 16 : i32
    %178 = vector.broadcast %c16_i32 : i32 to vector<32x128xi32>
    %179 = arith.cmpi ne, %173, %178 : vector<32x128xi32>
    %180 = arith.andi %175, %179 : vector<32x128xi1>
    %c31_i32_87 = arith.constant 31 : i32
    %181 = vector.broadcast %c31_i32_87 : i32 to vector<32x128xi32>
    %182 = arith.cmpi ne, %173, %181 : vector<32x128xi32>
    %183 = arith.andi %177, %182 : vector<32x128xi1>
    %cst_88 = arith.constant 0.000000e+00 : f32
    %184 = vector.broadcast %cst_88 : f32 to vector<32x128xf32>
    %185 = arith.select %180, %171, %184 : vector<32x128xi1>, vector<32x128xf32>
    %186 = arith.addf %167, %185 : vector<32x128xf32>
    %cst_89 = arith.constant 0.000000e+00 : f32
    %187 = vector.broadcast %cst_89 : f32 to vector<32x128xf32>
    %188 = arith.select %183, %172, %187 : vector<32x128xi1>, vector<32x128xf32>
    %189 = arith.addf %186, %188 : vector<32x128xf32>
    %c6 = arith.constant 6 : index
    %c0_90 = arith.constant 0 : index
    %190 = vector.load %arg2[%c6, %c0_90] : memref<17x128xf32, #tpu.memory_space<vmem>>, vector<1x128xf32>
    %c7 = arith.constant 7 : index
    %c0_91 = arith.constant 0 : index
    %191 = vector.load %arg2[%c7, %c0_91] : memref<17x128xf32, #tpu.memory_space<vmem>>, vector<1x128xf32>
    %cst_92 = arith.constant dense<0.000000e+00> : vector<128xf32>
    %192 = vector.multi_reduction <add>, %189, %cst_92 [0] : vector<32x128xf32> to vector<128xf32>
    %193 = vector.shape_cast %192 : vector<128xf32> to vector<1x128xf32>
    %194 = arith.mulf %189, %189 : vector<32x128xf32>
    %cst_93 = arith.constant dense<0.000000e+00> : vector<128xf32>
    %195 = vector.multi_reduction <add>, %194, %cst_93 [0] : vector<32x128xf32> to vector<128xf32>
    %196 = vector.shape_cast %195 : vector<128xf32> to vector<1x128xf32>
    %cst_94 = arith.constant 3.125000e-02 : f32
    %197 = vector.broadcast %cst_94 : f32 to vector<1x128xf32>
    %198 = arith.mulf %193, %197 : vector<1x128xf32>
    %cst_95 = arith.constant 3.125000e-02 : f32
    %199 = vector.broadcast %cst_95 : f32 to vector<1x128xf32>
    %200 = arith.mulf %196, %199 : vector<1x128xf32>
    %201 = arith.mulf %198, %198 : vector<1x128xf32>
    %202 = arith.subf %200, %201 : vector<1x128xf32>
    %cst_96 = arith.constant 0.000000e+00 : f32
    %203 = vector.broadcast %cst_96 : f32 to vector<1x128xf32>
    %204 = arith.maximumf %202, %203 : vector<1x128xf32>
    %205 = vector.broadcast %198 : vector<1x128xf32> to vector<32x128xf32>
    %206 = arith.subf %189, %205 : vector<32x128xf32>
    %cst_97 = arith.constant 9.99999974E-6 : f32
    %207 = vector.broadcast %cst_97 : f32 to vector<1x128xf32>
    %208 = arith.addf %204, %207 : vector<1x128xf32>
    %209 = math.rsqrt %208 : vector<1x128xf32>
    %210 = arith.mulf %209, %190 : vector<1x128xf32>
    %211 = vector.broadcast %210 : vector<1x128xf32> to vector<32x128xf32>
    %212 = arith.mulf %206, %211 : vector<32x128xf32>
    %213 = vector.broadcast %191 : vector<1x128xf32> to vector<32x128xf32>
    %214 = arith.addf %212, %213 : vector<32x128xf32>
    %cst_98 = arith.constant 5.000000e-01 : f32
    %215 = vector.broadcast %cst_98 : f32 to vector<32x128xf32>
    %216 = arith.mulf %215, %214 : vector<32x128xf32>
    %cst_99 = arith.constant 4.471500e-02 : f32
    %217 = vector.broadcast %cst_99 : f32 to vector<32x128xf32>
    %218 = arith.mulf %217, %214 : vector<32x128xf32>
    %219 = arith.mulf %218, %214 : vector<32x128xf32>
    %220 = arith.mulf %219, %214 : vector<32x128xf32>
    %221 = arith.addf %214, %220 : vector<32x128xf32>
    %cst_100 = arith.constant 0.797884583 : f32
    %222 = vector.broadcast %cst_100 : f32 to vector<32x128xf32>
    %223 = arith.mulf %222, %221 : vector<32x128xf32>
    %224 = math.tanh %223 : vector<32x128xf32>
    %cst_101 = arith.constant 1.000000e+00 : f32
    %225 = vector.broadcast %cst_101 : f32 to vector<32x128xf32>
    %226 = arith.addf %225, %224 : vector<32x128xf32>
    %227 = arith.mulf %216, %226 : vector<32x128xf32>
    %c0_102 = arith.constant 0 : index
    %c0_103 = arith.constant 0 : index
    %228 = vector.load %arg8[%c0_102, %c0_103] : memref<16x32xf32, #tpu.memory_space<vmem>>, vector<16x32xf32>
    %cst_104 = arith.constant dense<0.000000e+00> : vector<16x128xf32>
    %229 = tpu.matmul %228, %227, %cst_104 {dimension_numbers = #tpu.dot_dimension_numbers<[1], [0], [0], [1], [0, 0, 1, 1], [], []>} : vector<16x32xf32>, vector<32x128xf32>, vector<16x128xf32> -> vector<16x128xf32>
    %c0_105 = arith.constant 0 : index
    %c0_106 = arith.constant 0 : index
    %230 = vector.load %arg9[%c0_105, %c0_106] : memref<8x16xf32, #tpu.memory_space<vmem>>, vector<8x16xf32>
    %cst_107 = arith.constant dense<0.000000e+00> : vector<8x128xf32>
    %231 = tpu.matmul %230, %229, %cst_107 {dimension_numbers = #tpu.dot_dimension_numbers<[1], [0], [0], [1], [0, 0, 1, 1], [], []>} : vector<8x16xf32>, vector<16x128xf32>, vector<8x128xf32> -> vector<8x128xf32>
    %c0_108 = arith.constant 0 : index
    %c0_109 = arith.constant 0 : index
    %232 = vector.load %arg10[%c0_108, %c0_109] : memref<128x128xf32, #tpu.memory_space<vmem>>, vector<128x128xf32>
    %cst_110 = arith.constant dense<0.000000e+00> : vector<8x128xf32>
    %233 = tpu.matmul %231, %232, %cst_110 {dimension_numbers = #tpu.dot_dimension_numbers<[1], [0], [0], [1], [0, 0, 1, 1], [], []>} : vector<8x128xf32>, vector<128x128xf32>, vector<8x128xf32> -> vector<8x128xf32>
    %c0_111 = arith.constant 0 : index
    %c0_112 = arith.constant 0 : index
    %234 = vector.load %arg11[%c0_111, %c0_112] : memref<8x128xf32, #tpu.memory_space<vmem>>, vector<8x128xf32>
    %235 = arith.mulf %233, %234 : vector<8x128xf32>
    %c0_113 = arith.constant 0 : index
    %c0_114 = arith.constant 0 : index
    %236 = vector.load %arg12[%c0_113, %c0_114] : memref<128x32xf32, #tpu.memory_space<vmem>>, vector<128x32xf32>
    %cst_115 = arith.constant dense<0.000000e+00> : vector<8x32xf32>
    %237 = tpu.matmul %235, %236, %cst_115 {dimension_numbers = #tpu.dot_dimension_numbers<[1], [0], [0], [1], [0, 0, 1, 1], [], []>} : vector<8x128xf32>, vector<128x32xf32>, vector<8x32xf32> -> vector<8x32xf32>
    %c0_116 = arith.constant 0 : index
    %c0_117 = arith.constant 0 : index
    %238 = vector.load %arg13[%c0_116, %c0_117] : memref<2x8xf32, #tpu.memory_space<vmem>>, vector<2x8xf32>
    %cst_118 = arith.constant dense<0.000000e+00> : vector<2x32xf32>
    %239 = tpu.matmul %238, %237, %cst_118 {dimension_numbers = #tpu.dot_dimension_numbers<[1], [0], [0], [1], [0, 0, 1, 1], [], []>} : vector<2x8xf32>, vector<8x32xf32>, vector<2x32xf32> -> vector<2x32xf32>
    %c8 = arith.constant 8 : index
    %c0_119 = arith.constant 0 : index
    %240 = vector.load %arg2[%c8, %c0_119] : memref<17x128xf32, #tpu.memory_space<vmem>>, vector<1x32xf32>
    %241 = vector.broadcast %240 : vector<1x32xf32> to vector<2x32xf32>
    %242 = arith.addf %239, %241 : vector<2x32xf32>
    %c0_120 = arith.constant 0 : index
    %c0_121 = arith.constant 0 : index
    %243 = vector.load %arg27[%c0_120, %c0_121] : memref<2x32xf32, #tpu.memory_space<vmem>>, vector<2x32xf32>
    tpu.vector_store %arg27[%c0_120, %c0_121], %242 {strides = array<i32>} : memref<2x32xf32, #tpu.memory_space<vmem>>, vector<2x32xf32>,
    %244 = vector.extract_strided_slice %242 {offsets = [0, 0], sizes = [2, 16], strides = [1, 1]} : vector<2x32xf32> to vector<2x16xf32>
    %245 = vector.extract_strided_slice %242 {offsets = [0, 16], sizes = [2, 16], strides = [1, 1]} : vector<2x32xf32> to vector<2x16xf32>
    %cst_122 = arith.constant -1.000000e+01 : f32
    %cst_123 = arith.constant 1.000000e+01 : f32
    %246 = vector.broadcast %cst_122 : f32 to vector<2x16xf32>
    %247 = arith.maximumf %246, %245 : vector<2x16xf32>
    %248 = vector.broadcast %cst_123 : f32 to vector<2x16xf32>
    %249 = arith.minimumf %248, %247 : vector<2x16xf32>
    %cst_124 = arith.constant 5.000000e-01 : f32
    %250 = vector.broadcast %cst_124 : f32 to vector<2x16xf32>
    %251 = arith.mulf %250, %249 : vector<2x16xf32>
    %252 = math.exp %251 : vector<2x16xf32>
    %cst_125 = arith.constant 9.99999974E-6 : f32
    %cst_126 = arith.constant 1.000000e+01 : f32
    %253 = vector.broadcast %cst_125 : f32 to vector<2x16xf32>
    %254 = arith.maximumf %253, %252 : vector<2x16xf32>
    %255 = vector.broadcast %cst_126 : f32 to vector<2x16xf32>
    %256 = arith.minimumf %255, %254 : vector<2x16xf32>
    %c0_127 = arith.constant 0 : index
    %c0_128 = arith.constant 0 : index
    %257 = vector.load %arg1[%c0_127, %c0_128] : memref<2x16xf32, #tpu.memory_space<vmem>>, vector<2x16xf32>
    %258 = arith.mulf %257, %256 : vector<2x16xf32>
    %259 = arith.addf %244, %258 : vector<2x16xf32>
    %c0_129 = arith.constant 0 : index
    %c0_130 = arith.constant 0 : index
    %260 = vector.load %arg14[%c0_129, %c0_130] : memref<16x128xf32, #tpu.memory_space<vmem>>, vector<16x128xf32>
    %cst_131 = arith.constant dense<0.000000e+00> : vector<2x128xf32>
    %261 = tpu.matmul %259, %260, %cst_131 {dimension_numbers = #tpu.dot_dimension_numbers<[1], [0], [0], [1], [0, 0, 1, 1], [], []>} : vector<2x16xf32>, vector<16x128xf32>, vector<2x128xf32> -> vector<2x128xf32>
    %c9 = arith.constant 9 : index
    %c0_132 = arith.constant 0 : index
    %262 = vector.load %arg2[%c9, %c0_132] : memref<17x128xf32, #tpu.memory_space<vmem>>, vector<1x128xf32>
    %263 = vector.broadcast %262 : vector<1x128xf32> to vector<2x128xf32>
    %264 = arith.addf %261, %263 : vector<2x128xf32>
    %cst_133 = arith.constant 0.000000e+00 : f32
    %265 = vector.broadcast %cst_133 : f32 to vector<2x128xf32>
    %266 = arith.maximumf %264, %265 : vector<2x128xf32>
    %c0_134 = arith.constant 0 : index
    %c0_135 = arith.constant 0 : index
    %267 = vector.load %arg15[%c0_134, %c0_135] : memref<16x2xf32, #tpu.memory_space<vmem>>, vector<16x2xf32>
    %cst_136 = arith.constant dense<0.000000e+00> : vector<16x128xf32>
    %268 = tpu.matmul %267, %266, %cst_136 {dimension_numbers = #tpu.dot_dimension_numbers<[1], [0], [0], [1], [0, 0, 1, 1], [], []>} : vector<16x2xf32>, vector<2x128xf32>, vector<16x128xf32> -> vector<16x128xf32>
    %c0_137 = arith.constant 0 : index
    %c0_138 = arith.constant 0 : index
    %c0_139 = arith.constant 0 : index
    %269 = vector.load %arg16[%c0_137, %c0_138, %c0_139] : memref<3x128x64xf32, #tpu.memory_space<vmem>>, vector<1x128x64xf32>
    %270 = vector.shape_cast %269 : vector<1x128x64xf32> to vector<128x64xf32>
    %cst_140 = arith.constant dense<0.000000e+00> : vector<16x64xf32>
    %271 = tpu.matmul %268, %270, %cst_140 {dimension_numbers = #tpu.dot_dimension_numbers<[1], [0], [0], [1], [0, 0, 1, 1], [], []>} : vector<16x128xf32>, vector<128x64xf32>, vector<16x64xf32> -> vector<16x64xf32>
    %c0_141 = arith.constant 0 : index
    %c0_142 = arith.constant 0 : index
    %c0_143 = arith.constant 0 : index
    %272 = vector.load %arg17[%c0_141, %c0_142, %c0_143] : memref<3x128x64xf32, #tpu.memory_space<vmem>>, vector<1x128x64xf32>
    %273 = vector.shape_cast %272 : vector<1x128x64xf32> to vector<128x64xf32>
    %cst_144 = arith.constant dense<0.000000e+00> : vector<16x64xf32>
    %274 = tpu.matmul %229, %273, %cst_144 {dimension_numbers = #tpu.dot_dimension_numbers<[1], [0], [0], [1], [0, 0, 1, 1], [], []>} : vector<16x128xf32>, vector<128x64xf32>, vector<16x64xf32> -> vector<16x64xf32>
    %275 = arith.addf %271, %274 : vector<16x64xf32>
    %c1_145 = arith.constant 1 : index
    %c0_146 = arith.constant 0 : index
    %c0_147 = arith.constant 0 : index
    %276 = vector.load %arg16[%c1_145, %c0_146, %c0_147] : memref<3x128x64xf32, #tpu.memory_space<vmem>>, vector<1x128x64xf32>
    %277 = vector.shape_cast %276 : vector<1x128x64xf32> to vector<128x64xf32>
    %cst_148 = arith.constant dense<0.000000e+00> : vector<16x64xf32>
    %278 = tpu.matmul %268, %277, %cst_148 {dimension_numbers = #tpu.dot_dimension_numbers<[1], [0], [0], [1], [0, 0, 1, 1], [], []>} : vector<16x128xf32>, vector<128x64xf32>, vector<16x64xf32> -> vector<16x64xf32>
    %c1_149 = arith.constant 1 : index
    %c0_150 = arith.constant 0 : index
    %c0_151 = arith.constant 0 : index
    %279 = vector.load %arg17[%c1_149, %c0_150, %c0_151] : memref<3x128x64xf32, #tpu.memory_space<vmem>>, vector<1x128x64xf32>
    %280 = vector.shape_cast %279 : vector<1x128x64xf32> to vector<128x64xf32>
    %cst_152 = arith.constant dense<0.000000e+00> : vector<16x64xf32>
    %281 = tpu.matmul %229, %280, %cst_152 {dimension_numbers = #tpu.dot_dimension_numbers<[1], [0], [0], [1], [0, 0, 1, 1], [], []>} : vector<16x128xf32>, vector<128x64xf32>, vector<16x64xf32> -> vector<16x64xf32>
    %282 = arith.addf %278, %281 : vector<16x64xf32>
    %c2_153 = arith.constant 2 : index
    %c0_154 = arith.constant 0 : index
    %c0_155 = arith.constant 0 : index
    %283 = vector.load %arg16[%c2_153, %c0_154, %c0_155] : memref<3x128x64xf32, #tpu.memory_space<vmem>>, vector<1x128x64xf32>
    %284 = vector.shape_cast %283 : vector<1x128x64xf32> to vector<128x64xf32>
    %cst_156 = arith.constant dense<0.000000e+00> : vector<16x64xf32>
    %285 = tpu.matmul %268, %284, %cst_156 {dimension_numbers = #tpu.dot_dimension_numbers<[1], [0], [0], [1], [0, 0, 1, 1], [], []>} : vector<16x128xf32>, vector<128x64xf32>, vector<16x64xf32> -> vector<16x64xf32>
    %c2_157 = arith.constant 2 : index
    %c0_158 = arith.constant 0 : index
    %c0_159 = arith.constant 0 : index
    %286 = vector.load %arg17[%c2_157, %c0_158, %c0_159] : memref<3x128x64xf32, #tpu.memory_space<vmem>>, vector<1x128x64xf32>
    %287 = vector.shape_cast %286 : vector<1x128x64xf32> to vector<128x64xf32>
    %cst_160 = arith.constant dense<0.000000e+00> : vector<16x64xf32>
    %288 = tpu.matmul %229, %287, %cst_160 {dimension_numbers = #tpu.dot_dimension_numbers<[1], [0], [0], [1], [0, 0, 1, 1], [], []>} : vector<16x128xf32>, vector<128x64xf32>, vector<16x64xf32> -> vector<16x64xf32>
    %289 = arith.addf %285, %288 : vector<16x64xf32>
    %c1_i32_161 = arith.constant 1 : i32
    %290 = tpu.dynamic_rotate %275 by %c1_i32_161 dim 0 : vector<16x64xf32>, i32 -> vector<16x64xf32>
    %c15_i32_162 = arith.constant 15 : i32
    %291 = tpu.dynamic_rotate %289 by %c15_i32_162 dim 0 : vector<16x64xf32>, i32 -> vector<16x64xf32>
    %292 = tpu.iota {dimensions = array<i32: 0>} : vector<16x64xi32>
    %c0_i32_163 = arith.constant 0 : i32
    %293 = vector.broadcast %c0_i32_163 : i32 to vector<16x64xi32>
    %294 = arith.cmpi ne, %292, %293 : vector<16x64xi32>
    %c7_i32 = arith.constant 7 : i32
    %295 = vector.broadcast %c7_i32 : i32 to vector<16x64xi32>
    %296 = arith.cmpi ne, %292, %295 : vector<16x64xi32>
    %c8_i32 = arith.constant 8 : i32
    %297 = vector.broadcast %c8_i32 : i32 to vector<16x64xi32>
    %298 = arith.cmpi ne, %292, %297 : vector<16x64xi32>
    %299 = arith.andi %294, %298 : vector<16x64xi1>
    %c15_i32_164 = arith.constant 15 : i32
    %300 = vector.broadcast %c15_i32_164 : i32 to vector<16x64xi32>
    %301 = arith.cmpi ne, %292, %300 : vector<16x64xi32>
    %302 = arith.andi %296, %301 : vector<16x64xi1>
    %cst_165 = arith.constant 0.000000e+00 : f32
    %303 = vector.broadcast %cst_165 : f32 to vector<16x64xf32>
    %304 = arith.select %299, %290, %303 : vector<16x64xi1>, vector<16x64xf32>
    %305 = arith.addf %282, %304 : vector<16x64xf32>
    %cst_166 = arith.constant 0.000000e+00 : f32
    %306 = vector.broadcast %cst_166 : f32 to vector<16x64xf32>
    %307 = arith.select %302, %291, %306 : vector<16x64xi1>, vector<16x64xf32>
    %308 = arith.addf %305, %307 : vector<16x64xf32>
    %c10 = arith.constant 10 : index
    %c0_167 = arith.constant 0 : index
    %309 = vector.load %arg2[%c10, %c0_167] : memref<17x128xf32, #tpu.memory_space<vmem>>, vector<1x64xf32>
    %c11 = arith.constant 11 : index
    %c0_168 = arith.constant 0 : index
    %310 = vector.load %arg2[%c11, %c0_168] : memref<17x128xf32, #tpu.memory_space<vmem>>, vector<1x64xf32>
    %cst_169 = arith.constant dense<0.000000e+00> : vector<64xf32>
    %311 = vector.multi_reduction <add>, %308, %cst_169 [0] : vector<16x64xf32> to vector<64xf32>
    %312 = vector.shape_cast %311 : vector<64xf32> to vector<1x64xf32>
    %313 = arith.mulf %308, %308 : vector<16x64xf32>
    %cst_170 = arith.constant dense<0.000000e+00> : vector<64xf32>
    %314 = vector.multi_reduction <add>, %313, %cst_170 [0] : vector<16x64xf32> to vector<64xf32>
    %315 = vector.shape_cast %314 : vector<64xf32> to vector<1x64xf32>
    %cst_171 = arith.constant 6.250000e-02 : f32
    %316 = vector.broadcast %cst_171 : f32 to vector<1x64xf32>
    %317 = arith.mulf %312, %316 : vector<1x64xf32>
    %cst_172 = arith.constant 6.250000e-02 : f32
    %318 = vector.broadcast %cst_172 : f32 to vector<1x64xf32>
    %319 = arith.mulf %315, %318 : vector<1x64xf32>
    %320 = arith.mulf %317, %317 : vector<1x64xf32>
    %321 = arith.subf %319, %320 : vector<1x64xf32>
    %cst_173 = arith.constant 0.000000e+00 : f32
    %322 = vector.broadcast %cst_173 : f32 to vector<1x64xf32>
    %323 = arith.maximumf %321, %322 : vector<1x64xf32>
    %324 = vector.broadcast %317 : vector<1x64xf32> to vector<16x64xf32>
    %325 = arith.subf %308, %324 : vector<16x64xf32>
    %cst_174 = arith.constant 9.99999974E-6 : f32
    %326 = vector.broadcast %cst_174 : f32 to vector<1x64xf32>
    %327 = arith.addf %323, %326 : vector<1x64xf32>
    %328 = math.rsqrt %327 : vector<1x64xf32>
    %329 = arith.mulf %328, %309 : vector<1x64xf32>
    %330 = vector.broadcast %329 : vector<1x64xf32> to vector<16x64xf32>
    %331 = arith.mulf %325, %330 : vector<16x64xf32>
    %332 = vector.broadcast %310 : vector<1x64xf32> to vector<16x64xf32>
    %333 = arith.addf %331, %332 : vector<16x64xf32>
    %cst_175 = arith.constant 5.000000e-01 : f32
    %334 = vector.broadcast %cst_175 : f32 to vector<16x64xf32>
    %335 = arith.mulf %334, %333 : vector<16x64xf32>
    %cst_176 = arith.constant 4.471500e-02 : f32
    %336 = vector.broadcast %cst_176 : f32 to vector<16x64xf32>
    %337 = arith.mulf %336, %333 : vector<16x64xf32>
    %338 = arith.mulf %337, %333 : vector<16x64xf32>
    %339 = arith.mulf %338, %333 : vector<16x64xf32>
    %340 = arith.addf %333, %339 : vector<16x64xf32>
    %cst_177 = arith.constant 0.797884583 : f32
    %341 = vector.broadcast %cst_177 : f32 to vector<16x64xf32>
    %342 = arith.mulf %341, %340 : vector<16x64xf32>
    %343 = math.tanh %342 : vector<16x64xf32>
    %cst_178 = arith.constant 1.000000e+00 : f32
    %344 = vector.broadcast %cst_178 : f32 to vector<16x64xf32>
    %345 = arith.addf %344, %343 : vector<16x64xf32>
    %346 = arith.mulf %335, %345 : vector<16x64xf32>
    %c0_179 = arith.constant 0 : index
    %c0_180 = arith.constant 0 : index
    %347 = vector.load %arg22[%c0_179, %c0_180] : memref<32x16xf32, #tpu.memory_space<vmem>>, vector<32x16xf32>
    %cst_181 = arith.constant dense<0.000000e+00> : vector<32x64xf32>
    %348 = tpu.matmul %347, %346, %cst_181 {dimension_numbers = #tpu.dot_dimension_numbers<[1], [0], [0], [1], [0, 0, 1, 1], [], []>} : vector<32x16xf32>, vector<16x64xf32>, vector<32x64xf32> -> vector<32x64xf32>
    %c0_182 = arith.constant 0 : index
    %c0_183 = arith.constant 0 : index
    %c0_184 = arith.constant 0 : index
    %349 = vector.load %arg18[%c0_182, %c0_183, %c0_184] : memref<3x64x32xf32, #tpu.memory_space<vmem>>, vector<1x64x32xf32>
    %350 = vector.shape_cast %349 : vector<1x64x32xf32> to vector<64x32xf32>
    %cst_185 = arith.constant dense<0.000000e+00> : vector<32x32xf32>
    %351 = tpu.matmul %348, %350, %cst_185 {dimension_numbers = #tpu.dot_dimension_numbers<[1], [0], [0], [1], [0, 0, 1, 1], [], []>} : vector<32x64xf32>, vector<64x32xf32>, vector<32x32xf32> -> vector<32x32xf32>
    %c0_186 = arith.constant 0 : index
    %c0_187 = arith.constant 0 : index
    %c0_188 = arith.constant 0 : index
    %352 = vector.load %arg19[%c0_186, %c0_187, %c0_188] : memref<3x64x32xf32, #tpu.memory_space<vmem>>, vector<1x64x32xf32>
    %353 = vector.shape_cast %352 : vector<1x64x32xf32> to vector<64x32xf32>
    %cst_189 = arith.constant dense<0.000000e+00> : vector<32x32xf32>
    %354 = tpu.matmul %161, %353, %cst_189 {dimension_numbers = #tpu.dot_dimension_numbers<[1], [0], [0], [1], [0, 0, 1, 1], [], []>} : vector<32x64xf32>, vector<64x32xf32>, vector<32x32xf32> -> vector<32x32xf32>
    %355 = arith.addf %351, %354 : vector<32x32xf32>
    %c1_190 = arith.constant 1 : index
    %c0_191 = arith.constant 0 : index
    %c0_192 = arith.constant 0 : index
    %356 = vector.load %arg18[%c1_190, %c0_191, %c0_192] : memref<3x64x32xf32, #tpu.memory_space<vmem>>, vector<1x64x32xf32>
    %357 = vector.shape_cast %356 : vector<1x64x32xf32> to vector<64x32xf32>
    %cst_193 = arith.constant dense<0.000000e+00> : vector<32x32xf32>
    %358 = tpu.matmul %348, %357, %cst_193 {dimension_numbers = #tpu.dot_dimension_numbers<[1], [0], [0], [1], [0, 0, 1, 1], [], []>} : vector<32x64xf32>, vector<64x32xf32>, vector<32x32xf32> -> vector<32x32xf32>
    %c1_194 = arith.constant 1 : index
    %c0_195 = arith.constant 0 : index
    %c0_196 = arith.constant 0 : index
    %359 = vector.load %arg19[%c1_194, %c0_195, %c0_196] : memref<3x64x32xf32, #tpu.memory_space<vmem>>, vector<1x64x32xf32>
    %360 = vector.shape_cast %359 : vector<1x64x32xf32> to vector<64x32xf32>
    %cst_197 = arith.constant dense<0.000000e+00> : vector<32x32xf32>
    %361 = tpu.matmul %161, %360, %cst_197 {dimension_numbers = #tpu.dot_dimension_numbers<[1], [0], [0], [1], [0, 0, 1, 1], [], []>} : vector<32x64xf32>, vector<64x32xf32>, vector<32x32xf32> -> vector<32x32xf32>
    %362 = arith.addf %358, %361 : vector<32x32xf32>
    %c2_198 = arith.constant 2 : index
    %c0_199 = arith.constant 0 : index
    %c0_200 = arith.constant 0 : index
    %363 = vector.load %arg18[%c2_198, %c0_199, %c0_200] : memref<3x64x32xf32, #tpu.memory_space<vmem>>, vector<1x64x32xf32>
    %364 = vector.shape_cast %363 : vector<1x64x32xf32> to vector<64x32xf32>
    %cst_201 = arith.constant dense<0.000000e+00> : vector<32x32xf32>
    %365 = tpu.matmul %348, %364, %cst_201 {dimension_numbers = #tpu.dot_dimension_numbers<[1], [0], [0], [1], [0, 0, 1, 1], [], []>} : vector<32x64xf32>, vector<64x32xf32>, vector<32x32xf32> -> vector<32x32xf32>
    %c2_202 = arith.constant 2 : index
    %c0_203 = arith.constant 0 : index
    %c0_204 = arith.constant 0 : index
    %366 = vector.load %arg19[%c2_202, %c0_203, %c0_204] : memref<3x64x32xf32, #tpu.memory_space<vmem>>, vector<1x64x32xf32>
    %367 = vector.shape_cast %366 : vector<1x64x32xf32> to vector<64x32xf32>
    %cst_205 = arith.constant dense<0.000000e+00> : vector<32x32xf32>
    %368 = tpu.matmul %161, %367, %cst_205 {dimension_numbers = #tpu.dot_dimension_numbers<[1], [0], [0], [1], [0, 0, 1, 1], [], []>} : vector<32x64xf32>, vector<64x32xf32>, vector<32x32xf32> -> vector<32x32xf32>
    %369 = arith.addf %365, %368 : vector<32x32xf32>
    %c1_i32_206 = arith.constant 1 : i32
    %370 = tpu.dynamic_rotate %355 by %c1_i32_206 dim 0 : vector<32x32xf32>, i32 -> vector<32x32xf32>
    %c31_i32_207 = arith.constant 31 : i32
    %371 = tpu.dynamic_rotate %369 by %c31_i32_207 dim 0 : vector<32x32xf32>, i32 -> vector<32x32xf32>
    %372 = tpu.iota {dimensions = array<i32: 0>} : vector<32x32xi32>
    %c0_i32_208 = arith.constant 0 : i32
    %373 = vector.broadcast %c0_i32_208 : i32 to vector<32x32xi32>
    %374 = arith.cmpi ne, %372, %373 : vector<32x32xi32>
    %c15_i32_209 = arith.constant 15 : i32
    %375 = vector.broadcast %c15_i32_209 : i32 to vector<32x32xi32>
    %376 = arith.cmpi ne, %372, %375 : vector<32x32xi32>
    %c16_i32_210 = arith.constant 16 : i32
    %377 = vector.broadcast %c16_i32_210 : i32 to vector<32x32xi32>
    %378 = arith.cmpi ne, %372, %377 : vector<32x32xi32>
    %379 = arith.andi %374, %378 : vector<32x32xi1>
    %c31_i32_211 = arith.constant 31 : i32
    %380 = vector.broadcast %c31_i32_211 : i32 to vector<32x32xi32>
    %381 = arith.cmpi ne, %372, %380 : vector<32x32xi32>
    %382 = arith.andi %376, %381 : vector<32x32xi1>
    %cst_212 = arith.constant 0.000000e+00 : f32
    %383 = vector.broadcast %cst_212 : f32 to vector<32x32xf32>
    %384 = arith.select %379, %370, %383 : vector<32x32xi1>, vector<32x32xf32>
    %385 = arith.addf %362, %384 : vector<32x32xf32>
    %cst_213 = arith.constant 0.000000e+00 : f32
    %386 = vector.broadcast %cst_213 : f32 to vector<32x32xf32>
    %387 = arith.select %382, %371, %386 : vector<32x32xi1>, vector<32x32xf32>
    %388 = arith.addf %385, %387 : vector<32x32xf32>
    %c12 = arith.constant 12 : index
    %c0_214 = arith.constant 0 : index
    %389 = vector.load %arg2[%c12, %c0_214] : memref<17x128xf32, #tpu.memory_space<vmem>>, vector<1x32xf32>
    %c13 = arith.constant 13 : index
    %c0_215 = arith.constant 0 : index
    %390 = vector.load %arg2[%c13, %c0_215] : memref<17x128xf32, #tpu.memory_space<vmem>>, vector<1x32xf32>
    %cst_216 = arith.constant dense<0.000000e+00> : vector<32xf32>
    %391 = vector.multi_reduction <add>, %388, %cst_216 [0] : vector<32x32xf32> to vector<32xf32>
    %392 = vector.shape_cast %391 : vector<32xf32> to vector<1x32xf32>
    %393 = arith.mulf %388, %388 : vector<32x32xf32>
    %cst_217 = arith.constant dense<0.000000e+00> : vector<32xf32>
    %394 = vector.multi_reduction <add>, %393, %cst_217 [0] : vector<32x32xf32> to vector<32xf32>
    %395 = vector.shape_cast %394 : vector<32xf32> to vector<1x32xf32>
    %cst_218 = arith.constant 3.125000e-02 : f32
    %396 = vector.broadcast %cst_218 : f32 to vector<1x32xf32>
    %397 = arith.mulf %392, %396 : vector<1x32xf32>
    %cst_219 = arith.constant 3.125000e-02 : f32
    %398 = vector.broadcast %cst_219 : f32 to vector<1x32xf32>
    %399 = arith.mulf %395, %398 : vector<1x32xf32>
    %400 = arith.mulf %397, %397 : vector<1x32xf32>
    %401 = arith.subf %399, %400 : vector<1x32xf32>
    %cst_220 = arith.constant 0.000000e+00 : f32
    %402 = vector.broadcast %cst_220 : f32 to vector<1x32xf32>
    %403 = arith.maximumf %401, %402 : vector<1x32xf32>
    %404 = vector.broadcast %397 : vector<1x32xf32> to vector<32x32xf32>
    %405 = arith.subf %388, %404 : vector<32x32xf32>
    %cst_221 = arith.constant 9.99999974E-6 : f32
    %406 = vector.broadcast %cst_221 : f32 to vector<1x32xf32>
    %407 = arith.addf %403, %406 : vector<1x32xf32>
    %408 = math.rsqrt %407 : vector<1x32xf32>
    %409 = arith.mulf %408, %389 : vector<1x32xf32>
    %410 = vector.broadcast %409 : vector<1x32xf32> to vector<32x32xf32>
    %411 = arith.mulf %405, %410 : vector<32x32xf32>
    %412 = vector.broadcast %390 : vector<1x32xf32> to vector<32x32xf32>
    %413 = arith.addf %411, %412 : vector<32x32xf32>
    %cst_222 = arith.constant 5.000000e-01 : f32
    %414 = vector.broadcast %cst_222 : f32 to vector<32x32xf32>
    %415 = arith.mulf %414, %413 : vector<32x32xf32>
    %cst_223 = arith.constant 4.471500e-02 : f32
    %416 = vector.broadcast %cst_223 : f32 to vector<32x32xf32>
    %417 = arith.mulf %416, %413 : vector<32x32xf32>
    %418 = arith.mulf %417, %413 : vector<32x32xf32>
    %419 = arith.mulf %418, %413 : vector<32x32xf32>
    %420 = arith.addf %413, %419 : vector<32x32xf32>
    %cst_224 = arith.constant 0.797884583 : f32
    %421 = vector.broadcast %cst_224 : f32 to vector<32x32xf32>
    %422 = arith.mulf %421, %420 : vector<32x32xf32>
    %423 = math.tanh %422 : vector<32x32xf32>
    %cst_225 = arith.constant 1.000000e+00 : f32
    %424 = vector.broadcast %cst_225 : f32 to vector<32x32xf32>
    %425 = arith.addf %424, %423 : vector<32x32xf32>
    %426 = arith.mulf %415, %425 : vector<32x32xf32>
    %c0_226 = arith.constant 0 : index
    %c0_227 = arith.constant 0 : index
    %427 = vector.load %arg23[%c0_226, %c0_227] : memref<64x32xf32, #tpu.memory_space<vmem>>, vector<64x32xf32>
    %cst_228 = arith.constant dense<0.000000e+00> : vector<64x32xf32>
    %428 = tpu.matmul %427, %426, %cst_228 {dimension_numbers = #tpu.dot_dimension_numbers<[1], [0], [0], [1], [0, 0, 1, 1], [], []>} : vector<64x32xf32>, vector<32x32xf32>, vector<64x32xf32> -> vector<64x32xf32>
    %c0_229 = arith.constant 0 : index
    %c0_230 = arith.constant 0 : index
    %c0_231 = arith.constant 0 : index
    %429 = vector.load %arg20[%c0_229, %c0_230, %c0_231] : memref<3x32x16xf32, #tpu.memory_space<vmem>>, vector<1x32x16xf32>
    %430 = vector.shape_cast %429 : vector<1x32x16xf32> to vector<32x16xf32>
    %cst_232 = arith.constant dense<0.000000e+00> : vector<64x16xf32>
    %431 = tpu.matmul %428, %430, %cst_232 {dimension_numbers = #tpu.dot_dimension_numbers<[1], [0], [0], [1], [0, 0, 1, 1], [], []>} : vector<64x32xf32>, vector<32x16xf32>, vector<64x16xf32> -> vector<64x16xf32>
    %c0_233 = arith.constant 0 : index
    %c0_234 = arith.constant 0 : index
    %c0_235 = arith.constant 0 : index
    %432 = vector.load %arg21[%c0_233, %c0_234, %c0_235] : memref<3x32x16xf32, #tpu.memory_space<vmem>>, vector<1x32x16xf32>
    %433 = vector.shape_cast %432 : vector<1x32x16xf32> to vector<32x16xf32>
    %cst_236 = arith.constant dense<0.000000e+00> : vector<64x16xf32>
    %434 = tpu.matmul %93, %433, %cst_236 {dimension_numbers = #tpu.dot_dimension_numbers<[1], [0], [0], [1], [0, 0, 1, 1], [], []>} : vector<64x32xf32>, vector<32x16xf32>, vector<64x16xf32> -> vector<64x16xf32>
    %435 = arith.addf %431, %434 : vector<64x16xf32>
    %c1_237 = arith.constant 1 : index
    %c0_238 = arith.constant 0 : index
    %c0_239 = arith.constant 0 : index
    %436 = vector.load %arg20[%c1_237, %c0_238, %c0_239] : memref<3x32x16xf32, #tpu.memory_space<vmem>>, vector<1x32x16xf32>
    %437 = vector.shape_cast %436 : vector<1x32x16xf32> to vector<32x16xf32>
    %cst_240 = arith.constant dense<0.000000e+00> : vector<64x16xf32>
    %438 = tpu.matmul %428, %437, %cst_240 {dimension_numbers = #tpu.dot_dimension_numbers<[1], [0], [0], [1], [0, 0, 1, 1], [], []>} : vector<64x32xf32>, vector<32x16xf32>, vector<64x16xf32> -> vector<64x16xf32>
    %c1_241 = arith.constant 1 : index
    %c0_242 = arith.constant 0 : index
    %c0_243 = arith.constant 0 : index
    %439 = vector.load %arg21[%c1_241, %c0_242, %c0_243] : memref<3x32x16xf32, #tpu.memory_space<vmem>>, vector<1x32x16xf32>
    %440 = vector.shape_cast %439 : vector<1x32x16xf32> to vector<32x16xf32>
    %cst_244 = arith.constant dense<0.000000e+00> : vector<64x16xf32>
    %441 = tpu.matmul %93, %440, %cst_244 {dimension_numbers = #tpu.dot_dimension_numbers<[1], [0], [0], [1], [0, 0, 1, 1], [], []>} : vector<64x32xf32>, vector<32x16xf32>, vector<64x16xf32> -> vector<64x16xf32>
    %442 = arith.addf %438, %441 : vector<64x16xf32>
    %c2_245 = arith.constant 2 : index
    %c0_246 = arith.constant 0 : index
    %c0_247 = arith.constant 0 : index
    %443 = vector.load %arg20[%c2_245, %c0_246, %c0_247] : memref<3x32x16xf32, #tpu.memory_space<vmem>>, vector<1x32x16xf32>
    %444 = vector.shape_cast %443 : vector<1x32x16xf32> to vector<32x16xf32>
    %cst_248 = arith.constant dense<0.000000e+00> : vector<64x16xf32>
    %445 = tpu.matmul %428, %444, %cst_248 {dimension_numbers = #tpu.dot_dimension_numbers<[1], [0], [0], [1], [0, 0, 1, 1], [], []>} : vector<64x32xf32>, vector<32x16xf32>, vector<64x16xf32> -> vector<64x16xf32>
    %c2_249 = arith.constant 2 : index
    %c0_250 = arith.constant 0 : index
    %c0_251 = arith.constant 0 : index
    %446 = vector.load %arg21[%c2_249, %c0_250, %c0_251] : memref<3x32x16xf32, #tpu.memory_space<vmem>>, vector<1x32x16xf32>
    %447 = vector.shape_cast %446 : vector<1x32x16xf32> to vector<32x16xf32>
    %cst_252 = arith.constant dense<0.000000e+00> : vector<64x16xf32>
    %448 = tpu.matmul %93, %447, %cst_252 {dimension_numbers = #tpu.dot_dimension_numbers<[1], [0], [0], [1], [0, 0, 1, 1], [], []>} : vector<64x32xf32>, vector<32x16xf32>, vector<64x16xf32> -> vector<64x16xf32>
    %449 = arith.addf %445, %448 : vector<64x16xf32>
    %c1_i32_253 = arith.constant 1 : i32
    %450 = tpu.dynamic_rotate %435 by %c1_i32_253 dim 0 : vector<64x16xf32>, i32 -> vector<64x16xf32>
    %c63_i32_254 = arith.constant 63 : i32
    %451 = tpu.dynamic_rotate %449 by %c63_i32_254 dim 0 : vector<64x16xf32>, i32 -> vector<64x16xf32>
    %452 = tpu.iota {dimensions = array<i32: 0>} : vector<64x16xi32>
    %c0_i32_255 = arith.constant 0 : i32
    %453 = vector.broadcast %c0_i32_255 : i32 to vector<64x16xi32>
    %454 = arith.cmpi ne, %452, %453 : vector<64x16xi32>
    %c31_i32_256 = arith.constant 31 : i32
    %455 = vector.broadcast %c31_i32_256 : i32 to vector<64x16xi32>
    %456 = arith.cmpi ne, %452, %455 : vector<64x16xi32>
    %c32_i32_257 = arith.constant 32 : i32
    %457 = vector.broadcast %c32_i32_257 : i32 to vector<64x16xi32>
    %458 = arith.cmpi ne, %452, %457 : vector<64x16xi32>
    %459 = arith.andi %454, %458 : vector<64x16xi1>
    %c63_i32_258 = arith.constant 63 : i32
    %460 = vector.broadcast %c63_i32_258 : i32 to vector<64x16xi32>
    %461 = arith.cmpi ne, %452, %460 : vector<64x16xi32>
    %462 = arith.andi %456, %461 : vector<64x16xi1>
    %cst_259 = arith.constant 0.000000e+00 : f32
    %463 = vector.broadcast %cst_259 : f32 to vector<64x16xf32>
    %464 = arith.select %459, %450, %463 : vector<64x16xi1>, vector<64x16xf32>
    %465 = arith.addf %442, %464 : vector<64x16xf32>
    %cst_260 = arith.constant 0.000000e+00 : f32
    %466 = vector.broadcast %cst_260 : f32 to vector<64x16xf32>
    %467 = arith.select %462, %451, %466 : vector<64x16xi1>, vector<64x16xf32>
    %468 = arith.addf %465, %467 : vector<64x16xf32>
    %c14 = arith.constant 14 : index
    %c0_261 = arith.constant 0 : index
    %469 = vector.load %arg2[%c14, %c0_261] : memref<17x128xf32, #tpu.memory_space<vmem>>, vector<1x16xf32>
    %c15 = arith.constant 15 : index
    %c0_262 = arith.constant 0 : index
    %470 = vector.load %arg2[%c15, %c0_262] : memref<17x128xf32, #tpu.memory_space<vmem>>, vector<1x16xf32>
    %cst_263 = arith.constant dense<0.000000e+00> : vector<16xf32>
    %471 = vector.multi_reduction <add>, %468, %cst_263 [0] : vector<64x16xf32> to vector<16xf32>
    %472 = vector.shape_cast %471 : vector<16xf32> to vector<1x16xf32>
    %473 = arith.mulf %468, %468 : vector<64x16xf32>
    %cst_264 = arith.constant dense<0.000000e+00> : vector<16xf32>
    %474 = vector.multi_reduction <add>, %473, %cst_264 [0] : vector<64x16xf32> to vector<16xf32>
    %475 = vector.shape_cast %474 : vector<16xf32> to vector<1x16xf32>
    %cst_265 = arith.constant 1.562500e-02 : f32
    %476 = vector.broadcast %cst_265 : f32 to vector<1x16xf32>
    %477 = arith.mulf %472, %476 : vector<1x16xf32>
    %cst_266 = arith.constant 1.562500e-02 : f32
    %478 = vector.broadcast %cst_266 : f32 to vector<1x16xf32>
    %479 = arith.mulf %475, %478 : vector<1x16xf32>
    %480 = arith.mulf %477, %477 : vector<1x16xf32>
    %481 = arith.subf %479, %480 : vector<1x16xf32>
    %cst_267 = arith.constant 0.000000e+00 : f32
    %482 = vector.broadcast %cst_267 : f32 to vector<1x16xf32>
    %483 = arith.maximumf %481, %482 : vector<1x16xf32>
    %484 = vector.broadcast %477 : vector<1x16xf32> to vector<64x16xf32>
    %485 = arith.subf %468, %484 : vector<64x16xf32>
    %cst_268 = arith.constant 9.99999974E-6 : f32
    %486 = vector.broadcast %cst_268 : f32 to vector<1x16xf32>
    %487 = arith.addf %483, %486 : vector<1x16xf32>
    %488 = math.rsqrt %487 : vector<1x16xf32>
    %489 = arith.mulf %488, %469 : vector<1x16xf32>
    %490 = vector.broadcast %489 : vector<1x16xf32> to vector<64x16xf32>
    %491 = arith.mulf %485, %490 : vector<64x16xf32>
    %492 = vector.broadcast %470 : vector<1x16xf32> to vector<64x16xf32>
    %493 = arith.addf %491, %492 : vector<64x16xf32>
    %cst_269 = arith.constant 5.000000e-01 : f32
    %494 = vector.broadcast %cst_269 : f32 to vector<64x16xf32>
    %495 = arith.mulf %494, %493 : vector<64x16xf32>
    %cst_270 = arith.constant 4.471500e-02 : f32
    %496 = vector.broadcast %cst_270 : f32 to vector<64x16xf32>
    %497 = arith.mulf %496, %493 : vector<64x16xf32>
    %498 = arith.mulf %497, %493 : vector<64x16xf32>
    %499 = arith.mulf %498, %493 : vector<64x16xf32>
    %500 = arith.addf %493, %499 : vector<64x16xf32>
    %cst_271 = arith.constant 0.797884583 : f32
    %501 = vector.broadcast %cst_271 : f32 to vector<64x16xf32>
    %502 = arith.mulf %501, %500 : vector<64x16xf32>
    %503 = math.tanh %502 : vector<64x16xf32>
    %cst_272 = arith.constant 1.000000e+00 : f32
    %504 = vector.broadcast %cst_272 : f32 to vector<64x16xf32>
    %505 = arith.addf %504, %503 : vector<64x16xf32>
    %506 = arith.mulf %495, %505 : vector<64x16xf32>
    %c0_273 = arith.constant 0 : index
    %c0_274 = arith.constant 0 : index
    %507 = vector.load %arg24[%c0_273, %c0_274] : memref<128x64xf32, #tpu.memory_space<vmem>>, vector<128x64xf32>
    %cst_275 = arith.constant dense<0.000000e+00> : vector<128x16xf32>
    %508 = tpu.matmul %507, %506, %cst_275 {dimension_numbers = #tpu.dot_dimension_numbers<[1], [0], [0], [1], [0, 0, 1, 1], [], []>} : vector<128x64xf32>, vector<64x16xf32>, vector<128x16xf32> -> vector<128x16xf32>
    %c0_276 = arith.constant 0 : index
    %c0_277 = arith.constant 0 : index
    %c0_278 = arith.constant 0 : index
    %509 = vector.load %arg25[%c0_276, %c0_277, %c0_278] : memref<3x16x4xf32, #tpu.memory_space<vmem>>, vector<1x16x4xf32>
    %510 = vector.shape_cast %509 : vector<1x16x4xf32> to vector<16x4xf32>
    %cst_279 = arith.constant dense<0.000000e+00> : vector<128x4xf32>
    %511 = tpu.matmul %508, %510, %cst_279 {dimension_numbers = #tpu.dot_dimension_numbers<[1], [0], [0], [1], [0, 0, 1, 1], [], []>} : vector<128x16xf32>, vector<16x4xf32>, vector<128x4xf32> -> vector<128x4xf32>
    %c1_280 = arith.constant 1 : index
    %c0_281 = arith.constant 0 : index
    %c0_282 = arith.constant 0 : index
    %512 = vector.load %arg25[%c1_280, %c0_281, %c0_282] : memref<3x16x4xf32, #tpu.memory_space<vmem>>, vector<1x16x4xf32>
    %513 = vector.shape_cast %512 : vector<1x16x4xf32> to vector<16x4xf32>
    %cst_283 = arith.constant dense<0.000000e+00> : vector<128x4xf32>
    %514 = tpu.matmul %508, %513, %cst_283 {dimension_numbers = #tpu.dot_dimension_numbers<[1], [0], [0], [1], [0, 0, 1, 1], [], []>} : vector<128x16xf32>, vector<16x4xf32>, vector<128x4xf32> -> vector<128x4xf32>
    %c2_284 = arith.constant 2 : index
    %c0_285 = arith.constant 0 : index
    %c0_286 = arith.constant 0 : index
    %515 = vector.load %arg25[%c2_284, %c0_285, %c0_286] : memref<3x16x4xf32, #tpu.memory_space<vmem>>, vector<1x16x4xf32>
    %516 = vector.shape_cast %515 : vector<1x16x4xf32> to vector<16x4xf32>
    %cst_287 = arith.constant dense<0.000000e+00> : vector<128x4xf32>
    %517 = tpu.matmul %508, %516, %cst_287 {dimension_numbers = #tpu.dot_dimension_numbers<[1], [0], [0], [1], [0, 0, 1, 1], [], []>} : vector<128x16xf32>, vector<16x4xf32>, vector<128x4xf32> -> vector<128x4xf32>
    %c1_i32_288 = arith.constant 1 : i32
    %518 = tpu.dynamic_rotate %511 by %c1_i32_288 dim 0 : vector<128x4xf32>, i32 -> vector<128x4xf32>
    %c127_i32_289 = arith.constant 127 : i32
    %519 = tpu.dynamic_rotate %517 by %c127_i32_289 dim 0 : vector<128x4xf32>, i32 -> vector<128x4xf32>
    %520 = tpu.iota {dimensions = array<i32: 0>} : vector<128x4xi32>
    %c0_i32_290 = arith.constant 0 : i32
    %521 = vector.broadcast %c0_i32_290 : i32 to vector<128x4xi32>
    %522 = arith.cmpi ne, %520, %521 : vector<128x4xi32>
    %c63_i32_291 = arith.constant 63 : i32
    %523 = vector.broadcast %c63_i32_291 : i32 to vector<128x4xi32>
    %524 = arith.cmpi ne, %520, %523 : vector<128x4xi32>
    %c64_i32_292 = arith.constant 64 : i32
    %525 = vector.broadcast %c64_i32_292 : i32 to vector<128x4xi32>
    %526 = arith.cmpi ne, %520, %525 : vector<128x4xi32>
    %527 = arith.andi %522, %526 : vector<128x4xi1>
    %c127_i32_293 = arith.constant 127 : i32
    %528 = vector.broadcast %c127_i32_293 : i32 to vector<128x4xi32>
    %529 = arith.cmpi ne, %520, %528 : vector<128x4xi32>
    %530 = arith.andi %524, %529 : vector<128x4xi1>
    %cst_294 = arith.constant 0.000000e+00 : f32
    %531 = vector.broadcast %cst_294 : f32 to vector<128x4xf32>
    %532 = arith.select %527, %518, %531 : vector<128x4xi1>, vector<128x4xf32>
    %533 = arith.addf %514, %532 : vector<128x4xf32>
    %cst_295 = arith.constant 0.000000e+00 : f32
    %534 = vector.broadcast %cst_295 : f32 to vector<128x4xf32>
    %535 = arith.select %530, %519, %534 : vector<128x4xi1>, vector<128x4xf32>
    %536 = arith.addf %533, %535 : vector<128x4xf32>
    %c16 = arith.constant 16 : index
    %c0_296 = arith.constant 0 : index
    %537 = vector.load %arg2[%c16, %c0_296] : memref<17x128xf32, #tpu.memory_space<vmem>>, vector<1x4xf32>
    %538 = vector.broadcast %537 : vector<1x4xf32> to vector<128x4xf32>
    %539 = arith.addf %536, %538 : vector<128x4xf32>
    %540 = math.tanh %539 : vector<128x4xf32>
    %c0_297 = arith.constant 0 : index
    %c0_298 = arith.constant 0 : index
    %541 = vector.load %arg26[%c0_297, %c0_298] : memref<128x4xf32, #tpu.memory_space<vmem>>, vector<128x4xf32>
    tpu.vector_store %arg26[%c0_297, %c0_298], %540 {strides = array<i32>} : memref<128x4xf32, #tpu.memory_space<vmem>>, vector<128x4xf32>,
    return
  }
}

</mosaic_0001>

<bundles_post_ra>
// kernel: forward.1
= control target key start
LH: loop header
LB: loop body
LE: loop exit
PB: predicated region body
PF: predicated region fallthrough
CT: control target
= control target key end

     0   :  { %s12101_s0 = inlined_call_operand.vmem [shape: f32[128,4], index: 0, kind: input, shape index: {}]   ;;  %s12102_s1 = inlined_call_operand.vmem [shape: f32[2,16], index: 1, kind: input, shape index: {}]   ;;  %s12103_s2 = inlined_call_operand.hbm [shape: f32[17,128], index: 2, kind: input, shape index: {}]   ;;  %s12104_s3 = inlined_call_operand.hbm [shape: f32[3,4,32], index: 3, kind: input, shape index: {}]   ;;  %s12105_s4 = inlined_call_operand.hbm [shape: f32[3,32,64], index: 4, kind: input, shape index: {}]   ;;  %s12106_s5 = inlined_call_operand.hbm [shape: f32[3,64,128], index: 5, kind: input, shape index: {}]   ;;  %s12107_s6 = inlined_call_operand.hbm [shape: f32[64,128], index: 6, kind: input, shape index: {}]   ;;  %s12108_s7 = inlined_call_operand.hbm [shape: f32[32,64], index: 7, kind: input, shape index: {}]   ;;  %s12109_s8 = inlined_call_operand.hbm [shape: f32[16,32], index: 8, kind: input, shape index: {}]   ;;  %s12110_s9 = inlined_call_operand.hbm [shape: f32[8,16], index: 9, kind: input, shape index: {}]   ;;  %s12111_s10 = inlined_call_operand.hbm [shape: f32[128,128], index: 10, kind: input, shape index: {}]   ;;  %s12112_s11 = inlined_call_operand.hbm [shape: f32[8,128], index: 11, kind: input, shape index: {}]   ;;  %s12113_s12 = inlined_call_operand.hbm [shape: f32[128,32], index: 12, kind: input, shape index: {}]   ;;  %s12114_s13 = inlined_call_operand.vmem [shape: f32[2,8], index: 13, kind: input, shape index: {}]   ;;  %s12115_s14 = inlined_call_operand.hbm [shape: f32[16,128], index: 14, kind: input, shape index: {}]   ;;  %s12116_s15 = inlined_call_operand.hbm [shape: f32[16,2], index: 15, kind: input, shape index: {}]   ;;  %s12117_s16 = inlined_call_operand.hbm [shape: f32[3,128,64], index: 16, kind: input, shape index: {}]   ;;  %s12118_s17 = inlined_call_operand.hbm [shape: f32[3,128,64], index: 17, kind: input, shape index: {}]   ;;  %s12119_s18 = inlined_call_operand.hbm [shape: f32[3,64,32], index: 18, kind: input, shape index: {}]   ;;  %s12120_s19 = inlined_call_operand.vmem [shape: f32[3,64,32], index: 19, kind: input, shape index: {}]   ;;  %s12121_s20 = inlined_call_operand.hbm [shape: f32[3,32,16], index: 20, kind: input, shape index: {}]   ;;  %s12122_s21 = inlined_call_operand.hbm [shape: f32[3,32,16], index: 21, kind: input, shape index: {}]   ;;  %s12123_s22 = inlined_call_operand.hbm [shape: f32[32,16], index: 22, kind: input, shape index: {}]   ;;  %s12124_s23 = inlined_call_operand.vmem [shape: f32[64,32], index: 23, kind: input, shape index: {}]   ;;  %s12125_s24 = inlined_call_operand.hbm [shape: f32[128,64], index: 24, kind: input, shape index: {}]   ;;  %s12126_s25 = inlined_call_operand.hbm [shape: f32[3,16,4], index: 25, kind: input, shape index: {}]   ;;  %s12127_s26 = inlined_call_operand.vmem [shape: f32[128,4], index: 26, kind: output, shape index: {0}]   ;;  %s12128_s27 = inlined_call_operand.vmem [shape: f32[2,32], index: 27, kind: output, shape index: {1}]  }
   0x1   :  { %12144 = sst [smem:[#allocation45_spill]] %s12101_s0 }
   0x2   :  { %12145 = sst [smem:[#allocation46_spill]] %s12102_s1 }
   0x3   :  { %12146 = sst [smem:[#allocation47_spill]] %s12103_s2 }
   0x4   :  { %12147 = sst [smem:[#allocation48_spill]] %s12104_s3 }
   0x5   :  { %12148 = sst [smem:[#allocation49_spill]] %s12105_s4 }
   0x6   :  { %12149 = sst [smem:[#allocation50_spill]] %s12106_s5 }
   0x7   :  { %12150 = sst [smem:[#allocation51_spill]] %s12107_s6 }
   0x8   :  { %12151 = sst [smem:[#allocation52_spill]] %s12108_s7 }
   0x9   :  { %12152 = sst [smem:[#allocation53_spill]] %s12109_s8 }
   0xa   :  { %12153 = sst [smem:[#allocation54_spill]] %s12110_s9 }
   0xb   :  { %12154 = sst [smem:[#allocation55_spill]] %s12111_s10 }
   0xc   :  { %12155 = sst [smem:[#allocation56_spill]] %s12112_s11 }
   0xd   :  { %12156 = sst [smem:[#allocation57_spill]] %s12120_s19 }
   0xe   :  { %12157 = sst [smem:[#allocation58_spill]] %s12124_s23 }
   0xf   :  { %12158 = sst [smem:[#allocation59_spill]] %s12127_s26 }
  0x10   :  { %33 = vsyncpa [#allocation3], 0 }
  0x11   :  { %34 = vsyncpa [#allocation5], 0 }
  0x12   :  { %35 = vsyncpa [#allocation8], 0 }
  0x13   :  { %36 = vsyncpa [#allocation11], 0 }
  0x14   :  { %37 = vsyncpa [#allocation14], 0 }
  0x15   :  { %38 = vsyncpa [#allocation17], 0 }
  0x16   :  { %39 = vsyncpa [#allocation20], 0 }
  0x17   :  { %40 = vsyncpa [#allocation23], 0 }
  0x18   :  { %41 = vsyncpa [#allocation26], 0 }
  0x19   :  { %42 = vsyncpa [#allocation29], 0 }
  0x1a   :  { %43 = vsyncpa [#allocation32], 0  ;;  %s9846_s7 = smov [#allocation4]   ;;  %s12159_s9 = sld [smem:[#allocation48_spill]] }
  0x1b   :  { %s65_s4 = sshll.u32 %s9846_s7, 4  ;;  %s66_s4 = int_to_ptr.vmem [resolvable:$true] %s65_s4 }
  0x20   :  { %s9362_s5 = scalar_lea.hbm %s12159_s9, 192 }
  0x21   :  { %p9363_p0 = scmp.ne.s32.totalorder %s12159_s9, %s9362_s5  ;;  %p9366_p1 = scmp.lt.u32.totalorder %s9362_s5, %s12159_s9 }
  0x23   :  { %p9368_p2 = pnand %p9366_p1, %p9363_p0 }
  0x25   :  { %9371 = shalt.err (!%p9368_p2)
}
  0x26   :  { %s9372_s1 = scalar_lea.vmem %s66_s4, 192  ;;  %p9377_p4 = scmp.lt.s32.totalorder %s66_s4, %s66_s4 }
  0x27   :  { %p9373_p3 = scmp.ne.s32.totalorder %s66_s4, %s9372_s1  ;;  %p9378_p5 = scmp.lt.s32.totalorder %s9372_s1, %s9372_s1 }
  0x29   :  { %p9379_p6 = por %p9378_p5, %p9377_p4 }
  0x2b   :  { %p9380_p7 = pnand %p9379_p6, %p9373_p3 }
  0x2d   :  { %9383 = shalt.err (!%p9380_p7)
}
  0x2e   :  { %s9847_s6 = smov 64   ;;  %s9848_s11 = smov 4  }
  0x2f   :  { %71 = dma.hbm_to_vmem [thread:$0]  %s12159_s9, 192, %s66_s4, [#allocation5], %s9847_s6, %s9847_s6, %s9848_s11  }
  0x30   :  { %s9849_s7 = smov [#allocation7]   ;;  %s9850_s30 = smov [#allocation10]  }
  0x31   :  { %s89_s8 = sshll.u32 %s9849_s7, 4  ;;  %s113_s5 = sshll.u32 %s9850_s30, 4  ;;  %s90_s8 = int_to_ptr.vmem [resolvable:$true] %s89_s8  ;;  %s114_s5 = int_to_ptr.vmem [resolvable:$true] %s113_s5 }
  0x32   :  { %s12160_s10 = sld [smem:[#allocation50_spill]] }
  0x38   :  { %s9384_s29 = scalar_lea.hbm %s12160_s10, 3072 }
  0x39   :  { %p9385_p8 = scmp.ne.s32.totalorder %s12160_s10, %s9384_s29  ;;  %p9388_p9 = scmp.lt.u32.totalorder %s9384_s29, %s12160_s10 }
  0x3b   :  { %p9390_p10 = pnand %p9388_p9, %p9385_p8 }
  0x3d   :  { %9393 = shalt.err (!%p9390_p10)
}
  0x3e   :  { %s9394_s4 = scalar_lea.vmem %s90_s8, 3072  ;;  %p9399_p12 = scmp.lt.s32.totalorder %s90_s8, %s90_s8 }
  0x3f   :  { %p9395_p11 = scmp.ne.s32.totalorder %s90_s8, %s9394_s4  ;;  %p9400_p13 = scmp.lt.s32.totalorder %s9394_s4, %s9394_s4 }
  0x41   :  { %p9401_p0 = por %p9400_p13, %p9399_p12 }
  0x43   :  { %p9402_p1 = pnand %p9401_p0, %p9395_p11 }
  0x45   :  { %9405 = shalt.err (!%p9402_p1)
}
  0x46   :  { %s9851_s9 = smov 128   ;;  %s9852_s6 = smov 8  }
  0x47   :  { %95 = dma.hbm_to_vmem [thread:$0]  %s12160_s10, 3072, %s90_s8, [#allocation8], %s9851_s9, %s9851_s9, %s9852_s6  }
  0x48   :  { %s12161_s2 = sld [smem:[#allocation52_spill]] }
  0x4e   :  { %s9406_s3 = scalar_lea.hbm %s12161_s2, 512 }
  0x4f   :  { %p9407_p2 = scmp.ne.s32.totalorder %s12161_s2, %s9406_s3  ;;  %p9410_p3 = scmp.lt.u32.totalorder %s9406_s3, %s12161_s2 }
  0x51   :  { %p9412_p4 = pnand %p9410_p3, %p9407_p2 }
  0x53   :  { %9415 = shalt.err (!%p9412_p4)
}
  0x54   :  { %s9416_s29 = scalar_lea.vmem %s114_s5, 512  ;;  %p9421_p6 = scmp.lt.s32.totalorder %s114_s5, %s114_s5 }
  0x55   :  { %p9417_p5 = scmp.ne.s32.totalorder %s114_s5, %s9416_s29  ;;  %p9422_p7 = scmp.lt.s32.totalorder %s9416_s29, %s9416_s29 }
  0x57   :  { %p9423_p8 = por %p9422_p7, %p9421_p6 }
  0x59   :  { %p9424_p9 = pnand %p9423_p8, %p9417_p5 }
  0x5b   :  { %9427 = shalt.err (!%p9424_p9)
}
  0x5c   :  { %119 = dma.hbm_to_vmem [thread:$0]  %s12161_s2, 512, %s114_s5, [#allocation11], %s9851_s9, %s9851_s9, %s9852_s6  }
  0x5d   :  { %s9853_s1 = smov [#allocation13]   ;;  %s9854_s26 = smov [#allocation16]  }
  0x5e   :  { %s138_s4 = sshll.u32 %s9853_s1, 4  ;;  %s160_s11 = sshll.u32 %s9854_s26, 4  ;;  %s139_s4 = int_to_ptr.vmem [resolvable:$true] %s138_s4  ;;  %s161_s11 = int_to_ptr.vmem [resolvable:$true] %s160_s11 }
  0x5f   :  { %s12162_s3 = sld [smem:[#allocation54_spill]] }
  0x65   :  { %s9428_s7 = scalar_lea.hbm %s12162_s3, 128 }
  0x66   :  { %p9429_p10 = scmp.ne.s32.totalorder %s12162_s3, %s9428_s7  ;;  %p9432_p11 = scmp.lt.u32.totalorder %s9428_s7, %s12162_s3 }
  0x68   :  { %p9434_p12 = pnand %p9432_p11, %p9429_p10 }
  0x6a   :  { %9437 = shalt.err (!%p9434_p12)
}
  0x6b   :  { %s9438_s5 = scalar_lea.vmem %s139_s4, 128  ;;  %p9443_p0 = scmp.lt.s32.totalorder %s139_s4, %s139_s4 }
  0x6c   :  { %p9439_p13 = scmp.ne.s32.totalorder %s139_s4, %s9438_s5  ;;  %p9444_p1 = scmp.lt.s32.totalorder %s9438_s5, %s9438_s5 }
  0x6e   :  { %p9445_p2 = por %p9444_p1, %p9443_p0 }
  0x70   :  { %p9446_p3 = pnand %p9445_p2, %p9439_p13 }
  0x72   :  { %9449 = shalt.err (!%p9446_p3)
}
  0x73   :  { %141 = dma.hbm_to_vmem [thread:$0]  %s12162_s3, 128, %s139_s4, [#allocation14]  }
  0x74   :  { %s12163_s26 = sld [smem:[#allocation56_spill]] }
  0x7a   :  { %s9450_s19 = scalar_lea.hbm %s12163_s26, 128 }
  0x7b   :  { %p9451_p4 = scmp.ne.s32.totalorder %s12163_s26, %s9450_s19  ;;  %p9454_p5 = scmp.lt.u32.totalorder %s9450_s19, %s12163_s26 }
  0x7d   :  { %p9456_p6 = pnand %p9454_p5, %p9451_p4 }
  0x7f   :  { %9459 = shalt.err (!%p9456_p6)
}
  0x80   :  { %s9460_s0 = scalar_lea.vmem %s161_s11, 128  ;;  %p9465_p8 = scmp.lt.s32.totalorder %s161_s11, %s161_s11 }
  0x81   :  { %p9461_p7 = scmp.ne.s32.totalorder %s161_s11, %s9460_s0  ;;  %p9466_p9 = scmp.lt.s32.totalorder %s9460_s0, %s9460_s0 }
  0x83   :  { %p9467_p10 = por %p9466_p9, %p9465_p8 }
  0x85   :  { %p9468_p11 = pnand %p9467_p10, %p9461_p7 }
  0x87   :  { %9471 = shalt.err (!%p9468_p11)
}
  0x88   :  { %163 = dma.hbm_to_vmem [thread:$0]  %s12163_s26, 128, %s161_s11, [#allocation17]  }
  0x89   :  { %s9855_s29 = smov [#allocation19]   ;;  %s9856_s2 = smov [#allocation22]  }
  0x8a   :  { %s183_s5 = sshll.u32 %s9855_s29, 4  ;;  %s207_s8 = sshll.u32 %s9856_s2, 4  ;;  %s184_s5 = int_to_ptr.vmem [resolvable:$true] %s183_s5  ;;  %s208_s8 = int_to_ptr.vmem [resolvable:$true] %s207_s8 }
  0x8b   :  { %s9472_s19 = scalar_lea.hbm %s12115_s14, 256 }
  0x8c   :  { %p9473_p12 = scmp.ne.s32.totalorder %s12115_s14, %s9472_s19  ;;  %p9476_p13 = scmp.lt.u32.totalorder %s9472_s19, %s12115_s14 }
  0x8e   :  { %p9478_p0 = pnand %p9476_p13, %p9473_p12 }
  0x90   :  { %9481 = shalt.err (!%p9478_p0)
}
  0x91   :  { %s9482_s11 = scalar_lea.vmem %s184_s5, 256  ;;  %p9487_p2 = scmp.lt.s32.totalorder %s184_s5, %s184_s5 }
  0x92   :  { %p9483_p1 = scmp.ne.s32.totalorder %s184_s5, %s9482_s11  ;;  %p9488_p3 = scmp.lt.s32.totalorder %s9482_s11, %s9482_s11 }
  0x94   :  { %p9489_p4 = por %p9488_p3, %p9487_p2 }
  0x96   :  { %p9490_p5 = pnand %p9489_p4, %p9483_p1 }
  0x98   :  { %9493 = shalt.err (!%p9490_p5)
}
  0x99   :  { %189 = dma.hbm_to_vmem [thread:$0]  %s12115_s14, 256, %s184_s5, [#allocation20], %s9851_s9, %s9851_s9, %s9852_s6  }
  0x9a   :  { %s9494_s29 = scalar_lea.hbm %s12117_s16, 6144 }
  0x9b   :  { %p9495_p6 = scmp.ne.s32.totalorder %s12117_s16, %s9494_s29  ;;  %p9498_p7 = scmp.lt.u32.totalorder %s9494_s29, %s12117_s16 }
  0x9d   :  { %p9500_p8 = pnand %p9498_p7, %p9495_p6 }
  0x9f   :  { %9503 = shalt.err (!%p9500_p8)
}
  0xa0   :  { %s9504_s23 = scalar_lea.vmem %s208_s8, 6144  ;;  %p9509_p10 = scmp.lt.s32.totalorder %s208_s8, %s208_s8 }
  0xa1   :  { %p9505_p9 = scmp.ne.s32.totalorder %s208_s8, %s9504_s23  ;;  %p9510_p11 = scmp.lt.s32.totalorder %s9504_s23, %s9504_s23 }
  0xa3   :  { %p9511_p12 = por %p9510_p11, %p9509_p10 }
  0xa5   :  { %p9512_p13 = pnand %p9511_p12, %p9505_p9 }
  0xa7   :  { %9515 = shalt.err (!%p9512_p13)
}
  0xa8   :  { %213 = dma.hbm_to_vmem [thread:$0]  %s12117_s16, 6144, %s208_s8, [#allocation23], %s9851_s9, %s9851_s9, %s9852_s6  }
  0xa9   :  { %s9857_s7 = smov [#allocation25]   ;;  %s9858_s28 = smov [#allocation28]  }
  0xaa   :  { %s231_s30 = sshll.u32 %s9857_s7, 4  ;;  %s257_s11 = sshll.u32 %s9858_s28, 4  ;;  %s232_s30 = int_to_ptr.vmem [resolvable:$true] %s231_s30  ;;  %s258_s11 = int_to_ptr.vmem [resolvable:$true] %s257_s11 }
  0xab   :  { %s9516_s4 = scalar_lea.hbm %s12119_s18, 3072 }
  0xac   :  { %p9517_p0 = scmp.ne.s32.totalorder %s12119_s18, %s9516_s4  ;;  %p9520_p1 = scmp.lt.u32.totalorder %s9516_s4, %s12119_s18 }
  0xae   :  { %p9522_p2 = pnand %p9520_p1, %p9517_p0 }
  0xb0   :  { %9525 = shalt.err (!%p9522_p2)
}
  0xb1   :  { %s9526_s16 = scalar_lea.vmem %s232_s30, 3072  ;;  %p9531_p4 = scmp.lt.s32.totalorder %s232_s30, %s232_s30 }
  0xb2   :  { %p9527_p3 = scmp.ne.s32.totalorder %s232_s30, %s9526_s16  ;;  %p9532_p5 = scmp.lt.s32.totalorder %s9526_s16, %s9526_s16 }
  0xb4   :  { %p9533_p6 = por %p9532_p5, %p9531_p4 }
  0xb6   :  { %p9534_p7 = pnand %p9533_p6, %p9527_p3 }
  0xb8   :  { %9537 = shalt.err (!%p9534_p7)
}
  0xb9   :  { %237 = dma.hbm_to_vmem [thread:$0]  %s12119_s18, 3072, %s232_s30, [#allocation26], %s9851_s9, %s9851_s9, %s9852_s6  }
  0xba   :  { %s9538_s14 = scalar_lea.hbm %s12122_s21, 1536 }
  0xbb   :  { %p9539_p8 = scmp.ne.s32.totalorder %s12122_s21, %s9538_s14  ;;  %p9542_p9 = scmp.lt.u32.totalorder %s9538_s14, %s12122_s21 }
  0xbd   :  { %p9544_p10 = pnand %p9542_p9, %p9539_p8 }
  0xbf   :  { %9547 = shalt.err (!%p9544_p10)
}
  0xc0   :  { %s9548_s0 = scalar_lea.vmem %s258_s11, 1536  ;;  %p9553_p12 = scmp.lt.s32.totalorder %s258_s11, %s258_s11 }
  0xc1   :  { %p9549_p11 = scmp.ne.s32.totalorder %s258_s11, %s9548_s0  ;;  %p9554_p13 = scmp.lt.s32.totalorder %s9548_s0, %s9548_s0 }
  0xc3   :  { %p9555_p0 = por %p9554_p13, %p9553_p12 }
  0xc5   :  { %p9556_p1 = pnand %p9555_p0, %p9549_p11 }
  0xc7   :  { %9559 = shalt.err (!%p9556_p1)
}
  0xc8   :  { %263 = dma.hbm_to_vmem [thread:$0]  %s12122_s21, 1536, %s258_s11, [#allocation29], %s9851_s9, %s9851_s9, %s9852_s6  }
  0xc9   :  { %s9859_s4 = smov [#allocation31]   ;;  %s9860_s29 = smov [#allocation2]  }
  0xca   :  { %s283_s3 = sshll.u32 %s9859_s4, 4  ;;  %s53_s2 = sshll.u32 %s9860_s29, 4  ;;  %s284_s3 = int_to_ptr.vmem [resolvable:$true] %s283_s3  ;;  %s54_s2 = int_to_ptr.vmem [resolvable:$true] %s53_s2 }
  0xcb   :  { %s9560_s8 = scalar_lea.hbm %s12125_s24, 2048 }
  0xcc   :  { %p9561_p2 = scmp.ne.s32.totalorder %s12125_s24, %s9560_s8  ;;  %p9564_p3 = scmp.lt.u32.totalorder %s9560_s8, %s12125_s24 }
  0xce   :  { %p9566_p4 = pnand %p9564_p3, %p9561_p2 }
  0xd0   :  { %9569 = shalt.err (!%p9566_p4)
}
  0xd1   :  { %s9570_s21 = scalar_lea.vmem %s284_s3, 2048  ;;  %p9575_p6 = scmp.lt.s32.totalorder %s284_s3, %s284_s3 }
  0xd2   :  { %p9571_p5 = scmp.ne.s32.totalorder %s284_s3, %s9570_s21  ;;  %p9576_p7 = scmp.lt.s32.totalorder %s9570_s21, %s9570_s21 }
  0xd4   :  { %p9577_p8 = por %p9576_p7, %p9575_p6 }
  0xd6   :  { %p9578_p9 = pnand %p9577_p8, %p9571_p5 }
  0xd8   :  { %9581 = shalt.err (!%p9578_p9)
}
  0xd9   :  { %289 = dma.hbm_to_vmem [thread:$0]  %s12125_s24, 2048, %s284_s3, [#allocation32], %s9851_s9, %s9851_s9, %s9852_s6  }
  0xda   :  { %s12164_s26 = sld [smem:[#allocation47_spill]] }
  0xe0   :  { %s9582_s0 = scalar_lea.hbm %s12164_s26, 384 }
  0xe1   :  { %p9583_p10 = scmp.ne.s32.totalorder %s12164_s26, %s9582_s0  ;;  %p9586_p11 = scmp.lt.u32.totalorder %s9582_s0, %s12164_s26 }
  0xe3   :  { %p9588_p12 = pnand %p9586_p11, %p9583_p10 }
  0xe5   :  { %9591 = shalt.err (!%p9588_p12)
}
  0xe6   :  { %s9592_s10 = scalar_lea.vmem %s54_s2, 384  ;;  %p9597_p0 = scmp.lt.s32.totalorder %s54_s2, %s54_s2 }
  0xe7   :  { %p9593_p13 = scmp.ne.s32.totalorder %s54_s2, %s9592_s10  ;;  %p9598_p1 = scmp.lt.s32.totalorder %s9592_s10, %s9592_s10 }
  0xe9   :  { %p9599_p2 = por %p9598_p1, %p9597_p0 }
  0xeb   :  { %p9600_p3 = pnand %p9599_p2, %p9593_p13 }
  0xed   :  { %9603 = shalt.err (!%p9600_p3)
}
  0xee   :  { %59 = dma.hbm_to_vmem [thread:$0]  %s12164_s26, 384, %s54_s2, [#allocation3], %s9851_s9, %s9851_s9, %s9852_s6  }
  0xef   :  { %s9861_s16 = smov [#allocation6]   ;;  %s9862_s1 = smov [#allocation9]  }
  0xf0   :  { %s77_s8 = sshll.u32 %s9861_s16, 4  ;;  %s101_s19 = sshll.u32 %s9862_s1, 4  ;;  %s78_s8 = int_to_ptr.vmem [resolvable:$true] %s77_s8  ;;  %s102_s19 = int_to_ptr.vmem [resolvable:$true] %s101_s19 }
  0xf1   :  { %s12165_s21 = sld [smem:[#allocation49_spill]] }
  0xf7   :  { %s9604_s11 = scalar_lea.hbm %s12165_s21, 1536 }
  0xf8   :  { %p9605_p4 = scmp.ne.s32.totalorder %s12165_s21, %s9604_s11  ;;  %p9608_p5 = scmp.lt.u32.totalorder %s9604_s11, %s12165_s21 }
  0xfa   :  { %p9610_p6 = pnand %p9608_p5, %p9605_p4 }
  0xfc   :  { %9613 = shalt.err (!%p9610_p6)
}
  0xfd   :  { %s9614_s2 = scalar_lea.vmem %s78_s8, 1536  ;;  %p9619_p8 = scmp.lt.s32.totalorder %s78_s8, %s78_s8 }
  0xfe   :  { %p9615_p7 = scmp.ne.s32.totalorder %s78_s8, %s9614_s2  ;;  %p9620_p9 = scmp.lt.s32.totalorder %s9614_s2, %s9614_s2 }
 0x100   :  { %p9621_p10 = por %p9620_p9, %p9619_p8 }
 0x102   :  { %p9622_p11 = pnand %p9621_p10, %p9615_p7 }
 0x104   :  { %9625 = shalt.err (!%p9622_p11)
}
 0x105   :  { %83 = dma.hbm_to_vmem [thread:$0]  %s12165_s21, 1536, %s78_s8, [#allocation5], %s9851_s9, %s9851_s9, %s9852_s6  }
 0x106   :  { %s12166_s29 = sld [smem:[#allocation51_spill]] }
 0x10c   :  { %s9626_s10 = scalar_lea.hbm %s12166_s29, 1024 }
 0x10d   :  { %p9627_p12 = scmp.ne.s32.totalorder %s12166_s29, %s9626_s10  ;;  %p9630_p13 = scmp.lt.u32.totalorder %s9626_s10, %s12166_s29 }
 0x10f   :  { %p9632_p0 = pnand %p9630_p13, %p9627_p12 }
 0x111   :  { %9635 = shalt.err (!%p9632_p0)
}
 0x112   :  { %s9636_s23 = scalar_lea.vmem %s102_s19, 1024  ;;  %p9641_p2 = scmp.lt.s32.totalorder %s102_s19, %s102_s19 }
 0x113   :  { %p9637_p1 = scmp.ne.s32.totalorder %s102_s19, %s9636_s23  ;;  %p9642_p3 = scmp.lt.s32.totalorder %s9636_s23, %s9636_s23 }
 0x115   :  { %p9643_p4 = por %p9642_p3, %p9641_p2 }
 0x117   :  { %p9644_p5 = pnand %p9643_p4, %p9637_p1 }
 0x119   :  { %9647 = shalt.err (!%p9644_p5)
}
 0x11a   :  { %107 = dma.hbm_to_vmem [thread:$0]  %s12166_s29, 1024, %s102_s19, [#allocation8], %s9851_s9, %s9851_s9, %s9852_s6  }
 0x11b   :  { %s9863_s21 = smov [#allocation12]   ;;  %s9864_s5 = smov [#allocation15]  }
 0x11c   :  { %s125_s11 = sshll.u32 %s9863_s21, 4  ;;  %s147_s7 = sshll.u32 %s9864_s5, 4  ;;  %s126_s11 = int_to_ptr.vmem [resolvable:$true] %s125_s11  ;;  %s148_s7 = int_to_ptr.vmem [resolvable:$true] %s147_s7 }
 0x11d   :  { %s12167_s2 = sld [smem:[#allocation53_spill]] }
 0x123   :  { %s9648_s26 = scalar_lea.hbm %s12167_s2, 256 }
 0x124   :  { %p9649_p6 = scmp.ne.s32.totalorder %s12167_s2, %s9648_s26  ;;  %p9652_p7 = scmp.lt.u32.totalorder %s9648_s26, %s12167_s2 }
 0x126   :  { %p9654_p8 = pnand %p9652_p7, %p9649_p6 }
 0x128   :  { %9657 = shalt.err (!%p9654_p8)
}
 0x129   :  { %s9658_s19 = scalar_lea.vmem %s126_s11, 256  ;;  %p9663_p10 = scmp.lt.s32.totalorder %s126_s11, %s126_s11 }
 0x12a   :  { %p9659_p9 = scmp.ne.s32.totalorder %s126_s11, %s9658_s19  ;;  %p9664_p11 = scmp.lt.s32.totalorder %s9658_s19, %s9658_s19 }
 0x12c   :  { %p9665_p12 = por %p9664_p11, %p9663_p10 }
 0x12e   :  { %p9666_p13 = pnand %p9665_p12, %p9659_p9 }
 0x130   :  { %9669 = shalt.err (!%p9666_p13)
}
 0x131   :  { %131 = dma.hbm_to_vmem [thread:$0]  %s12167_s2, 256, %s126_s11, [#allocation11], %s9851_s9, %s9851_s9, %s9852_s6  }
 0x132   :  { %s12168_s1 = sld [smem:[#allocation55_spill]] }
 0x138   :  { %s9670_s23 = scalar_lea.hbm %s12168_s1, 2048 }
 0x139   :  { %p9671_p0 = scmp.ne.s32.totalorder %s12168_s1, %s9670_s23  ;;  %p9674_p1 = scmp.lt.u32.totalorder %s9670_s23, %s12168_s1 }
 0x13b   :  { %p9676_p2 = pnand %p9674_p1, %p9671_p0 }
 0x13d   :  { %9679 = shalt.err (!%p9676_p2)
}
 0x13e   :  { %s9680_s28 = scalar_lea.vmem %s148_s7, 2048  ;;  %p9685_p4 = scmp.lt.s32.totalorder %s148_s7, %s148_s7 }
 0x13f   :  { %p9681_p3 = scmp.ne.s32.totalorder %s148_s7, %s9680_s28  ;;  %p9686_p5 = scmp.lt.s32.totalorder %s9680_s28, %s9680_s28 }
 0x141   :  { %p9687_p6 = por %p9686_p5, %p9685_p4 }
 0x143   :  { %p9688_p7 = pnand %p9687_p6, %p9681_p3 }
 0x145   :  { %9691 = shalt.err (!%p9688_p7)
}
 0x146   :  { %153 = dma.hbm_to_vmem [thread:$0]  %s12168_s1, 2048, %s148_s7, [#allocation14], %s9851_s9, %s9851_s9, %s9852_s6  }
 0x147   :  { %s9865_s2 = smov [#allocation18]   ;;  %s9866_s18 = smov [#allocation21]  }
 0x148   :  { %s169_s26 = sshll.u32 %s9865_s2, 4  ;;  %s195_s30 = sshll.u32 %s9866_s18, 4  ;;  %s170_s26 = int_to_ptr.vmem [resolvable:$true] %s169_s26  ;;  %s196_s30 = int_to_ptr.vmem [resolvable:$true] %s195_s30 }
 0x149   :  { %s9692_s19 = scalar_lea.hbm %s12113_s12, 2048 }
 0x14a   :  { %p9693_p8 = scmp.ne.s32.totalorder %s12113_s12, %s9692_s19  ;;  %p9696_p9 = scmp.lt.u32.totalorder %s9692_s19, %s12113_s12 }
 0x14c   :  { %p9698_p10 = pnand %p9696_p9, %p9693_p8 }
 0x14e   :  { %9701 = shalt.err (!%p9698_p10)
}
 0x14f   :  { %s9702_s7 = scalar_lea.vmem %s170_s26, 2048  ;;  %p9707_p12 = scmp.lt.s32.totalorder %s170_s26, %s170_s26 }
 0x150   :  { %p9703_p11 = scmp.ne.s32.totalorder %s170_s26, %s9702_s7  ;;  %p9708_p13 = scmp.lt.s32.totalorder %s9702_s7, %s9702_s7 }
 0x152   :  { %p9709_p0 = por %p9708_p13, %p9707_p12 }
 0x154   :  { %p9710_p1 = pnand %p9709_p0, %p9703_p11 }
 0x156   :  { %9713 = shalt.err (!%p9710_p1)
}
 0x157   :  { %175 = dma.hbm_to_vmem [thread:$0]  %s12113_s12, 2048, %s170_s26, [#allocation17], %s9851_s9, %s9851_s9, %s9852_s6  }
 0x158   :  { %s9714_s21 = scalar_lea.hbm %s12116_s15, 256 }
 0x159   :  { %p9715_p2 = scmp.ne.s32.totalorder %s12116_s15, %s9714_s21  ;;  %p9718_p3 = scmp.lt.u32.totalorder %s9714_s21, %s12116_s15 }
 0x15b   :  { %p9720_p4 = pnand %p9718_p3, %p9715_p2 }
 0x15d   :  { %9723 = shalt.err (!%p9720_p4)
}
 0x15e   :  { %s9724_s2 = scalar_lea.vmem %s196_s30, 256  ;;  %p9729_p6 = scmp.lt.s32.totalorder %s196_s30, %s196_s30 }
 0x15f   :  { %p9725_p5 = scmp.ne.s32.totalorder %s196_s30, %s9724_s2  ;;  %p9730_p7 = scmp.lt.s32.totalorder %s9724_s2, %s9724_s2 }
 0x161   :  { %p9731_p8 = por %p9730_p7, %p9729_p6 }
 0x163   :  { %p9732_p9 = pnand %p9731_p8, %p9725_p5 }
 0x165   :  { %9735 = shalt.err (!%p9732_p9)
}
 0x166   :  { %201 = dma.hbm_to_vmem [thread:$0]  %s12116_s15, 256, %s196_s30, [#allocation20], %s9851_s9, %s9851_s9, %s9852_s6  }
 0x167   :  { %s9867_s18 = smov [#allocation24]   ;;  %s9868_s10 = smov [#allocation27]  }
 0x168   :  { %s219_s4 = sshll.u32 %s9867_s18, 4  ;;  %s245_s19 = sshll.u32 %s9868_s10, 4  ;;  %s220_s4 = int_to_ptr.vmem [resolvable:$true] %s219_s4  ;;  %s246_s19 = int_to_ptr.vmem [resolvable:$true] %s245_s19 }
 0x169   :  { %s9736_s3 = scalar_lea.hbm %s12118_s17, 6144 }
 0x16a   :  { %p9737_p10 = scmp.ne.s32.totalorder %s12118_s17, %s9736_s3  ;;  %p9740_p11 = scmp.lt.u32.totalorder %s9736_s3, %s12118_s17 }
 0x16c   :  { %p9742_p12 = pnand %p9740_p11, %p9737_p10 }
 0x16e   :  { %9745 = shalt.err (!%p9742_p12)
}
 0x16f   :  { %s9746_s15 = scalar_lea.vmem %s220_s4, 6144  ;;  %p9751_p0 = scmp.lt.s32.totalorder %s220_s4, %s220_s4 }
 0x170   :  { %p9747_p13 = scmp.ne.s32.totalorder %s220_s4, %s9746_s15  ;;  %p9752_p1 = scmp.lt.s32.totalorder %s9746_s15, %s9746_s15 }
 0x172   :  { %p9753_p2 = por %p9752_p1, %p9751_p0 }
 0x174   :  { %p9754_p3 = pnand %p9753_p2, %p9747_p13 }
 0x176   :  { %9757 = shalt.err (!%p9754_p3)
}
 0x177   :  { %225 = dma.hbm_to_vmem [thread:$0]  %s12118_s17, 6144, %s220_s4, [#allocation23], %s9851_s9, %s9851_s9, %s9852_s6  }
 0x178   :  { %s9758_s5 = scalar_lea.hbm %s12121_s20, 1536 }
 0x179   :  { %p9759_p4 = scmp.ne.s32.totalorder %s12121_s20, %s9758_s5  ;;  %p9762_p5 = scmp.lt.u32.totalorder %s9758_s5, %s12121_s20 }
 0x17b   :  { %p9764_p6 = pnand %p9762_p5, %p9759_p4 }
 0x17d   :  { %9767 = shalt.err (!%p9764_p6)
}
 0x17e   :  { %s9768_s12 = scalar_lea.vmem %s246_s19, 1536  ;;  %p9773_p8 = scmp.lt.s32.totalorder %s246_s19, %s246_s19 }
 0x17f   :  { %p9769_p7 = scmp.ne.s32.totalorder %s246_s19, %s9768_s12  ;;  %p9774_p9 = scmp.lt.s32.totalorder %s9768_s12, %s9768_s12 }
 0x181   :  { %p9775_p10 = por %p9774_p9, %p9773_p8 }
 0x183   :  { %p9776_p11 = pnand %p9775_p10, %p9769_p7 }
 0x185   :  { %9779 = shalt.err (!%p9776_p11)
}
 0x186   :  { %251 = dma.hbm_to_vmem [thread:$0]  %s12121_s20, 1536, %s246_s19, [#allocation26], %s9851_s9, %s9851_s9, %s9852_s6  }
 0x187   :  { %s9869_s18 = smov [#allocation30]   ;;  %s9870_s10 = smov [#allocation33]  }
 0x188   :  { %s269_s4 = sshll.u32 %s9869_s18, 4  ;;  %s295_s29 = sshll.u32 %s9870_s10, 4  ;;  %s270_s4 = int_to_ptr.vmem [resolvable:$true] %s269_s4  ;;  %s296_s29 = int_to_ptr.vmem [resolvable:$true] %s295_s29 }
 0x189   :  { %s9780_s16 = scalar_lea.hbm %s12123_s22, 512 }
 0x18a   :  { %p9781_p12 = scmp.ne.s32.totalorder %s12123_s22, %s9780_s16  ;;  %p9784_p13 = scmp.lt.u32.totalorder %s9780_s16, %s12123_s22 }
 0x18c   :  { %p9786_p0 = pnand %p9784_p13, %p9781_p12 }
 0x18e   :  { %9789 = shalt.err (!%p9786_p0)
}
 0x18f   :  { %s9790_s20 = scalar_lea.vmem %s270_s4, 512  ;;  %p9795_p2 = scmp.lt.s32.totalorder %s270_s4, %s270_s4 }
 0x190   :  { %p9791_p1 = scmp.ne.s32.totalorder %s270_s4, %s9790_s20  ;;  %p9796_p3 = scmp.lt.s32.totalorder %s9790_s20, %s9790_s20 }
 0x192   :  { %p9797_p4 = por %p9796_p3, %p9795_p2 }
 0x194   :  { %p9798_p5 = pnand %p9797_p4, %p9791_p1 }
 0x196   :  { %9801 = shalt.err (!%p9798_p5)
}
 0x197   :  { %275 = dma.hbm_to_vmem [thread:$0]  %s12123_s22, 512, %s270_s4, [#allocation29], %s9851_s9, %s9851_s9, %s9852_s6  }
 0x198   :  { %s9802_s21 = scalar_lea.hbm %s12126_s25, 768 }
 0x199   :  { %p9803_p6 = scmp.ne.s32.totalorder %s12126_s25, %s9802_s21  ;;  %p9806_p7 = scmp.lt.u32.totalorder %s9802_s21, %s12126_s25 }
 0x19b   :  { %p9808_p8 = pnand %p9806_p7, %p9803_p6 }
 0x19d   :  { %9811 = shalt.err (!%p9808_p8)
}
 0x19e   :  { %s9812_s2 = scalar_lea.vmem %s296_s29, 768  ;;  %p9817_p10 = scmp.lt.s32.totalorder %s296_s29, %s296_s29 }
 0x19f   :  { %p9813_p9 = scmp.ne.s32.totalorder %s296_s29, %s9812_s2  ;;  %p9818_p11 = scmp.lt.s32.totalorder %s9812_s2, %s9812_s2 }
 0x1a1   :  { %p9819_p12 = por %p9818_p11, %p9817_p10 }
 0x1a3   :  { %p9820_p13 = pnand %p9819_p12, %p9813_p9 }
 0x1a5   :  { %9823 = shalt.err (!%p9820_p13)
}
 0x1a6   :  { %301 = dma.hbm_to_vmem [thread:$0]  %s12126_s25, 768, %s296_s29, [#allocation32], %s9851_s9, %s9851_s9, %s9852_s6  }
 0x1a7   :  { %9824 = dma.done.wait [#allocation3], 384  }
 0x1a8   :  { %9825 = vsyncadd [#allocation3], 4294966912 }
 0x1a9   :  { %9826 = dma.done.wait [#allocation5], 1728  }
 0x1aa   :  { %9827 = vsyncadd [#allocation5], 4294965568 }
 0x1ab   :  { %9828 = dma.done.wait [#allocation8], 4096  }
 0x1ac   :  { %9829 = vsyncadd [#allocation8], 4294963200 }
 0x1ad   :  { %9830 = dma.done.wait [#allocation11], 768  }
 0x1ae   :  { %9831 = vsyncadd [#allocation11], 4294966528 }
 0x1af   :  { %9832 = dma.done.wait [#allocation14], 2176  }
 0x1b0   :  { %9833 = vsyncadd [#allocation14], 4294965120 }
 0x1b1   :  { %9834 = dma.done.wait [#allocation17], 2176  }
 0x1b2   :  { %9835 = vsyncadd [#allocation17], 4294965120 }
 0x1b3   :  { %9836 = dma.done.wait [#allocation20], 512  }
 0x1b4   :  { %9837 = vsyncadd [#allocation20], 4294966784 }
 0x1b5   :  { %9838 = dma.done.wait [#allocation23], 12288  }
 0x1b6   :  { %9839 = vsyncadd [#allocation23], 4294955008 }
 0x1b7   :  { %9840 = dma.done.wait [#allocation26], 4608  }
 0x1b8   :  { %9841 = vsyncadd [#allocation26], 4294962688 }
 0x1b9   :  { %9842 = dma.done.wait [#allocation29], 2048  }
 0x1ba   :  { %9843 = vsyncadd [#allocation29], 4294965248 }
 0x1bb   :  { %9844 = dma.done.wait [#allocation32], 2816  }
 0x1bc   :  { %9845 = vsyncadd [#allocation32], 4294964480  ;;  %vm587_vm0 = vcmask 1043456   ;;  %vm383_vm1 = vcmask 31744   ;;  %v538_v0 = vld [vmem:[#allocation4] sm:$0xf] }
 0x1bd   :  { %s12169_s6 = sld [smem:[#allocation45_spill]]  ;;  %7608 = vmatprep.subr.msk.mxu0 %vm587_vm0, %v538_v0  ;;  %9157 = vmatprep.subr.msk.mxu1 %vm587_vm0, %v538_v0  ;;  %v10378_v20 = vld [vmem:[#allocation4 + $0x4] sm:$0xf]  ;;  %v10380_v21 = vld [vmem:[#allocation4 + $0x8] sm:$0xf]  ;;  %vm1265_vm5 = vcmask 261120  }
 0x1be   :  { %7609 = vmatpush3.msk.msra.mxu0 %vm587_vm0, %v538_v0  ;;  %9158 = vmatpush3.msk.msra.mxu1 %vm587_vm0, %v538_v0  ;;  %vm2120_vm9 = vcmask 523264   ;;  %vm9872_vm14 = vmmov 0   ;;  %vm2893_vm15 = vcmask 130048   ;;  %s12171_s7 = sld [smem:[#allocation57_spill]]  ;;  %s12172_s9 = sld [smem:[#allocation58_spill]] }
 0x1bf   :  { %7660 = vmatprep.subr.msk.mxu0 %vm587_vm0, %v10378_v20  ;;  %7634 = vmatprep.subr.msk.mxu1 %vm587_vm0, %v10380_v21  ;;  %s12173_s19 = sld [smem:[#allocation59_spill]] }
 0x1c3   :  { %v10324_v1 = vld [vmem:[%s12169_s6] sm:$0xff]  ;;  %v10329_v2 = vld [vmem:[%s12169_s6 + $0x8] sm:$0xff]  ;;  %v10336_v3 = vld [vmem:[%s12169_s6 + $0x10] sm:$0xff] }
 0x1c4   :  { %v10341_v4 = vld [vmem:[%s12169_s6 + $0x18] sm:$0xff]  ;;  %v384_v5 = vsel %vm383_vm1, %v10324_v1, 0.0  ;;  %v385_v6 = vsel %vm383_vm1, %v10329_v2, 0.0  ;;  %v10352_v7 = vld [vmem:[%s12169_s6 + $0x20] sm:$0xff]  ;;  %v387_v9 = vsel %vm383_vm1, %v10336_v3, 0.0  ;;  %v10361_v11 = vld [vmem:[%s12169_s6 + $0x28] sm:$0xff]  ;;  %v421_v16 = vmul.f32 %v10324_v1, %v10324_v1 }
 0x1c5   :  { %v386_v8 = vadd.f32 %v385_v6, %v384_v5  ;;  %v389_v10 = vsel %vm383_vm1, %v10341_v4, 0.0  ;;  %v391_v13 = vsel %vm383_vm1, %v10352_v7, 0.0  ;;  %v10368_v14 = vld [vmem:[%s12169_s6 + $0x30] sm:$0xff]  ;;  %v422_v17 = vmul.f32 %v10329_v2, %v10329_v2  ;;  %v10385_v22 = vld [vmem:[%s12169_s6 + $0x38] sm:$0xff]  ;;  %v10400_v27 = vld [vmem:[%s12169_s6 + $0x40] sm:$0xff] }
 0x1c6   :  { %v423_v18 = vmul.f32 %v10336_v3, %v10336_v3  ;;  %v393_v19 = vsel %vm383_vm1, %v10361_v11, 0.0  ;;  %v424_v24 = vmul.f32 %v10341_v4, %v10341_v4  ;;  %v395_v25 = vsel %vm383_vm1, %v10368_v14, 0.0  ;;  %v10410_v34 = vld [vmem:[%s12169_s6 + $0x48] sm:$0xff]  ;;  %v10420_v40 = vld [vmem:[%s12169_s6 + $0x50] sm:$0xff]  ;;  %v10430_v46 = vld [vmem:[%s12169_s6 + $0x58] sm:$0xff] }
 0x1c7   :  { %v388_v12 = vadd.f32 %v387_v9, %v386_v8  ;;  %v425_v26 = vmul.f32 %v10352_v7, %v10352_v7  ;;  %v437_v29 = vsel %vm383_vm1, %v421_v16, 0.0  ;;  %v438_v30 = vsel %vm383_vm1, %v422_v17, 0.0  ;;  %v10440_v52 = vld [vmem:[%s12169_s6 + $0x60] sm:$0xff]  ;;  %v10450_v58 = vld [vmem:[%s12169_s6 + $0x68] sm:$0xff]  ;;  %v10460_v0 = vld [vmem:[%s12169_s6 + $0x70] sm:$0xff] }
 0x1c8   :  { %v440_v31 = vsel %vm383_vm1, %v423_v18, 0.0  ;;  %v397_v32 = vsel %vm383_vm1, %v10385_v22, 0.0  ;;  %v439_v33 = vadd.f32 %v438_v30, %v437_v29  ;;  %v426_v36 = vmul.f32 %v10361_v11, %v10361_v11 }
 0x1c9   :  { %v390_v15 = vadd.f32 %v389_v10, %v388_v12  ;;  %v442_v37 = vsel %vm383_vm1, %v424_v24, 0.0  ;;  %v399_v38 = vsel %vm383_vm1, %v10400_v27, 0.0  ;;  %v427_v42 = vmul.f32 %v10368_v14, %v10368_v14  ;;  %v10470_v12 = vld [vmem:[%s12169_s6 + $0x78] sm:$0xff] }
 0x1ca   :  { %v441_v39 = vadd.f32 %v440_v31, %v439_v33  ;;  %v444_v43 = vsel %vm383_vm1, %v425_v26, 0.0  ;;  %v401_v44 = vsel %vm383_vm1, %v10410_v34, 0.0  ;;  %v428_v48 = vmul.f32 %v10385_v22, %v10385_v22 }
 0x1cb   :  { %v392_v23 = vadd.f32 %v391_v13, %v390_v15  ;;  %v446_v49 = vsel %vm383_vm1, %v426_v36, 0.0  ;;  %v403_v50 = vsel %vm383_vm1, %v10420_v40, 0.0  ;;  %v429_v54 = vmul.f32 %v10400_v27, %v10400_v27 }
 0x1cc   :  { %v443_v45 = vadd.f32 %v442_v37, %v441_v39  ;;  %v448_v55 = vsel %vm383_vm1, %v427_v42, 0.0  ;;  %v405_v56 = vsel %vm383_vm1, %v10430_v46, 0.0  ;;  %v430_v60 = vmul.f32 %v10410_v34, %v10410_v34 }
 0x1cd   :  { %v394_v28 = vadd.f32 %v393_v19, %v392_v23  ;;  %v450_v61 = vsel %vm383_vm1, %v428_v48, 0.0  ;;  %v407_v62 = vsel %vm383_vm1, %v10440_v52, 0.0  ;;  %v431_v6 = vmul.f32 %v10420_v40, %v10420_v40 }
 0x1ce   :  { %v445_v51 = vadd.f32 %v444_v43, %v443_v45  ;;  %v452_v8 = vsel %vm383_vm1, %v429_v54, 0.0  ;;  %v409_v9 = vsel %vm383_vm1, %v10450_v58, 0.0  ;;  %v432_v15 = vmul.f32 %v10430_v46, %v10430_v46 }
 0x1cf   :  { %v396_v35 = vadd.f32 %v395_v25, %v394_v28  ;;  %v454_v16 = vsel %vm383_vm1, %v430_v60, 0.0  ;;  %v411_v17 = vsel %vm383_vm1, %v10460_v0, 0.0  ;;  %v433_v23 = vmul.f32 %v10440_v52, %v10440_v52 }
 0x1d0   :  { %v447_v57 = vadd.f32 %v446_v49, %v445_v51  ;;  %v456_v24 = vsel %vm383_vm1, %v431_v6, 0.0  ;;  %v413_v25 = vsel %vm383_vm1, %v10470_v12, 0.0  ;;  %v434_v29 = vmul.f32 %v10450_v58, %v10450_v58 }
 0x1d1   :  { %v398_v41 = vadd.f32 %v397_v32, %v396_v35  ;;  %v458_v30 = vsel %vm383_vm1, %v432_v15, 0.0  ;;  %v435_v33 = vmul.f32 %v10460_v0, %v10460_v0  ;;  %v460_v35 = vsel %vm383_vm1, %v433_v23, 0.0 }
 0x1d2   :  { %v449_v63 = vadd.f32 %v448_v55, %v447_v57  ;;  %v462_v39 = vsel %vm383_vm1, %v434_v29, 0.0  ;;  %v6776_v29 = vld [vmem:[#allocation2 + $0x1] ss:$0 sm:$0xff] }
 0x1d3   :  { %v400_v47 = vadd.f32 %v399_v38, %v398_v41  ;;  %v436_v38 = vmul.f32 %v10470_v12, %v10470_v12  ;;  %v464_v43 = vsel %vm383_vm1, %v435_v33, 0.0 }
 0x1d4   :  { %v451_v10 = vadd.f32 %v450_v61, %v449_v63 }
 0x1d5   :  { %v402_v53 = vadd.f32 %v401_v44, %v400_v47  ;;  %v466_v47 = vsel %vm383_vm1, %v436_v38, 0.0 }
 0x1d6   :  { %v453_v18 = vadd.f32 %v452_v8, %v451_v10 }
 0x1d7   :  { %v404_v59 = vadd.f32 %v403_v50, %v402_v53 }
 0x1d8   :  { %v455_v26 = vadd.f32 %v454_v16, %v453_v18 }
 0x1d9   :  { %v406_v5 = vadd.f32 %v405_v56, %v404_v59 }
 0x1da   :  { %v457_v31 = vadd.f32 %v456_v24, %v455_v26 }
 0x1db   :  { %v408_v13 = vadd.f32 %v407_v62, %v406_v5 }
 0x1dc   :  { %v459_v36 = vadd.f32 %v458_v30, %v457_v31 }
 0x1dd   :  { %v410_v19 = vadd.f32 %v409_v9, %v408_v13  ;;  %v498_v9 = vlaneseq  ;;  %v381_v13 = vld [vmem:[#allocation2] sm:$0x1] }
 0x1de   :  { %v461_v41 = vadd.f32 %v460_v35, %v459_v36 }
 0x1df   :  { %v412_v28 = vadd.f32 %v411_v17, %v410_v19  ;;  %v10497_v10 = vshrl.u32 %v498_v9, 7 }
 0x1e0   :  { %v463_v44 = vadd.f32 %v462_v39, %v461_v41 }
 0x1e1   :  { %v414_v32 = vadd.f32 %v413_v25, %v412_v28  ;;  %v10500_v15 = vsub.s32 0, %v10497_v10  ;;  %vm906_vm2 = vcmp.lt.s32.totalorder %v10497_v10, 1  ;;  %vm939_vm3 = vcmp.lt.s32.totalorder %v10497_v10, 7 }
 0x1e2   :  { %v465_v48 = vadd.f32 %v464_v43, %v463_v44  ;;  %vm971_vm4 = vcmp.ne.s32.totalorder %v10497_v10, 0 }
 0x1e3   :  { %v415_v37 = vrot.slane %v414_v32, 4 }
 0x1e4   :  { %v467_v50 = vadd.f32 %v466_v47, %v465_v48 }
 0x1e5   :  { %v416_v42 = vadd.f32 %v415_v37, %v414_v32 }
 0x1e6   :  { %v468_v53 = vrot.slane %v467_v50, 4 }
 0x1e7   :  { %v417_v45 = vrot.slane %v416_v42, 2 }
 0x1e8   :  { %v469_v55 = vadd.f32 %v468_v53, %v467_v50 }
 0x1e9   :  { %v418_v49 = vadd.f32 %v417_v45, %v416_v42 }
 0x1ea   :  { %v470_v56 = vrot.slane %v469_v55, 2 }
 0x1eb   :  { %v419_v51 = vrot.slane %v418_v49, 1 }
 0x1ec   :  { %v471_v57 = vadd.f32 %v470_v56, %v469_v55 }
 0x1ed   :  { %v420_v54 = vadd.f32 %v419_v51, %v418_v49 }
 0x1ee   :  { %v472_v60 = vrot.slane %v471_v57, 1 }
 0x1ef   :  { %v10493_v59 = vmul.f32 0.0078125, %v420_v54 }
 0x1f0   :  { %v473_v61 = vadd.f32 %v472_v60, %v471_v57 }
 0x1f1   :  { %v476_v62 = vmul.f32 %v10493_v59, %v10493_v59  ;;  %v479_v17 = vsub.f32 %v10324_v1, %v10493_v59  ;;  %v489_v19 = vsub.f32 %v10420_v40, %v10493_v59  ;;  %v480_v23 = vsub.f32 %v10329_v2, %v10493_v59 }
 0x1f2   :  { %v475_v63 = vmul.f32 0.0078125, %v473_v61  ;;  %v490_v24 = vsub.f32 %v10430_v46, %v10493_v59  ;;  %v481_v25 = vsub.f32 %v10336_v3, %v10493_v59  ;;  %v491_v26 = vsub.f32 %v10440_v52, %v10493_v59 }
 0x1f3   :  { %v482_v28 = vsub.f32 %v10341_v4, %v10493_v59  ;;  %v492_v1 = vsub.f32 %v10450_v58, %v10493_v59  ;;  %v483_v2 = vsub.f32 %v10352_v7, %v10493_v59  ;;  %v493_v46 = vsub.f32 %v10460_v0, %v10493_v59 }
 0x1f4   :  { %v477_v5 = vsub.f32 %v475_v63, %v476_v62  ;;  %v484_v3 = vsub.f32 %v10361_v11, %v10493_v59  ;;  %v494_v52 = vsub.f32 %v10470_v12, %v10493_v59  ;;  %v485_v4 = vsub.f32 %v10368_v14, %v10493_v59 }
 0x1f5   :  { %v486_v14 = vsub.f32 %v10385_v22, %v10493_v59  ;;  %v487_v12 = vsub.f32 %v10400_v27, %v10493_v59  ;;  %v488_v50 = vsub.f32 %v10410_v34, %v10493_v59 }
 0x1f6   :  { %v478_v6 = vmax.f32 %v477_v5, 0.0 }
 0x1f8   :  { %v495_v8 = vadd.f32 1e-05, %v478_v6 }
 0x1fa   :  { %9230 = vrsqrt.f32 %v495_v8 }
 0x204   :  { %v9231_v16 = vpop.eup %9230 }
 0x205   :  { %v497_v18 = vmul.f32 %v9231_v16, %v381_v13 }
 0x207   :  { %v501_v40 = vrot.slane %v497_v18, %v10500_v15 }
 0x209   :  { %v502_v30 = vmul.f32 %v501_v40, %v479_v17  ;;  %v512_v58 = vmul.f32 %v501_v40, %v489_v19  ;;  %v503_v31 = vmul.f32 %v501_v40, %v480_v23  ;;  %v513_v32 = vmul.f32 %v501_v40, %v490_v24 }
 0x20a   :  { %v504_v33 = vmul.f32 %v501_v40, %v481_v25  ;;  %v514_v35 = vmul.f32 %v501_v40, %v491_v26  ;;  %v505_v7 = vmul.f32 %v501_v40, %v482_v28  ;;  %v515_v36 = vmul.f32 %v501_v40, %v492_v1 }
 0x20b   :  { %v522_v37 = vadd.f32 %v6776_v29, %v502_v30  ;;  %v10529_v38 = vadd.f32 %v6776_v29, %v512_v58  ;;  %v523_v0 = vadd.f32 %v6776_v29, %v503_v31  ;;  %v10531_v39 = vadd.f32 %v6776_v29, %v513_v32 }
 0x20c   :  { %v524_v11 = vadd.f32 %v6776_v29, %v504_v33  ;;  %v10533_v41 = vadd.f32 %v6776_v29, %v514_v35  ;;  %v525_v42 = vadd.f32 %v6776_v29, %v505_v7  ;;  %v506_v43 = vmul.f32 %v501_v40, %v483_v2 }
 0x20d   :  { %7610 = vmatprep.mubr.msk.f32.mxu0 %vm383_vm1, %v522_v37  ;;  %7625 = vmatprep.mubr.msk.f32.mxu1 %vm383_vm1, %v10529_v38  ;;  %v516_v44 = vmul.f32 %v501_v40, %v493_v46  ;;  %v535_v45 = vadd.f32 %v6776_v29, %v515_v36  ;;  %v507_v47 = vmul.f32 %v501_v40, %v484_v3 }
 0x20e   :  { %7611 = vmatmul.mubr.msk.f32.vlgmr.msra.gmra.mrb[0].mxu0 %vm383_vm1, %v523_v0  ;;  %7626 = vmatmul.mubr.msk.f32.vlgmr.msra.gmra.mrb[0].mxu1 %vm383_vm1, %v10531_v39  ;;  %v517_v48 = vmul.f32 %v501_v40, %v494_v52  ;;  %v526_v22 = vadd.f32 %v6776_v29, %v506_v43  ;;  %v508_v49 = vmul.f32 %v501_v40, %v485_v4 }
 0x20f   :  { %7613 = vmatprep.mubr.msk.f32.mxu0 %vm383_vm1, %v524_v11  ;;  %7628 = vmatprep.mubr.msk.f32.mxu1 %vm383_vm1, %v10533_v41  ;;  %v536_v27 = vadd.f32 %v6776_v29, %v516_v44  ;;  %v527_v51 = vadd.f32 %v6776_v29, %v507_v47  ;;  %v509_v54 = vmul.f32 %v501_v40, %v486_v14 }
 0x210   :  { %7661 = vmatpush3.msk.msra.mxu0 %vm587_vm0, %v10378_v20  ;;  %7635 = vmatpush3.msk.msra.mxu1 %vm587_vm0, %v10380_v21  ;;  %v537_v53 = vadd.f32 %v6776_v29, %v517_v48  ;;  %v528_v55 = vadd.f32 %v6776_v29, %v508_v49  ;;  %v510_v56 = vmul.f32 %v501_v40, %v487_v12  ;;  %vm3147_vm0 = vcmask 64512  }
 0x211   :  { %v529_v20 = vadd.f32 %v6776_v29, %v509_v54  ;;  %v511_v21 = vmul.f32 %v501_v40, %v488_v50 }
 0x212   :  { %7614 = vmatmul.mubr.msk.f32.gmra.mrb[2].mxu0 %vm383_vm1, %v525_v42  ;;  %7629 = vmatmul.mubr.msk.f32.gmra.mrb[2].mxu1 %vm383_vm1, %v535_v45  ;;  %v530_v34 = vadd.f32 %v6776_v29, %v510_v56 }
 0x213   :  { %7616 = vmatprep.mubr.msk.f32.mxu0 %vm383_vm1, %v526_v22  ;;  %7631 = vmatprep.mubr.msk.f32.mxu1 %vm383_vm1, %v536_v27  ;;  %v531_v57 = vadd.f32 %v6776_v29, %v511_v21 }
 0x216   :  { %7617 = vmatmul.mubr.msk.f32.gmra.mrb[4].mxu0 %vm383_vm1, %v527_v51  ;;  %7632 = vmatmul.mubr.msk.f32.gmra.mrb[4].mxu1 %vm383_vm1, %v537_v53 }
 0x217   :  { %7619 = vmatprep.mubr.msk.f32.mxu0 %vm383_vm1, %v528_v55  ;;  %7636 = vmatprep.mubr.msk.f32.mxu1 %vm383_vm1, %v522_v37 }
 0x21a   :  { %7620 = vmatmul.mubr.msk.f32.gmra.mrb[6].mxu0 %vm383_vm1, %v529_v20  ;;  %7637 = vmatmul.mubr.msk.f32.vlgmr.msra.gmra.mrb[6].mxu1 %vm383_vm1, %v523_v0 }
 0x21b   :  { %7622 = vmatprep.mubr.msk.f32.mxu0 %vm383_vm1, %v530_v34  ;;  %7639 = vmatprep.mubr.msk.f32.mxu1 %vm383_vm1, %v524_v11 }
 0x21e   :  { %7623 = vmatmul.mubr.msk.f32.gmra.mrb[8].mxu0 %vm383_vm1, %v531_v57  ;;  %7640 = vmatmul.mubr.msk.f32.gmra.mrb[8].mxu1 %vm383_vm1, %v525_v42 }
 0x21f   :  { %7642 = vmatprep.mubr.msk.f32.mxu1 %vm383_vm1, %v526_v22  ;;  %7662 = vmatprep.mubr.msk.f32.mxu0 %vm383_vm1, %v522_v37 }
 0x222   :  { %7643 = vmatmul.mubr.msk.f32.gmra.mrb[10].mxu1 %vm383_vm1, %v527_v51  ;;  %7663 = vmatmul.mubr.msk.f32.vlgmr.msra.gmra.mrb[10].mxu0 %vm383_vm1, %v523_v0 }
 0x223   :  { %7645 = vmatprep.mubr.msk.f32.mxu1 %vm383_vm1, %v528_v55  ;;  %7665 = vmatprep.mubr.msk.f32.mxu0 %vm383_vm1, %v524_v11 }
 0x226   :  { %7646 = vmatmul.mubr.msk.f32.gmra.mrb[12].mxu1 %vm383_vm1, %v529_v20  ;;  %7666 = vmatmul.mubr.msk.f32.gmra.mrb[12].mxu0 %vm383_vm1, %v525_v42 }
 0x227   :  { %7648 = vmatprep.mubr.msk.f32.mxu1 %vm383_vm1, %v530_v34  ;;  %7668 = vmatprep.mubr.msk.f32.mxu0 %vm383_vm1, %v526_v22 }
 0x22a   :  { %7649 = vmatmul.mubr.msk.f32.gmra.mrb[14].mxu1 %vm383_vm1, %v531_v57  ;;  %7669 = vmatmul.mubr.msk.f32.gmra.mrb[14].mxu0 %vm383_vm1, %v527_v51 }
 0x22b   :  { %7651 = vmatprep.mubr.msk.f32.mxu1 %vm383_vm1, %v10529_v38  ;;  %7671 = vmatprep.mubr.msk.f32.mxu0 %vm383_vm1, %v528_v55 }
 0x22e   :  { %7652 = vmatmul.mubr.msk.f32.gmra.mrb[16].mxu1 %vm383_vm1, %v10531_v39  ;;  %7672 = vmatmul.mubr.msk.f32.gmra.mrb[16].mxu0 %vm383_vm1, %v529_v20 }
 0x22f   :  { %7654 = vmatprep.mubr.msk.f32.mxu1 %vm383_vm1, %v10533_v41  ;;  %7674 = vmatprep.mubr.msk.f32.mxu0 %vm383_vm1, %v530_v34 }
 0x232   :  { %7655 = vmatmul.mubr.msk.f32.gmra.mrb[18].mxu1 %vm383_vm1, %v535_v45  ;;  %7675 = vmatmul.mubr.msk.f32.gmra.mrb[18].mxu0 %vm383_vm1, %v531_v57 }
 0x233   :  { %7657 = vmatprep.mubr.msk.f32.mxu1 %vm383_vm1, %v536_v27  ;;  %7677 = vmatprep.mubr.msk.f32.mxu0 %vm383_vm1, %v10529_v38 }
 0x236   :  { %7658 = vmatmul.mubr.msk.f32.gmra.mrb[20].mxu1 %vm383_vm1, %v537_v53  ;;  %7678 = vmatmul.mubr.msk.f32.gmra.mrb[20].mxu0 %vm383_vm1, %v10531_v39 }
 0x237   :  { %7680 = vmatprep.mubr.msk.f32.mxu0 %vm383_vm1, %v10533_v41 }
 0x23a   :  { %7681 = vmatmul.mubr.msk.f32.gmra.mrb[22].mxu0 %vm383_vm1, %v535_v45 }
 0x23b   :  { %7683 = vmatprep.mubr.msk.f32.mxu0 %vm383_vm1, %v536_v27 }
 0x23e   :  { %7684 = vmatmul.mubr.msk.f32.gmra.mrb[24].mxu0 %vm383_vm1, %v537_v53 }
 0x2e1   :  { %v7612_v59 = vpop.f32.mrb[0].mxu0  ;;  %v7627_v60 = vpop.f32.mrb[0].mxu1 }
 0x2e2   :  { %v889_v61 = vrot.slane %v7612_v59, 7  ;;  %v657_v62 = vpop.f32.mrb[1].mxu0  ;;  %v899_v63 = vrot.slane %v7627_v60, 7  ;;  %v707_v5 = vpop.f32.mrb[1].mxu1 }
 0x2e3   :  { %v888_v6 = vrot.slane %v657_v62, 7  ;;  %v898_v8 = vrot.slane %v707_v5, 7 }
 0x2e5   :  { %v7615_v9 = vpop.f32.mrb[2].mxu0  ;;  %v7630_v13 = vpop.f32.mrb[2].mxu1  ;;  %v921_v16 = vsel %vm906_vm2, %v888_v6, %v889_v61  ;;  %v10607_v17 = vsel %vm906_vm2, %v898_v8, %v899_v63 }
 0x2e6   :  { %v891_v18 = vrot.slane %v7615_v9, 7  ;;  %v901_v19 = vrot.slane %v7630_v13, 7  ;;  %v667_v23 = vpop.f32.mrb[3].mxu0  ;;  %v717_v24 = vpop.f32.mrb[3].mxu1 }
 0x2e7   :  { %v890_v25 = vrot.slane %v667_v23, 7  ;;  %v900_v26 = vrot.slane %v717_v24, 7  ;;  %v10686_v23 = vadd.s32 56, %v10497_v10 }
 0x2e9   :  { %v7618_v28 = vpop.f32.mrb[4].mxu0  ;;  %v7633_v1 = vpop.f32.mrb[4].mxu1  ;;  %v919_v40 = vsel %vm906_vm2, %v890_v25, %v891_v18  ;;  %v10613_v2 = vsel %vm906_vm2, %v889_v61, %v890_v25  ;;  %v10617_v29 = vsel %vm906_vm2, %v900_v26, %v901_v19  ;;  %v10621_v46 = vsel %vm906_vm2, %v899_v63, %v900_v26 }
 0x2ea   :  { %v893_v3 = vrot.slane %v7618_v28, 7  ;;  %v903_v52 = vrot.slane %v7633_v1, 7  ;;  %v677_v4 = vpop.f32.mrb[5].mxu0  ;;  %v727_v30 = vpop.f32.mrb[5].mxu1  ;;  %vm994_vm7 = vcmp.ne.s32.totalorder %v10686_v23, 63 }
 0x2eb   :  { %v892_v58 = vrot.slane %v677_v4, 7  ;;  %v902_v31 = vrot.slane %v727_v30, 7 }
 0x2ec   :  { %v922_v32 = vsel %vm906_vm2, %v903_v52, %v888_v6 }
 0x2ed   :  { %v7621_v33 = vpop.f32.mrb[6].mxu0  ;;  %v7638_v35 = vpop.f32.mrb[6].mxu1  ;;  %v10627_v7 = vsel %vm906_vm2, %v892_v58, %v893_v3  ;;  %v10631_v36 = vsel %vm906_vm2, %v891_v18, %v892_v58  ;;  %v10635_v37 = vsel %vm906_vm2, %v902_v31, %v903_v52  ;;  %v10642_v41 = vsel %vm906_vm2, %v901_v19, %v902_v31 }
 0x2ee   :  { %v895_v38 = vrot.slane %v7621_v33, 7  ;;  %v687_v0 = vpop.f32.mrb[7].mxu0  ;;  %v924_v39 = vrot.slane %v7638_v35, 1  ;;  %v10638_v11 = vpop.f32.mrb[7].mxu1  ;;  %v1067_v61 = vsel %vm971_vm4, %v922_v32, 0.0 }
 0x2ef   :  { %v894_v14 = vrot.slane %v687_v0, 7  ;;  %v923_v12 = vrot.slane %v10638_v11, 1 }
 0x2f1   :  { %v7624_v42 = vpop.f32.mrb[8].mxu0  ;;  %v7641_v43 = vpop.f32.mrb[8].mxu1  ;;  %v954_v44 = vsel %vm939_vm3, %v923_v12, %v924_v39  ;;  %v10651_v45 = vsel %vm906_vm2, %v894_v14, %v895_v38  ;;  %v10655_v47 = vsel %vm906_vm2, %v893_v3, %v894_v14 }
 0x2f2   :  { %v897_v48 = vrot.slane %v7624_v42, 7  ;;  %v926_v22 = vrot.slane %v7641_v43, 1  ;;  %v697_v27 = vpop.f32.mrb[9].mxu0  ;;  %v819_v49 = vpop.f32.mrb[9].mxu1 }
 0x2f3   :  { %v896_v50 = vrot.slane %v697_v27, 7  ;;  %v925_v51 = vrot.slane %v819_v49, 1 }
 0x2f4   :  { %v10660_v53 = vsel %vm906_vm2, %v897_v48, %v898_v8  ;;  %v10677_v8 = vadd.s32 64, %v10497_v10 }
 0x2f5   :  { %v7644_v54 = vpop.f32.mrb[10].mxu1  ;;  %v953_v55 = vsel %vm939_vm3, %v924_v39, %v925_v51  ;;  %v7664_v56 = vpop.f32.mrb[10].mxu0  ;;  %v952_v20 = vsel %vm939_vm3, %v925_v51, %v926_v22  ;;  %v10668_v21 = vsel %vm906_vm2, %v896_v50, %v897_v48  ;;  %v914_v34 = vsel %vm906_vm2, %v895_v38, %v896_v50 }
 0x2f6   :  { %v928_v57 = vrot.slane %v7644_v54, 1  ;;  %v1158_v59 = vadd.f32 %v7664_v56, %v921_v16  ;;  %v829_v60 = vpop.f32.mrb[11].mxu1  ;;  %v1152_v62 = vpop.f32.mrb[11].mxu0  ;;  %vm1011_vm6 = vcmp.ne.s32.totalorder %v10677_v8, 64  ;;  %v10720_v56 = vadd.s32 120, %v10497_v10 }
 0x2f7   :  { %v927_v63 = vrot.slane %v829_v60, 1  ;;  %v1153_v5 = vadd.f32 %v1152_v62, %v1067_v61 }
 0x2f8   :  { %v10674_v6 = vadd.f32 %v1158_v59, %v953_v55  ;;  %vm12143_vm8 = vcmp.ne.s32.totalorder %v10720_v56, 127 }
 0x2f9   :  { %v10679_v9 = vadd.f32 %v1153_v5, %v954_v44  ;;  %v7647_v13 = vpop.f32.mrb[12].mxu1  ;;  %v951_v18 = vsel %vm939_vm3, %v926_v22, %v927_v63  ;;  %v7667_v16 = vpop.f32.mrb[12].mxu0  ;;  %v950_v19 = vsel %vm939_vm3, %v927_v63, %v928_v57 }
 0x2fa   :  { %v1267_v24 = vsel %vm1265_vm5, %v10674_v6, 0.0  ;;  %v1304_v25 = vmul.f32 %v10674_v6, %v10674_v6  ;;  %v930_v26 = vrot.slane %v7647_v13, 1  ;;  %v1168_v28 = vadd.f32 %v7667_v16, %v919_v40  ;;  %v839_v1 = vpop.f32.mrb[13].mxu1  ;;  %v1162_v3 = vpop.f32.mrb[13].mxu0 }
 0x2fb   :  { %v1266_v52 = vsel %vm1265_vm5, %v10679_v9, 0.0  ;;  %v1303_v4 = vmul.f32 %v10679_v9, %v10679_v9  ;;  %v929_v30 = vrot.slane %v839_v1, 1  ;;  %v1163_v58 = vadd.f32 %v1162_v3, %v10613_v2 }
 0x2fc   :  { %v1320_v31 = vsel %vm1265_vm5, %v1304_v25, 0.0  ;;  %v1268_v32 = vadd.f32 %v1267_v24, %v1266_v52  ;;  %v10698_v33 = vadd.f32 %v1168_v28, %v951_v18  ;;  %v1075_v18 = vsel %vm1011_vm6, %v914_v34, 0.0 }
 0x2fd   :  { %v1319_v40 = vsel %vm1265_vm5, %v1303_v4, 0.0  ;;  %v10702_v35 = vadd.f32 %v1163_v58, %v952_v20  ;;  %v7650_v38 = vpop.f32.mrb[14].mxu1  ;;  %v949_v0 = vsel %vm939_vm3, %v928_v57, %v929_v30  ;;  %v7670_v39 = vpop.f32.mrb[14].mxu0  ;;  %v948_v14 = vsel %vm939_vm3, %v929_v30, %v930_v26 }
 0x2fe   :  { %v1321_v2 = vadd.f32 %v1320_v31, %v1319_v40  ;;  %v1306_v42 = vmul.f32 %v10698_v33, %v10698_v33  ;;  %v932_v43 = vrot.slane %v7650_v38, 1  ;;  %v849_v44 = vpop.f32.mrb[15].mxu1  ;;  %v1172_v48 = vpop.f32.mrb[15].mxu0  ;;  %v1178_v49 = vadd.f32 %v7670_v39, %v10627_v7  ;;  %v1564_v31 = vld [vmem:[#allocation9] sm:$0xff] }
 0x2ff   :  { %v1269_v22 = vsel %vm1265_vm5, %v10702_v35, 0.0  ;;  %v1305_v27 = vmul.f32 %v10702_v35, %v10702_v35  ;;  %v931_v50 = vrot.slane %v849_v44, 1  ;;  %v1271_v51 = vsel %vm1265_vm5, %v10698_v33, 0.0  ;;  %7718 = vmatprep.mubr.f32.mxu1 %v1564_v31 }
 0x300   :  { %v1270_v54 = vadd.f32 %v1269_v22, %v1268_v32  ;;  %v1173_v55 = vadd.f32 %v1172_v48, %v10631_v36  ;;  %v10723_v57 = vadd.f32 %v1178_v49, %v949_v0  ;;  %v1324_v16 = vsel %vm1265_vm5, %v1306_v42, 0.0 }
 0x301   :  { %v1322_v20 = vsel %vm1265_vm5, %v1305_v27, 0.0  ;;  %v10725_v59 = vpop.f32.mrb[16].mxu1  ;;  %v947_v60 = vsel %vm939_vm3, %v930_v26, %v931_v50  ;;  %v7673_v7 = vpop.f32.mrb[16].mxu0  ;;  %v946_v61 = vsel %vm939_vm3, %v931_v50, %v932_v43 }
 0x302   :  { %v1323_v62 = vadd.f32 %v1322_v20, %v1321_v2  ;;  %v10731_v63 = vadd.f32 %v1173_v55, %v950_v19  ;;  %v1272_v36 = vadd.f32 %v1271_v51, %v1270_v54  ;;  %v859_v5 = vpop.f32.mrb[17].mxu1  ;;  %v1182_v13 = vpop.f32.mrb[17].mxu0  ;;  %v1308_v24 = vmul.f32 %v10723_v57, %v10723_v57 }
 0x303   :  { %v1188_v25 = vadd.f32 %v7673_v7, %v10651_v45  ;;  %v1238_v26 = vsel %vm994_vm7, %v947_v60, 0.0  ;;  %v933_v3 = vrot.slane %v859_v5, 1  ;;  %v934_v34 = vrot.slane %v10725_v59, 1 }
 0x304   :  { %v1273_v19 = vsel %vm1265_vm5, %v10731_v63, 0.0  ;;  %v1307_v28 = vmul.f32 %v10731_v63, %v10731_v63  ;;  %v1325_v1 = vadd.f32 %v1324_v16, %v1323_v62  ;;  %v1183_v30 = vadd.f32 %v1182_v13, %v10655_v47 }
 0x305   :  { %v1274_v52 = vadd.f32 %v1273_v19, %v1272_v36  ;;  %v10746_v4 = vadd.f32 %v1238_v26, %v1188_v25  ;;  %v7656_v58 = vpop.f32.mrb[18].mxu1  ;;  %v7676_v45 = vpop.f32.mrb[18].mxu0  ;;  %v1275_v32 = vsel %vm1265_vm5, %v10723_v57, 0.0  ;;  %v945_v38 = vsel %vm939_vm3, %v932_v43, %v933_v3 }
 0x306   :  { %v1326_v40 = vsel %vm1265_vm5, %v1307_v28, 0.0  ;;  %v1198_v0 = vadd.f32 %v7676_v45, %v10668_v21  ;;  %v869_v39 = vpop.f32.mrb[19].mxu1  ;;  %v1192_v2 = vpop.f32.mrb[19].mxu0  ;;  %v1328_v42 = vsel %vm1265_vm5, %v1308_v24, 0.0  ;;  %v10758_v48 = vadd.f32 %v1183_v30, %v948_v14 }
 0x307   :  { %v1327_v44 = vadd.f32 %v1326_v40, %v1325_v1  ;;  %v1310_v47 = vmul.f32 %v10746_v4, %v10746_v4  ;;  %v1276_v22 = vadd.f32 %v1275_v32, %v1274_v52  ;;  %v935_v49 = vrot.slane %v869_v39, 1 }
 0x308   :  { %v10760_v27 = vadd.f32 %v1198_v0, %v945_v38  ;;  %v1193_v50 = vadd.f32 %v1192_v2, %v1075_v18  ;;  %v1277_v43 = vsel %vm1265_vm5, %v10758_v48, 0.0  ;;  %v1309_v21 = vmul.f32 %v10758_v48, %v10758_v48 }
 0x309   :  { %v1329_v51 = vadd.f32 %v1328_v42, %v1327_v44  ;;  %v936_v54 = vrot.slane %v7656_v58, 1  ;;  %v7659_v55 = vpop.f32.mrb[20].mxu1  ;;  %v7679_v20 = vpop.f32.mrb[20].mxu0  ;;  %v1279_v59 = vsel %vm1265_vm5, %v10746_v4, 0.0  ;;  %v1332_v14 = vsel %vm1265_vm5, %v1310_v47, 0.0 }
 0x30a   :  { %v1278_v60 = vadd.f32 %v1277_v43, %v1276_v22  ;;  %v10769_v7 = vadd.f32 %v1193_v50, %v946_v61  ;;  %v879_v62 = vpop.f32.mrb[21].mxu1  ;;  %v1202_v36 = vpop.f32.mrb[21].mxu0  ;;  %v1330_v5 = vsel %vm1265_vm5, %v1309_v21, 0.0  ;;  %v1312_v13 = vmul.f32 %v10760_v27, %v10760_v27 }
 0x30b   :  { %v943_v18 = vsel %vm939_vm3, %v934_v34, %v935_v49  ;;  %v1208_v16 = vadd.f32 %v7679_v20, %v10607_v17  ;;  %v1331_v24 = vadd.f32 %v1330_v5, %v1329_v51  ;;  %v938_v26 = vrot.slane %v7659_v55, 1 }
 0x30c   :  { %v1280_v25 = vadd.f32 %v1279_v59, %v1278_v60  ;;  %v1281_v61 = vsel %vm1265_vm5, %v10769_v7, 0.0  ;;  %v1311_v19 = vmul.f32 %v10769_v7, %v10769_v7  ;;  %v937_v1 = vrot.slane %v879_v62, 1  ;;  %v1816_v60 = vld [vmem:[#allocation6 + $0x40] sm:$0xff]  ;;  %v1817_v62 = vld [vmem:[#allocation6 + $0x48] sm:$0xff] }
 0x30d   :  { %v10782_v28 = vadd.f32 %v1208_v16, %v943_v18  ;;  %v944_v52 = vsel %vm939_vm3, %v933_v3, %v934_v34  ;;  %v7682_v30 = vpop.f32.mrb[22].mxu0  ;;  %v1333_v45 = vadd.f32 %v1332_v14, %v1331_v24  ;;  %v1203_v17 = vadd.f32 %v1202_v36, %v10660_v53 }
 0x30e   :  { %v1282_v58 = vadd.f32 %v1281_v61, %v1280_v25  ;;  %v1218_v31 = vadd.f32 %v7682_v30, %v10617_v29  ;;  %v1212_v32 = vpop.f32.mrb[23].mxu0  ;;  %v1283_v40 = vsel %vm1265_vm5, %v10760_v27, 0.0  ;;  %v1334_v38 = vsel %vm1265_vm5, %v1311_v19, 0.0  ;;  %v1818_v61 = vld [vmem:[#allocation6 + $0x50] sm:$0xff] }
 0x30f   :  { %v1314_v0 = vmul.f32 %v10782_v28, %v10782_v28  ;;  %v941_v39 = vsel %vm939_vm3, %v936_v54, %v937_v1  ;;  %v1335_v3 = vadd.f32 %v1334_v38, %v1333_v45  ;;  %v10795_v34 = vadd.f32 %v1203_v17, %v944_v52 }
 0x310   :  { %v1284_v2 = vadd.f32 %v1283_v40, %v1282_v58  ;;  %v10797_v42 = vadd.f32 %v1218_v31, %v941_v39  ;;  %v1336_v29 = vsel %vm1265_vm5, %v1312_v13, 0.0  ;;  %v942_v53 = vsel %vm939_vm3, %v935_v49, %v936_v54 }
 0x311   :  { %v1213_v44 = vadd.f32 %v1212_v32, %v10621_v46  ;;  %v955_v47 = vsel %vm939_vm3, %v938_v26, %v923_v12  ;;  %v7685_v22 = vpop.f32.mrb[24].mxu0  ;;  %v1287_v50 = vsel %vm1265_vm5, %v10782_v28, 0.0  ;;  %v1285_v43 = vsel %vm1265_vm5, %v10795_v34, 0.0 }
 0x312   :  { %v1313_v21 = vmul.f32 %v10795_v34, %v10795_v34  ;;  %v1337_v51 = vadd.f32 %v1336_v29, %v1335_v3  ;;  %v1222_v55 = vpop.f32.mrb[25].mxu0  ;;  %v1340_v49 = vsel %vm1265_vm5, %v1314_v0, 0.0  ;;  %v1286_v46 = vadd.f32 %v1285_v43, %v1284_v2 }
 0x313   :  { %v10814_v54 = vadd.f32 %v1213_v44, %v942_v53  ;;  %v1228_v11 = vadd.f32 %v7685_v22, %v10635_v37  ;;  %v1316_v20 = vmul.f32 %v10797_v42, %v10797_v42  ;;  %v940_v59 = vsel %vm939_vm3, %v937_v1, %v938_v26 }
 0x314   :  { %v1338_v12 = vsel %vm1265_vm5, %v1313_v21, 0.0  ;;  %v1223_v14 = vadd.f32 %v1222_v55, %v10642_v41  ;;  %v1288_v5 = vadd.f32 %v1287_v50, %v1286_v46  ;;  %v1246_v37 = vsel %vm12143_vm8, %v955_v47, 0.0  ;;  %v1819_v41 = vld [vmem:[#allocation6 + $0x58] sm:$0xff] }
 0x315   :  { %v1339_v36 = vadd.f32 %v1338_v12, %v1337_v51  ;;  %v1289_v13 = vsel %vm1265_vm5, %v10814_v54, 0.0  ;;  %v1315_v18 = vmul.f32 %v10814_v54, %v10814_v54  ;;  %v10829_v16 = vadd.f32 %v1246_v37, %v1228_v11 }
 0x316   :  { %v10831_v24 = vadd.f32 %v1223_v14, %v940_v59  ;;  %v8639_v25 = vpack.c.bf16 %v1817_v62, %v1816_v60  ;;  %v1290_v26 = vadd.f32 %v1289_v13, %v1288_v5  ;;  %v1291_v1 = vsel %vm1265_vm5, %v10797_v42, 0.0 }
 0x317   :  { %v1341_v19 = vadd.f32 %v1340_v49, %v1339_v36  ;;  %v1342_v52 = vsel %vm1265_vm5, %v1315_v18, 0.0  ;;  %v8643_v31 = vpack.c.bf16 %v1819_v41, %v1818_v61  ;;  %v1344_v32 = vsel %vm1265_vm5, %v1316_v20, 0.0 }
 0x318   :  { %v1293_v30 = vsel %vm1265_vm5, %v10831_v24, 0.0  ;;  %8640 = vmatprep.subr.bf16.mxu0 %v8639_v25  ;;  %v1292_v45 = vadd.f32 %v1291_v1, %v1290_v26  ;;  %v1317_v17 = vmul.f32 %v10831_v24, %v10831_v24  ;;  %v1318_v40 = vmul.f32 %v10829_v16, %v10829_v16  ;;  %v1263_v26 = vld [vmem:[#allocation2 + $0x2] sm:$0x1] }
 0x319   :  { %v1343_v58 = vadd.f32 %v1342_v52, %v1341_v19  ;;  %8642 = vmatpush3.bf16.msra.mxu0 %v8639_v25  ;;  %v1295_v3 = vsel %vm1265_vm5, %v10829_v16, 0.0  ;;  %vm3221_vm8 = vcmask 254976  }
 0x31a   :  { %v1294_v38 = vadd.f32 %v1293_v30, %v1292_v45  ;;  %v1346_v39 = vsel %vm1265_vm5, %v1317_v17, 0.0  ;;  %8644 = vmatprep.subr.bf16.mxu0 %v8643_v31  ;;  %v1348_v53 = vsel %vm1265_vm5, %v1318_v40, 0.0  ;;  %v10886_v30 = vld [vmem:[#allocation2 + $0x3] ss:$0 sm:$0xff] }
 0x31b   :  { %v1345_v0 = vadd.f32 %v1344_v32, %v1343_v58 }
 0x31c   :  { %v1296_v2 = vadd.f32 %v1295_v3, %v1294_v38 }
 0x31d   :  { %v1347_v29 = vadd.f32 %v1346_v39, %v1345_v0  ;;  %8646 = vmatpush3.bf16.msra.mxu0 %v8643_v31 }
 0x31e   :  { %v1297_v44 = vrot.slane %v1296_v2, 4 }
 0x31f   :  { %v1349_v47 = vadd.f32 %v1348_v53, %v1347_v29 }
 0x320   :  { %v1298_v22 = vadd.f32 %v1297_v44, %v1296_v2 }
 0x321   :  { %v1350_v50 = vrot.slane %v1349_v47, 4 }
 0x322   :  { %v1299_v43 = vrot.slane %v1298_v22, 2 }
 0x323   :  { %v1351_v21 = vadd.f32 %v1350_v50, %v1349_v47 }
 0x324   :  { %v1300_v51 = vadd.f32 %v1299_v43, %v1298_v22 }
 0x325   :  { %v1352_v55 = vrot.slane %v1351_v21, 2 }
 0x326   :  { %v1301_v49 = vrot.slane %v1300_v51, 1 }
 0x327   :  { %v1353_v46 = vadd.f32 %v1352_v55, %v1351_v21 }
 0x328   :  { %v1302_v11 = vadd.f32 %v1301_v49, %v1300_v51 }
 0x329   :  { %v1354_v12 = vrot.slane %v1353_v46, 1 }
 0x32a   :  { %v10847_v59 = vmul.f32 0.0078125, %v1302_v11 }
 0x32b   :  { %v1355_v20 = vadd.f32 %v1354_v12, %v1353_v46 }
 0x32c   :  { %v1358_v60 = vmul.f32 %v10847_v59, %v10847_v59  ;;  %v1375_v62 = vsub.f32 %v10831_v24, %v10847_v59  ;;  %v1361_v36 = vsub.f32 %v10679_v9, %v10847_v59  ;;  %v1362_v5 = vsub.f32 %v10674_v6, %v10847_v59 }
 0x32d   :  { %v1357_v14 = vmul.f32 0.0078125, %v1355_v20  ;;  %v1363_v13 = vsub.f32 %v10702_v35, %v10847_v59  ;;  %v1364_v37 = vsub.f32 %v10698_v33, %v10847_v59  ;;  %v1365_v18 = vsub.f32 %v10731_v63, %v10847_v59 }
 0x32e   :  { %v1366_v61 = vsub.f32 %v10723_v57, %v10847_v59  ;;  %v1367_v24 = vsub.f32 %v10758_v48, %v10847_v59  ;;  %v1368_v9 = vsub.f32 %v10746_v4, %v10847_v59  ;;  %v1369_v6 = vsub.f32 %v10769_v7, %v10847_v59 }
 0x32f   :  { %v1359_v25 = vsub.f32 %v1357_v14, %v1358_v60  ;;  %v1370_v35 = vsub.f32 %v10760_v27, %v10847_v59  ;;  %v1371_v33 = vsub.f32 %v10795_v34, %v10847_v59  ;;  %v1372_v63 = vsub.f32 %v10782_v28, %v10847_v59 }
 0x330   :  { %v1373_v57 = vsub.f32 %v10814_v54, %v10847_v59  ;;  %v1374_v48 = vsub.f32 %v10797_v42, %v10847_v59  ;;  %v1376_v4 = vsub.f32 %v10829_v16, %v10847_v59 }
 0x331   :  { %v1360_v41 = vmax.f32 %v1359_v25, 0.0 }
 0x333   :  { %v1377_v7 = vadd.f32 1e-05, %v1360_v41 }
 0x335   :  { %9232 = vrsqrt.f32 %v1377_v7 }
 0x33f   :  { %v9233_v19 = vpop.eup %9232 }
 0x340   :  { %v1379_v1 = vmul.f32 %v9233_v19, %v1263_v26 }
 0x342   :  { %v10884_v52 = vrot.slane %v1379_v1, %v10500_v15 }
 0x344   :  { %v1398_v58 = vmul.f32 %v10884_v52, %v1375_v62  ;;  %v1384_v45 = vmul.f32 %v10884_v52, %v1361_v36  ;;  %v1385_v17 = vmul.f32 %v10884_v52, %v1362_v5  ;;  %v1386_v31 = vmul.f32 %v10884_v52, %v1363_v13 }
 0x345   :  { %v1387_v32 = vmul.f32 %v10884_v52, %v1364_v37  ;;  %v1388_v40 = vmul.f32 %v10884_v52, %v1365_v18  ;;  %v1389_v38 = vmul.f32 %v10884_v52, %v1366_v61  ;;  %v1390_v0 = vmul.f32 %v10884_v52, %v1367_v24 }
 0x346   :  { %v1404_v39 = vadd.f32 %v10886_v30, %v1384_v45  ;;  %v1405_v3 = vadd.f32 %v10886_v30, %v1385_v17  ;;  %v1406_v2 = vadd.f32 %v10886_v30, %v1386_v31  ;;  %v1391_v47 = vmul.f32 %v10884_v52, %v1368_v9 }
 0x347   :  { %v10900_v29 = vadd.f32 %v10886_v30, %v1387_v32  ;;  %v10903_v53 = vadd.f32 %v10886_v30, %v1388_v40  ;;  %v10906_v44 = vadd.f32 %v10886_v30, %v1389_v38  ;;  %v10914_v20 = vadd.f32 %v10886_v30, %v1398_v58 }
 0x348   :  { %v1436_v22 = vmul.f32 0.044715, %v1404_v39  ;;  %v1437_v50 = vmul.f32 0.044715, %v1405_v3  ;;  %v1438_v43 = vmul.f32 0.044715, %v1406_v2  ;;  %v10917_v62 = vadd.f32 %v10886_v30, %v1390_v0 }
 0x349   :  { %v1439_v21 = vmul.f32 0.044715, %v10900_v29  ;;  %v1440_v11 = vmul.f32 0.044715, %v10903_v53  ;;  %v1441_v12 = vmul.f32 0.044715, %v10906_v44  ;;  %v10925_v24 = vadd.f32 %v10886_v30, %v1391_v47 }
 0x34a   :  { %v1452_v51 = vmul.f32 %v1436_v22, %v1404_v39  ;;  %v1453_v55 = vmul.f32 %v1437_v50, %v1405_v3  ;;  %v1454_v49 = vmul.f32 %v1438_v43, %v1406_v2  ;;  %v10922_v18 = vmul.f32 0.5, %v1404_v39 }
 0x34b   :  { %v1455_v46 = vmul.f32 %v1439_v21, %v10900_v29  ;;  %v1456_v13 = vmul.f32 %v1440_v11, %v10903_v53  ;;  %v1457_v37 = vmul.f32 %v1441_v12, %v10906_v44  ;;  %v1442_v58 = vmul.f32 0.044715, %v10917_v62 }
 0x34c   :  { %v1468_v14 = vmul.f32 %v1452_v51, %v1404_v39  ;;  %v1469_v60 = vmul.f32 %v1453_v55, %v1405_v3  ;;  %v1470_v36 = vmul.f32 %v1454_v49, %v1406_v2  ;;  %v1392_v45 = vmul.f32 %v10884_v52, %v1369_v6 }
 0x34d   :  { %v1471_v5 = vmul.f32 %v1455_v46, %v10900_v29  ;;  %v1472_v7 = vmul.f32 %v1456_v13, %v10903_v53  ;;  %v1473_v26 = vmul.f32 %v1457_v37, %v10906_v44  ;;  %v1443_v38 = vmul.f32 0.044715, %v10925_v24 }
 0x34e   :  { %v1484_v25 = vadd.f32 %v1468_v14, %v1404_v39  ;;  %v1485_v61 = vadd.f32 %v1469_v60, %v1405_v3  ;;  %v1486_v9 = vadd.f32 %v1470_v36, %v1406_v2  ;;  %v1458_v0 = vmul.f32 %v1442_v58, %v10917_v62 }
 0x34f   :  { %v1487_v41 = vadd.f32 %v1471_v5, %v10900_v29  ;;  %v1488_v32 = vadd.f32 %v1472_v7, %v10903_v53  ;;  %v1489_v40 = vadd.f32 %v1473_v26, %v10906_v44  ;;  %v1393_v39 = vmul.f32 %v10884_v52, %v1370_v35 }
 0x350   :  { %v1500_v19 = vmul.f32 0.7978846, %v1484_v25  ;;  %v1501_v1 = vmul.f32 0.7978846, %v1485_v61  ;;  %v1502_v17 = vmul.f32 0.7978846, %v1486_v9  ;;  %v10941_v6 = vadd.f32 %v10886_v30, %v1392_v45 }
 0x351   :  { %v1503_v31 = vmul.f32 0.7978846, %v1487_v41  ;;  %v1504_v47 = vmul.f32 0.7978846, %v1488_v32  ;;  %v1505_v22 = vmul.f32 0.7978846, %v1489_v40  ;;  %v1459_v50 = vmul.f32 %v1443_v38, %v10925_v24 }
 0x352   :  { %9234 = vtanh.f32 %v1500_v19  ;;  %v1474_v43 = vmul.f32 %v1458_v0, %v10917_v62  ;;  %v10946_v21 = vadd.f32 %v10886_v30, %v1393_v39  ;;  %v1421_v51 = vmul.f32 0.5, %v1405_v3 }
 0x353   :  { %9236 = vtanh.f32 %v1501_v1  ;;  %v1444_v27 = vmul.f32 0.044715, %v10941_v6  ;;  %v1394_v35 = vmul.f32 %v10884_v52, %v1371_v33  ;;  %v1422_v55 = vmul.f32 0.5, %v1406_v2 }
 0x354   :  { %9238 = vtanh.f32 %v1502_v17  ;;  %v1475_v49 = vmul.f32 %v1459_v50, %v10925_v24  ;;  %v1490_v46 = vadd.f32 %v1474_v43, %v10917_v62  ;;  %v1445_v11 = vmul.f32 0.044715, %v10946_v21 }
 0x355   :  { %9240 = vtanh.f32 %v1503_v31  ;;  %v1460_v12 = vmul.f32 %v1444_v27, %v10941_v6  ;;  %v1395_v3 = vmul.f32 %v10884_v52, %v1372_v63  ;;  %v10963_v33 = vadd.f32 %v10886_v30, %v1394_v35 }
 0x356   :  { %9242 = vtanh.f32 %v1504_v47  ;;  %v1491_v34 = vadd.f32 %v1475_v49, %v10925_v24  ;;  %v1506_v14 = vmul.f32 0.7978846, %v1490_v46  ;;  %v1396_v2 = vmul.f32 %v10884_v52, %v1373_v57 }
 0x357   :  { %9244 = vtanh.f32 %v1505_v22  ;;  %v1461_v60 = vmul.f32 %v1445_v11, %v10946_v21  ;;  %v1476_v36 = vmul.f32 %v1460_v12, %v10941_v6  ;;  %v10972_v5 = vadd.f32 %v10886_v30, %v1395_v3 }
 0x358   :  { %v1397_v28 = vmul.f32 %v10884_v52, %v1374_v48  ;;  %v1423_v63 = vmul.f32 0.5, %v10900_v29  ;;  %v1507_v13 = vmul.f32 0.7978846, %v1491_v34  ;;  %9246 = vtanh.f32 %v1506_v14 }
 0x359   :  { %v1446_v54 = vmul.f32 0.044715, %v10963_v33  ;;  %v1424_v57 = vmul.f32 0.5, %v10903_v53  ;;  %v1477_v37 = vmul.f32 %v1461_v60, %v10946_v21  ;;  %v1492_v25 = vadd.f32 %v1476_v36, %v10941_v6 }
 0x35a   :  { %v1447_v61 = vmul.f32 0.044715, %v10972_v5  ;;  %v1425_v41 = vmul.f32 0.5, %v10906_v44  ;;  %9248 = vtanh.f32 %v1507_v13  ;;  %v10987_v48 = vadd.f32 %v10886_v30, %v1396_v2 }
 0x35b   :  { %v1462_v42 = vmul.f32 %v1446_v54, %v10963_v33  ;;  %v1493_v26 = vadd.f32 %v1477_v37, %v10946_v21  ;;  %v1508_v53 = vmul.f32 0.7978846, %v1492_v25  ;;  %v1426_v45 = vmul.f32 0.5, %v10917_v62 }
 0x35c   :  { %v9235_v9 = vpop.eup %9234  ;;  %v1463_v19 = vmul.f32 %v1447_v61, %v10972_v5  ;;  %v10994_v44 = vadd.f32 %v10886_v30, %v1397_v28  ;;  %v1448_v35 = vmul.f32 0.044715, %v10987_v48  ;;  %v1399_v36 = vmul.f32 %v10884_v52, %v1376_v4 }
 0x35d   :  { %v9237_v29 = vpop.eup %9236  ;;  %v1532_v7 = vadd.f32 1.0, %v9235_v9  ;;  %v1478_v17 = vmul.f32 %v1462_v42, %v10963_v33  ;;  %v1509_v38 = vmul.f32 0.7978846, %v1493_v26  ;;  %9250 = vtanh.f32 %v1508_v53 }
 0x35e   :  { %v9239_v1 = vpop.eup %9238  ;;  %v1533_v58 = vadd.f32 1.0, %v9237_v29  ;;  %v1479_v22 = vmul.f32 %v1463_v19, %v10972_v5  ;;  %v1464_v34 = vmul.f32 %v1448_v35, %v10987_v48  ;;  %v1427_v37 = vmul.f32 0.5, %v10925_v24 }
 0x35f   :  { %v9241_v31 = vpop.eup %9240  ;;  %v1548_v32 = vmul.f32 %v1532_v7, %v10922_v18  ;;  %v1534_v40 = vadd.f32 1.0, %v9239_v1  ;;  %v1494_v50 = vadd.f32 %v1478_v17, %v10963_v33  ;;  %9252 = vtanh.f32 %v1509_v38 }
 0x360   :  { %v9243_v0 = vpop.eup %9242  ;;  %v1549_v39 = vmul.f32 %v1533_v58, %v1421_v51  ;;  %v1535_v47 = vadd.f32 1.0, %v9241_v31  ;;  %v1495_v18 = vadd.f32 %v1479_v22, %v10972_v5  ;;  %v1449_v51 = vmul.f32 0.044715, %v10994_v44 }
 0x361   :  { %v9245_v43 = vpop.eup %9244  ;;  %v1550_v62 = vmul.f32 %v1534_v40, %v1422_v55  ;;  %v1536_v27 = vadd.f32 1.0, %v9243_v0  ;;  %v1510_v3 = vmul.f32 0.7978846, %v1494_v50  ;;  %v1480_v13 = vmul.f32 %v1464_v34, %v10987_v48 }
 0x362   :  { %v8599_v49 = vpack.c.bf16 %v1549_v39, %v1548_v32  ;;  %v1551_v46 = vmul.f32 %v1535_v47, %v1423_v63  ;;  %v1537_v11 = vadd.f32 1.0, %v9245_v43  ;;  %v9247_v14 = vpop.eup %9246  ;;  %v1511_v55 = vmul.f32 0.7978846, %v1495_v18 }
 0x363   :  { %v1552_v12 = vmul.f32 %v1536_v27, %v1424_v57  ;;  %v1538_v28 = vadd.f32 1.0, %v9247_v14  ;;  %9254 = vtanh.f32 %v1510_v3  ;;  %v1465_v63 = vmul.f32 %v1449_v51, %v10994_v44 }
 0x364   :  { %8600 = vmatprep.subr.bf16.mxu1 %v8599_v49  ;;  %v8603_v2 = vpack.c.bf16 %v1551_v46, %v1550_v62  ;;  %v1553_v60 = vmul.f32 %v1537_v11, %v1425_v41  ;;  %v9249_v54 = vpop.eup %9248  ;;  %9256 = vtanh.f32 %v1511_v55  ;;  %v11011_v25 = vadd.f32 %v10886_v30, %v1399_v36 }
 0x365   :  { %8602 = vmatpush3.bf16.msra.mxu1 %v8599_v49  ;;  %v1539_v61 = vadd.f32 1.0, %v9249_v54  ;;  %v1554_v16 = vmul.f32 %v1538_v28, %v1426_v45  ;;  %v1481_v59 = vmul.f32 %v1465_v63, %v10994_v44  ;;  %v1496_v4 = vadd.f32 %v1480_v13, %v10987_v48  ;;  %v1677_v54 = vld [vmem:[#allocation6] sm:$0xff] }
 0x366   :  { %8604 = vmatprep.subr.bf16.mxu1 %v8603_v2  ;;  %v8607_v57 = vpack.c.bf16 %v1553_v60, %v1552_v12  ;;  %v1450_v52 = vmul.f32 0.044715, %v10914_v20  ;;  %v1451_v9 = vmul.f32 0.044715, %v11011_v25  ;;  %v1428_v30 = vmul.f32 0.5, %v10941_v6 }
 0x367   :  { %v9251_v41 = vpop.eup %9250  ;;  %v1555_v42 = vmul.f32 %v1539_v61, %v1427_v37  ;;  %v1497_v29 = vadd.f32 %v1481_v59, %v10994_v44  ;;  %v1512_v24 = vmul.f32 0.7978846, %v1496_v4  ;;  %v1429_v58 = vmul.f32 0.5, %v10946_v21  ;;  %v1680_v59 = vld [vmem:[#allocation6 + $0x18] sm:$0xff]  ;;  %v1565_v4 = vld [vmem:[#allocation9 + $0x8] sm:$0xff] }
 0x368   :  { %v1540_v7 = vadd.f32 1.0, %v9251_v41  ;;  %v1466_v26 = vmul.f32 %v1450_v52, %v10914_v20  ;;  %v1467_v53 = vmul.f32 %v1451_v9, %v11011_v25  ;;  %v1430_v47 = vmul.f32 0.5, %v10963_v33  ;;  %v1566_v52 = vld [vmem:[#allocation9 + $0x10] sm:$0xff]  ;;  %v1567_v9 = vld [vmem:[#allocation9 + $0x18] sm:$0xff]  ;;  %v1569_v41 = vld [vmem:[#allocation9 + $0x28] sm:$0xff] }
 0x369   :  { %8606 = vmatpush3.bf16.msra.mxu1 %v8603_v2  ;;  %v9253_v19 = vpop.eup %9252  ;;  %v8611_v1 = vpack.c.bf16 %v1555_v42, %v1554_v16  ;;  %v1513_v45 = vmul.f32 0.7978846, %v1497_v29  ;;  %9258 = vtanh.f32 %v1512_v24  ;;  %v1431_v27 = vmul.f32 0.5, %v10972_v5  ;;  %v1679_v16 = vld [vmem:[#allocation6 + $0x10] sm:$0xff]  ;;  %v1571_v29 = vld [vmem:[#allocation9 + $0x38] sm:$0xff]  ;;  %v1811_v24 = vld [vmem:[#allocation6 + $0x20] sm:$0xff] }
 0x36a   :  { %8608 = vmatprep.subr.bf16.mxu1 %v8607_v57  ;;  %v1541_v17 = vadd.f32 1.0, %v9253_v19  ;;  %v1556_v31 = vmul.f32 %v1540_v7, %v1428_v30  ;;  %v1482_v32 = vmul.f32 %v1466_v26, %v10914_v20  ;;  %v1483_v40 = vmul.f32 %v1467_v53, %v11011_v25  ;;  %v1570_v42 = vld [vmem:[#allocation9 + $0x30] sm:$0xff]  ;;  %v1812_v30 = vld [vmem:[#allocation6 + $0x28] sm:$0xff]  ;;  %v1814_v53 = vld [vmem:[#allocation6 + $0x38] sm:$0xff] }
 0x36b   :  { %9260 = vtanh.f32 %v1513_v45  ;;  %v1432_v12 = vmul.f32 0.5, %v10987_v48  ;;  %v1433_v51 = vmul.f32 0.5, %v10994_v44  ;;  %v1434_v36 = vmul.f32 0.5, %v10914_v20  ;;  %v1813_v26 = vld [vmem:[#allocation6 + $0x30] sm:$0xff] }
 0x36c   :  { %v1557_v6 = vmul.f32 %v1541_v17, %v1429_v58  ;;  %v1498_v38 = vadd.f32 %v1482_v32, %v10914_v20  ;;  %v1499_v0 = vadd.f32 %v1483_v40, %v11011_v25  ;;  %v1435_v63 = vmul.f32 0.5, %v11011_v25  ;;  %v1568_v25 = vld [vmem:[#allocation9 + $0x20] sm:$0xff] }
 0x36d   :  { %8610 = vmatpush3.bf16.msra.mxu1 %v8607_v57  ;;  %v9255_v39 = vpop.eup %9254  ;;  %v1678_v57 = vld [vmem:[#allocation6 + $0x8] sm:$0xff]  ;;  %v8635_v20 = vpack.c.bf16 %v1680_v59, %v1679_v16  ;;  %v8647_v7 = vpack.c.bf16 %v1812_v30, %v1811_v24  ;;  %v8651_v58 = vpack.c.bf16 %v1814_v53, %v1813_v26 }
 0x36e   :  { %8612 = vmatprep.subr.bf16.mxu1 %v8611_v1  ;;  %v9257_v21 = vpop.eup %9256  ;;  %v8615_v22 = vpack.c.bf16 %v1557_v6, %v1556_v31  ;;  %v1542_v50 = vadd.f32 1.0, %v9255_v39  ;;  %v1514_v43 = vmul.f32 0.7978846, %v1498_v38  ;;  %v1515_v62 = vmul.f32 0.7978846, %v1499_v0  ;;  %v2283_v38 = vld [vmem:[#allocation10] sm:$0xff] }
 0x36f   :  { %v1543_v35 = vadd.f32 1.0, %v9257_v21  ;;  %v8631_v61 = vpack.c.bf16 %v1678_v57, %v1677_v54  ;;  %v2385_v21 = vld [vmem:[#allocation7 + $0x8] sm:$0xff] }
 0x370   :  { %v1558_v49 = vmul.f32 %v1542_v50, %v1430_v47  ;;  %9262 = vtanh.f32 %v1514_v43  ;;  %v2384_v47 = vld [vmem:[#allocation7] sm:$0xff] }
 0x371   :  { %8614 = vmatpush3.bf16.msra.mxu1 %v8611_v1  ;;  %v1559_v46 = vmul.f32 %v1543_v35, %v1431_v27  ;;  %9264 = vtanh.f32 %v1515_v62  ;;  %v8671_v27 = vpack.c.bf16 %v2385_v21, %v2384_v47  ;;  %v2386_v35 = vld [vmem:[#allocation7 + $0x10] sm:$0xff] }
 0x372   :  { %8616 = vmatprep.subr.bf16.mxu1 %v8615_v22 }
 0x373   :  { %v9259_v11 = vpop.eup %9258  ;;  %v8619_v18 = vpack.c.bf16 %v1559_v46, %v1558_v49 }
 0x374   :  { %v1544_v33 = vadd.f32 1.0, %v9259_v11  ;;  %v2387_v11 = vld [vmem:[#allocation7 + $0x18] sm:$0xff] }
 0x375   :  { %8618 = vmatpush3.bf16.msra.mxu1 %v8615_v22  ;;  %v9261_v3 = vpop.eup %9260 }
 0x376   :  { %8620 = vmatprep.subr.bf16.mxu1 %v8619_v18  ;;  %v1545_v34 = vadd.f32 1.0, %v9261_v3  ;;  %v1560_v14 = vmul.f32 %v1544_v33, %v1432_v12  ;;  %v2388_v12 = vld [vmem:[#allocation7 + $0x20] sm:$0xff]  ;;  %v2389_v33 = vld [vmem:[#allocation7 + $0x28] sm:$0xff] }
 0x378   :  { %v1561_v5 = vmul.f32 %v1545_v34, %v1433_v51 }
 0x379   :  { %8622 = vmatpush3.bf16.msra.mxu1 %v8619_v18  ;;  %v8675_v18 = vpack.c.bf16 %v2387_v11, %v2386_v35 }
 0x37a   :  { %v9263_v2 = vpop.eup %9262  ;;  %v8623_v60 = vpack.c.bf16 %v1561_v5, %v1560_v14 }
 0x37b   :  { %v9265_v55 = vpop.eup %9264  ;;  %v1546_v28 = vadd.f32 1.0, %v9263_v2 }
 0x37c   :  { %8624 = vmatprep.subr.bf16.mxu1 %v8623_v60  ;;  %v1547_v13 = vadd.f32 1.0, %v9265_v55 }
 0x37d   :  { %8626 = vmatpush3.bf16.msra.mxu1 %v8623_v60  ;;  %v1562_v48 = vmul.f32 %v1546_v28, %v1434_v36  ;;  %v8679_v36 = vpack.c.bf16 %v2389_v33, %v2388_v12 }
 0x37e   :  { %v1563_v37 = vmul.f32 %v1547_v13, %v1435_v63  ;;  %v2390_v13 = vld [vmem:[#allocation7 + $0x30] sm:$0xff] }
 0x380   :  { %v8627_v44 = vpack.c.bf16 %v1563_v37, %v1562_v48  ;;  %v2391_v48 = vld [vmem:[#allocation7 + $0x38] sm:$0xff] }
 0x382   :  { %8628 = vmatprep.subr.bf16.mxu1 %v8627_v44 }
 0x383   :  { %8630 = vmatpush3.bf16.msra.mxu1 %v8627_v44 }
 0x384   :  { %8632 = vmatprep.subr.bf16.mxu1 %v8631_v61 }
 0x386   :  { %7719 = vmatmul.mubr.f32.vlgmr.msra.gmra.mrb[22].mxu1 %v1565_v4 }
 0x387   :  { %7721 = vmatprep.mubr.f32.mxu1 %v1566_v52  ;;  %8634 = vmatpush3.bf16.msra.mxu1 %v8631_v61 }
 0x388   :  { %8636 = vmatprep.subr.bf16.mxu1 %v8635_v20 }
 0x38a   :  { %7722 = vmatmul.mubr.f32.gmra.mrb[24].mxu1 %v1567_v9  ;;  %v8683_v9 = vpack.c.bf16 %v2391_v48, %v2390_v13 }
 0x38b   :  { %7724 = vmatprep.mubr.f32.mxu1 %v1568_v25  ;;  %8638 = vmatpush3.bf16.msra.mxu1 %v8635_v20 }
 0x38c   :  { %8648 = vmatprep.subr.bf16.mxu1 %v8647_v7 }
 0x38e   :  { %7725 = vmatmul.mubr.f32.gmra.mrb[26].mxu1 %v1569_v41 }
 0x38f   :  { %7727 = vmatprep.mubr.f32.mxu1 %v1570_v42 }
 0x392   :  { %7728 = vmatmul.mubr.f32.gmra.mrb[28].mxu1 %v1571_v29 }
 0x459   :  { %v11032_v19 = vpop.f32.mrb[22].mxu1 }
 0x45a   :  { %v11034_v1 = vpop.f32.mrb[23].mxu1 }
 0x45b   :  { %7738 = vmatprep.mubr.msk.f32.mxu1 %vm1265_vm5, %v11034_v1  ;;  %7758 = vmatprep.mubr.msk.f32.mxu0 %vm1265_vm5, %v11034_v1 }
 0x45c   :  { %7739 = vmatmul.mubr.msk.f32.vlgmr.msra.gmra.mrb[30].mxu1 %vm1265_vm5, %v11032_v19  ;;  %7759 = vmatmul.mubr.msk.f32.vlgmr.msra.gmra.mrb[26].mxu0 %vm1265_vm5, %v11032_v19 }
 0x45d   :  { %v11044_v45 = vpop.f32.mrb[24].mxu1  ;;  %8650 = vmatpush3.bf16.msra.mxu1 %v8647_v7 }
 0x45e   :  { %v11046_v17 = vpop.f32.mrb[25].mxu1  ;;  %8652 = vmatprep.subr.bf16.mxu1 %v8651_v58 }
 0x45f   :  { %7741 = vmatprep.mubr.msk.f32.mxu1 %vm1265_vm5, %v11046_v17  ;;  %7761 = vmatprep.mubr.msk.f32.mxu0 %vm1265_vm5, %v11046_v17 }
 0x460   :  { %7742 = vmatmul.mubr.msk.f32.gmra.mrb[32].mxu1 %vm1265_vm5, %v11044_v45  ;;  %7762 = vmatmul.mubr.msk.f32.gmra.mrb[28].mxu0 %vm1265_vm5, %v11044_v45 }
 0x461   :  { %v11056_v31 = vpop.f32.mrb[26].mxu1  ;;  %8654 = vmatpush3.bf16.msra.mxu1 %v8651_v58 }
 0x462   :  { %v11058_v32 = vpop.f32.mrb[27].mxu1  ;;  %8672 = vmatprep.subr.bf16.mxu1 %v8671_v27 }
 0x463   :  { %7744 = vmatprep.mubr.msk.f32.mxu1 %vm1265_vm5, %v11058_v32  ;;  %7764 = vmatprep.mubr.msk.f32.mxu0 %vm1265_vm5, %v11058_v32 }
 0x464   :  { %7745 = vmatmul.mubr.msk.f32.gmra.mrb[34].mxu1 %vm1265_vm5, %v11056_v31  ;;  %7765 = vmatmul.mubr.msk.f32.gmra.mrb[30].mxu0 %vm1265_vm5, %v11056_v31 }
 0x465   :  { %v11068_v40 = vpop.f32.mrb[28].mxu1 }
 0x466   :  { %v11070_v6 = vpop.f32.mrb[29].mxu1 }
 0x467   :  { %7747 = vmatprep.mubr.msk.f32.mxu1 %vm1265_vm5, %v11070_v6  ;;  %7767 = vmatprep.mubr.msk.f32.mxu0 %vm1265_vm5, %v11070_v6 }
 0x468   :  { %7748 = vmatmul.mubr.msk.f32.gmra.mrb[36].mxu1 %vm1265_vm5, %v11068_v40  ;;  %7768 = vmatmul.mubr.msk.f32.gmra.mrb[32].mxu0 %vm1265_vm5, %v11068_v40 }
 0x469   :  { %7778 = vmatprep.mubr.msk.f32.mxu1 %vm1265_vm5, %v11034_v1  ;;  %7806 = vmatprep.mubr.msk.f32.mxu0 %vm2120_vm9, %v2283_v38 }
 0x46c   :  { %7779 = vmatmul.mubr.msk.f32.vlgmr.msra.gmra.mrb[38].mxu1 %vm1265_vm5, %v11032_v19 }
 0x46d   :  { %7781 = vmatprep.mubr.msk.f32.mxu1 %vm1265_vm5, %v11046_v17  ;;  %8674 = vmatpush3.bf16.msra.mxu1 %v8671_v27 }
 0x46e   :  { %8676 = vmatprep.subr.bf16.mxu1 %v8675_v18 }
 0x470   :  { %7782 = vmatmul.mubr.msk.f32.gmra.mrb[40].mxu1 %vm1265_vm5, %v11044_v45 }
 0x471   :  { %7784 = vmatprep.mubr.msk.f32.mxu1 %vm1265_vm5, %v11058_v32  ;;  %8678 = vmatpush3.bf16.msra.mxu1 %v8675_v18 }
 0x472   :  { %8680 = vmatprep.subr.bf16.mxu1 %v8679_v36 }
 0x474   :  { %7785 = vmatmul.mubr.msk.f32.gmra.mrb[42].mxu1 %vm1265_vm5, %v11056_v31 }
 0x475   :  { %7787 = vmatprep.mubr.msk.f32.mxu1 %vm1265_vm5, %v11070_v6  ;;  %8682 = vmatpush3.bf16.msra.mxu1 %v8679_v36 }
 0x476   :  { %8684 = vmatprep.subr.bf16.mxu1 %v8683_v9 }
 0x478   :  { %7788 = vmatmul.mubr.msk.f32.gmra.mrb[44].mxu1 %vm1265_vm5, %v11068_v40 }
 0x479   :  { %8686 = vmatpush3.bf16.msra.mxu1 %v8683_v9 }
 0x52f   :  { %v7740_v0 = vpop.f32.mrb[30].mxu1  ;;  %v7760_v39 = vpop.f32.mrb[26].mxu0 }
 0x530   :  { %v1926_v22 = vrot.slane %v7740_v0, 7  ;;  %v1942_v50 = vrot.slane %v7760_v39, 1  ;;  %v1771_v43 = vpop.f32.mrb[31].mxu1  ;;  %v1886_v62 = vpop.f32.mrb[27].mxu0 }
 0x531   :  { %v1925_v49 = vrot.slane %v1771_v43, 7  ;;  %v1941_v46 = vrot.slane %v1886_v62, 1 }
 0x533   :  { %v7743_v3 = vpop.f32.mrb[32].mxu1  ;;  %v7763_v51 = vpop.f32.mrb[28].mxu0  ;;  %v1939_v34 = vsel %vm906_vm2, %v1925_v49, %v1926_v22  ;;  %v1955_v14 = vsel %vm939_vm3, %v1941_v46, %v1942_v50 }
 0x534   :  { %v1928_v5 = vrot.slane %v7743_v3, 7  ;;  %v1944_v2 = vrot.slane %v7763_v51, 1  ;;  %v1781_v60 = vpop.f32.mrb[33].mxu1  ;;  %v1896_v55 = vpop.f32.mrb[29].mxu0 }
 0x535   :  { %v1927_v28 = vrot.slane %v1781_v60, 7  ;;  %v1943_v63 = vrot.slane %v1896_v55, 1 }
 0x537   :  { %v7746_v54 = vpop.f32.mrb[34].mxu1  ;;  %v7766_v57 = vpop.f32.mrb[30].mxu0  ;;  %v1954_v37 = vsel %vm939_vm3, %v1942_v50, %v1943_v63  ;;  %v1937_v44 = vsel %vm906_vm2, %v1927_v28, %v1928_v5  ;;  %v1938_v61 = vsel %vm906_vm2, %v1926_v22, %v1927_v28  ;;  %v1953_v16 = vsel %vm939_vm3, %v1943_v63, %v1944_v2 }
 0x538   :  { %v1930_v59 = vrot.slane %v7746_v54, 7  ;;  %v1946_v4 = vrot.slane %v7766_v57, 1  ;;  %v1791_v52 = vpop.f32.mrb[35].mxu1  ;;  %v1906_v20 = vpop.f32.mrb[31].mxu0  ;;  %v11120_v22 = vadd.s32 24, %v10497_v10 }
 0x539   :  { %v1929_v25 = vrot.slane %v1791_v52, 7  ;;  %v1945_v41 = vrot.slane %v1906_v20, 1 }
 0x53a   :  { %vm1960_vm10 = vcmp.ne.s32.totalorder %v11120_v22, 31 }
 0x53b   :  { %v7749_v42 = vpop.f32.mrb[36].mxu1  ;;  %v7769_v29 = vpop.f32.mrb[32].mxu0  ;;  %v1952_v24 = vsel %vm939_vm3, %v1944_v2, %v1945_v41  ;;  %v1935_v30 = vsel %vm906_vm2, %v1929_v25, %v1930_v59  ;;  %v1936_v7 = vsel %vm906_vm2, %v1928_v5, %v1929_v25  ;;  %v1951_v26 = vsel %vm939_vm3, %v1945_v41, %v1946_v4 }
 0x53c   :  { %v1932_v53 = vrot.slane %v7749_v42, 7  ;;  %v1948_v58 = vrot.slane %v7769_v29, 1  ;;  %v1801_v38 = vpop.f32.mrb[37].mxu1  ;;  %v1916_v0 = vpop.f32.mrb[33].mxu0 }
 0x53d   :  { %v1931_v39 = vrot.slane %v1801_v38, 7  ;;  %v1947_v47 = vrot.slane %v1916_v0, 1 }
 0x53e   :  { %v1940_v21 = vsel %vm906_vm2, %v1932_v53, %v1925_v49  ;;  %v1956_v50 = vsel %vm939_vm3, %v1948_v58, %v1941_v46  ;;  %v11131_v49 = vadd.s32 32, %v10497_v10 }
 0x53f   :  { %v7780_v43 = vpop.f32.mrb[38].mxu1  ;;  %v1989_v62 = vsel %vm971_vm4, %v1940_v21, 0.0  ;;  %v1950_v27 = vsel %vm939_vm3, %v1946_v4, %v1947_v47  ;;  %v1933_v35 = vsel %vm906_vm2, %v1931_v39, %v1932_v53  ;;  %v1934_v12 = vsel %vm906_vm2, %v1930_v59, %v1931_v39 }
 0x540   :  { %v2069_v11 = vadd.f32 %v7780_v43, %v1939_v34  ;;  %v2063_v18 = vpop.f32.mrb[39].mxu1  ;;  %v1949_v46 = vsel %vm939_vm3, %v1947_v47, %v1948_v58  ;;  %vm1969_vm11 = vcmp.ne.s32.totalorder %v11131_v49, 32 }
 0x541   :  { %v2064_v33 = vadd.f32 %v2063_v18, %v1989_v62  ;;  %v1993_v20 = vsel %vm1969_vm11, %v1936_v7, 0.0 }
 0x542   :  { %v11137_v3 = vadd.f32 %v2069_v11, %v1954_v37  ;;  %v2109_v11 = vsel %vm994_vm7, %v1956_v50, 0.0 }
 0x543   :  { %v11140_v51 = vadd.f32 %v2064_v33, %v1955_v14  ;;  %v7783_v5 = vpop.f32.mrb[40].mxu1  ;;  %v2105_v14 = vsel %vm1960_vm10, %v1952_v24, 0.0 }
 0x544   :  { %v2122_v34 = vsel %vm2120_vm9, %v11137_v3, 0.0  ;;  %v2143_v2 = vmul.f32 %v11137_v3, %v11137_v3  ;;  %v2079_v60 = vadd.f32 %v7783_v5, %v1937_v44  ;;  %v2073_v55 = vpop.f32.mrb[41].mxu1 }
 0x545   :  { %v2121_v36 = vsel %vm2120_vm9, %v11140_v51, 0.0  ;;  %v2142_v28 = vmul.f32 %v11140_v51, %v11140_v51  ;;  %v2074_v63 = vadd.f32 %v2073_v55, %v1938_v61 }
 0x546   :  { %v2151_v13 = vsel %vm2120_vm9, %v2143_v2, 0.0  ;;  %v2123_v48 = vadd.f32 %v2122_v34, %v2121_v36  ;;  %v11154_v54 = vadd.f32 %v2105_v14, %v2079_v60 }
 0x547   :  { %v2150_v57 = vsel %vm2120_vm9, %v2142_v28, 0.0  ;;  %v11157_v37 = vadd.f32 %v2074_v63, %v1953_v16  ;;  %v7786_v44 = vpop.f32.mrb[42].mxu1 }
 0x548   :  { %v2152_v59 = vadd.f32 %v2151_v13, %v2150_v57  ;;  %v2145_v4 = vmul.f32 %v11154_v54, %v11154_v54  ;;  %v2089_v52 = vadd.f32 %v7786_v44, %v1935_v30  ;;  %v2083_v9 = vpop.f32.mrb[43].mxu1  ;;  %v2126_v29 = vsel %vm2120_vm9, %v11154_v54, 0.0 }
 0x549   :  { %v2124_v61 = vsel %vm2120_vm9, %v11157_v37, 0.0  ;;  %v2144_v25 = vmul.f32 %v11157_v37, %v11157_v37  ;;  %v2084_v41 = vadd.f32 %v2083_v9, %v1993_v20 }
 0x54a   :  { %v2125_v42 = vadd.f32 %v2124_v61, %v2123_v48  ;;  %v11167_v16 = vadd.f32 %v2089_v52, %v1950_v27  ;;  %v2155_v7 = vsel %vm2120_vm9, %v2145_v4, 0.0 }
 0x54b   :  { %v2153_v24 = vsel %vm2120_vm9, %v2144_v25, 0.0  ;;  %v11172_v30 = vadd.f32 %v2084_v41, %v1951_v26  ;;  %v7789_v53 = vpop.f32.mrb[44].mxu1 }
 0x54c   :  { %v2154_v58 = vadd.f32 %v2153_v24, %v2152_v59  ;;  %v2147_v38 = vmul.f32 %v11167_v16, %v11167_v16  ;;  %v2127_v0 = vadd.f32 %v2126_v29, %v2125_v42  ;;  %v2093_v39 = vpop.f32.mrb[45].mxu1  ;;  %v2099_v43 = vadd.f32 %v7789_v53, %v1933_v35 }
 0x54d   :  { %v2128_v47 = vsel %vm2120_vm9, %v11172_v30, 0.0  ;;  %v2146_v21 = vmul.f32 %v11172_v30, %v11172_v30  ;;  %v2094_v62 = vadd.f32 %v2093_v39, %v1934_v12  ;;  %v2130_v18 = vsel %vm2120_vm9, %v11167_v16, 0.0 }
 0x54e   :  { %v2129_v27 = vadd.f32 %v2128_v47, %v2127_v0  ;;  %v2156_v26 = vadd.f32 %v2155_v7, %v2154_v58  ;;  %v2117_v5 = vadd.f32 %v2109_v11, %v2099_v43  ;;  %v2159_v55 = vsel %vm2120_vm9, %v2147_v38, 0.0 }
 0x54f   :  { %v2157_v33 = vsel %vm2120_vm9, %v2146_v21, 0.0  ;;  %v2116_v34 = vadd.f32 %v2094_v62, %v1949_v46 }
 0x550   :  { %v2158_v2 = vadd.f32 %v2157_v33, %v2156_v26  ;;  %v2131_v60 = vadd.f32 %v2130_v18, %v2129_v27  ;;  %v2149_v36 = vmul.f32 %v2117_v5, %v2117_v5  ;;  %v2134_v63 = vsel %vm2120_vm9, %v2117_v5, 0.0  ;;  %v2118_v33 = vld [vmem:[#allocation2 + $0x4] sm:$0x1] }
 0x551   :  { %v2132_v35 = vsel %vm2120_vm9, %v2116_v34, 0.0  ;;  %v2148_v12 = vmul.f32 %v2116_v34, %v2116_v34 }
 0x552   :  { %v2133_v28 = vadd.f32 %v2132_v35, %v2131_v60  ;;  %v2160_v14 = vadd.f32 %v2159_v55, %v2158_v2  ;;  %v2163_v57 = vsel %vm2120_vm9, %v2149_v36, 0.0  ;;  %v6853_v60 = vld [vmem:[#allocation2 + $0x5] ss:$0 sm:$0xff] }
 0x553   :  { %v2161_v50 = vsel %vm2120_vm9, %v2148_v12, 0.0 }
 0x554   :  { %v2135_v13 = vadd.f32 %v2134_v63, %v2133_v28  ;;  %v2162_v48 = vadd.f32 %v2161_v50, %v2160_v14 }
 0x556   :  { %v2136_v44 = vrot.slane %v2135_v13, 4  ;;  %v2164_v46 = vadd.f32 %v2163_v57, %v2162_v48 }
 0x558   :  { %v2137_v59 = vadd.f32 %v2136_v44, %v2135_v13  ;;  %v2165_v4 = vrot.slane %v2164_v46, 4 }
 0x55a   :  { %v2138_v52 = vrot.slane %v2137_v59, 2  ;;  %v2166_v20 = vadd.f32 %v2165_v4, %v2164_v46 }
 0x55c   :  { %v2139_v9 = vadd.f32 %v2138_v52, %v2137_v59  ;;  %v2167_v61 = vrot.slane %v2166_v20, 2 }
 0x55e   :  { %v2140_v25 = vrot.slane %v2139_v9, 1  ;;  %v2168_v41 = vadd.f32 %v2167_v61, %v2166_v20 }
 0x560   :  { %v2141_v42 = vadd.f32 %v2140_v25, %v2139_v9  ;;  %v2169_v29 = vrot.slane %v2168_v41, 1 }
 0x562   :  { %v2170_v24 = vadd.f32 %v2169_v29, %v2168_v41  ;;  %v2171_v53 = vmul.f32 0.015625, %v2141_v42 }
 0x564   :  { %v2172_v7 = vmul.f32 0.015625, %v2170_v24  ;;  %v2173_v58 = vmul.f32 %v2171_v53, %v2171_v53  ;;  %v2182_v38 = vsub.f32 %v2116_v34, %v2171_v53  ;;  %v2176_v0 = vsub.f32 %v11140_v51, %v2171_v53 }
 0x565   :  { %v2177_v39 = vsub.f32 %v11137_v3, %v2171_v53  ;;  %v2178_v47 = vsub.f32 %v11157_v37, %v2171_v53  ;;  %v2179_v21 = vsub.f32 %v11154_v54, %v2171_v53  ;;  %v2180_v43 = vsub.f32 %v11172_v30, %v2171_v53 }
 0x566   :  { %v2174_v62 = vsub.f32 %v2172_v7, %v2173_v58  ;;  %v2181_v27 = vsub.f32 %v11167_v16, %v2171_v53  ;;  %v2183_v26 = vsub.f32 %v2117_v5, %v2171_v53 }
 0x568   :  { %v2175_v11 = vmax.f32 %v2174_v62, 0.0 }
 0x56a   :  { %v2184_v18 = vadd.f32 1e-05, %v2175_v11 }
 0x56c   :  { %9266 = vrsqrt.f32 %v2184_v18 }
 0x576   :  { %v9267_v2 = vpop.eup %9266 }
 0x577   :  { %v2186_v34 = vmul.f32 %v9267_v2, %v2118_v33 }
 0x579   :  { %v2190_v51 = vrot.slane %v2186_v34, %v10500_v15 }
 0x57b   :  { %v2197_v3 = vmul.f32 %v2190_v51, %v2182_v38  ;;  %v2191_v55 = vmul.f32 %v2190_v51, %v2176_v0  ;;  %v2192_v37 = vmul.f32 %v2190_v51, %v2177_v39  ;;  %v2193_v36 = vmul.f32 %v2190_v51, %v2178_v47 }
 0x57c   :  { %v2194_v54 = vmul.f32 %v2190_v51, %v2179_v21  ;;  %v2195_v35 = vmul.f32 %v2190_v51, %v2180_v43  ;;  %v2196_v30 = vmul.f32 %v2190_v51, %v2181_v27  ;;  %v2198_v12 = vmul.f32 %v2190_v51, %v2183_v26 }
 0x57d   :  { %v2203_v28 = vadd.f32 %v6853_v60, %v2191_v55  ;;  %v2204_v16 = vadd.f32 %v6853_v60, %v2192_v37  ;;  %v11198_v5 = vadd.f32 %v6853_v60, %v2193_v36  ;;  %v11208_v46 = vadd.f32 %v6853_v60, %v2197_v3 }
 0x57e   :  { %v11200_v14 = vadd.f32 %v6853_v60, %v2194_v54  ;;  %v11202_v63 = vadd.f32 %v6853_v60, %v2195_v35  ;;  %v11204_v50 = vadd.f32 %v6853_v60, %v2196_v30  ;;  %v11210_v52 = vadd.f32 %v6853_v60, %v2198_v12 }
 0x57f   :  { %v2219_v13 = vmul.f32 0.044715, %v2203_v28  ;;  %v2220_v48 = vmul.f32 0.044715, %v2204_v16  ;;  %v2221_v57 = vmul.f32 0.044715, %v11198_v5 }
 0x580   :  { %v2222_v44 = vmul.f32 0.044715, %v11200_v14  ;;  %v2223_v61 = vmul.f32 0.044715, %v11202_v63  ;;  %v2224_v25 = vmul.f32 0.044715, %v11204_v50 }
 0x581   :  { %v2227_v59 = vmul.f32 %v2219_v13, %v2203_v28  ;;  %v2228_v4 = vmul.f32 %v2220_v48, %v2204_v16  ;;  %v2229_v20 = vmul.f32 %v2221_v57, %v11198_v5  ;;  %v2225_v0 = vmul.f32 0.044715, %v11208_v46 }
 0x582   :  { %v2230_v9 = vmul.f32 %v2222_v44, %v11200_v14  ;;  %v2231_v53 = vmul.f32 %v2223_v61, %v11202_v63  ;;  %v2232_v7 = vmul.f32 %v2224_v25, %v11204_v50  ;;  %v2226_v39 = vmul.f32 0.044715, %v11210_v52 }
 0x583   :  { %v2235_v41 = vmul.f32 %v2227_v59, %v2203_v28  ;;  %v2236_v42 = vmul.f32 %v2228_v4, %v2204_v16  ;;  %v2237_v29 = vmul.f32 %v2229_v20, %v11198_v5  ;;  %v2233_v11 = vmul.f32 %v2225_v0, %v11208_v46 }
 0x584   :  { %v2238_v24 = vmul.f32 %v2230_v9, %v11200_v14  ;;  %v2239_v43 = vmul.f32 %v2231_v53, %v11202_v63  ;;  %v2240_v62 = vmul.f32 %v2232_v7, %v11204_v50  ;;  %v2234_v18 = vmul.f32 %v2226_v39, %v11210_v52 }
 0x585   :  { %v2243_v58 = vadd.f32 %v2235_v41, %v2203_v28  ;;  %v2244_v38 = vadd.f32 %v2236_v42, %v2204_v16  ;;  %v2245_v47 = vadd.f32 %v2237_v29, %v11198_v5  ;;  %v2241_v60 = vmul.f32 %v2233_v11, %v11208_v46 }
 0x586   :  { %v2246_v21 = vadd.f32 %v2238_v24, %v11200_v14  ;;  %v2247_v34 = vadd.f32 %v2239_v43, %v11202_v63  ;;  %v2248_v51 = vadd.f32 %v2240_v62, %v11204_v50  ;;  %v2242_v3 = vmul.f32 %v2234_v18, %v11210_v52 }
 0x587   :  { %v2251_v27 = vmul.f32 0.7978846, %v2243_v58  ;;  %v2252_v26 = vmul.f32 0.7978846, %v2244_v38  ;;  %v2253_v33 = vmul.f32 0.7978846, %v2245_v47  ;;  %v2249_v36 = vadd.f32 %v2241_v60, %v11208_v46 }
 0x588   :  { %v2254_v2 = vmul.f32 0.7978846, %v2246_v21  ;;  %v2255_v55 = vmul.f32 0.7978846, %v2247_v34  ;;  %v2256_v37 = vmul.f32 0.7978846, %v2248_v51  ;;  %v2250_v54 = vadd.f32 %v2242_v3, %v11210_v52 }
 0x589   :  { %9268 = vtanh.f32 %v2251_v27  ;;  %v2257_v35 = vmul.f32 0.7978846, %v2249_v36  ;;  %v2211_v48 = vmul.f32 0.5, %v2203_v28  ;;  %v2212_v59 = vmul.f32 0.5, %v2204_v16  ;;  %v2500_v34 = vld [vmem:[#allocation7 + $0x88] sm:$0xff]  ;;  %v2501_v51 = vld [vmem:[#allocation7 + $0x90] sm:$0xff] }
 0x58a   :  { %9270 = vtanh.f32 %v2252_v26  ;;  %v2258_v30 = vmul.f32 0.7978846, %v2250_v54  ;;  %v2213_v61 = vmul.f32 0.5, %v11198_v5  ;;  %v2214_v29 = vmul.f32 0.5, %v11200_v14  ;;  %v2502_v60 = vld [vmem:[#allocation7 + $0x98] sm:$0xff]  ;;  %v2284_v3 = vld [vmem:[#allocation10 + $0x8] sm:$0xff] }
 0x58b   :  { %9272 = vtanh.f32 %v2253_v33  ;;  %v2215_v58 = vmul.f32 0.5, %v11202_v63  ;;  %v2216_v16 = vmul.f32 0.5, %v11204_v50  ;;  %v2217_v5 = vmul.f32 0.5, %v11208_v46  ;;  %v2499_v50 = vld [vmem:[#allocation7 + $0x80] sm:$0xff]  ;;  %v2504_v36 = vld [vmem:[#allocation7 + $0xa8] sm:$0xff]  ;;  %v2286_v54 = vld [vmem:[#allocation10 + $0x18] sm:$0xff] }
 0x58c   :  { %9274 = vtanh.f32 %v2254_v2  ;;  %v2218_v26 = vmul.f32 0.5, %v11210_v52  ;;  %v8687_v46 = vpack.c.bf16 %v2500_v34, %v2499_v50  ;;  %v8691_v52 = vpack.c.bf16 %v2502_v60, %v2501_v51 }
 0x58d   :  { %9276 = vtanh.f32 %v2255_v55  ;;  %v2285_v55 = vld [vmem:[#allocation10 + $0x10] sm:$0xff] }
 0x58e   :  { %9278 = vtanh.f32 %v2256_v37  ;;  %v2503_v37 = vld [vmem:[#allocation7 + $0xa0] sm:$0xff] }
 0x58f   :  { %9280 = vtanh.f32 %v2257_v35  ;;  %v8695_v35 = vpack.c.bf16 %v2504_v36, %v2503_v37  ;;  %v11296_v37 = vadd.s32 16, %v10497_v10 }
 0x590   :  { %9282 = vtanh.f32 %v2258_v30  ;;  %v2505_v30 = vld [vmem:[#allocation7 + $0xb0] sm:$0xff] }
 0x591   :  { %vm2614_vm13 = vcmp.ne.s32.totalorder %v11296_v37, 16 }
 0x593   :  { %v9269_v12 = vpop.eup %9268 }
 0x594   :  { %v9271_v13 = vpop.eup %9270  ;;  %v2267_v57 = vadd.f32 1.0, %v9269_v12  ;;  %v2506_v12 = vld [vmem:[#allocation7 + $0xb8] sm:$0xff] }
 0x595   :  { %v9273_v44 = vpop.eup %9272  ;;  %v2268_v4 = vadd.f32 1.0, %v9271_v13  ;;  %v8699_v13 = vpack.c.bf16 %v2506_v12, %v2505_v30 }
 0x596   :  { %v9275_v20 = vpop.eup %9274  ;;  %v2275_v9 = vmul.f32 %v2267_v57, %v2211_v48  ;;  %v2269_v25 = vadd.f32 1.0, %v9273_v44  ;;  %v2490_v48 = vld [vmem:[#allocation7 + $0x40] sm:$0xff]  ;;  %v2491_v57 = vld [vmem:[#allocation7 + $0x48] sm:$0xff] }
 0x597   :  { %v9277_v41 = vpop.eup %9276  ;;  %v2276_v42 = vmul.f32 %v2268_v4, %v2212_v59  ;;  %v2270_v24 = vadd.f32 1.0, %v9275_v20  ;;  %v8703_v44 = vpack.c.bf16 %v2491_v57, %v2490_v48  ;;  %v2492_v59 = vld [vmem:[#allocation7 + $0x50] sm:$0xff]  ;;  %v2493_v4 = vld [vmem:[#allocation7 + $0x58] sm:$0xff] }
 0x598   :  { %v9279_v53 = vpop.eup %9278  ;;  %v2277_v7 = vmul.f32 %v2269_v25, %v2213_v61  ;;  %v2271_v38 = vadd.f32 1.0, %v9277_v41  ;;  %v8707_v61 = vpack.c.bf16 %v2493_v4, %v2492_v59  ;;  %v2494_v25 = vld [vmem:[#allocation7 + $0x60] sm:$0xff]  ;;  %v2495_v41 = vld [vmem:[#allocation7 + $0x68] sm:$0xff] }
 0x599   :  { %v9281_v28 = vpop.eup %9280  ;;  %v8655_v0 = vpack.c.bf16 %v2276_v42, %v2275_v9  ;;  %v2278_v39 = vmul.f32 %v2270_v24, %v2214_v29  ;;  %v2272_v47 = vadd.f32 1.0, %v9279_v53  ;;  %8704 = vmatprep.subr.bf16.mxu1 %v8703_v44  ;;  %v8711_v24 = vpack.c.bf16 %v2495_v41, %v2494_v25  ;;  %v2496_v53 = vld [vmem:[#allocation7 + $0x70] sm:$0xff] }
 0x59a   :  { %v9283_v21 = vpop.eup %9282  ;;  %v2279_v43 = vmul.f32 %v2271_v38, %v2215_v58  ;;  %v2273_v62 = vadd.f32 1.0, %v9281_v28  ;;  %v2809_v38 = vld [vmem:[#allocation12] sm:$0xff] }
 0x59b   :  { %8656 = vmatprep.subr.bf16.mxu0 %v8655_v0  ;;  %v8659_v27 = vpack.c.bf16 %v2278_v39, %v2277_v7  ;;  %v2280_v14 = vmul.f32 %v2272_v47, %v2216_v16  ;;  %v2274_v11 = vadd.f32 1.0, %v9283_v21  ;;  %v2497_v7 = vld [vmem:[#allocation7 + $0x78] sm:$0xff] }
 0x59c   :  { %8658 = vmatpush3.bf16.msra.mxu0 %v8655_v0  ;;  %v2281_v63 = vmul.f32 %v2273_v62, %v2217_v5  ;;  %v8715_v58 = vpack.c.bf16 %v2497_v7, %v2496_v53 }
 0x59d   :  { %8660 = vmatprep.subr.bf16.mxu0 %v8659_v27  ;;  %v8663_v18 = vpack.c.bf16 %v2280_v14, %v2279_v43  ;;  %v2282_v33 = vmul.f32 %v2274_v11, %v2218_v26 }
 0x59f   :  { %v8667_v2 = vpack.c.bf16 %v2282_v33, %v2281_v63 }
 0x5a0   :  { %8662 = vmatpush3.bf16.msra.mxu0 %v8659_v27 }
 0x5a1   :  { %8664 = vmatprep.subr.bf16.mxu0 %v8663_v18 }
 0x5a4   :  { %8666 = vmatpush3.bf16.msra.mxu0 %v8663_v18 }
 0x5a5   :  { %8668 = vmatprep.subr.bf16.mxu0 %v8667_v2 }
 0x5a8   :  { %8670 = vmatpush3.bf16.msra.mxu0 %v8667_v2 }
 0x5a9   :  { %8688 = vmatprep.subr.bf16.mxu0 %v8687_v46 }
 0x5ab   :  { %7807 = vmatmul.mubr.msk.f32.vlgmr.msra.gmra.mrb[34].mxu0 %vm2120_vm9, %v2284_v3 }
 0x5ac   :  { %7809 = vmatprep.mubr.msk.f32.mxu0 %vm2120_vm9, %v2285_v55  ;;  %8690 = vmatpush3.bf16.msra.mxu0 %v8687_v46 }
 0x5ad   :  { %8692 = vmatprep.subr.bf16.mxu0 %v8691_v52 }
 0x5af   :  { %7810 = vmatmul.mubr.msk.f32.gmra.mrb[36].mxu0 %vm2120_vm9, %v2286_v54 }
 0x5b0   :  { %8694 = vmatpush3.bf16.msra.mxu0 %v8691_v52  ;;  %v11293_v52 = vadd.s32 8, %v10497_v10 }
 0x5b1   :  { %8696 = vmatprep.subr.bf16.mxu0 %v8695_v35 }
 0x5b2   :  { %vm2609_vm12 = vcmp.ne.s32.totalorder %v11293_v52, 15 }
 0x5b4   :  { %8698 = vmatpush3.bf16.msra.mxu0 %v8695_v35 }
 0x5b5   :  { %8700 = vmatprep.subr.bf16.mxu0 %v8699_v13 }
 0x5b8   :  { %8702 = vmatpush3.bf16.msra.mxu0 %v8699_v13 }
 0x67e   :  { %v11243_v20 = vpop.f32.mrb[34].mxu0 }
 0x67f   :  { %v11245_v9 = vpop.f32.mrb[35].mxu0 }
 0x680   :  { %7828 = vmatprep.mubr.msk.f32.mxu1 %vm2120_vm9, %v11245_v9  ;;  %7850 = vmatprep.mubr.msk.f32.mxu0 %vm2120_vm9, %v11245_v9 }
 0x681   :  { %7829 = vmatmul.mubr.msk.f32.vlgmr.msra.gmra.mrb[46].mxu1 %vm2120_vm9, %v11243_v20  ;;  %7851 = vmatmul.mubr.msk.f32.vlgmr.msra.gmra.mrb[38].mxu0 %vm2120_vm9, %v11243_v20 }
 0x682   :  { %8706 = vmatpush3.bf16.msra.mxu1 %v8703_v44  ;;  %v11255_v42 = vpop.f32.mrb[36].mxu0 }
 0x683   :  { %v11257_v29 = vpop.f32.mrb[37].mxu0  ;;  %8708 = vmatprep.subr.bf16.mxu1 %v8707_v61 }
 0x684   :  { %7831 = vmatprep.mubr.msk.f32.mxu1 %vm2120_vm9, %v11257_v29  ;;  %7853 = vmatprep.mubr.msk.f32.mxu0 %vm2120_vm9, %v11257_v29 }
 0x685   :  { %7832 = vmatmul.mubr.msk.f32.gmra.mrb[48].mxu1 %vm2120_vm9, %v11255_v42  ;;  %7854 = vmatmul.mubr.msk.f32.gmra.mrb[40].mxu0 %vm2120_vm9, %v11255_v42 }
 0x686   :  { %8710 = vmatpush3.bf16.msra.mxu1 %v8707_v61  ;;  %7872 = vmatprep.mubr.msk.f32.mxu1 %vm2120_vm9, %v11245_v9 }
 0x687   :  { %8712 = vmatprep.subr.bf16.mxu1 %v8711_v24  ;;  %7886 = vmatprep.mubr.msk.f32.mxu0 %vm1265_vm5, %v2809_v38 }
 0x68a   :  { %8714 = vmatpush3.bf16.msra.mxu1 %v8711_v24 }
 0x68b   :  { %8716 = vmatprep.subr.bf16.mxu1 %v8715_v58 }
 0x68e   :  { %8718 = vmatpush3.bf16.msra.mxu1 %v8715_v58 }
 0x691   :  { %7873 = vmatmul.mubr.msk.f32.vlgmr.msra.gmra.mrb[50].mxu1 %vm2120_vm9, %v11243_v20 }
 0x692   :  { %7875 = vmatprep.mubr.msk.f32.mxu1 %vm2120_vm9, %v11257_v29 }
 0x695   :  { %7876 = vmatmul.mubr.msk.f32.gmra.mrb[52].mxu1 %vm2120_vm9, %v11255_v42 }
 0x754   :  { %v7830_v28 = vpop.f32.mrb[46].mxu1  ;;  %v7852_v0 = vpop.f32.mrb[38].mxu0 }
 0x755   :  { %v2593_v39 = vrot.slane %v7830_v28, 7  ;;  %v2601_v16 = vrot.slane %v7852_v0, 1  ;;  %v2470_v47 = vpop.f32.mrb[47].mxu1  ;;  %v2573_v21 = vpop.f32.mrb[39].mxu0 }
 0x756   :  { %v2592_v43 = vrot.slane %v2470_v47, 7  ;;  %v2600_v5 = vrot.slane %v2573_v21, 1 }
 0x758   :  { %v7833_v62 = vpop.f32.mrb[48].mxu1  ;;  %v7855_v27 = vpop.f32.mrb[40].mxu0  ;;  %v2598_v14 = vsel %vm906_vm2, %v2592_v43, %v2593_v39  ;;  %v2606_v26 = vsel %vm939_vm3, %v2600_v5, %v2601_v16 }
 0x759   :  { %v2595_v11 = vrot.slane %v7833_v62, 7  ;;  %v2603_v63 = vrot.slane %v7855_v27, 1  ;;  %v2480_v18 = vpop.f32.mrb[49].mxu1  ;;  %v2583_v33 = vpop.f32.mrb[41].mxu0 }
 0x75a   :  { %v2594_v2 = vrot.slane %v2480_v18, 7  ;;  %v2602_v50 = vrot.slane %v2583_v33, 1 }
 0x75b   :  { %v2599_v34 = vsel %vm906_vm2, %v2595_v11, %v2592_v43  ;;  %v2607_v46 = vsel %vm939_vm3, %v2603_v63, %v2600_v5 }
 0x75c   :  { %v2605_v51 = vsel %vm939_vm3, %v2601_v16, %v2602_v50  ;;  %v2596_v60 = vsel %vm906_vm2, %v2594_v2, %v2595_v11  ;;  %v2597_v3 = vsel %vm906_vm2, %v2593_v39, %v2594_v2  ;;  %v2604_v55 = vsel %vm939_vm3, %v2602_v50, %v2603_v63 }
 0x75d   :  { %v2624_v35 = vsel %vm971_vm4, %v2599_v34, 0.0  ;;  %v2714_v12 = vsel %vm2609_vm12, %v2605_v51, 0.0  ;;  %v2626_v61 = vsel %vm2614_vm13, %v2597_v3, 0.0  ;;  %v2716_v53 = vsel %vm1960_vm10, %v2607_v46, 0.0 }
 0x764   :  { %v7874_v36 = vpop.f32.mrb[50].mxu1 }
 0x765   :  { %v2700_v54 = vadd.f32 %v7874_v36, %v2598_v14  ;;  %v2694_v30 = vpop.f32.mrb[51].mxu1 }
 0x766   :  { %v2695_v13 = vadd.f32 %v2694_v30, %v2624_v35 }
 0x767   :  { %v2718_v48 = vadd.f32 %v2714_v12, %v2700_v54 }
 0x768   :  { %v2717_v57 = vadd.f32 %v2695_v13, %v2606_v26  ;;  %v7877_v44 = vpop.f32.mrb[52].mxu1  ;;  %v2721_v13 = vld [vmem:[#allocation2 + $0x6] sm:$0x1] }
 0x769   :  { %v2733_v59 = vmul.f32 %v2718_v48, %v2718_v48  ;;  %v2710_v4 = vadd.f32 %v7877_v44, %v2596_v60  ;;  %v2704_v25 = vpop.f32.mrb[53].mxu1 }
 0x76a   :  { %v2723_v41 = vadd.f32 %v2718_v48, %v2717_v57  ;;  %v2732_v24 = vmul.f32 %v2717_v57, %v2717_v57  ;;  %v2705_v7 = vadd.f32 %v2704_v25, %v2626_v61  ;;  %v6870_v61 = vld [vmem:[#allocation2 + $0x7] ss:$0 sm:$0xff] }
 0x76b   :  { %v2720_v58 = vadd.f32 %v2716_v53, %v2710_v4 }
 0x76c   :  { %v2736_v38 = vadd.f32 %v2733_v59, %v2732_v24  ;;  %v2719_v28 = vadd.f32 %v2705_v7, %v2604_v55 }
 0x76d   :  { %v2735_v16 = vmul.f32 %v2720_v58, %v2720_v58 }
 0x76e   :  { %v2724_v0 = vadd.f32 %v2723_v41, %v2719_v28  ;;  %v2734_v39 = vmul.f32 %v2719_v28, %v2719_v28 }
 0x770   :  { %v2725_v47 = vadd.f32 %v2724_v0, %v2720_v58  ;;  %v2737_v21 = vadd.f32 %v2736_v38, %v2734_v39 }
 0x772   :  { %v2726_v43 = vrot.slane %v2725_v47, 4  ;;  %v2738_v5 = vadd.f32 %v2737_v21, %v2735_v16 }
 0x774   :  { %v2727_v62 = vadd.f32 %v2726_v43, %v2725_v47  ;;  %v2739_v27 = vrot.slane %v2738_v5, 4 }
 0x776   :  { %v2728_v14 = vrot.slane %v2727_v62, 2  ;;  %v2740_v26 = vadd.f32 %v2739_v27, %v2738_v5 }
 0x778   :  { %v2729_v11 = vadd.f32 %v2728_v14, %v2727_v62  ;;  %v2741_v63 = vrot.slane %v2740_v26, 2 }
 0x77a   :  { %v2730_v18 = vrot.slane %v2729_v11, 1  ;;  %v2742_v33 = vadd.f32 %v2741_v63, %v2740_v26 }
 0x77c   :  { %v2731_v2 = vadd.f32 %v2730_v18, %v2729_v11  ;;  %v2743_v50 = vrot.slane %v2742_v33, 1 }
 0x77e   :  { %v2744_v34 = vadd.f32 %v2743_v50, %v2742_v33  ;;  %v2745_v46 = vmul.f32 0.03125, %v2731_v2 }
 0x780   :  { %v2746_v51 = vmul.f32 0.03125, %v2744_v34  ;;  %v2747_v60 = vmul.f32 %v2745_v46, %v2745_v46  ;;  %v2750_v3 = vsub.f32 %v2717_v57, %v2745_v46  ;;  %v2751_v55 = vsub.f32 %v2718_v48, %v2745_v46 }
 0x781   :  { %v2752_v36 = vsub.f32 %v2719_v28, %v2745_v46  ;;  %v2753_v54 = vsub.f32 %v2720_v58, %v2745_v46 }
 0x782   :  { %v2748_v35 = vsub.f32 %v2746_v51, %v2747_v60 }
 0x784   :  { %v2749_v30 = vmax.f32 %v2748_v35, 0.0 }
 0x786   :  { %v2754_v12 = vadd.f32 1e-05, %v2749_v30 }
 0x788   :  { %9284 = vrsqrt.f32 %v2754_v12 }
 0x792   :  { %v9285_v44 = vpop.eup %9284 }
 0x793   :  { %v2756_v59 = vmul.f32 %v9285_v44, %v2721_v13 }
 0x795   :  { %v2760_v4 = vrot.slane %v2756_v59, %v10500_v15 }
 0x797   :  { %v2761_v25 = vmul.f32 %v2760_v4, %v2750_v3  ;;  %v2762_v41 = vmul.f32 %v2760_v4, %v2751_v55  ;;  %v2763_v24 = vmul.f32 %v2760_v4, %v2752_v36  ;;  %v2764_v53 = vmul.f32 %v2760_v4, %v2753_v54 }
 0x799   :  { %v2769_v7 = vadd.f32 %v6870_v61, %v2761_v25  ;;  %v2770_v38 = vadd.f32 %v6870_v61, %v2762_v41  ;;  %v2771_v57 = vadd.f32 %v6870_v61, %v2763_v24  ;;  %v2772_v48 = vadd.f32 %v6870_v61, %v2764_v53  ;;  %v2810_v53 = vld [vmem:[#allocation12 + $0x8] sm:$0xff] }
 0x79b   :  { %v2777_v28 = vmul.f32 0.044715, %v2769_v7  ;;  %v2778_v58 = vmul.f32 0.044715, %v2770_v38  ;;  %v2779_v0 = vmul.f32 0.044715, %v2771_v57 }
 0x79c   :  { %v2780_v39 = vmul.f32 0.044715, %v2772_v48  ;;  %v2773_v60 = vmul.f32 0.5, %v2769_v7  ;;  %v2774_v36 = vmul.f32 0.5, %v2770_v38  ;;  %v2775_v12 = vmul.f32 0.5, %v2771_v57 }
 0x79d   :  { %v2781_v16 = vmul.f32 %v2777_v28, %v2769_v7  ;;  %v2782_v47 = vmul.f32 %v2778_v58, %v2770_v38  ;;  %v2783_v21 = vmul.f32 %v2779_v0, %v2771_v57  ;;  %v2776_v59 = vmul.f32 0.5, %v2772_v48  ;;  %v2969_v28 = vld [vmem:[#allocation15 + $0x10] sm:$0xff]  ;;  %v2970_v0 = vld [vmem:[#allocation15 + $0x18] sm:$0xff] }
 0x79e   :  { %v2784_v43 = vmul.f32 %v2780_v39, %v2772_v48  ;;  %v8734_v39 = vpack.c.bf16 %v2970_v0, %v2969_v28  ;;  %v3065_v28 = vld [vmem:[#allocation18 + $0x50] sm:$0xff] }
 0x79f   :  { %v2785_v5 = vmul.f32 %v2781_v16, %v2769_v7  ;;  %v2786_v62 = vmul.f32 %v2782_v47, %v2770_v38  ;;  %v2787_v27 = vmul.f32 %v2783_v21, %v2771_v57  ;;  %v2971_v16 = vld [vmem:[#allocation15 + $0x20] sm:$0xff]  ;;  %v2972_v47 = vld [vmem:[#allocation15 + $0x28] sm:$0xff] }
 0x7a0   :  { %v2788_v14 = vmul.f32 %v2784_v43, %v2772_v48  ;;  %v8737_v21 = vpack.c.bf16 %v2972_v47, %v2971_v16  ;;  %v2973_v43 = vld [vmem:[#allocation15 + $0x30] sm:$0xff] }
 0x7a1   :  { %v2789_v26 = vadd.f32 %v2785_v5, %v2769_v7  ;;  %v2790_v11 = vadd.f32 %v2786_v62, %v2770_v38  ;;  %v2791_v63 = vadd.f32 %v2787_v27, %v2771_v57  ;;  %v9871_v7 = vmov 0.0|0.0   ;;  %v2967_v57 = vld [vmem:[#allocation15] sm:$0xff]  ;;  %v2974_v5 = vld [vmem:[#allocation15 + $0x38] sm:$0xff]  ;;  %v3068_v16 = vld [vmem:[#allocation18 + $0x68] sm:$0xff] }
 0x7a2   :  { %v2792_v18 = vadd.f32 %v2788_v14, %v2772_v48  ;;  %8727 = vmatprep.subr.bf16.mxu1 %v9871_v7  ;;  %v9873_v38 = vmov 0.0   ;;  %v2968_v48 = vld [vmem:[#allocation15 + $0x8] sm:$0xff]  ;;  %v8740_v62 = vpack.c.bf16 %v2974_v5, %v2973_v43  ;;  %v2975_v27 = vld [vmem:[#allocation15 + $0x40] sm:$0xff]  ;;  %v3069_v5 = vld [vmem:[#allocation18 + $0x70] sm:$0xff] }
 0x7a3   :  { %v2793_v33 = vmul.f32 0.7978846, %v2789_v26  ;;  %v2794_v2 = vmul.f32 0.7978846, %v2790_v11  ;;  %v2795_v50 = vmul.f32 0.7978846, %v2791_v63  ;;  %7893 = vmatprep.mubr.msk.f32.mxu1 %vm9872_vm14, %v9873_v38  ;;  %v8731_v58 = vpack.c.bf16 %v2968_v48, %v2967_v57 }
 0x7a4   :  { %v2796_v34 = vmul.f32 0.7978846, %v2792_v18  ;;  %v2976_v14 = vld [vmem:[#allocation15 + $0x48] sm:$0xff]  ;;  %v2977_v11 = vld [vmem:[#allocation15 + $0x50] sm:$0xff]  ;;  %v2978_v63 = vld [vmem:[#allocation15 + $0x58] sm:$0xff] }
 0x7a5   :  { %9286 = vtanh.f32 %v2793_v33  ;;  %v8743_v26 = vpack.c.bf16 %v2976_v14, %v2975_v27  ;;  %v8746_v18 = vpack.c.bf16 %v2978_v63, %v2977_v11  ;;  %v2979_v33 = vld [vmem:[#allocation15 + $0x60] sm:$0xff]  ;;  %v3064_v57 = vld [vmem:[#allocation18 + $0x48] sm:$0xff] }
 0x7a6   :  { %9288 = vtanh.f32 %v2794_v2  ;;  %v2980_v2 = vld [vmem:[#allocation15 + $0x68] sm:$0xff]  ;;  %v3053_v14 = vld [vmem:[#allocation16] sm:$0xff] }
 0x7a7   :  { %9290 = vtanh.f32 %v2795_v50  ;;  %v8749_v50 = vpack.c.bf16 %v2980_v2, %v2979_v33 }
 0x7a8   :  { %9292 = vtanh.f32 %v2796_v34  ;;  %v2981_v34 = vld [vmem:[#allocation15 + $0x70] sm:$0xff] }
 0x7af   :  { %v9287_v46 = vpop.eup %9286 }
 0x7b0   :  { %v9289_v51 = vpop.eup %9288  ;;  %v2801_v3 = vadd.f32 1.0, %v9287_v46  ;;  %v2982_v46 = vld [vmem:[#allocation15 + $0x78] sm:$0xff] }
 0x7b1   :  { %v9291_v55 = vpop.eup %9290  ;;  %v2802_v54 = vadd.f32 1.0, %v9289_v51  ;;  %v8752_v51 = vpack.c.bf16 %v2982_v46, %v2981_v34 }
 0x7b2   :  { %v9293_v35 = vpop.eup %9292  ;;  %v2805_v30 = vmul.f32 %v2801_v3, %v2773_v60  ;;  %v2803_v13 = vadd.f32 1.0, %v9291_v55 }
 0x7b3   :  { %v2806_v44 = vmul.f32 %v2802_v54, %v2774_v36  ;;  %v2804_v4 = vadd.f32 1.0, %v9293_v35  ;;  %v2892_v36 = vld [vmem:[#allocation13] sm:$0xff]  ;;  %v3055_v54 = vld [vmem:[#allocation18] sm:$0xff]  ;;  %v3056_v35 = vld [vmem:[#allocation18 + $0x8] sm:$0xff] }
 0x7b4   :  { %v2807_v61 = vmul.f32 %v2803_v13, %v2775_v12  ;;  %v8755_v12 = vpack.c.bf16 %v3056_v35, %v3055_v54  ;;  %v3058_v13 = vld [vmem:[#allocation18 + $0x18] sm:$0xff]  ;;  %v3238_v54 = vld [vmem:[#allocation19 + $0x8] sm:$0xff]  ;;  %v3422_v35 = vld [vmem:[#allocation24] sm:$0xff] }
 0x7b5   :  { %v8719_v25 = vpack.c.bf16 %v2806_v44, %v2805_v30  ;;  %v2808_v41 = vmul.f32 %v2804_v4, %v2776_v59  ;;  %v3057_v30 = vld [vmem:[#allocation18 + $0x10] sm:$0xff]  ;;  %v3059_v59 = vld [vmem:[#allocation18 + $0x20] sm:$0xff]  ;;  %v3060_v4 = vld [vmem:[#allocation18 + $0x28] sm:$0xff] }
 0x7b6   :  { %v8758_v44 = vpack.c.bf16 %v3058_v13, %v3057_v30 }
 0x7b7   :  { %8720 = vmatprep.subr.bf16.mxu0 %v8719_v25  ;;  %v8723_v24 = vpack.c.bf16 %v2808_v41, %v2807_v61  ;;  %v8761_v61 = vpack.c.bf16 %v3060_v4, %v3059_v59  ;;  %v3062_v41 = vld [vmem:[#allocation18 + $0x38] sm:$0xff] }
 0x7b8   :  { %8722 = vmatpush3.bf16.msra.mxu0 %v8719_v25  ;;  %v3061_v25 = vld [vmem:[#allocation18 + $0x30] sm:$0xff] }
 0x7b9   :  { %8724 = vmatprep.subr.bf16.mxu0 %v8723_v24 }
 0x7bc   :  { %8726 = vmatpush3.bf16.msra.mxu0 %v8723_v24  ;;  %v8764_v24 = vpack.c.bf16 %v3062_v41, %v3061_v25  ;;  %v3424_v41 = vld [vmem:[#allocation24 + $0x10] sm:$0xff] }
 0x7bd   :  { %8730 = vmatprep.subr.bf16.mxu0 %v9871_v7 }
 0x7bf   :  { %7887 = vmatmul.mubr.msk.f32.vlgmr.msra.gmra.mrb[42].mxu0 %vm1265_vm5, %v2810_v53  ;;  %v3063_v53 = vld [vmem:[#allocation18 + $0x40] sm:$0xff] }
 0x7c0   :  { %7928 = vmatprep.mubr.msk.f32.mxu0 %vm9872_vm14, %v9873_v38  ;;  %8732 = vmatpush3.bf16.msra.mxu0 %v8731_v58  ;;  %v8767_v48 = vpack.c.bf16 %v3064_v57, %v3063_v53  ;;  %v3066_v58 = vld [vmem:[#allocation18 + $0x58] sm:$0xff] }
 0x7c1   :  { %8733 = vmatprep.subr.bf16.mxu0 %v9871_v7  ;;  %v8770_v0 = vpack.c.bf16 %v3066_v58, %v3065_v28  ;;  %v3426_v28 = vld [vmem:[#allocation24 + $0x20] sm:$0xff]  ;;  %v3427_v58 = vld [vmem:[#allocation24 + $0x28] sm:$0xff] }
 0x7c4   :  { %8735 = vmatpush3.bf16.msra.mxu0 %v8734_v39  ;;  %v3067_v39 = vld [vmem:[#allocation18 + $0x60] sm:$0xff] }
 0x7c5   :  { %8736 = vmatprep.subr.bf16.mxu0 %v9871_v7  ;;  %v8773_v47 = vpack.c.bf16 %v3068_v16, %v3067_v39  ;;  %v3428_v39 = vld [vmem:[#allocation24 + $0x30] sm:$0xff]  ;;  %v3429_v16 = vld [vmem:[#allocation24 + $0x38] sm:$0xff] }
 0x7c8   :  { %8738 = vmatpush3.bf16.msra.mxu0 %v8737_v21 }
 0x7c9   :  { %8739 = vmatprep.subr.bf16.mxu0 %v9871_v7 }
 0x7cc   :  { %8741 = vmatpush3.bf16.msra.mxu0 %v8740_v62  ;;  %v3070_v62 = vld [vmem:[#allocation18 + $0x78] sm:$0xff] }
 0x7cd   :  { %8742 = vmatprep.subr.bf16.mxu0 %v9871_v7  ;;  %v8776_v27 = vpack.c.bf16 %v3070_v62, %v3069_v5  ;;  %v3432_v62 = vld [vmem:[#allocation24 + $0x50] sm:$0xff] }
 0x7d0   :  { %8744 = vmatpush3.bf16.msra.mxu0 %v8743_v26 }
 0x7d1   :  { %8745 = vmatprep.subr.bf16.mxu0 %v9871_v7 }
 0x7d4   :  { %8747 = vmatpush3.bf16.msra.mxu0 %v8746_v18  ;;  %v3141_v18 = vld [vmem:[%s12114_s13] sm:$0x3]  ;;  %s9874_s13 = smov 112  }
 0x7d5   :  { %8748 = vmatprep.subr.bf16.mxu0 %v9871_v7 }
 0x7d8   :  { %8750 = vmatpush3.bf16.msra.mxu0 %v8749_v50  ;;  %v6874_v50 = vld [vmem:[#allocation2 + $0x8] ss:$0 sm:$0xff] }
 0x7d9   :  { %8751 = vmatprep.subr.bf16.mxu0 %v9871_v7 }
 0x7dc   :  { %8753 = vmatpush3.bf16.msra.mxu0 %v8752_v51 }
 0x7dd   :  { %7966 = vmatprep.subr.mxu0 %v9873_v38 }
 0x892   :  { %v11324_v60 = vpop.f32.mrb[42].mxu0 }
 0x893   :  { %v11326_v3 = vpop.f32.mrb[43].mxu0 }
 0x894   :  { %v8728_v55 = vpack.c.bf16 %v11324_v60, %v11326_v3 }
 0x896   :  { %8729 = vmatpush3.bf16.msra.mxu1 %v8728_v55 }
 0x897   :  { %8754 = vmatprep.subr.bf16.mxu1 %v9871_v7 }
 0x899   :  { %7894 = vmatmul.mubr.msk.f32.vlgmr.msra.gmra.mrb[54].mxu1 %vm2893_vm15, %v2892_v36  ;;  %v3237_v36 = vld [vmem:[#allocation19] sm:$0xff] }
 0x89a   :  { %7963 = vmatprep.mubr.msk.f32.mxu1 %vm9872_vm14, %v9873_v38  ;;  %8756 = vmatpush3.bf16.msra.mxu1 %v8755_v12  ;;  %v8779_v30 = vpack.c.bf16 %v3238_v54, %v3237_v36  ;;  %v3423_v12 = vld [vmem:[#allocation24 + $0x8] sm:$0xff]  ;;  %v3410_v36 = vld [vmem:[#allocation22 + $0x20] sm:$0xff] }
 0x89b   :  { %8757 = vmatprep.subr.bf16.mxu1 %v9871_v7  ;;  %v8781_v13 = vpack.c.bf16 %v3423_v12, %v3422_v35  ;;  %v3411_v54 = vld [vmem:[#allocation22 + $0x28] sm:$0xff]  ;;  %v3413_v12 = vld [vmem:[#allocation22 + $0x38] sm:$0xff] }
 0x89c   :  { %v8821_v35 = vpack.c.bf16 %v3411_v54, %v3410_v36  ;;  %v3618_v54 = vld [vmem:[#allocation24 + $0xe0] sm:$0xff] }
 0x89e   :  { %8759 = vmatpush3.bf16.msra.mxu1 %v8758_v44 }
 0x89f   :  { %8760 = vmatprep.subr.bf16.mxu1 %v9871_v7 }
 0x8a2   :  { %8762 = vmatpush3.bf16.msra.mxu1 %v8761_v61 }
 0x8a3   :  { %8763 = vmatprep.subr.bf16.mxu1 %v9871_v7 }
 0x8a6   :  { %8765 = vmatpush3.bf16.msra.mxu1 %v8764_v24  ;;  %v3425_v24 = vld [vmem:[#allocation24 + $0x18] sm:$0xff] }
 0x8a7   :  { %8766 = vmatprep.subr.bf16.mxu1 %v9871_v7 }
 0x8aa   :  { %8768 = vmatpush3.bf16.msra.mxu1 %v8767_v48  ;;  %v8785_v48 = vpack.c.bf16 %v3425_v24, %v3424_v41  ;;  %v3418_v24 = vld [vmem:[#allocation22 + $0x60] sm:$0xff] }
 0x8ab   :  { %8769 = vmatprep.subr.bf16.mxu1 %v9871_v7 }
 0x8ae   :  { %8771 = vmatpush3.bf16.msra.mxu1 %v8770_v0  ;;  %v8789_v0 = vpack.c.bf16 %v3427_v58, %v3426_v28  ;;  %v3421_v28 = vld [vmem:[#allocation22 + $0x78] sm:$0xff] }
 0x8af   :  { %8772 = vmatprep.subr.bf16.mxu1 %v9871_v7 }
 0x8b2   :  { %8774 = vmatpush3.bf16.msra.mxu1 %v8773_v47  ;;  %v8793_v47 = vpack.c.bf16 %v3429_v16, %v3428_v39  ;;  %v3606_v16 = vld [vmem:[#allocation24 + $0x80] sm:$0xff] }
 0x8b3   :  { %8775 = vmatprep.subr.bf16.mxu1 %v9871_v7 }
 0x8b6   :  { %8777 = vmatpush3.bf16.msra.mxu1 %v8776_v27  ;;  %v3433_v27 = vld [vmem:[#allocation24 + $0x58] sm:$0xff] }
 0x8b7   :  { %8778 = vmatprep.subr.bf16.mxu1 %v9871_v7 }
 0x96c   :  { %v2963_v21 = vpop.f32.mrb[54].mxu1 }
 0x96d   :  { %7929 = vmatmul.mubr.f32.vlgmr.msra.gmra.mrb[44].mxu0 %v2963_v21  ;;  %v7895_v43 = vpop.f32.mrb[55].mxu1  ;;  %v3430_v21 = vld [vmem:[#allocation24 + $0x40] sm:$0xff] }
 0x96e   :  { %7968 = vmatprep.mubr.msk.f32.mxu0 %vm9872_vm14, %v9873_v38  ;;  %v3431_v43 = vld [vmem:[#allocation24 + $0x48] sm:$0xff] }
 0x96f   :  { %v8797_v5 = vpack.c.bf16 %v3431_v43, %v3430_v21 }
 0xa40   :  { %v3049_v26 = vpop.f32.mrb[44].mxu0 }
 0xa41   :  { %v3054_v11 = vmul.f32 %v3053_v14, %v3049_v26  ;;  %v7930_v63 = vpop.f32.mrb[45].mxu0  ;;  %v8801_v14 = vpack.c.bf16 %v3433_v27, %v3432_v62  ;;  %v3434_v26 = vld [vmem:[#allocation24 + $0x60] sm:$0xff]  ;;  %v3609_v62 = vld [vmem:[#allocation24 + $0x98] sm:$0xff] }
 0xa43   :  { %7964 = vmatmul.mubr.f32.vlgmr.msra.gmra.mrb[56].mxu1 %v3054_v11  ;;  %v3435_v11 = vld [vmem:[#allocation24 + $0x68] sm:$0xff] }
 0xa44   :  { %7975 = vmatprep.mubr.msk.f32.mxu1 %vm9872_vm14, %v9873_v38  ;;  %8780 = vmatpush3.bf16.msra.mxu1 %v8779_v30  ;;  %v8805_v63 = vpack.c.bf16 %v3435_v11, %v3434_v26  ;;  %v3412_v30 = vld [vmem:[#allocation22 + $0x30] sm:$0xff]  ;;  %vm3327_vm14 = vcmask 1041408   ;;  %v3319_v26 = vld [vmem:[#allocation21 + $0x8] sm:$0xff] }
 0xa45   :  { %8782 = vmatprep.subr.bf16.mxu1 %v8781_v13 }
 0xb16   :  { %v3137_v33 = vpop.f32.mrb[56].mxu1 }
 0xb17   :  { %7967 = vmatpush3.msra.mxu0 %v3137_v33  ;;  %v7965_v2 = vpop.f32.mrb[57].mxu1  ;;  %v3437_v33 = vld [vmem:[#allocation24 + $0x78] sm:$0xff] }
 0xb18   :  { %7969 = vmatmul.mubr.msk.f32.vlgmr.msra.gmra.mrb[46].mxu0 %vm3147_vm0, %v3141_v18  ;;  %v3436_v18 = vld [vmem:[#allocation24 + $0x70] sm:$0xff]  ;;  %vm3967_vm0 = vcmp.ne.s32.totalorder %v11293_v52, 8 }
 0xb19   :  { %v8809_v2 = vpack.c.bf16 %v3437_v33, %v3436_v18  ;;  %v3611_v18 = vld [vmem:[#allocation24 + $0xa8] sm:$0xff] }
 0xbeb   :  { %v3217_v34 = vpop.f32.mrb[46].mxu0 }
 0xbec   :  { %v3218_v7 = vadd.f32 %v6874_v50, %v3217_v34  ;;  %v7970_v46 = vpop.f32.mrb[47].mxu0  ;;  %v3318_v50 = vld [vmem:[#allocation21] sm:$0xff]  ;;  %v3406_v34 = vld [vmem:[#allocation22] sm:$0xff] }
 0xbee   :  { %3222 = vst.msk [vmem:[%s12128_s27] sm:$0x3] %vm3221_vm8, %v3218_v7  ;;  %v6876_v51 = vclamps-f32 %v3218_v7, 10.0  ;;  %s12170_s27 = sld [smem:[#allocation46_spill]]  ;;  %vm3320_vm8 = vcmask 15360  }
 0xbef   :  { %7980 = vmatprep.mubr.msk.f32.mxu0 %vm3320_vm8, %v3318_v50  ;;  %v3613_v50 = vld [vmem:[#allocation24 + $0xb8] sm:$0xff] }
 0xbf0   :  { %v3225_v38 = vmul.f32 0.5, %v6876_v51  ;;  %v3408_v51 = vld [vmem:[#allocation22 + $0x10] sm:$0xff] }
 0xbf2   :  { %v3226_v55 = vmul.f32 1.442695, %v3225_v38  ;;  %v3409_v38 = vld [vmem:[#allocation22 + $0x18] sm:$0xff] }
 0xbf4   :  { %9294 = vpow2.f32 %v3226_v55  ;;  %v3230_v61 = vld [vmem:[%s12170_s27] sm:$0x3]  ;;  %v8817_v55 = vpack.c.bf16 %v3409_v38, %v3408_v51  ;;  %v3616_v38 = vld [vmem:[#allocation24 + $0xd0] sm:$0xff] }
 0xbfe   :  { %v9295_v44 = vpop.eup %9294 }
 0xbff   :  { %v3228_v59 = vmax.f32 %v9295_v44, 1e-05  ;;  %v3414_v44 = vld [vmem:[#allocation22 + $0x40] sm:$0xff] }
 0xc01   :  { %v3229_v4 = vmin.f32 %v3228_v59, 10.0  ;;  %v3415_v59 = vld [vmem:[#allocation22 + $0x48] sm:$0xff] }
 0xc03   :  { %3232 = vrot.lane.b32.xlu0 %v3229_v4, %s9874_s13  ;;  %v8829_v4 = vpack.c.bf16 %v3415_v59, %v3414_v44  ;;  %v3589_v59 = vld [vmem:[#allocation22 + $0x80] sm:$0xff] }
 0xc75   :  { %v3233_v25 = vpop.permute.xlu0 %3232 }
 0xc76   :  { %v3235_v53 = vmul.f32 %v3233_v25, %v3230_v61  ;;  %v3416_v61 = vld [vmem:[#allocation22 + $0x50] sm:$0xff]  ;;  %v3417_v25 = vld [vmem:[#allocation22 + $0x58] sm:$0xff] }
 0xc77   :  { %v8833_v41 = vpack.c.bf16 %v3417_v25, %v3416_v61  ;;  %v3591_v25 = vld [vmem:[#allocation22 + $0x90] sm:$0xff] }
 0xc78   :  { %v3236_v57 = vadd.f32 %v3235_v53, %v3218_v7  ;;  %v3407_v7 = vld [vmem:[#allocation22 + $0x8] sm:$0xff] }
 0xc79   :  { %v8813_v46 = vpack.c.bf16 %v3407_v7, %v3406_v34  ;;  %v3419_v53 = vld [vmem:[#allocation22 + $0x68] sm:$0xff]  ;;  %v3614_v7 = vld [vmem:[#allocation24 + $0xc0] sm:$0xff] }
 0xc7a   :  { %7976 = vmatmul.mubr.msk.f32.vlgmr.msra.gmra.mrb[58].mxu1 %vm2893_vm15, %v3236_v57  ;;  %v8837_v57 = vpack.c.bf16 %v3419_v53, %v3418_v24  ;;  %v3593_v53 = vld [vmem:[#allocation22 + $0xa0] sm:$0xff] }
 0xc7b   :  { %8784 = vmatpush3.bf16.msra.mxu1 %v8781_v13  ;;  %8015 = vmatprep.mubr.f32.mxu1 %v11326_v3  ;;  %v8825_v13 = vpack.c.bf16 %v3413_v12, %v3412_v30  ;;  %v3620_v12 = vld [vmem:[#allocation24 + $0xf0] sm:$0xff] }
 0xc7c   :  { %8786 = vmatprep.subr.bf16.mxu1 %v8785_v48 }
 0xc7f   :  { %8788 = vmatpush3.bf16.msra.mxu1 %v8785_v48  ;;  %v3420_v48 = vld [vmem:[#allocation22 + $0x70] sm:$0xff] }
 0xc80   :  { %8790 = vmatprep.subr.bf16.mxu1 %v8789_v0  ;;  %v8841_v58 = vpack.c.bf16 %v3421_v28, %v3420_v48  ;;  %v3595_v28 = vld [vmem:[#allocation22 + $0xb0] sm:$0xff] }
 0xc83   :  { %8792 = vmatpush3.bf16.msra.mxu1 %v8789_v0  ;;  %v6877_v0 = vld [vmem:[#allocation2 + $0x9] ss:$0 sm:$0xff] }
 0xc84   :  { %8794 = vmatprep.subr.bf16.mxu1 %v8793_v47 }
 0xc87   :  { %8796 = vmatpush3.bf16.msra.mxu1 %v8793_v47  ;;  %v3607_v47 = vld [vmem:[#allocation24 + $0x88] sm:$0xff] }
 0xc88   :  { %8798 = vmatprep.subr.bf16.mxu1 %v8797_v5 }
 0xc8b   :  { %8800 = vmatpush3.bf16.msra.mxu1 %v8797_v5  ;;  %v3608_v5 = vld [vmem:[#allocation24 + $0x90] sm:$0xff] }
 0xc8c   :  { %8802 = vmatprep.subr.bf16.mxu1 %v8801_v14  ;;  %v8849_v11 = vpack.c.bf16 %v3609_v62, %v3608_v5  ;;  %v3601_v62 = vld [vmem:[#allocation22 + $0xe0] sm:$0xff] }
 0xc8f   :  { %8804 = vmatpush3.bf16.msra.mxu1 %v8801_v14  ;;  %v8845_v14 = vpack.c.bf16 %v3607_v47, %v3606_v16  ;;  %v3598_v16 = vld [vmem:[#allocation22 + $0xc8] sm:$0xff] }
 0xc90   :  { %8806 = vmatprep.subr.bf16.mxu1 %v8805_v63 }
 0xc93   :  { %8808 = vmatpush3.bf16.msra.mxu1 %v8805_v63  ;;  %v3610_v63 = vld [vmem:[#allocation24 + $0xa0] sm:$0xff] }
 0xc94   :  { %8810 = vmatprep.subr.bf16.mxu1 %v8809_v2  ;;  %v8853_v33 = vpack.c.bf16 %v3611_v18, %v3610_v63  ;;  %v3790_v18 = vld [vmem:[#allocation24 + $0x100] sm:$0xff] }
 0xc97   :  { %8812 = vmatpush3.bf16.msra.mxu1 %v8809_v2  ;;  %v3612_v2 = vld [vmem:[#allocation24 + $0xb0] sm:$0xff] }
 0xc98   :  { %8814 = vmatprep.subr.bf16.mxu1 %v8813_v46  ;;  %v8857_v34 = vpack.c.bf16 %v3613_v50, %v3612_v2  ;;  %v3792_v50 = vld [vmem:[#allocation24 + $0x110] sm:$0xff] }
 0xc9a   :  { %8016 = vmatmul.mubr.f32.vlgmr.msra.gmra.mrb[60].mxu1 %v11324_v60 }
 0xc9b   :  { %8816 = vmatpush3.bf16.msra.mxu1 %v8813_v46  ;;  %v3615_v46 = vld [vmem:[#allocation24 + $0xc8] sm:$0xff] }
 0xc9c   :  { %8818 = vmatprep.subr.bf16.mxu1 %v8817_v55  ;;  %v8861_v51 = vpack.c.bf16 %v3615_v46, %v3614_v7 }
 0xc9f   :  { %8820 = vmatpush3.bf16.msra.mxu1 %v8817_v55  ;;  %v3617_v55 = vld [vmem:[#allocation24 + $0xd8] sm:$0xff] }
 0xca0   :  { %8822 = vmatprep.subr.bf16.mxu1 %v8821_v35  ;;  %v8865_v36 = vpack.c.bf16 %v3617_v55, %v3616_v38  ;;  %v3794_v38 = vld [vmem:[#allocation24 + $0x120] sm:$0xff]  ;;  %v3795_v55 = vld [vmem:[#allocation24 + $0x128] sm:$0xff] }
 0xca3   :  { %8824 = vmatpush3.bf16.msra.mxu1 %v8821_v35  ;;  %v3619_v35 = vld [vmem:[#allocation24 + $0xe8] sm:$0xff] }
 0xca4   :  { %8826 = vmatprep.subr.bf16.mxu1 %v8825_v13  ;;  %v8869_v30 = vpack.c.bf16 %v3619_v35, %v3618_v54  ;;  %v3796_v54 = vld [vmem:[#allocation24 + $0x130] sm:$0xff]  ;;  %v3797_v35 = vld [vmem:[#allocation24 + $0x138] sm:$0xff] }
 0xca7   :  { %8828 = vmatpush3.bf16.msra.mxu1 %v8825_v13  ;;  %v3621_v13 = vld [vmem:[#allocation24 + $0xf8] sm:$0xff] }
 0xca8   :  { %8830 = vmatprep.subr.bf16.mxu1 %v8829_v4  ;;  %v8873_v44 = vpack.c.bf16 %v3621_v13, %v3620_v12  ;;  %v3798_v12 = vld [vmem:[#allocation24 + $0x140] sm:$0xff]  ;;  %v3799_v13 = vld [vmem:[#allocation24 + $0x148] sm:$0xff] }
 0xcab   :  { %8832 = vmatpush3.bf16.msra.mxu1 %v8829_v4  ;;  %v3590_v4 = vld [vmem:[#allocation22 + $0x88] sm:$0xff] }
 0xcac   :  { %8834 = vmatprep.subr.bf16.mxu1 %v8833_v41  ;;  %v8877_v61 = vpack.c.bf16 %v3590_v4, %v3589_v59  ;;  %v3800_v59 = vld [vmem:[#allocation24 + $0x150] sm:$0xff]  ;;  %v3801_v4 = vld [vmem:[#allocation24 + $0x158] sm:$0xff] }
 0xcaf   :  { %8836 = vmatpush3.bf16.msra.mxu1 %v8833_v41  ;;  %v3592_v41 = vld [vmem:[#allocation22 + $0x98] sm:$0xff] }
 0xcb0   :  { %8838 = vmatprep.subr.bf16.mxu1 %v8837_v57  ;;  %v8881_v24 = vpack.c.bf16 %v3592_v41, %v3591_v25  ;;  %v3802_v25 = vld [vmem:[#allocation24 + $0x160] sm:$0xff]  ;;  %v3803_v41 = vld [vmem:[#allocation24 + $0x168] sm:$0xff] }
 0xcb3   :  { %8840 = vmatpush3.bf16.msra.mxu1 %v8837_v57  ;;  %v3594_v57 = vld [vmem:[#allocation22 + $0xa8] sm:$0xff] }
 0xcb4   :  { %8842 = vmatprep.subr.bf16.mxu1 %v8841_v58  ;;  %v8885_v48 = vpack.c.bf16 %v3594_v57, %v3593_v53  ;;  %v3805_v53 = vld [vmem:[#allocation24 + $0x178] sm:$0xff] }
 0xcb7   :  { %8844 = vmatpush3.bf16.msra.mxu1 %v8841_v58  ;;  %v3596_v58 = vld [vmem:[#allocation22 + $0xb8] sm:$0xff] }
 0xd4d   :  { %v3313_v39 = vpop.f32.mrb[58].mxu1 }
 0xd4e   :  { %v3314_v21 = vadd.f32 %v6877_v0, %v3313_v39  ;;  %v7977_v43 = vpop.f32.mrb[59].mxu1  ;;  %v8889_v0 = vpack.c.bf16 %v3596_v58, %v3595_v28  ;;  %v3597_v39 = vld [vmem:[#allocation22 + $0xc0] sm:$0xff]  ;;  %v3774_v28 = vld [vmem:[#allocation22 + $0x108] sm:$0xff] }
 0xd4f   :  { %v8893_v47 = vpack.c.bf16 %v3598_v16, %v3597_v39  ;;  %v3600_v43 = vld [vmem:[#allocation22 + $0xd8] sm:$0xff] }
 0xd50   :  { %v3317_v27 = vmax.f32 %v3314_v21, 0.0  ;;  %v3599_v21 = vld [vmem:[#allocation22 + $0xd0] sm:$0xff]  ;;  %v3776_v39 = vld [vmem:[#allocation22 + $0x118] sm:$0xff] }
 0xd51   :  { %v8897_v5 = vpack.c.bf16 %v3600_v43, %v3599_v21  ;;  %v3778_v21 = vld [vmem:[#allocation22 + $0x128] sm:$0xff] }
 0xd52   :  { %7978 = vmatprep.subr.msk.mxu0 %vm3327_vm14, %v3317_v27 }
 0xd53   :  { %7979 = vmatpush3.msk.msra.mxu0 %vm3327_vm14, %v3317_v27  ;;  %v3602_v27 = vld [vmem:[#allocation22 + $0xe8] sm:$0xff] }
 0xd54   :  { %7981 = vmatmul.mubr.msk.f32.vlgmr.msra.gmra.mrb[48].mxu0 %vm3320_vm8, %v3319_v26  ;;  %8846 = vmatprep.subr.bf16.mxu0 %v8845_v14  ;;  %v3603_v26 = vld [vmem:[#allocation22 + $0xf0] sm:$0xff]  ;;  %vm3964_vm8 = vcmp.ne.s32.totalorder %v10497_v10, 7 }
 0xd55   :  { %8848 = vmatpush3.bf16.msra.mxu0 %v8845_v14  ;;  %8085 = vmatprep.mubr.f32.mxu0 %v11326_v3  ;;  %v8901_v14 = vpack.c.bf16 %v3602_v27, %v3601_v62  ;;  %v3780_v62 = vld [vmem:[#allocation22 + $0x138] sm:$0xff] }
 0xd56   :  { %8850 = vmatprep.subr.bf16.mxu0 %v8849_v11 }
 0xd59   :  { %8852 = vmatpush3.bf16.msra.mxu0 %v8849_v11  ;;  %v3604_v11 = vld [vmem:[#allocation22 + $0xf8] sm:$0xff] }
 0xd5a   :  { %8854 = vmatprep.subr.bf16.mxu0 %v8853_v33  ;;  %v8905_v63 = vpack.c.bf16 %v3604_v11, %v3603_v26  ;;  %v3782_v26 = vld [vmem:[#allocation22 + $0x148] sm:$0xff] }
 0xd5d   :  { %8856 = vmatpush3.bf16.msra.mxu0 %v8853_v33  ;;  %v3791_v33 = vld [vmem:[#allocation24 + $0x108] sm:$0xff] }
 0xd5e   :  { %8858 = vmatprep.subr.bf16.mxu0 %v8857_v34  ;;  %v8909_v2 = vpack.c.bf16 %v3791_v33, %v3790_v18  ;;  %v3784_v18 = vld [vmem:[#allocation22 + $0x158] sm:$0xff] }
 0xd60   :  { %8910 = vmatprep.subr.bf16.mxu1 %v8909_v2 }
 0xd61   :  { %8860 = vmatpush3.bf16.msra.mxu0 %v8857_v34  ;;  %v3793_v34 = vld [vmem:[#allocation24 + $0x118] sm:$0xff] }
 0xd62   :  { %8862 = vmatprep.subr.bf16.mxu0 %v8861_v51 }
 0xd65   :  { %8864 = vmatpush3.bf16.msra.mxu0 %v8861_v51  ;;  %v8913_v51 = vpack.c.bf16 %v3793_v34, %v3792_v50  ;;  %v3787_v34 = vld [vmem:[#allocation22 + $0x170] sm:$0xff] }
 0xd66   :  { %8866 = vmatprep.subr.bf16.mxu0 %v8865_v36 }
 0xd69   :  { %8868 = vmatpush3.bf16.msra.mxu0 %v8865_v36  ;;  %v8917_v36 = vpack.c.bf16 %v3795_v55, %v3794_v38  ;;  %v6911_v38 = vld [vmem:[%s12171_s7 + $0x80] sm:$0xff]  ;;  %v6912_v55 = vld [vmem:[%s12171_s7 + $0x88] sm:$0xff] }
 0xd6a   :  { %8870 = vmatprep.subr.bf16.mxu0 %v8869_v30 }
 0xd6d   :  { %8872 = vmatpush3.bf16.msra.mxu0 %v8869_v30  ;;  %v8921_v30 = vpack.c.bf16 %v3797_v35, %v3796_v54  ;;  %v6913_v54 = vld [vmem:[%s12171_s7 + $0x90] sm:$0xff]  ;;  %v6914_v35 = vld [vmem:[%s12171_s7 + $0x98] sm:$0xff] }
 0xd6e   :  { %8874 = vmatprep.subr.bf16.mxu0 %v8873_v44 }
 0xd71   :  { %8876 = vmatpush3.bf16.msra.mxu0 %v8873_v44  ;;  %v8925_v44 = vpack.c.bf16 %v3799_v13, %v3798_v12  ;;  %v6915_v12 = vld [vmem:[%s12171_s7 + $0xa0] sm:$0xff]  ;;  %v6916_v13 = vld [vmem:[%s12171_s7 + $0xa8] sm:$0xff] }
 0xd72   :  { %8878 = vmatprep.subr.bf16.mxu0 %v8877_v61 }
 0xd74   :  { %8086 = vmatmul.mubr.f32.vlgmr.msra.gmra.mrb[50].mxu0 %v11324_v60 }
 0xd75   :  { %8880 = vmatpush3.bf16.msra.mxu0 %v8877_v61  ;;  %v8929_v61 = vpack.c.bf16 %v3801_v4, %v3800_v59  ;;  %v6917_v59 = vld [vmem:[%s12171_s7 + $0xb0] sm:$0xff]  ;;  %v6918_v4 = vld [vmem:[%s12171_s7 + $0xb8] sm:$0xff] }
 0xd76   :  { %8882 = vmatprep.subr.bf16.mxu0 %v8881_v24 }
 0xd79   :  { %8884 = vmatpush3.bf16.msra.mxu0 %v8881_v24  ;;  %v3804_v24 = vld [vmem:[#allocation24 + $0x170] sm:$0xff] }
 0xd7a   :  { %8886 = vmatprep.subr.bf16.mxu0 %v8885_v48  ;;  %v8937_v57 = vpack.c.bf16 %v3805_v53, %v3804_v24 }
 0xd7d   :  { %8888 = vmatpush3.bf16.msra.mxu0 %v8885_v48  ;;  %v3773_v48 = vld [vmem:[#allocation22 + $0x100] sm:$0xff] }
 0xd7e   :  { %8890 = vmatprep.subr.bf16.mxu0 %v8889_v0  ;;  %v8941_v58 = vpack.c.bf16 %v3774_v28, %v3773_v48 }
 0xd81   :  { %8892 = vmatpush3.bf16.msra.mxu0 %v8889_v0  ;;  %v3775_v0 = vld [vmem:[#allocation22 + $0x110] sm:$0xff] }
 0xd82   :  { %8894 = vmatprep.subr.bf16.mxu0 %v8893_v47  ;;  %v8945_v16 = vpack.c.bf16 %v3776_v39, %v3775_v0 }
 0xd85   :  { %8896 = vmatpush3.bf16.msra.mxu0 %v8893_v47  ;;  %v3777_v47 = vld [vmem:[#allocation22 + $0x120] sm:$0xff] }
 0xd86   :  { %8898 = vmatprep.subr.bf16.mxu0 %v8897_v5  ;;  %v8949_v43 = vpack.c.bf16 %v3778_v21, %v3777_v47  ;;  %v4530_v47 = vld [vmem:[#allocation25 + $0x80] sm:$0xff]  ;;  %v4531_v21 = vld [vmem:[#allocation25 + $0x88] sm:$0xff] }
 0xd89   :  { %8900 = vmatpush3.bf16.msra.mxu0 %v8897_v5  ;;  %v3779_v5 = vld [vmem:[#allocation22 + $0x130] sm:$0xff] }
 0xd8a   :  { %8902 = vmatprep.subr.bf16.mxu0 %v8901_v14  ;;  %v8953_v27 = vpack.c.bf16 %v3780_v62, %v3779_v5  ;;  %v4532_v5 = vld [vmem:[#allocation25 + $0x90] sm:$0xff]  ;;  %v4533_v62 = vld [vmem:[#allocation25 + $0x98] sm:$0xff] }
 0xd8d   :  { %8904 = vmatpush3.bf16.msra.mxu0 %v8901_v14  ;;  %v3781_v14 = vld [vmem:[#allocation22 + $0x140] sm:$0xff] }
 0xd8e   :  { %8906 = vmatprep.subr.bf16.mxu0 %v8905_v63  ;;  %v8957_v11 = vpack.c.bf16 %v3782_v26, %v3781_v14  ;;  %v4534_v14 = vld [vmem:[#allocation25 + $0xa0] sm:$0xff]  ;;  %v4535_v26 = vld [vmem:[#allocation25 + $0xa8] sm:$0xff] }
 0xd91   :  { %8908 = vmatpush3.bf16.msra.mxu0 %v8905_v63  ;;  %v3783_v63 = vld [vmem:[#allocation22 + $0x150] sm:$0xff] }
 0xd92   :  { %v8961_v33 = vpack.c.bf16 %v3784_v18, %v3783_v63  ;;  %v4536_v63 = vld [vmem:[#allocation25 + $0xb0] sm:$0xff]  ;;  %v4537_v18 = vld [vmem:[#allocation25 + $0xb8] sm:$0xff] }
 0xe27   :  { %v11362_v7 = vpop.f32.mrb[48].mxu0 }
 0xe28   :  { %v3397_v46 = vpop.f32.mrb[49].mxu0 }
 0xe29   :  { %8050 = vmatprep.mubr.f32.mxu1 %v3397_v46  ;;  %8120 = vmatprep.mubr.f32.mxu0 %v3397_v46 }
 0xe2a   :  { %8051 = vmatmul.mubr.f32.vlgmr.msra.gmra.mrb[60].mxu1 %v11362_v7  ;;  %8121 = vmatmul.mubr.f32.vlgmr.msra.gmra.mrb[50].mxu0 %v11362_v7 }
 0xe2b   :  { %8912 = vmatpush3.bf16.msra.mxu1 %v8909_v2  ;;  %8155 = vmatprep.mubr.f32.mxu1 %v11326_v3  ;;  %v8933_v3 = vpack.c.bf16 %v3803_v41, %v3802_v25  ;;  %v3786_v2 = vld [vmem:[#allocation22 + $0x168] sm:$0xff] }
 0xe2c   :  { %8914 = vmatprep.subr.bf16.mxu1 %v8913_v51 }
 0xe2f   :  { %8916 = vmatpush3.bf16.msra.mxu1 %v8913_v51 }
 0xe30   :  { %8918 = vmatprep.subr.bf16.mxu1 %v8917_v36 }
 0xe33   :  { %8920 = vmatpush3.bf16.msra.mxu1 %v8917_v36  ;;  %v9041_v36 = vpack.c.bf16 %v6912_v55, %v6911_v38 }
 0xe34   :  { %8922 = vmatprep.subr.bf16.mxu1 %v8921_v30 }
 0xe37   :  { %8924 = vmatpush3.bf16.msra.mxu1 %v8921_v30  ;;  %v9045_v30 = vpack.c.bf16 %v6914_v35, %v6913_v54 }
 0xe38   :  { %8926 = vmatprep.subr.bf16.mxu1 %v8925_v44 }
 0xe3b   :  { %8928 = vmatpush3.bf16.msra.mxu1 %v8925_v44  ;;  %v9049_v44 = vpack.c.bf16 %v6916_v13, %v6915_v12 }
 0xe3c   :  { %8930 = vmatprep.subr.bf16.mxu1 %v8929_v61 }
 0xe3f   :  { %8932 = vmatpush3.bf16.msra.mxu1 %v8929_v61  ;;  %v9053_v61 = vpack.c.bf16 %v6918_v4, %v6917_v59 }
 0xe40   :  { %8934 = vmatprep.subr.bf16.mxu1 %v8933_v3 }
 0xe43   :  { %8936 = vmatpush3.bf16.msra.mxu1 %v8933_v3 }
 0xe44   :  { %8938 = vmatprep.subr.bf16.mxu1 %v8937_v57 }
 0xe47   :  { %8940 = vmatpush3.bf16.msra.mxu1 %v8937_v57 }
 0xe48   :  { %8942 = vmatprep.subr.bf16.mxu1 %v8941_v58 }
 0xe4a   :  { %8156 = vmatmul.mubr.f32.vlgmr.msra.gmra.mrb[62].mxu1 %v11324_v60  ;;  %v3785_v60 = vld [vmem:[#allocation22 + $0x160] sm:$0xff] }
 0xe4b   :  { %8944 = vmatpush3.bf16.msra.mxu1 %v8941_v58  ;;  %8190 = vmatprep.mubr.f32.mxu1 %v3397_v46  ;;  %v8965_v50 = vpack.c.bf16 %v3786_v2, %v3785_v60  ;;  %v3788_v46 = vld [vmem:[#allocation22 + $0x178] sm:$0xff] }
 0xe4c   :  { %8946 = vmatprep.subr.bf16.mxu1 %v8945_v16  ;;  %v8969_v51 = vpack.c.bf16 %v3788_v46, %v3787_v34 }
 0xe4f   :  { %8948 = vmatpush3.bf16.msra.mxu1 %v8945_v16  ;;  %v4042_v16 = vld [vmem:[#allocation30] sm:$0xff] }
 0xe50   :  { %8950 = vmatprep.subr.bf16.mxu1 %v8949_v43  ;;  %8197 = vmatprep.mubr.msk.f32.mxu0 %vm2893_vm15, %v4042_v16 }
 0xe53   :  { %8952 = vmatpush3.bf16.msra.mxu1 %v8949_v43  ;;  %v9057_v43 = vpack.c.bf16 %v4531_v21, %v4530_v47 }
 0xe54   :  { %8954 = vmatprep.subr.bf16.mxu1 %v8953_v27 }
 0xe57   :  { %8956 = vmatpush3.bf16.msra.mxu1 %v8953_v27  ;;  %v9061_v27 = vpack.c.bf16 %v4533_v62, %v4532_v5 }
 0xe58   :  { %8958 = vmatprep.subr.bf16.mxu1 %v8957_v11 }
 0xe5b   :  { %8960 = vmatpush3.bf16.msra.mxu1 %v8957_v11  ;;  %v9065_v11 = vpack.c.bf16 %v4535_v26, %v4534_v14  ;;  %v3980_v26 = vld [vmem:[#allocation2 + $0xa] sm:$0x1] }
 0xe5c   :  { %8962 = vmatprep.subr.bf16.mxu1 %v8961_v33 }
 0xe5f   :  { %8964 = vmatpush3.bf16.msra.mxu1 %v8961_v33  ;;  %v9069_v33 = vpack.c.bf16 %v4537_v18, %v4536_v63 }
 0xe60   :  { %8966 = vmatprep.subr.bf16.mxu1 %v8965_v50 }
 0xe63   :  { %8968 = vmatpush3.bf16.msra.mxu1 %v8965_v50 }
 0xe64   :  { %8970 = vmatprep.subr.bf16.mxu1 %v8969_v51 }
 0xe67   :  { %8972 = vmatpush3.bf16.msra.mxu1 %v8969_v51 }
 0xe68   :  { %9042 = vmatprep.subr.bf16.mxu1 %v9041_v36 }
 0xe6a   :  { %8191 = vmatmul.mubr.f32.vlgmr.msra.gmra.mrb[62].mxu1 %v11362_v7 }
 0xe6b   :  { %9044 = vmatpush3.bf16.msra.mxu1 %v9041_v36  ;;  %8307 = vmatprep.mubr.msk.f32.mxu1 %vm2120_vm9, %v11245_v9 }
 0xe6c   :  { %9046 = vmatprep.subr.bf16.mxu1 %v9045_v30 }
 0xe6f   :  { %9048 = vmatpush3.bf16.msra.mxu1 %v9045_v30 }
 0xe70   :  { %9050 = vmatprep.subr.bf16.mxu1 %v9049_v44 }
 0xe73   :  { %9052 = vmatpush3.bf16.msra.mxu1 %v9049_v44 }
 0xe74   :  { %9054 = vmatprep.subr.bf16.mxu1 %v9053_v61 }
 0xe77   :  { %9056 = vmatpush3.bf16.msra.mxu1 %v9053_v61 }
 0xe78   :  { %9058 = vmatprep.subr.bf16.mxu1 %v9057_v43 }
 0xe7a   :  { %8308 = vmatmul.mubr.msk.f32.vlgmr.msra.gmra.mrb[64].mxu1 %vm2120_vm9, %v11243_v20 }
 0xe7b   :  { %8310 = vmatprep.mubr.msk.f32.mxu1 %vm2120_vm9, %v11257_v29  ;;  %9060 = vmatpush3.bf16.msra.mxu1 %v9057_v43 }
 0xe7c   :  { %9062 = vmatprep.subr.bf16.mxu1 %v9061_v27 }
 0xe7e   :  { %8311 = vmatmul.mubr.msk.f32.gmra.mrb[66].mxu1 %vm2120_vm9, %v11255_v42 }
 0xe7f   :  { %9064 = vmatpush3.bf16.msra.mxu1 %v9061_v27 }
 0xe80   :  { %9066 = vmatprep.subr.bf16.mxu1 %v9065_v11 }
 0xe83   :  { %9068 = vmatpush3.bf16.msra.mxu1 %v9065_v11 }
 0xe84   :  { %9070 = vmatprep.subr.bf16.mxu1 %v9069_v33 }
 0xe87   :  { %9072 = vmatpush3.bf16.msra.mxu1 %v9069_v33  ;;  %v6882_v33 = vld [vmem:[#allocation2 + $0xb] ss:$0 sm:$0xff] }
 0xefd   :  { %v8052_v7 = vpop.f32.mrb[60].mxu1  ;;  %v8122_v25 = vpop.f32.mrb[50].mxu0 }
 0xefe   :  { %v3957_v41 = vrot.slane %v8052_v7, 7  ;;  %v3579_v3 = vpop.f32.mrb[61].mxu1  ;;  %v3763_v24 = vpop.f32.mrb[51].mxu0 }
 0xeff   :  { %v3956_v53 = vrot.slane %v3579_v3, 7 }
 0xf01   :  { %v3958_v57 = vsel %vm906_vm2, %v3956_v53, %v3957_v41  ;;  %v3959_v48 = vsel %vm906_vm2, %v3957_v41, %v3956_v53 }
 0xf02   :  { %v3973_v28 = vsel %vm3967_vm0, %v3958_v57, 0.0  ;;  %v3972_v58 = vsel %vm971_vm4, %v3959_v48, 0.0 }
 0xf03   :  { %v3975_v0 = vadd.f32 %v8122_v25, %v3973_v28  ;;  %v3974_v39 = vadd.f32 %v3972_v58, %v3763_v24 }
 0xf3d   :  { %v8192_v60 = vpop.f32.mrb[62].mxu1 }
 0xf3e   :  { %v3961_v2 = vrot.slane %v8192_v60, 1  ;;  %v3947_v50 = vpop.f32.mrb[63].mxu1 }
 0xf3f   :  { %v3960_v34 = vrot.slane %v3947_v50, 1 }
 0xf41   :  { %v3962_v46 = vsel %vm939_vm3, %v3960_v34, %v3961_v2  ;;  %v3963_v51 = vsel %vm939_vm3, %v3961_v2, %v3960_v34 }
 0xf42   :  { %v3976_v38 = vsel %vm3964_vm8, %v3962_v46, 0.0  ;;  %v3977_v55 = vsel %vm2609_vm12, %v3963_v51, 0.0 }
 0xf43   :  { %v3978_v36 = vadd.f32 %v3976_v38, %v3974_v39  ;;  %v3979_v54 = vadd.f32 %v3977_v55, %v3975_v0 }
 0xf45   :  { %v3982_v35 = vsel %vm2120_vm9, %v3978_v36, 0.0  ;;  %v3983_v30 = vsel %vm2120_vm9, %v3979_v54, 0.0  ;;  %v3991_v12 = vmul.f32 %v3978_v36, %v3978_v36  ;;  %v3992_v13 = vmul.f32 %v3979_v54, %v3979_v54 }
 0xf46   :  { %v3984_v44 = vadd.f32 %v3983_v30, %v3982_v35 }
 0xf47   :  { %v3993_v59 = vsel %vm2120_vm9, %v3991_v12, 0.0  ;;  %v3994_v4 = vsel %vm2120_vm9, %v3992_v13, 0.0 }
 0xf48   :  { %v3985_v61 = vrot.slane %v3984_v44, 4  ;;  %v3995_v7 = vadd.f32 %v3994_v4, %v3993_v59 }
 0xf4a   :  { %v3986_v25 = vadd.f32 %v3985_v61, %v3984_v44  ;;  %v3996_v41 = vrot.slane %v3995_v7, 4 }
 0xf4c   :  { %v3987_v3 = vrot.slane %v3986_v25, 2  ;;  %v3997_v24 = vadd.f32 %v3996_v41, %v3995_v7 }
 0xf4e   :  { %v3988_v53 = vadd.f32 %v3987_v3, %v3986_v25  ;;  %v3998_v57 = vrot.slane %v3997_v24, 2  ;;  %v4151_v3 = vld [vmem:[%s12171_s7] sm:$0xff] }
 0xf50   :  { %v3989_v48 = vrot.slane %v3988_v53, 1  ;;  %v3999_v28 = vadd.f32 %v3998_v57, %v3997_v24  ;;  %v4152_v24 = vld [vmem:[%s12171_s7 + $0x8] sm:$0xff] }
 0xf52   :  { %v3990_v58 = vadd.f32 %v3989_v48, %v3988_v53  ;;  %v4000_v0 = vrot.slane %v3999_v28, 1  ;;  %v8977_v48 = vpack.c.bf16 %v4152_v24, %v4151_v3  ;;  %v6899_v3 = vld [vmem:[%s12171_s7 + $0x60] sm:$0xff]  ;;  %v6900_v24 = vld [vmem:[%s12171_s7 + $0x68] sm:$0xff] }
 0xf54   :  { %v4001_v39 = vadd.f32 %v4000_v0, %v3999_v28  ;;  %v4002_v16 = vmul.f32 0.0625, %v3990_v58  ;;  %v4153_v28 = vld [vmem:[%s12171_s7 + $0x10] sm:$0xff]  ;;  %v4154_v58 = vld [vmem:[%s12171_s7 + $0x18] sm:$0xff] }
 0xf55   :  { %v4043_v0 = vld [vmem:[#allocation30 + $0x8] sm:$0xff] }
 0xf56   :  { %v4003_v47 = vmul.f32 0.0625, %v4001_v39  ;;  %v4004_v21 = vmul.f32 %v4002_v16, %v4002_v16  ;;  %v4007_v43 = vsub.f32 %v3978_v36, %v4002_v16  ;;  %v4008_v5 = vsub.f32 %v3979_v54, %v4002_v16  ;;  %v4044_v39 = vld [vmem:[#allocation30 + $0x10] sm:$0xff] }
 0xf57   :  { %v8981_v16 = vpack.c.bf16 %v4154_v58, %v4153_v28  ;;  %v6901_v28 = vld [vmem:[%s12171_s7 + $0x70] sm:$0xff]  ;;  %v6902_v58 = vld [vmem:[%s12171_s7 + $0x78] sm:$0xff] }
 0xf58   :  { %v4005_v62 = vsub.f32 %v4003_v47, %v4004_v21  ;;  %v4155_v47 = vld [vmem:[%s12171_s7 + $0x20] sm:$0xff]  ;;  %v4156_v21 = vld [vmem:[%s12171_s7 + $0x28] sm:$0xff] }
 0xf5a   :  { %v4006_v27 = vmax.f32 %v4005_v62, 0.0  ;;  %v4157_v62 = vld [vmem:[%s12171_s7 + $0x30] sm:$0xff] }
 0xf5c   :  { %v4009_v14 = vadd.f32 1e-05, %v4006_v27  ;;  %v4158_v27 = vld [vmem:[%s12171_s7 + $0x38] sm:$0xff] }
 0xf5e   :  { %9296 = vrsqrt.f32 %v4009_v14  ;;  %v8989_v14 = vpack.c.bf16 %v4158_v27, %v4157_v62  ;;  %v4347_v62 = vld [vmem:[#allocation25 + $0x68] sm:$0xff] }
 0xf68   :  { %v9297_v11 = vpop.eup %9296 }
 0xf69   :  { %v4011_v63 = vmul.f32 %v9297_v11, %v3980_v26  ;;  %v4143_v26 = vld [vmem:[#allocation25] sm:$0xff]  ;;  %v4144_v11 = vld [vmem:[#allocation25 + $0x8] sm:$0xff] }
 0xf6b   :  { %v4015_v18 = vrot.slane %v4011_v63, %v10500_v15  ;;  %v8993_v63 = vpack.c.bf16 %v4144_v11, %v4143_v26  ;;  %v4349_v26 = vld [vmem:[#allocation25 + $0x78] sm:$0xff] }
 0xf6d   :  { %v4016_v60 = vmul.f32 %v4015_v18, %v4007_v43  ;;  %v4017_v2 = vmul.f32 %v4015_v18, %v4008_v5  ;;  %v4045_v43 = vld [vmem:[#allocation30 + $0x18] sm:$0xff]  ;;  %v8985_v5 = vpack.c.bf16 %v4156_v21, %v4155_v47  ;;  %v4145_v18 = vld [vmem:[#allocation25 + $0x10] sm:$0xff] }
 0xf6e   :  { %v4344_v21 = vld [vmem:[#allocation25 + $0x50] sm:$0xff] }
 0xf6f   :  { %v4022_v50 = vadd.f32 %v6882_v33, %v4016_v60  ;;  %v4023_v34 = vadd.f32 %v6882_v33, %v4017_v2  ;;  %v4146_v33 = vld [vmem:[#allocation25 + $0x18] sm:$0xff]  ;;  %v4147_v2 = vld [vmem:[#allocation25 + $0x20] sm:$0xff] }
 0xf70   :  { %v8997_v60 = vpack.c.bf16 %v4146_v33, %v4145_v18 }
 0xf71   :  { %v4026_v46 = vmul.f32 0.044715, %v4022_v50  ;;  %v4027_v51 = vmul.f32 0.044715, %v4023_v34  ;;  %v4024_v4 = vmul.f32 0.5, %v4022_v50  ;;  %v4025_v7 = vmul.f32 0.5, %v4023_v34 }
 0xf73   :  { %v4028_v38 = vmul.f32 %v4026_v46, %v4022_v50  ;;  %v4029_v55 = vmul.f32 %v4027_v51, %v4023_v34  ;;  %v4149_v46 = vld [vmem:[#allocation25 + $0x30] sm:$0xff]  ;;  %v4150_v51 = vld [vmem:[#allocation25 + $0x38] sm:$0xff] }
 0xf75   :  { %v4030_v36 = vmul.f32 %v4028_v38, %v4022_v50  ;;  %v4031_v54 = vmul.f32 %v4029_v55, %v4023_v34  ;;  %v9005_v38 = vpack.c.bf16 %v4150_v51, %v4149_v46  ;;  %v6895_v55 = vld [vmem:[%s12171_s7 + $0x40] sm:$0xff] }
 0xf77   :  { %v4032_v35 = vadd.f32 %v4030_v36, %v4022_v50  ;;  %v4033_v30 = vadd.f32 %v4031_v54, %v4023_v34  ;;  %v4148_v50 = vld [vmem:[#allocation25 + $0x28] sm:$0xff] }
 0xf78   :  { %v9001_v34 = vpack.c.bf16 %v4148_v50, %v4147_v2  ;;  %v6896_v36 = vld [vmem:[%s12171_s7 + $0x48] sm:$0xff] }
 0xf79   :  { %v4034_v12 = vmul.f32 0.7978846, %v4032_v35  ;;  %v4035_v13 = vmul.f32 0.7978846, %v4033_v30  ;;  %v9009_v54 = vpack.c.bf16 %v6896_v36, %v6895_v55  ;;  %v5230_v35 = vld [vmem:[#allocation28 + $0x20] sm:$0xff]  ;;  %v5231_v30 = vld [vmem:[#allocation28 + $0x28] sm:$0xff] }
 0xf7b   :  { %9298 = vtanh.f32 %v4034_v12  ;;  %v9097_v12 = vpack.c.bf16 %v5231_v30, %v5230_v35 }
 0xf7c   :  { %9300 = vtanh.f32 %v4035_v13  ;;  %v6897_v13 = vld [vmem:[%s12171_s7 + $0x50] sm:$0xff] }
 0xf7d   :  { %9098 = vmatprep.subr.bf16.mxu1 %v9097_v12 }
 0xf85   :  { %v9299_v44 = vpop.eup %9298 }
 0xf86   :  { %v9301_v59 = vpop.eup %9300  ;;  %v4038_v61 = vadd.f32 1.0, %v9299_v44  ;;  %v6898_v44 = vld [vmem:[%s12171_s7 + $0x58] sm:$0xff] }
 0xf87   :  { %v4039_v25 = vadd.f32 1.0, %v9301_v59  ;;  %v5232_v59 = vld [vmem:[#allocation28 + $0x30] sm:$0xff] }
 0xf88   :  { %v4040_v41 = vmul.f32 %v4038_v61, %v4024_v4  ;;  %v5233_v4 = vld [vmem:[#allocation28 + $0x38] sm:$0xff] }
 0xf89   :  { %v4041_v53 = vmul.f32 %v4039_v25, %v4025_v7  ;;  %v9013_v25 = vpack.c.bf16 %v6898_v44, %v6897_v13 }
 0xf8b   :  { %v8973_v57 = vpack.c.bf16 %v4041_v53, %v4040_v41  ;;  %v9101_v41 = vpack.c.bf16 %v5233_v4, %v5232_v59 }
 0xf8d   :  { %8974 = vmatprep.subr.bf16.mxu0 %v8973_v57 }
 0xf8e   :  { %8976 = vmatpush3.bf16.msra.mxu0 %v8973_v57 }
 0xf8f   :  { %8978 = vmatprep.subr.bf16.mxu0 %v8977_v48 }
 0xf91   :  { %8198 = vmatmul.mubr.msk.f32.vlgmr.msra.gmra.mrb[52].mxu0 %vm2893_vm15, %v4043_v0  ;;  %v9021_v0 = vpack.c.bf16 %v6902_v58, %v6901_v28 }
 0xf92   :  { %8980 = vmatpush3.bf16.msra.mxu0 %v8977_v48  ;;  %8200 = vmatprep.mubr.msk.f32.mxu0 %vm2893_vm15, %v4044_v39  ;;  %v9017_v48 = vpack.c.bf16 %v6900_v24, %v6899_v3  ;;  %v4342_v39 = vld [vmem:[#allocation25 + $0x40] sm:$0xff]  ;;  %v5227_v24 = vld [vmem:[#allocation27 + $0x30] sm:$0xff] }
 0xf93   :  { %8982 = vmatprep.subr.bf16.mxu0 %v8981_v16 }
 0xf95   :  { %8201 = vmatmul.mubr.msk.f32.gmra.mrb[54].mxu0 %vm2893_vm15, %v4045_v43  ;;  %v4345_v43 = vld [vmem:[#allocation25 + $0x58] sm:$0xff] }
 0xf96   :  { %8984 = vmatpush3.bf16.msra.mxu0 %v8981_v16  ;;  %8219 = vmatprep.mubr.msk.f32.mxu0 %vm2120_vm9, %v11245_v9  ;;  %v4343_v16 = vld [vmem:[#allocation25 + $0x48] sm:$0xff] }
 0xf97   :  { %8986 = vmatprep.subr.bf16.mxu0 %v8985_v5  ;;  %v9025_v47 = vpack.c.bf16 %v4343_v16, %v4342_v39 }
 0xf9a   :  { %8988 = vmatpush3.bf16.msra.mxu0 %v8985_v5  ;;  %v4346_v5 = vld [vmem:[#allocation25 + $0x60] sm:$0xff] }
 0xf9b   :  { %8990 = vmatprep.subr.bf16.mxu0 %v8989_v14  ;;  %v9033_v27 = vpack.c.bf16 %v4347_v62, %v4346_v5 }
 0xf9e   :  { %8992 = vmatpush3.bf16.msra.mxu0 %v8989_v14  ;;  %v4348_v14 = vld [vmem:[#allocation25 + $0x70] sm:$0xff] }
 0xf9f   :  { %8994 = vmatprep.subr.bf16.mxu0 %v8993_v63 }
 0xfa1   :  { %8220 = vmatmul.mubr.msk.f32.vlgmr.msra.gmra.mrb[56].mxu0 %vm2120_vm9, %v11243_v20 }
 0xfa2   :  { %8222 = vmatprep.mubr.msk.f32.mxu0 %vm2120_vm9, %v11257_v29  ;;  %8996 = vmatpush3.bf16.msra.mxu0 %v8993_v63 }
 0xfa3   :  { %8998 = vmatprep.subr.bf16.mxu0 %v8997_v60 }
 0xfa5   :  { %8223 = vmatmul.mubr.msk.f32.gmra.mrb[58].mxu0 %vm2120_vm9, %v11255_v42 }
 0xfa6   :  { %9000 = vmatpush3.bf16.msra.mxu0 %v8997_v60 }
 0xfa7   :  { %9002 = vmatprep.subr.bf16.mxu0 %v9001_v34 }
 0xfaa   :  { %9004 = vmatpush3.bf16.msra.mxu0 %v9001_v34 }
 0xfab   :  { %9006 = vmatprep.subr.bf16.mxu0 %v9005_v38 }
 0xfae   :  { %9008 = vmatpush3.bf16.msra.mxu0 %v9005_v38 }
 0xfaf   :  { %9010 = vmatprep.subr.bf16.mxu0 %v9009_v54 }
0x1064   :  { %v11468_v61 = vpop.f32.mrb[52].mxu0 }
0x1065   :  { %v4124_v7 = vpop.f32.mrb[53].mxu0 }
0x1066   :  { %8241 = vmatprep.mubr.msk.f32.mxu0 %vm2120_vm9, %v4124_v7  ;;  %8329 = vmatprep.mubr.msk.f32.mxu1 %vm2120_vm9, %v4124_v7 }
0x1067   :  { %8242 = vmatmul.mubr.msk.f32.vlgmr.msra.gmra.mrb[56].mxu0 %vm2120_vm9, %v11468_v61  ;;  %8330 = vmatmul.mubr.msk.f32.vlgmr.msra.gmra.mrb[64].mxu1 %vm2120_vm9, %v11468_v61 }
0x1068   :  { %9012 = vmatpush3.bf16.msra.mxu0 %v9009_v54  ;;  %v8202_v53 = vpop.f32.mrb[54].mxu0  ;;  %9100 = vmatpush3.bf16.msra.mxu1 %v9097_v12 }
0x1069   :  { %v4134_v57 = vpop.f32.mrb[55].mxu0  ;;  %9014 = vmatprep.subr.bf16.mxu0 %v9013_v25  ;;  %9102 = vmatprep.subr.bf16.mxu1 %v9101_v41 }
0x106a   :  { %8244 = vmatprep.mubr.msk.f32.mxu0 %vm2120_vm9, %v4134_v57  ;;  %8332 = vmatprep.mubr.msk.f32.mxu1 %vm2120_vm9, %v4134_v57 }
0x106b   :  { %8245 = vmatmul.mubr.msk.f32.gmra.mrb[58].mxu0 %vm2120_vm9, %v8202_v53  ;;  %8333 = vmatmul.mubr.msk.f32.gmra.mrb[66].mxu1 %vm2120_vm9, %v8202_v53 }
0x106c   :  { %9016 = vmatpush3.bf16.msra.mxu0 %v9013_v25  ;;  %8263 = vmatprep.mubr.msk.f32.mxu0 %vm2120_vm9, %v11245_v9  ;;  %v9029_v9 = vpack.c.bf16 %v4345_v43, %v4344_v21  ;;  %v5225_v25 = vld [vmem:[#allocation27 + $0x20] sm:$0xff] }
0x106d   :  { %9104 = vmatpush3.bf16.msra.mxu1 %v9101_v41  ;;  %8403 = vmatprep.mubr.msk.f32.mxu1 %vm1265_vm5, %v11034_v1  ;;  %v5226_v41 = vld [vmem:[#allocation27 + $0x28] sm:$0xff] }
0x106e   :  { %9018 = vmatprep.subr.bf16.mxu0 %v9017_v48  ;;  %v9105_v3 = vpack.c.bf16 %v5226_v41, %v5225_v25 }
0x1070   :  { %9020 = vmatpush3.bf16.msra.mxu0 %v9017_v48  ;;  %8404 = vmatmul.mubr.msk.f32.vlgmr.msra.gmra.mrb[68].mxu1 %vm1265_vm5, %v11032_v19 }
0x1071   :  { %8406 = vmatprep.mubr.msk.f32.mxu1 %vm1265_vm5, %v11046_v17  ;;  %9022 = vmatprep.subr.bf16.mxu0 %v9021_v0 }
0x1072   :  { %9106 = vmatprep.subr.bf16.mxu1 %v9105_v3 }
0x1073   :  { %9108 = vmatpush3.bf16.msra.mxu1 %v9105_v3 }
0x1074   :  { %9024 = vmatpush3.bf16.msra.mxu0 %v9021_v0  ;;  %8407 = vmatmul.mubr.msk.f32.gmra.mrb[70].mxu1 %vm1265_vm5, %v11044_v45 }
0x1075   :  { %8409 = vmatprep.mubr.msk.f32.mxu1 %vm1265_vm5, %v11058_v32  ;;  %9026 = vmatprep.subr.bf16.mxu0 %v9025_v47 }
0x1077   :  { %8264 = vmatmul.mubr.msk.f32.vlgmr.msra.gmra.mrb[60].mxu0 %vm2120_vm9, %v11243_v20  ;;  %v9037_v20 = vpack.c.bf16 %v4349_v26, %v4348_v14 }
0x1078   :  { %8266 = vmatprep.mubr.msk.f32.mxu0 %vm2120_vm9, %v11257_v29  ;;  %9028 = vmatpush3.bf16.msra.mxu0 %v9025_v47 }
0x1079   :  { %8410 = vmatmul.mubr.msk.f32.gmra.mrb[72].mxu1 %vm1265_vm5, %v11056_v31  ;;  %9030 = vmatprep.subr.bf16.mxu0 %v9029_v9 }
0x107a   :  { %8412 = vmatprep.mubr.msk.f32.mxu1 %vm1265_vm5, %v11070_v6 }
0x107b   :  { %8267 = vmatmul.mubr.msk.f32.gmra.mrb[62].mxu0 %vm2120_vm9, %v11255_v42  ;;  %v4845_v42 = vld [vmem:[%s12172_s9] sm:$0xff] }
0x107c   :  { %9032 = vmatpush3.bf16.msra.mxu0 %v9029_v9  ;;  %8285 = vmatprep.mubr.msk.f32.mxu0 %vm2120_vm9, %v4124_v7 }
0x107d   :  { %8413 = vmatmul.mubr.msk.f32.gmra.mrb[74].mxu1 %vm1265_vm5, %v11068_v40  ;;  %9034 = vmatprep.subr.bf16.mxu0 %v9033_v27 }
0x1080   :  { %9036 = vmatpush3.bf16.msra.mxu0 %v9033_v27 }
0x1081   :  { %9038 = vmatprep.subr.bf16.mxu0 %v9037_v20 }
0x1084   :  { %9040 = vmatpush3.bf16.msra.mxu0 %v9037_v20 }
0x1087   :  { %8286 = vmatmul.mubr.msk.f32.vlgmr.msra.gmra.mrb[60].mxu0 %vm2120_vm9, %v11468_v61 }
0x1088   :  { %8288 = vmatprep.mubr.msk.f32.mxu0 %vm2120_vm9, %v4134_v57 }
0x108b   :  { %8289 = vmatmul.mubr.msk.f32.gmra.mrb[62].mxu0 %vm2120_vm9, %v8202_v53  ;;  %v5228_v53 = vld [vmem:[#allocation27 + $0x38] sm:$0xff] }
0x108c   :  { %8343 = vmatprep.mubr.msk.f32.mxu0 %vm1265_vm5, %v4845_v42  ;;  %v9109_v57 = vpack.c.bf16 %v5228_v53, %v5227_v24 }
0x108e   :  { %9110 = vmatprep.subr.bf16.mxu1 %v9109_v57 }
0x108f   :  { %9112 = vmatpush3.bf16.msra.mxu1 %v9109_v57 }
0x113a   :  { %v8243_v29 = vpop.f32.mrb[56].mxu0  ;;  %v8331_v11 = vpop.f32.mrb[64].mxu1 }
0x113b   :  { %v4718_v63 = vrot.slane %v8243_v29, 7  ;;  %v4726_v18 = vrot.slane %v8331_v11, 1  ;;  %v4322_v33 = vpop.f32.mrb[57].mxu0  ;;  %v4698_v60 = vpop.f32.mrb[65].mxu1 }
0x113c   :  { %v4717_v2 = vrot.slane %v4322_v33, 7  ;;  %v4725_v50 = vrot.slane %v4698_v60, 1 }
0x113e   :  { %v8246_v34 = vpop.f32.mrb[58].mxu0  ;;  %v8334_v46 = vpop.f32.mrb[66].mxu1  ;;  %v4723_v51 = vsel %vm906_vm2, %v4717_v2, %v4718_v63  ;;  %v4731_v38 = vsel %vm939_vm3, %v4725_v50, %v4726_v18 }
0x113f   :  { %v4720_v55 = vrot.slane %v8246_v34, 7  ;;  %v4728_v36 = vrot.slane %v8334_v46, 1  ;;  %v4332_v54 = vpop.f32.mrb[59].mxu0  ;;  %v4708_v35 = vpop.f32.mrb[67].mxu1 }
0x1140   :  { %v4719_v30 = vrot.slane %v4332_v54, 7  ;;  %v4727_v12 = vrot.slane %v4708_v35, 1 }
0x1141   :  { %v4724_v13 = vsel %vm906_vm2, %v4720_v55, %v4717_v2  ;;  %v4732_v44 = vsel %vm939_vm3, %v4728_v36, %v4725_v50 }
0x1142   :  { %v4730_v59 = vsel %vm939_vm3, %v4726_v18, %v4727_v12  ;;  %v4721_v4 = vsel %vm906_vm2, %v4719_v30, %v4720_v55  ;;  %v4722_v61 = vsel %vm906_vm2, %v4718_v63, %v4719_v30  ;;  %v4729_v7 = vsel %vm939_vm3, %v4727_v12, %v4728_v36 }
0x1143   :  { %v4733_v0 = vsel %vm971_vm4, %v4724_v13, 0.0  ;;  %v4742_v39 = vsel %vm2609_vm12, %v4730_v59, 0.0  ;;  %v4735_v14 = vsel %vm2614_vm13, %v4722_v61, 0.0  ;;  %v4744_v42 = vsel %vm1960_vm10, %v4732_v44, 0.0 }
0x115a   :  { %v8287_v48 = vpop.f32.mrb[60].mxu0 }
0x115b   :  { %v4738_v28 = vadd.f32 %v8287_v48, %v4723_v51  ;;  %v4510_v58 = vpop.f32.mrb[61].mxu0 }
0x115c   :  { %v4737_v16 = vadd.f32 %v4733_v0, %v4510_v58 }
0x115d   :  { %v4746_v47 = vadd.f32 %v4742_v39, %v4738_v28 }
0x115e   :  { %v4745_v21 = vadd.f32 %v4737_v16, %v4731_v38  ;;  %v8290_v43 = vpop.f32.mrb[62].mxu0 }
0x115f   :  { %v4752_v9 = vsel %vm1265_vm5, %v4746_v47, 0.0  ;;  %v4765_v5 = vmul.f32 %v4746_v47, %v4746_v47  ;;  %v4740_v62 = vadd.f32 %v8290_v43, %v4721_v4  ;;  %v4520_v27 = vpop.f32.mrb[63].mxu0 }
0x1160   :  { %v4751_v26 = vsel %vm1265_vm5, %v4745_v21, 0.0  ;;  %v4764_v20 = vmul.f32 %v4745_v21, %v4745_v21  ;;  %v4739_v52 = vadd.f32 %v4735_v14, %v4520_v27  ;;  %v6927_v14 = vld [vmem:[#allocation2 + $0xd] ss:$0 sm:$0xff] }
0x1161   :  { %v4769_v29 = vsel %vm1265_vm5, %v4765_v5, 0.0  ;;  %v4753_v11 = vadd.f32 %v4752_v9, %v4751_v26  ;;  %v4748_v63 = vadd.f32 %v4744_v42, %v4740_v62  ;;  %v4749_v9 = vld [vmem:[#allocation2 + $0xc] sm:$0x1] }
0x1162   :  { %v4768_v18 = vsel %vm1265_vm5, %v4764_v20, 0.0  ;;  %v4747_v33 = vadd.f32 %v4739_v52, %v4729_v7 }
0x1163   :  { %v4770_v60 = vadd.f32 %v4769_v29, %v4768_v18  ;;  %v4767_v2 = vmul.f32 %v4748_v63, %v4748_v63  ;;  %v4756_v46 = vsel %vm1265_vm5, %v4748_v63, 0.0 }
0x1164   :  { %v4754_v50 = vsel %vm1265_vm5, %v4747_v33, 0.0  ;;  %v4766_v37 = vmul.f32 %v4747_v33, %v4747_v33 }
0x1165   :  { %v4755_v34 = vadd.f32 %v4754_v50, %v4753_v11  ;;  %v4773_v36 = vsel %vm1265_vm5, %v4767_v2, 0.0 }
0x1166   :  { %v4771_v51 = vsel %vm1265_vm5, %v4766_v37, 0.0 }
0x1167   :  { %v4757_v38 = vadd.f32 %v4756_v46, %v4755_v34  ;;  %v4772_v55 = vadd.f32 %v4771_v51, %v4770_v60 }
0x1169   :  { %v4758_v54 = vrot.slane %v4757_v38, 4  ;;  %v4774_v35 = vadd.f32 %v4773_v36, %v4772_v55 }
0x116b   :  { %v4759_v30 = vadd.f32 %v4758_v54, %v4757_v38  ;;  %v4775_v12 = vrot.slane %v4774_v35, 4 }
0x116d   :  { %v4760_v13 = vrot.slane %v4759_v30, 2  ;;  %v4776_v44 = vadd.f32 %v4775_v12, %v4774_v35 }
0x116f   :  { %v4761_v59 = vadd.f32 %v4760_v13, %v4759_v30  ;;  %v4777_v4 = vrot.slane %v4776_v44, 2 }
0x1171   :  { %v4762_v61 = vrot.slane %v4761_v59, 1  ;;  %v4778_v7 = vadd.f32 %v4777_v4, %v4776_v44 }
0x1173   :  { %v4763_v25 = vadd.f32 %v4762_v61, %v4761_v59  ;;  %v4779_v41 = vrot.slane %v4778_v7, 1 }
0x1175   :  { %v4780_v3 = vadd.f32 %v4779_v41, %v4778_v7  ;;  %v4781_v24 = vmul.f32 0.03125, %v4763_v25 }
0x1177   :  { %v4782_v53 = vmul.f32 0.03125, %v4780_v3  ;;  %v4783_v57 = vmul.f32 %v4781_v24, %v4781_v24  ;;  %v4786_v48 = vsub.f32 %v4745_v21, %v4781_v24  ;;  %v4787_v28 = vsub.f32 %v4746_v47, %v4781_v24 }
0x1178   :  { %v4788_v58 = vsub.f32 %v4747_v33, %v4781_v24  ;;  %v4789_v0 = vsub.f32 %v4748_v63, %v4781_v24 }
0x1179   :  { %v4784_v39 = vsub.f32 %v4782_v53, %v4783_v57 }
0x117b   :  { %v4785_v16 = vmax.f32 %v4784_v39, 0.0 }
0x117d   :  { %v4790_v43 = vadd.f32 1e-05, %v4785_v16 }
0x117f   :  { %9302 = vrsqrt.f32 %v4790_v43 }
0x1189   :  { %v9303_v5 = vpop.eup %9302 }
0x118a   :  { %v4792_v62 = vmul.f32 %v9303_v5, %v4749_v9  ;;  %v4986_v5 = vld [vmem:[#allocation28] sm:$0xff] }
0x118c   :  { %v4796_v27 = vrot.slane %v4792_v62, %v10500_v15  ;;  %v4987_v62 = vld [vmem:[#allocation28 + $0x8] sm:$0xff] }
0x118e   :  { %v4797_v26 = vmul.f32 %v4796_v27, %v4786_v48  ;;  %v4798_v20 = vmul.f32 %v4796_v27, %v4787_v28  ;;  %v4799_v42 = vmul.f32 %v4796_v27, %v4788_v58  ;;  %v4800_v52 = vmul.f32 %v4796_v27, %v4789_v0 }
0x1190   :  { %v4805_v29 = vadd.f32 %v6927_v14, %v4797_v26  ;;  %v4806_v11 = vadd.f32 %v6927_v14, %v4798_v20  ;;  %v4807_v21 = vadd.f32 %v6927_v14, %v4799_v42  ;;  %v4808_v47 = vadd.f32 %v6927_v14, %v4800_v52  ;;  %v4988_v26 = vld [vmem:[#allocation28 + $0x10] sm:$0xff]  ;;  %v4989_v20 = vld [vmem:[#allocation28 + $0x18] sm:$0xff]  ;;  %v4846_v42 = vld [vmem:[%s12172_s9 + $0x8] sm:$0xff] }
0x1191   :  { %v9081_v14 = vpack.c.bf16 %v4987_v62, %v4986_v5  ;;  %v4847_v52 = vld [vmem:[%s12172_s9 + $0x10] sm:$0xff] }
0x1192   :  { %v4813_v18 = vmul.f32 0.044715, %v4805_v29  ;;  %v4814_v63 = vmul.f32 0.044715, %v4806_v11  ;;  %v4815_v33 = vmul.f32 0.044715, %v4807_v21 }
0x1193   :  { %v4816_v60 = vmul.f32 0.044715, %v4808_v47  ;;  %v4809_v7 = vmul.f32 0.5, %v4805_v29  ;;  %v4810_v3 = vmul.f32 0.5, %v4806_v11  ;;  %v4811_v48 = vmul.f32 0.5, %v4807_v21 }
0x1194   :  { %v4817_v2 = vmul.f32 %v4813_v18, %v4805_v29  ;;  %v4818_v50 = vmul.f32 %v4814_v63, %v4806_v11  ;;  %v4819_v37 = vmul.f32 %v4815_v33, %v4807_v21  ;;  %v4812_v0 = vmul.f32 0.5, %v4808_v47  ;;  %v4849_v18 = vld [vmem:[%s12172_s9 + $0x20] sm:$0xff]  ;;  %v4850_v33 = vld [vmem:[%s12172_s9 + $0x28] sm:$0xff] }
0x1195   :  { %v4820_v34 = vmul.f32 %v4816_v60, %v4808_v47  ;;  %v4851_v60 = vld [vmem:[%s12172_s9 + $0x30] sm:$0xff] }
0x1196   :  { %v4821_v46 = vmul.f32 %v4817_v2, %v4805_v29  ;;  %v4822_v51 = vmul.f32 %v4818_v50, %v4806_v11  ;;  %v4823_v38 = vmul.f32 %v4819_v37, %v4807_v21  ;;  %v4852_v2 = vld [vmem:[%s12172_s9 + $0x38] sm:$0xff] }
0x1197   :  { %v4824_v55 = vmul.f32 %v4820_v34, %v4808_v47  ;;  %v4984_v50 = vld [vmem:[#allocation27 + $0x10] sm:$0xff]  ;;  %v4985_v37 = vld [vmem:[#allocation27 + $0x18] sm:$0xff] }
0x1198   :  { %v4825_v36 = vadd.f32 %v4821_v46, %v4805_v29  ;;  %v4826_v54 = vadd.f32 %v4822_v51, %v4806_v11  ;;  %v4827_v35 = vadd.f32 %v4823_v38, %v4807_v21  ;;  %v9085_v29 = vpack.c.bf16 %v4989_v20, %v4988_v26  ;;  %v4982_v11 = vld [vmem:[#allocation27] sm:$0xff]  ;;  %v4983_v21 = vld [vmem:[#allocation27 + $0x8] sm:$0xff] }
0x1199   :  { %v4828_v30 = vadd.f32 %v4824_v55, %v4808_v47  ;;  %v4848_v47 = vld [vmem:[%s12172_s9 + $0x18] sm:$0xff]  ;;  %v9089_v63 = vpack.c.bf16 %v4983_v21, %v4982_v11  ;;  %v9093_v34 = vpack.c.bf16 %v4985_v37, %v4984_v50  ;;  %v5450_v46 = vld [vmem:[#allocation28 + $0x40] sm:$0xff]  ;;  %v5451_v51 = vld [vmem:[#allocation28 + $0x48] sm:$0xff] }
0x119a   :  { %v4829_v12 = vmul.f32 0.7978846, %v4825_v36  ;;  %v4830_v13 = vmul.f32 0.7978846, %v4826_v54  ;;  %v4831_v44 = vmul.f32 0.7978846, %v4827_v35  ;;  %v9113_v38 = vpack.c.bf16 %v5451_v51, %v5450_v46 }
0x119b   :  { %v4832_v59 = vmul.f32 0.7978846, %v4828_v30  ;;  %v5452_v55 = vld [vmem:[#allocation28 + $0x50] sm:$0xff]  ;;  %v5453_v36 = vld [vmem:[#allocation28 + $0x58] sm:$0xff]  ;;  %v5892_v37 = vld [vmem:[#allocation31] sm:$0xff] }
0x119c   :  { %9304 = vtanh.f32 %v4829_v12  ;;  %v9117_v30 = vpack.c.bf16 %v5453_v36, %v5452_v55  ;;  %v5445_v12 = vld [vmem:[#allocation27 + $0x40] sm:$0xff] }
0x119d   :  { %9306 = vtanh.f32 %v4830_v13  ;;  %v5446_v13 = vld [vmem:[#allocation27 + $0x48] sm:$0xff] }
0x119e   :  { %9308 = vtanh.f32 %v4831_v44 }
0x119f   :  { %9310 = vtanh.f32 %v4832_v59 }
0x11a6   :  { %v9305_v4 = vpop.eup %9304 }
0x11a7   :  { %v9307_v61 = vpop.eup %9306  ;;  %v4837_v25 = vadd.f32 1.0, %v9305_v4  ;;  %v9121_v4 = vpack.c.bf16 %v5446_v13, %v5445_v12 }
0x11a8   :  { %v9309_v41 = vpop.eup %9308  ;;  %v4838_v24 = vadd.f32 1.0, %v9307_v61 }
0x11a9   :  { %v9311_v53 = vpop.eup %9310  ;;  %v4841_v57 = vmul.f32 %v4837_v25, %v4809_v7  ;;  %v4839_v28 = vadd.f32 1.0, %v9309_v41 }
0x11aa   :  { %v4842_v58 = vmul.f32 %v4838_v24, %v4810_v3  ;;  %v4840_v39 = vadd.f32 1.0, %v9311_v53  ;;  %v5447_v3 = vld [vmem:[#allocation27 + $0x50] sm:$0xff]  ;;  %v5448_v24 = vld [vmem:[#allocation27 + $0x58] sm:$0xff] }
0x11ab   :  { %v4843_v16 = vmul.f32 %v4839_v28, %v4811_v48  ;;  %v9125_v53 = vpack.c.bf16 %v5448_v24, %v5447_v3 }
0x11ac   :  { %v9073_v43 = vpack.c.bf16 %v4842_v58, %v4841_v57  ;;  %v4844_v9 = vmul.f32 %v4840_v39, %v4812_v0 }
0x11ae   :  { %9074 = vmatprep.subr.bf16.mxu0 %v9073_v43  ;;  %v9077_v27 = vpack.c.bf16 %v4844_v9, %v4843_v16 }
0x11af   :  { %9076 = vmatpush3.bf16.msra.mxu0 %v9073_v43 }
0x11b0   :  { %9078 = vmatprep.subr.bf16.mxu0 %v9077_v27 }
0x11b3   :  { %9080 = vmatpush3.bf16.msra.mxu0 %v9077_v27 }
0x11b4   :  { %9082 = vmatprep.subr.bf16.mxu0 %v9081_v14 }
0x11b6   :  { %8344 = vmatmul.mubr.msk.f32.vlgmr.msra.gmra.mrb[64].mxu0 %vm1265_vm5, %v4846_v42 }
0x11b7   :  { %8346 = vmatprep.mubr.msk.f32.mxu0 %vm1265_vm5, %v4847_v52  ;;  %9084 = vmatpush3.bf16.msra.mxu0 %v9081_v14 }
0x11b8   :  { %9086 = vmatprep.subr.bf16.mxu0 %v9085_v29 }
0x11ba   :  { %8347 = vmatmul.mubr.msk.f32.gmra.mrb[66].mxu0 %vm1265_vm5, %v4848_v47 }
0x11bb   :  { %8349 = vmatprep.mubr.msk.f32.mxu0 %vm1265_vm5, %v4849_v18  ;;  %9088 = vmatpush3.bf16.msra.mxu0 %v9085_v29 }
0x11bc   :  { %9090 = vmatprep.subr.bf16.mxu0 %v9089_v63 }
0x11be   :  { %8350 = vmatmul.mubr.msk.f32.gmra.mrb[68].mxu0 %vm1265_vm5, %v4850_v33 }
0x11bf   :  { %8352 = vmatprep.mubr.msk.f32.mxu0 %vm1265_vm5, %v4851_v60 }
0x11c2   :  { %8353 = vmatmul.mubr.msk.f32.gmra.mrb[70].mxu0 %vm1265_vm5, %v4852_v2 }
0x11c3   :  { %8363 = vmatprep.mubr.msk.f32.mxu0 %vm1265_vm5, %v11034_v1 }
0x11c6   :  { %8364 = vmatmul.mubr.msk.f32.vlgmr.msra.gmra.mrb[72].mxu0 %vm1265_vm5, %v11032_v19 }
0x11c7   :  { %8366 = vmatprep.mubr.msk.f32.mxu0 %vm1265_vm5, %v11046_v17  ;;  %9092 = vmatpush3.bf16.msra.mxu0 %v9089_v63 }
0x11c8   :  { %9094 = vmatprep.subr.bf16.mxu0 %v9093_v34 }
0x11ca   :  { %8367 = vmatmul.mubr.msk.f32.gmra.mrb[74].mxu0 %vm1265_vm5, %v11044_v45 }
0x11cb   :  { %8369 = vmatprep.mubr.msk.f32.mxu0 %vm1265_vm5, %v11058_v32  ;;  %9096 = vmatpush3.bf16.msra.mxu0 %v9093_v34 }
0x11cc   :  { %9114 = vmatprep.subr.bf16.mxu0 %v9113_v38 }
0x11ce   :  { %8370 = vmatmul.mubr.msk.f32.gmra.mrb[76].mxu0 %vm1265_vm5, %v11056_v31 }
0x11cf   :  { %8372 = vmatprep.mubr.msk.f32.mxu0 %vm1265_vm5, %v11070_v6 }
0x11d2   :  { %8373 = vmatmul.mubr.msk.f32.gmra.mrb[78].mxu0 %vm1265_vm5, %v11068_v40 }
0x1289   :  { %v8345_v54 = vpop.f32.mrb[64].mxu0 }
0x128a   :  { %v4943_v35 = vpop.f32.mrb[65].mxu0 }
0x128b   :  { %8383 = vmatprep.mubr.msk.f32.mxu0 %vm1265_vm5, %v4943_v35  ;;  %8423 = vmatprep.mubr.msk.f32.mxu1 %vm1265_vm5, %v4943_v35 }
0x128c   :  { %8384 = vmatmul.mubr.msk.f32.vlgmr.msra.gmra.mrb[72].mxu0 %vm1265_vm5, %v8345_v54  ;;  %8424 = vmatmul.mubr.msk.f32.vlgmr.msra.gmra.mrb[68].mxu1 %vm1265_vm5, %v8345_v54 }
0x128d   :  { %v8348_v44 = vpop.f32.mrb[66].mxu0  ;;  %9116 = vmatpush3.bf16.msra.mxu0 %v9113_v38 }
0x128e   :  { %v4953_v59 = vpop.f32.mrb[67].mxu0  ;;  %9118 = vmatprep.subr.bf16.mxu0 %v9117_v30 }
0x128f   :  { %8386 = vmatprep.mubr.msk.f32.mxu0 %vm1265_vm5, %v4953_v59  ;;  %8426 = vmatprep.mubr.msk.f32.mxu1 %vm1265_vm5, %v4953_v59 }
0x1290   :  { %8387 = vmatmul.mubr.msk.f32.gmra.mrb[74].mxu0 %vm1265_vm5, %v8348_v44  ;;  %8427 = vmatmul.mubr.msk.f32.gmra.mrb[70].mxu1 %vm1265_vm5, %v8348_v44 }
0x1291   :  { %v8351_v61 = vpop.f32.mrb[68].mxu0  ;;  %9120 = vmatpush3.bf16.msra.mxu0 %v9117_v30 }
0x1292   :  { %v4963_v7 = vpop.f32.mrb[69].mxu0  ;;  %9122 = vmatprep.subr.bf16.mxu0 %v9121_v4 }
0x1293   :  { %8389 = vmatprep.mubr.msk.f32.mxu0 %vm1265_vm5, %v4963_v7  ;;  %8429 = vmatprep.mubr.msk.f32.mxu1 %vm1265_vm5, %v4963_v7 }
0x1294   :  { %8390 = vmatmul.mubr.msk.f32.gmra.mrb[76].mxu0 %vm1265_vm5, %v8351_v61  ;;  %8430 = vmatmul.mubr.msk.f32.gmra.mrb[72].mxu1 %vm1265_vm5, %v8351_v61 }
0x1295   :  { %v8354_v25 = vpop.f32.mrb[70].mxu0 }
0x1296   :  { %v4973_v41 = vpop.f32.mrb[71].mxu0 }
0x1297   :  { %8392 = vmatprep.mubr.msk.f32.mxu0 %vm1265_vm5, %v4973_v41  ;;  %8432 = vmatprep.mubr.msk.f32.mxu1 %vm1265_vm5, %v4973_v41 }
0x1298   :  { %8393 = vmatmul.mubr.msk.f32.gmra.mrb[78].mxu0 %vm1265_vm5, %v8354_v25  ;;  %8433 = vmatmul.mubr.msk.f32.gmra.mrb[74].mxu1 %vm1265_vm5, %v8354_v25 }
0x1299   :  { %8443 = vmatprep.mubr.msk.f32.mxu0 %vm1265_vm5, %v11034_v1  ;;  %8491 = vmatprep.mubr.msk.f32.mxu1 %vm2120_vm9, %v5892_v37 }
0x129c   :  { %8444 = vmatmul.mubr.msk.f32.vlgmr.msra.gmra.mrb[80].mxu0 %vm1265_vm5, %v11032_v19 }
0x129d   :  { %8446 = vmatprep.mubr.msk.f32.mxu0 %vm1265_vm5, %v11046_v17  ;;  %9124 = vmatpush3.bf16.msra.mxu0 %v9121_v4 }
0x129e   :  { %9126 = vmatprep.subr.bf16.mxu0 %v9125_v53 }
0x12a0   :  { %8447 = vmatmul.mubr.msk.f32.gmra.mrb[82].mxu0 %vm1265_vm5, %v11044_v45 }
0x12a1   :  { %8449 = vmatprep.mubr.msk.f32.mxu0 %vm1265_vm5, %v11058_v32  ;;  %9128 = vmatpush3.bf16.msra.mxu0 %v9125_v53 }
0x12a4   :  { %8450 = vmatmul.mubr.msk.f32.gmra.mrb[84].mxu0 %vm1265_vm5, %v11056_v31 }
0x12a5   :  { %8452 = vmatprep.mubr.msk.f32.mxu0 %vm1265_vm5, %v11070_v6 }
0x12a8   :  { %8453 = vmatmul.mubr.msk.f32.gmra.mrb[86].mxu0 %vm1265_vm5, %v11068_v40 }
0x12a9   :  { %8463 = vmatprep.mubr.msk.f32.mxu0 %vm1265_vm5, %v4943_v35 }
0x12ac   :  { %8464 = vmatmul.mubr.msk.f32.vlgmr.msra.gmra.mrb[80].mxu0 %vm1265_vm5, %v8345_v54 }
0x12ad   :  { %8466 = vmatprep.mubr.msk.f32.mxu0 %vm1265_vm5, %v4953_v59 }
0x12b0   :  { %8467 = vmatmul.mubr.msk.f32.gmra.mrb[82].mxu0 %vm1265_vm5, %v8348_v44 }
0x12b1   :  { %8469 = vmatprep.mubr.msk.f32.mxu0 %vm1265_vm5, %v4963_v7 }
0x12b4   :  { %8470 = vmatmul.mubr.msk.f32.gmra.mrb[84].mxu0 %vm1265_vm5, %v8351_v61 }
0x12b5   :  { %8472 = vmatprep.mubr.msk.f32.mxu0 %vm1265_vm5, %v4973_v41 }
0x12b8   :  { %8473 = vmatmul.mubr.msk.f32.gmra.mrb[86].mxu0 %vm1265_vm5, %v8354_v25 }
0x135f   :  { %v8385_v19 = vpop.f32.mrb[72].mxu0  ;;  %v8425_v1 = vpop.f32.mrb[68].mxu1 }
0x1360   :  { %v5665_v45 = vrot.slane %v8385_v19, 7  ;;  %v5185_v17 = vpop.f32.mrb[73].mxu0  ;;  %v5405_v31 = vpop.f32.mrb[69].mxu1 }
0x1361   :  { %v5664_v32 = vrot.slane %v5185_v17, 7 }
0x1363   :  { %v5678_v40 = vsel %vm906_vm2, %v5664_v32, %v5665_v45  ;;  %v8388_v6 = vpop.f32.mrb[74].mxu0  ;;  %v8428_v57 = vpop.f32.mrb[70].mxu1 }
0x1364   :  { %v5705_v48 = vadd.f32 %v8425_v1, %v5678_v40  ;;  %v5667_v28 = vrot.slane %v8388_v6, 7  ;;  %v5195_v58 = vpop.f32.mrb[75].mxu0  ;;  %v5415_v0 = vpop.f32.mrb[71].mxu1 }
0x1365   :  { %v5666_v39 = vrot.slane %v5195_v58, 7 }
0x1367   :  { %v5676_v16 = vsel %vm906_vm2, %v5666_v39, %v5667_v28  ;;  %v5677_v43 = vsel %vm906_vm2, %v5665_v45, %v5666_v39  ;;  %v8391_v9 = vpop.f32.mrb[76].mxu0  ;;  %v8431_v5 = vpop.f32.mrb[72].mxu1 }
0x1368   :  { %v11648_v62 = vadd.f32 %v8428_v57, %v5676_v16  ;;  %v5706_v27 = vadd.f32 %v5677_v43, %v5415_v0  ;;  %v5669_v14 = vrot.slane %v8391_v9, 7  ;;  %v5205_v26 = vpop.f32.mrb[77].mxu0  ;;  %v5425_v20 = vpop.f32.mrb[73].mxu1 }
0x1369   :  { %v5668_v42 = vrot.slane %v5205_v26, 7 }
0x136b   :  { %v5674_v52 = vsel %vm906_vm2, %v5668_v42, %v5669_v14  ;;  %v5675_v29 = vsel %vm906_vm2, %v5667_v28, %v5668_v42  ;;  %v8394_v11 = vpop.f32.mrb[78].mxu0  ;;  %v8434_v21 = vpop.f32.mrb[74].mxu1 }
0x136c   :  { %v11654_v47 = vadd.f32 %v8431_v5, %v5674_v52  ;;  %v5700_v18 = vsel %vm1969_vm11, %v5675_v29, 0.0  ;;  %v5671_v63 = vrot.slane %v8394_v11, 7  ;;  %v5215_v33 = vpop.f32.mrb[79].mxu0  ;;  %v5435_v60 = vpop.f32.mrb[75].mxu1 }
0x136d   :  { %v5708_v2 = vadd.f32 %v5700_v18, %v5425_v20  ;;  %v5670_v50 = vrot.slane %v5215_v33, 7 }
0x136e   :  { %v5679_v34 = vsel %vm906_vm2, %v5671_v63, %v5664_v32 }
0x136f   :  { %v5696_v46 = vsel %vm971_vm4, %v5679_v34, 0.0  ;;  %v5672_v51 = vsel %vm906_vm2, %v5670_v50, %v5671_v63  ;;  %v5673_v49 = vsel %vm906_vm2, %v5669_v14, %v5670_v50  ;;  %v6102_v14 = vld [vmem:[#allocation33 + $0x8] sm:$0xff] }
0x1370   :  { %v5704_v38 = vadd.f32 %v5696_v46, %v5405_v31  ;;  %v5711_v55 = vadd.f32 %v8434_v21, %v5672_v51  ;;  %v5710_v36 = vadd.f32 %v5673_v49, %v5435_v60 }
0x137f   :  { %v8465_v54 = vpop.f32.mrb[80].mxu0 }
0x1380   :  { %v5681_v35 = vrot.slane %v8465_v54, 1  ;;  %v5625_v30 = vpop.f32.mrb[81].mxu0 }
0x1381   :  { %v5680_v12 = vrot.slane %v5625_v30, 1 }
0x1383   :  { %v5694_v13 = vsel %vm939_vm3, %v5680_v12, %v5681_v35  ;;  %v8468_v44 = vpop.f32.mrb[82].mxu0 }
0x1384   :  { %v11669_v59 = vadd.f32 %v5704_v38, %v5694_v13  ;;  %v5683_v4 = vrot.slane %v8468_v44, 1  ;;  %v5635_v61 = vpop.f32.mrb[83].mxu0 }
0x1385   :  { %v5682_v7 = vrot.slane %v5635_v61, 1 }
0x1386   :  { %v5751_v25 = vmul.f32 %v11669_v59, %v11669_v59  ;;  %v5730_v31 = vsel %vm2893_vm15, %v11669_v59, 0.0 }
0x1387   :  { %v5692_v41 = vsel %vm939_vm3, %v5682_v7, %v5683_v4  ;;  %v5693_v3 = vsel %vm939_vm3, %v5681_v35, %v5682_v7  ;;  %v8471_v24 = vpop.f32.mrb[84].mxu0 }
0x1388   :  { %v11677_v53 = vadd.f32 %v5705_v48, %v5693_v3  ;;  %v11679_v19 = vadd.f32 %v5706_v27, %v5692_v41  ;;  %v5685_v1 = vrot.slane %v8471_v24, 1  ;;  %v5645_v45 = vpop.f32.mrb[85].mxu0  ;;  %v5759_v57 = vsel %vm2893_vm15, %v5751_v25, 0.0  ;;  %v6101_v27 = vld [vmem:[#allocation33] sm:$0xff] }
0x1389   :  { %v5684_v17 = vrot.slane %v5645_v45, 1  ;;  %v9145_v18 = vpack.c.bf16 %v6102_v14, %v6101_v27 }
0x138a   :  { %v5731_v32 = vsel %vm2893_vm15, %v11677_v53, 0.0  ;;  %v5752_v40 = vmul.f32 %v11677_v53, %v11677_v53  ;;  %v5753_v6 = vmul.f32 %v11679_v19, %v11679_v19  ;;  %v5733_v39 = vsel %vm2893_vm15, %v11679_v19, 0.0 }
0x138b   :  { %v5732_v48 = vadd.f32 %v5731_v32, %v5730_v31  ;;  %v5690_v28 = vsel %vm939_vm3, %v5684_v17, %v5685_v1  ;;  %v5691_v58 = vsel %vm939_vm3, %v5683_v4, %v5684_v17  ;;  %v8474_v0 = vpop.f32.mrb[86].mxu0  ;;  %9146 = vmatprep.subr.bf16.mxu0 %v9145_v18 }
0x138c   :  { %v5760_v16 = vsel %vm2893_vm15, %v5752_v40, 0.0  ;;  %v5715_v43 = vsel %vm1960_vm10, %v5691_v58, 0.0  ;;  %v11699_v9 = vadd.f32 %v5708_v2, %v5690_v28  ;;  %v5655_v5 = vpop.f32.mrb[87].mxu0  ;;  %v5687_v52 = vrot.slane %v8474_v0, 1  ;;  %9148 = vmatpush3.bf16.msra.mxu0 %v9145_v18 }
0x138d   :  { %v5734_v26 = vadd.f32 %v5733_v39, %v5732_v48  ;;  %v5761_v20 = vadd.f32 %v5760_v16, %v5759_v57  ;;  %v11702_v42 = vadd.f32 %v5715_v43, %v11648_v62  ;;  %v5762_v29 = vsel %vm2893_vm15, %v5753_v6, 0.0 }
0x138e   :  { %v5755_v11 = vmul.f32 %v11699_v9, %v11699_v9  ;;  %v5686_v21 = vrot.slane %v5655_v5, 1  ;;  %v5695_v60 = vsel %vm939_vm3, %v5687_v52, %v5680_v12  ;;  %v5737_v2 = vsel %vm2893_vm15, %v11699_v9, 0.0 }
0x138f   :  { %v5763_v22 = vadd.f32 %v5762_v29, %v5761_v20  ;;  %v5735_v63 = vsel %vm2893_vm15, %v11702_v42, 0.0  ;;  %v5754_v33 = vmul.f32 %v11702_v42, %v11702_v42  ;;  %v5719_v50 = vsel %vm994_vm7, %v5695_v60, 0.0 }
0x1390   :  { %v5736_v62 = vadd.f32 %v5735_v63, %v5734_v26  ;;  %v5688_v37 = vsel %vm939_vm3, %v5686_v21, %v5687_v52  ;;  %v11720_v46 = vadd.f32 %v5719_v50, %v5711_v55  ;;  %v5689_v51 = vsel %vm939_vm3, %v5685_v1, %v5686_v21 }
0x1391   :  { %v5764_v34 = vsel %vm2893_vm15, %v5754_v33, 0.0  ;;  %v5726_v49 = vadd.f32 %v5710_v36, %v5688_v37  ;;  %v5725_v35 = vadd.f32 %v11654_v47, %v5689_v51  ;;  %v5766_v30 = vsel %vm2893_vm15, %v5755_v11, 0.0 }
0x1392   :  { %v5738_v38 = vadd.f32 %v5737_v2, %v5736_v62  ;;  %v5765_v54 = vadd.f32 %v5764_v34, %v5763_v22  ;;  %v5758_v55 = vmul.f32 %v11720_v46, %v11720_v46  ;;  %v5743_v47 = vsel %vm2893_vm15, %v11720_v46, 0.0  ;;  %v5728_v62 = vld [vmem:[#allocation2 + $0xe] sm:$0x1] }
0x1393   :  { %v5739_v13 = vsel %vm2893_vm15, %v5725_v35, 0.0  ;;  %v5756_v44 = vmul.f32 %v5725_v35, %v5725_v35  ;;  %v5757_v4 = vmul.f32 %v5726_v49, %v5726_v49  ;;  %v5741_v7 = vsel %vm2893_vm15, %v5726_v49, 0.0 }
0x1394   :  { %v5767_v12 = vadd.f32 %v5766_v30, %v5765_v54  ;;  %v5740_v61 = vadd.f32 %v5739_v13, %v5738_v38  ;;  %v5772_v45 = vsel %vm2893_vm15, %v5758_v55, 0.0 }
0x1395   :  { %v5768_v36 = vsel %vm2893_vm15, %v5756_v44, 0.0  ;;  %v5770_v3 = vsel %vm2893_vm15, %v5757_v4, 0.0 }
0x1396   :  { %v5742_v25 = vadd.f32 %v5741_v7, %v5740_v61  ;;  %v5769_v41 = vadd.f32 %v5768_v36, %v5767_v12 }
0x1398   :  { %v5744_v24 = vadd.f32 %v5743_v47, %v5742_v25  ;;  %v5771_v1 = vadd.f32 %v5770_v3, %v5769_v41 }
0x139a   :  { %v5745_v17 = vrot.slane %v5744_v24, 4  ;;  %v5773_v31 = vadd.f32 %v5772_v45, %v5771_v1 }
0x139c   :  { %v5746_v32 = vadd.f32 %v5745_v17, %v5744_v24  ;;  %v5774_v40 = vrot.slane %v5773_v31, 4 }
0x139e   :  { %v5747_v6 = vrot.slane %v5746_v32, 2  ;;  %v5775_v57 = vadd.f32 %v5774_v40, %v5773_v31 }
0x13a0   :  { %v5748_v48 = vadd.f32 %v5747_v6, %v5746_v32  ;;  %v5776_v28 = vrot.slane %v5775_v57, 2 }
0x13a2   :  { %v5749_v58 = vrot.slane %v5748_v48, 1  ;;  %v5777_v0 = vadd.f32 %v5776_v28, %v5775_v57 }
0x13a4   :  { %v5750_v39 = vadd.f32 %v5749_v58, %v5748_v48  ;;  %v5778_v16 = vrot.slane %v5777_v0, 1 }
0x13a6   :  { %v5779_v43 = vadd.f32 %v5778_v16, %v5777_v0  ;;  %v5780_v5 = vmul.f32 0.015625, %v5750_v39 }
0x13a8   :  { %v5781_v27 = vmul.f32 0.015625, %v5779_v43  ;;  %v5782_v14 = vmul.f32 %v5780_v5, %v5780_v5  ;;  %v5790_v26 = vsub.f32 %v5725_v35, %v5780_v5  ;;  %v5791_v20 = vsub.f32 %v5726_v49, %v5780_v5 }
0x13a9   :  { %v5785_v52 = vsub.f32 %v11669_v59, %v5780_v5  ;;  %v5786_v29 = vsub.f32 %v11677_v53, %v5780_v5  ;;  %v5787_v11 = vsub.f32 %v11679_v19, %v5780_v5  ;;  %v5788_v21 = vsub.f32 %v11702_v42, %v5780_v5  ;;  %v6984_v59 = vld [vmem:[#allocation2 + $0xf] ss:$0 sm:$0xff] }
0x13aa   :  { %v5783_v18 = vsub.f32 %v5781_v27, %v5782_v14  ;;  %v5789_v22 = vsub.f32 %v11699_v9, %v5780_v5  ;;  %v5792_v63 = vsub.f32 %v11720_v46, %v5780_v5 }
0x13ac   :  { %v5784_v33 = vmax.f32 %v5783_v18, 0.0 }
0x13ae   :  { %v5793_v60 = vadd.f32 1e-05, %v5784_v33 }
0x13b0   :  { %9312 = vrsqrt.f32 %v5793_v60 }
0x13ba   :  { %v9313_v2 = vpop.eup %9312 }
0x13bb   :  { %v5795_v50 = vmul.f32 %v9313_v2, %v5728_v62 }
0x13bd   :  { %v5799_v37 = vrot.slane %v5795_v50, %v10500_v15 }
0x13bf   :  { %v5805_v34 = vmul.f32 %v5799_v37, %v5790_v26  ;;  %v5806_v53 = vmul.f32 %v5799_v37, %v5791_v20  ;;  %v5800_v51 = vmul.f32 %v5799_v37, %v5785_v52  ;;  %v5801_v19 = vmul.f32 %v5799_v37, %v5786_v29 }
0x13c0   :  { %v5802_v49 = vmul.f32 %v5799_v37, %v5787_v11  ;;  %v5803_v42 = vmul.f32 %v5799_v37, %v5788_v21  ;;  %v5804_v38 = vmul.f32 %v5799_v37, %v5789_v22  ;;  %v5807_v54 = vmul.f32 %v5799_v37, %v5792_v63 }
0x13c1   :  { %v5812_v9 = vadd.f32 %v6984_v59, %v5800_v51  ;;  %v5813_v35 = vadd.f32 %v6984_v59, %v5801_v19  ;;  %v11742_v46 = vadd.f32 %v6984_v59, %v5805_v34  ;;  %v11749_v55 = vadd.f32 %v6984_v59, %v5806_v53 }
0x13c2   :  { %v5814_v30 = vadd.f32 %v6984_v59, %v5802_v49  ;;  %v11744_v12 = vadd.f32 %v6984_v59, %v5803_v42  ;;  %v11746_v13 = vadd.f32 %v6984_v59, %v5804_v38  ;;  %v11751_v25 = vadd.f32 %v6984_v59, %v5807_v54 }
0x13c3   :  { %v5828_v44 = vmul.f32 0.044715, %v5812_v9  ;;  %v5829_v15 = vmul.f32 0.044715, %v5813_v35  ;;  %v5833_v24 = vmul.f32 0.044715, %v11742_v46 }
0x13c4   :  { %v5830_v4 = vmul.f32 0.044715, %v5814_v30  ;;  %v5831_v61 = vmul.f32 0.044715, %v11744_v12  ;;  %v5832_v3 = vmul.f32 0.044715, %v11746_v13 }
0x13c5   :  { %v5836_v7 = vmul.f32 %v5828_v44, %v5812_v9  ;;  %v5837_v36 = vmul.f32 %v5829_v15, %v5813_v35  ;;  %v5841_v40 = vmul.f32 %v5833_v24, %v11742_v46  ;;  %v5834_v48 = vmul.f32 0.044715, %v11749_v55 }
0x13c6   :  { %v5838_v41 = vmul.f32 %v5830_v4, %v5814_v30  ;;  %v5839_v47 = vmul.f32 %v5831_v61, %v11744_v12  ;;  %v5840_v32 = vmul.f32 %v5832_v3, %v11746_v13  ;;  %v5835_v28 = vmul.f32 0.044715, %v11751_v25 }
0x13c7   :  { %v5844_v1 = vmul.f32 %v5836_v7, %v5812_v9  ;;  %v5845_v45 = vmul.f32 %v5837_v36, %v5813_v35  ;;  %v5849_v16 = vmul.f32 %v5841_v40, %v11742_v46  ;;  %v5842_v27 = vmul.f32 %v5834_v48, %v11749_v55 }
0x13c8   :  { %v5846_v17 = vmul.f32 %v5838_v41, %v5814_v30  ;;  %v5847_v31 = vmul.f32 %v5839_v47, %v11744_v12  ;;  %v5848_v39 = vmul.f32 %v5840_v32, %v11746_v13  ;;  %v5843_v14 = vmul.f32 %v5835_v28, %v11751_v25  ;;  %v6301_v28 = vld [vmem:[#allocation33 + $0x28] sm:$0xff] }
0x13c9   :  { %v5852_v6 = vadd.f32 %v5844_v1, %v5812_v9  ;;  %v5853_v57 = vadd.f32 %v5845_v45, %v5813_v35  ;;  %v5857_v29 = vadd.f32 %v5849_v16, %v11742_v46  ;;  %v5850_v11 = vmul.f32 %v5842_v27, %v11749_v55  ;;  %v5897_v16 = vld [vmem:[#allocation31 + $0x28] sm:$0xff]  ;;  %v5900_v27 = vld [vmem:[#allocation31 + $0x40] sm:$0xff] }
0x13ca   :  { %v5854_v58 = vadd.f32 %v5846_v17, %v5814_v30  ;;  %v5855_v0 = vadd.f32 %v5847_v31, %v11744_v12  ;;  %v5856_v52 = vadd.f32 %v5848_v39, %v11746_v13  ;;  %v5851_v21 = vmul.f32 %v5843_v14, %v11751_v25  ;;  %v5896_v39 = vld [vmem:[#allocation31 + $0x20] sm:$0xff]  ;;  %v5901_v14 = vld [vmem:[#allocation31 + $0x48] sm:$0xff] }
0x13cb   :  { %v5860_v43 = vmul.f32 0.7978846, %v5852_v6  ;;  %v5861_v5 = vmul.f32 0.7978846, %v5853_v57  ;;  %v5865_v22 = vmul.f32 0.7978846, %v5857_v29  ;;  %v5858_v63 = vadd.f32 %v5850_v11, %v11749_v55 }
0x13cc   :  { %v5862_v26 = vmul.f32 0.7978846, %v5854_v58  ;;  %v5863_v20 = vmul.f32 0.7978846, %v5855_v0  ;;  %v5864_v18 = vmul.f32 0.7978846, %v5856_v52  ;;  %v5859_v33 = vadd.f32 %v5851_v21, %v11751_v25 }
0x13cd   :  { %9314 = vtanh.f32 %v5860_v43  ;;  %v5866_v60 = vmul.f32 0.7978846, %v5858_v63  ;;  %v5820_v37 = vmul.f32 0.5, %v5812_v9  ;;  %v5821_v53 = vmul.f32 0.5, %v5813_v35  ;;  %v5893_v58 = vld [vmem:[#allocation31 + $0x8] sm:$0xff]  ;;  %v5894_v0 = vld [vmem:[#allocation31 + $0x10] sm:$0xff] }
0x13ce   :  { %9316 = vtanh.f32 %v5861_v5  ;;  %v5867_v62 = vmul.f32 0.7978846, %v5859_v33  ;;  %v5822_v42 = vmul.f32 0.5, %v5814_v30  ;;  %v5823_v15 = vmul.f32 0.5, %v11744_v12  ;;  %v5898_v43 = vld [vmem:[#allocation31 + $0x30] sm:$0xff]  ;;  %v5899_v5 = vld [vmem:[#allocation31 + $0x38] sm:$0xff] }
0x13cf   :  { %9318 = vtanh.f32 %v5862_v26  ;;  %v5824_v36 = vmul.f32 0.5, %v11746_v13  ;;  %v5825_v35 = vmul.f32 0.5, %v11742_v46  ;;  %v5826_v30 = vmul.f32 0.5, %v11749_v55  ;;  %v6300_v46 = vld [vmem:[#allocation33 + $0x20] sm:$0xff]  ;;  %v5902_v26 = vld [vmem:[#allocation31 + $0x50] sm:$0xff]  ;;  %v5905_v29 = vld [vmem:[#allocation31 + $0x68] sm:$0xff] }
0x13d0   :  { %9320 = vtanh.f32 %v5863_v20  ;;  %v5827_v32 = vmul.f32 0.5, %v11751_v25  ;;  %v9149_v55 = vpack.c.bf16 %v6301_v28, %v6300_v46  ;;  %v5895_v25 = vld [vmem:[#allocation31 + $0x18] sm:$0xff]  ;;  %v5904_v52 = vld [vmem:[#allocation31 + $0x60] sm:$0xff]  ;;  %v5906_v11 = vld [vmem:[#allocation31 + $0x70] sm:$0xff] }
0x13d1   :  { %9322 = vtanh.f32 %v5864_v18  ;;  %v5903_v20 = vld [vmem:[#allocation31 + $0x58] sm:$0xff]  ;;  %v6297_v18 = vld [vmem:[#allocation33 + $0x10] sm:$0xff] }
0x13d2   :  { %9324 = vtanh.f32 %v5865_v22  ;;  %v5907_v21 = vld [vmem:[#allocation31 + $0x78] sm:$0xff] }
0x13d3   :  { %9326 = vtanh.f32 %v5866_v60  ;;  %v6298_v22 = vld [vmem:[#allocation33 + $0x18] sm:$0xff] }
0x13d4   :  { %9328 = vtanh.f32 %v5867_v62  ;;  %v9153_v63 = vpack.c.bf16 %v6298_v22, %v6297_v18 }
0x13d6   :  { %9154 = vmatprep.subr.bf16.mxu0 %v9153_v63 }
0x13d7   :  { %v9315_v2 = vpop.eup %9314 }
0x13d8   :  { %v9317_v50 = vpop.eup %9316  ;;  %v5876_v59 = vadd.f32 1.0, %v9315_v2 }
0x13d9   :  { %v9319_v34 = vpop.eup %9318  ;;  %v5877_v51 = vadd.f32 1.0, %v9317_v50 }
0x13da   :  { %v9321_v19 = vpop.eup %9320  ;;  %v5884_v49 = vmul.f32 %v5876_v59, %v5820_v37  ;;  %v5878_v38 = vadd.f32 1.0, %v9319_v34 }
0x13db   :  { %v9323_v54 = vpop.eup %9322  ;;  %v5885_v44 = vmul.f32 %v5877_v51, %v5821_v53  ;;  %v5879_v4 = vadd.f32 1.0, %v9321_v19 }
0x13dc   :  { %v9325_v61 = vpop.eup %9324  ;;  %v5886_v7 = vmul.f32 %v5878_v38, %v5822_v42  ;;  %v5880_v41 = vadd.f32 1.0, %v9323_v54 }
0x13dd   :  { %v9327_v47 = vpop.eup %9326  ;;  %v9129_v9 = vpack.c.bf16 %v5885_v44, %v5884_v49  ;;  %v5887_v3 = vmul.f32 %v5879_v4, %v5823_v15  ;;  %v5881_v24 = vadd.f32 1.0, %v9325_v61 }
0x13de   :  { %v9329_v1 = vpop.eup %9328  ;;  %v5888_v45 = vmul.f32 %v5880_v41, %v5824_v36  ;;  %v5882_v17 = vadd.f32 1.0, %v9327_v47 }
0x13df   :  { %9130 = vmatprep.subr.bf16.mxu1 %v9129_v9  ;;  %v9133_v31 = vpack.c.bf16 %v5887_v3, %v5886_v7  ;;  %v5889_v12 = vmul.f32 %v5881_v24, %v5825_v35  ;;  %v5883_v40 = vadd.f32 1.0, %v9329_v1 }
0x13e0   :  { %9132 = vmatpush3.bf16.msra.mxu1 %v9129_v9  ;;  %v5890_v13 = vmul.f32 %v5882_v17, %v5826_v30 }
0x13e1   :  { %9134 = vmatprep.subr.bf16.mxu1 %v9133_v31  ;;  %v9137_v6 = vpack.c.bf16 %v5889_v12, %v5888_v45  ;;  %v5891_v57 = vmul.f32 %v5883_v40, %v5827_v32 }
0x13e3   :  { %v9141_v48 = vpack.c.bf16 %v5891_v57, %v5890_v13 }
0x13e4   :  { %9136 = vmatpush3.bf16.msra.mxu1 %v9133_v31 }
0x13e5   :  { %9138 = vmatprep.subr.bf16.mxu1 %v9137_v6 }
0x13e8   :  { %9140 = vmatpush3.bf16.msra.mxu1 %v9137_v6 }
0x13e9   :  { %9142 = vmatprep.subr.bf16.mxu1 %v9141_v48 }
0x13ec   :  { %9144 = vmatpush3.bf16.msra.mxu1 %v9141_v48 }
0x13ed   :  { %9150 = vmatprep.subr.bf16.mxu1 %v9149_v55 }
0x13ef   :  { %8492 = vmatmul.mubr.msk.f32.vlgmr.msra.gmra.mrb[76].mxu1 %vm2120_vm9, %v5893_v58 }
0x13f0   :  { %8494 = vmatprep.mubr.msk.f32.mxu1 %vm2120_vm9, %v5894_v0  ;;  %9152 = vmatpush3.bf16.msra.mxu1 %v9149_v55 }
0x13f3   :  { %8495 = vmatmul.mubr.msk.f32.gmra.mrb[78].mxu1 %vm2120_vm9, %v5895_v25 }
0x13f4   :  { %8497 = vmatprep.mubr.msk.f32.mxu1 %vm2120_vm9, %v5896_v39 }
0x13f7   :  { %8498 = vmatmul.mubr.msk.f32.gmra.mrb[80].mxu1 %vm2120_vm9, %v5897_v16 }
0x13f8   :  { %8500 = vmatprep.mubr.msk.f32.mxu1 %vm2120_vm9, %v5898_v43 }
0x13fb   :  { %8501 = vmatmul.mubr.msk.f32.gmra.mrb[82].mxu1 %vm2120_vm9, %v5899_v5 }
0x13fc   :  { %8503 = vmatprep.mubr.msk.f32.mxu1 %vm2120_vm9, %v5900_v27 }
0x13ff   :  { %8504 = vmatmul.mubr.msk.f32.gmra.mrb[84].mxu1 %vm2120_vm9, %v5901_v14 }
0x1400   :  { %8506 = vmatprep.mubr.msk.f32.mxu1 %vm2120_vm9, %v5902_v26 }
0x1403   :  { %8507 = vmatmul.mubr.msk.f32.gmra.mrb[86].mxu1 %vm2120_vm9, %v5903_v20 }
0x1404   :  { %8509 = vmatprep.mubr.msk.f32.mxu1 %vm2120_vm9, %v5904_v52 }
0x1407   :  { %8510 = vmatmul.mubr.msk.f32.gmra.mrb[88].mxu1 %vm2120_vm9, %v5905_v29 }
0x1408   :  { %8512 = vmatprep.mubr.msk.f32.mxu1 %vm2120_vm9, %v5906_v11 }
0x140b   :  { %8513 = vmatmul.mubr.msk.f32.gmra.mrb[90].mxu1 %vm2120_vm9, %v5907_v21 }
0x14c2   :  { %v8493_v33 = vpop.f32.mrb[76].mxu1 }
0x14c3   :  { %v6022_v60 = vpop.f32.mrb[77].mxu1 }
0x14c4   :  { %8519 = vmatprep.mubr.msk.f32.mxu0 %vm2893_vm15, %v6022_v60  ;;  %8547 = vmatprep.mubr.msk.f32.mxu1 %vm2893_vm15, %v6022_v60 }
0x14c5   :  { %8520 = vmatmul.mubr.msk.f32.vlgmr.msra.gmra.mrb[88].mxu0 %vm2893_vm15, %v8493_v33  ;;  %8548 = vmatmul.mubr.msk.f32.vlgmr.msra.gmra.mrb[92].mxu1 %vm2893_vm15, %v8493_v33 }
0x14c6   :  { %v8496_v62 = vpop.f32.mrb[78].mxu1  ;;  %9156 = vmatpush3.bf16.msra.mxu0 %v9153_v63 }
0x14c7   :  { %v6032_v2 = vpop.f32.mrb[79].mxu1 }
0x14c8   :  { %8522 = vmatprep.mubr.msk.f32.mxu0 %vm2893_vm15, %v6032_v2  ;;  %8550 = vmatprep.mubr.msk.f32.mxu1 %vm2893_vm15, %v6032_v2 }
0x14c9   :  { %8523 = vmatmul.mubr.msk.f32.gmra.mrb[90].mxu0 %vm2893_vm15, %v8496_v62  ;;  %8551 = vmatmul.mubr.msk.f32.gmra.mrb[94].mxu1 %vm2893_vm15, %v8496_v62 }
0x14ca   :  { %v8499_v50 = vpop.f32.mrb[80].mxu1 }
0x14cb   :  { %v6042_v37 = vpop.f32.mrb[81].mxu1 }
0x14cc   :  { %8525 = vmatprep.mubr.msk.f32.mxu0 %vm2893_vm15, %v6042_v37  ;;  %8553 = vmatprep.mubr.msk.f32.mxu1 %vm2893_vm15, %v6042_v37 }
0x14cd   :  { %8526 = vmatmul.mubr.msk.f32.gmra.mrb[92].mxu0 %vm2893_vm15, %v8499_v50  ;;  %8554 = vmatmul.mubr.msk.f32.gmra.mrb[96].mxu1 %vm2893_vm15, %v8499_v50 }
0x14ce   :  { %v8502_v59 = vpop.f32.mrb[82].mxu1 }
0x14cf   :  { %v6052_v34 = vpop.f32.mrb[83].mxu1 }
0x14d0   :  { %8528 = vmatprep.mubr.msk.f32.mxu0 %vm2893_vm15, %v6052_v34  ;;  %8556 = vmatprep.mubr.msk.f32.mxu1 %vm2893_vm15, %v6052_v34 }
0x14d1   :  { %8529 = vmatmul.mubr.msk.f32.gmra.mrb[94].mxu0 %vm2893_vm15, %v8502_v59  ;;  %8557 = vmatmul.mubr.msk.f32.gmra.mrb[98].mxu1 %vm2893_vm15, %v8502_v59 }
0x14d2   :  { %v8505_v53 = vpop.f32.mrb[84].mxu1 }
0x14d3   :  { %v6062_v51 = vpop.f32.mrb[85].mxu1 }
0x14d4   :  { %8531 = vmatprep.mubr.msk.f32.mxu0 %vm2893_vm15, %v6062_v51  ;;  %8559 = vmatprep.mubr.msk.f32.mxu1 %vm2893_vm15, %v6062_v51 }
0x14d5   :  { %8532 = vmatmul.mubr.msk.f32.gmra.mrb[96].mxu0 %vm2893_vm15, %v8505_v53  ;;  %8560 = vmatmul.mubr.msk.f32.gmra.mrb[100].mxu1 %vm2893_vm15, %v8505_v53 }
0x14d6   :  { %v8508_v19 = vpop.f32.mrb[86].mxu1 }
0x14d7   :  { %v6072_v49 = vpop.f32.mrb[87].mxu1 }
0x14d8   :  { %8534 = vmatprep.mubr.msk.f32.mxu0 %vm2893_vm15, %v6072_v49  ;;  %8562 = vmatprep.mubr.msk.f32.mxu1 %vm2893_vm15, %v6072_v49 }
0x14d9   :  { %8535 = vmatmul.mubr.msk.f32.gmra.mrb[98].mxu0 %vm2893_vm15, %v8508_v19  ;;  %8563 = vmatmul.mubr.msk.f32.gmra.mrb[102].mxu1 %vm2893_vm15, %v8508_v19 }
0x14da   :  { %v8511_v42 = vpop.f32.mrb[88].mxu1 }
0x14db   :  { %v6082_v38 = vpop.f32.mrb[89].mxu1 }
0x14dc   :  { %8537 = vmatprep.mubr.msk.f32.mxu0 %vm2893_vm15, %v6082_v38  ;;  %8565 = vmatprep.mubr.msk.f32.mxu1 %vm2893_vm15, %v6082_v38 }
0x14dd   :  { %8538 = vmatmul.mubr.msk.f32.gmra.mrb[100].mxu0 %vm2893_vm15, %v8511_v42  ;;  %8566 = vmatmul.mubr.msk.f32.gmra.mrb[104].mxu1 %vm2893_vm15, %v8511_v42 }
0x14de   :  { %v8514_v54 = vpop.f32.mrb[90].mxu1 }
0x14df   :  { %v6092_v44 = vpop.f32.mrb[91].mxu1 }
0x14e0   :  { %8540 = vmatprep.mubr.msk.f32.mxu0 %vm2893_vm15, %v6092_v44  ;;  %8568 = vmatprep.mubr.msk.f32.mxu1 %vm2893_vm15, %v6092_v44 }
0x14e1   :  { %8541 = vmatmul.mubr.msk.f32.gmra.mrb[102].mxu0 %vm2893_vm15, %v8514_v54  ;;  %8569 = vmatmul.mubr.msk.f32.gmra.mrb[106].mxu1 %vm2893_vm15, %v8514_v54 }
0x14e2   :  { %8575 = vmatprep.mubr.msk.f32.mxu0 %vm2893_vm15, %v6022_v60 }
0x14e5   :  { %8576 = vmatmul.mubr.msk.f32.vlgmr.msra.gmra.mrb[104].mxu0 %vm2893_vm15, %v8493_v33 }
0x14e6   :  { %8578 = vmatprep.mubr.msk.f32.mxu0 %vm2893_vm15, %v6032_v2 }
0x14e9   :  { %8579 = vmatmul.mubr.msk.f32.gmra.mrb[106].mxu0 %vm2893_vm15, %v8496_v62 }
0x14ea   :  { %8581 = vmatprep.mubr.msk.f32.mxu0 %vm2893_vm15, %v6042_v37 }
0x14ed   :  { %8582 = vmatmul.mubr.msk.f32.gmra.mrb[108].mxu0 %vm2893_vm15, %v8499_v50 }
0x14ee   :  { %8584 = vmatprep.mubr.msk.f32.mxu0 %vm2893_vm15, %v6052_v34 }
0x14f1   :  { %8585 = vmatmul.mubr.msk.f32.gmra.mrb[110].mxu0 %vm2893_vm15, %v8502_v59 }
0x14f2   :  { %8587 = vmatprep.mubr.msk.f32.mxu0 %vm2893_vm15, %v6062_v51 }
0x14f5   :  { %8588 = vmatmul.mubr.msk.f32.gmra.mrb[112].mxu0 %vm2893_vm15, %v8505_v53 }
0x14f6   :  { %8590 = vmatprep.mubr.msk.f32.mxu0 %vm2893_vm15, %v6072_v49 }
0x14f9   :  { %8591 = vmatmul.mubr.msk.f32.gmra.mrb[114].mxu0 %vm2893_vm15, %v8508_v19 }
0x14fa   :  { %8593 = vmatprep.mubr.msk.f32.mxu0 %vm2893_vm15, %v6082_v38 }
0x14fd   :  { %8594 = vmatmul.mubr.msk.f32.gmra.mrb[116].mxu0 %vm2893_vm15, %v8511_v42 }
0x14fe   :  { %8596 = vmatprep.mubr.msk.f32.mxu0 %vm2893_vm15, %v6092_v44 }
0x1501   :  { %8597 = vmatmul.mubr.msk.f32.gmra.mrb[118].mxu0 %vm2893_vm15, %v8514_v54 }
0x1598   :  { %v8521_v15 = vpop.f32.mrb[88].mxu0  ;;  %v8549_v4 = vpop.f32.mrb[92].mxu1 }
0x1599   :  { %v6448_v61 = vrot.slane %v8521_v15, 7  ;;  %v6480_v7 = vrot.slane %v8549_v4, 1  ;;  %v11840_v36 = vpop.f32.mrb[89].mxu0  ;;  %v11842_v41 = vpop.f32.mrb[93].mxu1 }
0x159a   :  { %v6447_v47 = vrot.slane %v11840_v36, 7  ;;  %v6479_v9 = vrot.slane %v11842_v41, 1 }
0x159c   :  { %v8524_v3 = vpop.f32.mrb[90].mxu0  ;;  %v8552_v35 = vpop.f32.mrb[94].mxu1  ;;  %v11850_v24 = vsel %vm906_vm2, %v6447_v47, %v6448_v61  ;;  %v11856_v1 = vsel %vm939_vm3, %v6479_v9, %v6480_v7 }
0x159d   :  { %v6450_v45 = vrot.slane %v8524_v3, 7  ;;  %v6482_v30 = vrot.slane %v8552_v35, 1  ;;  %v6227_v17 = vpop.f32.mrb[91].mxu0  ;;  %v6378_v31 = vpop.f32.mrb[95].mxu1 }
0x159e   :  { %v6449_v12 = vrot.slane %v6227_v17, 7  ;;  %v6481_v32 = vrot.slane %v6378_v31, 1 }
0x15a0   :  { %v8527_v40 = vpop.f32.mrb[92].mxu0  ;;  %v8555_v13 = vpop.f32.mrb[96].mxu1  ;;  %v11860_v6 = vsel %vm939_vm3, %v6480_v7, %v6481_v32  ;;  %v11864_v57 = vsel %vm906_vm2, %v6449_v12, %v6450_v45  ;;  %v11868_v48 = vsel %vm906_vm2, %v6448_v61, %v6449_v12  ;;  %v11872_v46 = vsel %vm939_vm3, %v6481_v32, %v6482_v30 }
0x15a1   :  { %v6452_v28 = vrot.slane %v8527_v40, 7  ;;  %v6484_v55 = vrot.slane %v8555_v13, 1  ;;  %v6237_v58 = vpop.f32.mrb[93].mxu0  ;;  %v6388_v0 = vpop.f32.mrb[97].mxu1 }
0x15a2   :  { %v6451_v25 = vrot.slane %v6237_v58, 7  ;;  %v6483_v39 = vrot.slane %v6388_v0, 1 }
0x15a4   :  { %v8530_v16 = vpop.f32.mrb[94].mxu0  ;;  %v8558_v43 = vpop.f32.mrb[98].mxu1  ;;  %v11876_v5 = vsel %vm939_vm3, %v6482_v30, %v6483_v39  ;;  %v11880_v27 = vsel %vm906_vm2, %v6451_v25, %v6452_v28  ;;  %v11884_v14 = vsel %vm906_vm2, %v6450_v45, %v6451_v25  ;;  %v11888_v26 = vsel %vm939_vm3, %v6483_v39, %v6484_v55 }
0x15a5   :  { %v6454_v20 = vrot.slane %v8530_v16, 7  ;;  %v6486_v52 = vrot.slane %v8558_v43, 1  ;;  %v6247_v29 = vpop.f32.mrb[95].mxu0  ;;  %v6398_v11 = vpop.f32.mrb[99].mxu1 }
0x15a6   :  { %v6453_v21 = vrot.slane %v6247_v29, 7  ;;  %v6485_v18 = vrot.slane %v6398_v11, 1 }
0x15a8   :  { %v8533_v22 = vpop.f32.mrb[96].mxu0  ;;  %v8561_v63 = vpop.f32.mrb[100].mxu1  ;;  %v11892_v33 = vsel %vm939_vm3, %v6484_v55, %v6485_v18  ;;  %v11896_v60 = vsel %vm906_vm2, %v6453_v21, %v6454_v20  ;;  %v11900_v62 = vsel %vm906_vm2, %v6452_v28, %v6453_v21  ;;  %v11904_v2 = vsel %vm939_vm3, %v6485_v18, %v6486_v52 }
0x15a9   :  { %v6456_v50 = vrot.slane %v8533_v22, 7  ;;  %v6488_v37 = vrot.slane %v8561_v63, 1  ;;  %v6257_v59 = vpop.f32.mrb[97].mxu0  ;;  %v6408_v34 = vpop.f32.mrb[101].mxu1 }
0x15aa   :  { %v6455_v53 = vrot.slane %v6257_v59, 7  ;;  %v6487_v51 = vrot.slane %v6408_v34, 1 }
0x15ac   :  { %v8536_v19 = vpop.f32.mrb[98].mxu0  ;;  %v8564_v49 = vpop.f32.mrb[102].mxu1  ;;  %v11908_v42 = vsel %vm939_vm3, %v6486_v52, %v6487_v51  ;;  %v11912_v38 = vsel %vm906_vm2, %v6455_v53, %v6456_v50  ;;  %v11916_v54 = vsel %vm906_vm2, %v6454_v20, %v6455_v53  ;;  %v11920_v44 = vsel %vm939_vm3, %v6487_v51, %v6488_v37 }
0x15ad   :  { %v6458_v15 = vrot.slane %v8536_v19, 7  ;;  %v6490_v4 = vrot.slane %v8564_v49, 1  ;;  %v6267_v61 = vpop.f32.mrb[99].mxu0  ;;  %v6418_v7 = vpop.f32.mrb[103].mxu1  ;;  %v11983_v19 = vld [vmem:[#allocation2 + $0x10] ss:$0 sm:$0xff] }
0x15ae   :  { %v6457_v3 = vrot.slane %v6267_v61, 7  ;;  %v6489_v35 = vrot.slane %v6418_v7, 1 }
0x15b0   :  { %v8539_v45 = vpop.f32.mrb[100].mxu0  ;;  %v8567_v30 = vpop.f32.mrb[104].mxu1  ;;  %v11924_v17 = vsel %vm939_vm3, %v6488_v37, %v6489_v35  ;;  %v11928_v31 = vsel %vm906_vm2, %v6457_v3, %v6458_v15  ;;  %v11932_v12 = vsel %vm906_vm2, %v6456_v50, %v6457_v3  ;;  %v11936_v32 = vsel %vm939_vm3, %v6489_v35, %v6490_v4 }
0x15b1   :  { %v6460_v40 = vrot.slane %v8539_v45, 7  ;;  %v6492_v13 = vrot.slane %v8567_v30, 1  ;;  %v6277_v28 = vpop.f32.mrb[101].mxu0  ;;  %v6428_v55 = vpop.f32.mrb[105].mxu1 }
0x15b2   :  { %v6459_v58 = vrot.slane %v6277_v28, 7  ;;  %v6491_v0 = vrot.slane %v6428_v55, 1 }
0x15b4   :  { %v8542_v25 = vpop.f32.mrb[102].mxu0  ;;  %v8570_v39 = vpop.f32.mrb[106].mxu1  ;;  %v11940_v16 = vsel %vm939_vm3, %v6490_v4, %v6491_v0  ;;  %v11944_v43 = vsel %vm906_vm2, %v6459_v58, %v6460_v40  ;;  %v11948_v20 = vsel %vm906_vm2, %v6458_v15, %v6459_v58  ;;  %v11952_v52 = vsel %vm939_vm3, %v6491_v0, %v6492_v13 }
0x15b5   :  { %v6462_v29 = vrot.slane %v8542_v25, 7  ;;  %v6494_v11 = vrot.slane %v8570_v39, 1  ;;  %v6287_v21 = vpop.f32.mrb[103].mxu0  ;;  %v6438_v18 = vpop.f32.mrb[107].mxu1 }
0x15b6   :  { %v6461_v22 = vrot.slane %v6287_v21, 7  ;;  %v6493_v63 = vrot.slane %v6438_v18, 1  ;;  %v6519_v21 = vsel %vm1011_vm6, %v11916_v54, 0.0 }
0x15b7   :  { %v6478_v50 = vsel %vm906_vm2, %v6462_v29, %v6447_v47  ;;  %v11962_v37 = vsel %vm939_vm3, %v6494_v11, %v6479_v9 }
0x15b8   :  { %v8577_v59 = vpop.f32.mrb[104].mxu0  ;;  %v6511_v34 = vsel %vm971_vm4, %v6478_v50, 0.0  ;;  %v11968_v53 = vsel %vm939_vm3, %v6492_v13, %v6493_v63  ;;  %v11972_v36 = vsel %vm906_vm2, %v6461_v22, %v6462_v29  ;;  %v11977_v41 = vsel %vm906_vm2, %v6460_v40, %v6461_v22 }
0x15b9   :  { %v6599_v47 = vadd.f32 %v8577_v59, %v11850_v24  ;;  %v6593_v51 = vpop.f32.mrb[105].mxu0  ;;  %v11981_v9 = vsel %vm939_vm3, %v6493_v63, %v6494_v11  ;;  %vm12174_vm2 = vcmp.ne.s32.totalorder %v10720_v56, 127 }
0x15ba   :  { %v6594_v49 = vadd.f32 %v6593_v51, %v6511_v34 }
0x15bb   :  { %v6689_v15 = vadd.f32 %v6599_v47, %v11860_v6 }
0x15bc   :  { %v6688_v4 = vadd.f32 %v6594_v49, %v11856_v1  ;;  %v8580_v61 = vpop.f32.mrb[106].mxu0 }
0x15bd   :  { %v6710_v7 = vadd.f32 %v11983_v19, %v6689_v15  ;;  %v6609_v24 = vadd.f32 %v8580_v61, %v11864_v57  ;;  %v6603_v3 = vpop.f32.mrb[107].mxu0 }
0x15be   :  { %v6709_v35 = vadd.f32 %v11983_v19, %v6688_v4  ;;  %v6604_v45 = vadd.f32 %v6603_v3, %v11868_v48 }
0x15bf   :  { %9330 = vtanh.f32 %v6710_v7  ;;  %v6691_v10 = vadd.f32 %v6609_v24, %v11876_v5 }
0x15c0   :  { %9332 = vtanh.f32 %v6709_v35  ;;  %v6690_v30 = vadd.f32 %v6604_v45, %v11872_v46  ;;  %v8583_v40 = vpop.f32.mrb[108].mxu0 }
0x15c1   :  { %v6712_v6 = vadd.f32 %v11983_v19, %v6691_v10  ;;  %v6619_v1 = vadd.f32 %v8583_v40, %v11880_v27  ;;  %v6613_v13 = vpop.f32.mrb[109].mxu0  ;;  %v6679_v27 = vsel %vm994_vm7, %v11908_v42, 0.0 }
0x15c2   :  { %v6711_v28 = vadd.f32 %v11983_v19, %v6690_v30  ;;  %v6614_v57 = vadd.f32 %v6613_v13, %v11884_v14 }
0x15c3   :  { %9334 = vtanh.f32 %v6712_v6  ;;  %v6693_v55 = vadd.f32 %v6619_v1, %v11892_v33 }
0x15c4   :  { %9336 = vtanh.f32 %v6711_v28  ;;  %v6692_v48 = vadd.f32 %v6614_v57, %v11888_v26  ;;  %v8586_v5 = vpop.f32.mrb[110].mxu0 }
0x15c5   :  { %v6714_v58 = vadd.f32 %v11983_v19, %v6693_v55  ;;  %v6629_v46 = vadd.f32 %v8586_v5, %v11896_v60  ;;  %v6623_v0 = vpop.f32.mrb[111].mxu0 }
0x15c6   :  { %v6713_v25 = vadd.f32 %v11983_v19, %v6692_v48  ;;  %v6624_v14 = vadd.f32 %v6623_v0, %v11900_v62 }
0x15c7   :  { %9338 = vtanh.f32 %v6714_v58  ;;  %v6695_v39 = vadd.f32 %v6679_v27, %v6629_v46 }
0x15c8   :  { %9340 = vtanh.f32 %v6713_v25  ;;  %v6694_v33 = vadd.f32 %v6624_v14, %v11904_v2  ;;  %v8589_v26 = vpop.f32.mrb[112].mxu0 }
0x15c9   :  { %v9331_v29 = vpop.eup %9330  ;;  %v6716_v11 = vadd.f32 %v11983_v19, %v6695_v39  ;;  %v6639_v60 = vadd.f32 %v8589_v26, %v11912_v38  ;;  %v6633_v18 = vpop.f32.mrb[113].mxu0 }
0x15ca   :  { %v9333_v23 = vpop.eup %9332  ;;  %6742 = vst.msk [vmem:[%s12173_s19 + $0x8] sm:$0xff] %vm383_vm1, %v9331_v29  ;;  %v6715_v62 = vadd.f32 %v11983_v19, %v6694_v33  ;;  %v6634_v2 = vadd.f32 %v6633_v18, %v6519_v21 }
0x15cb   :  { %6741 = vst.msk [vmem:[%s12173_s19] sm:$0xff] %vm383_vm1, %v9333_v23  ;;  %9342 = vtanh.f32 %v6716_v11  ;;  %v6697_v42 = vadd.f32 %v6639_v60, %v11924_v17 }
0x15cc   :  { %9344 = vtanh.f32 %v6715_v62  ;;  %v6696_v8 = vadd.f32 %v6634_v2, %v11920_v44  ;;  %v8592_v38 = vpop.f32.mrb[114].mxu0 }
0x15cd   :  { %v9335_v54 = vpop.eup %9334  ;;  %v6718_v22 = vadd.f32 %v11983_v19, %v6697_v42  ;;  %v6649_v63 = vadd.f32 %v8592_v38, %v11928_v31  ;;  %v6643_v50 = vpop.f32.mrb[115].mxu0 }
0x15ce   :  { %v9337_v59 = vpop.eup %9336  ;;  %6744 = vst.msk [vmem:[%s12173_s19 + $0x18] sm:$0xff] %vm383_vm1, %v9335_v54  ;;  %v6717_v34 = vadd.f32 %v11983_v19, %v6696_v8  ;;  %v6644_v17 = vadd.f32 %v6643_v50, %v11932_v12 }
0x15cf   :  { %6743 = vst.msk [vmem:[%s12173_s19 + $0x10] sm:$0xff] %vm383_vm1, %v9337_v59  ;;  %9346 = vtanh.f32 %v6718_v22  ;;  %v6699_v44 = vadd.f32 %v6649_v63, %v11940_v16 }
0x15d0   :  { %9348 = vtanh.f32 %v6717_v34  ;;  %v6698_v31 = vadd.f32 %v6644_v17, %v11936_v32  ;;  %v8595_v47 = vpop.f32.mrb[116].mxu0 }
0x15d1   :  { %v9339_v51 = vpop.eup %9338  ;;  %v6720_v49 = vadd.f32 %v11983_v19, %v6699_v44  ;;  %v6659_v15 = vadd.f32 %v8595_v47, %v11944_v43  ;;  %v6653_v4 = vpop.f32.mrb[117].mxu0 }
0x15d2   :  { %v9341_v61 = vpop.eup %9340  ;;  %6746 = vst.msk [vmem:[%s12173_s19 + $0x28] sm:$0xff] %vm383_vm1, %v9339_v51  ;;  %v6719_v12 = vadd.f32 %v11983_v19, %v6698_v31  ;;  %v6654_v16 = vadd.f32 %v6653_v4, %v11948_v20 }
0x15d3   :  { %6745 = vst.msk [vmem:[%s12173_s19 + $0x20] sm:$0xff] %vm383_vm1, %v9341_v61  ;;  %9350 = vtanh.f32 %v6720_v49  ;;  %v6701_v32 = vadd.f32 %v6659_v15, %v11968_v53  ;;  %v6687_v53 = vsel %vm12174_vm2, %v11962_v37, 0.0 }
0x15d4   :  { %9352 = vtanh.f32 %v6719_v12  ;;  %v6700_v43 = vadd.f32 %v6654_v16, %v11952_v52  ;;  %v8598_v7 = vpop.f32.mrb[118].mxu0 }
0x15d5   :  { %v9343_v24 = vpop.eup %9342  ;;  %v6722_v3 = vadd.f32 %v11983_v19, %v6701_v32  ;;  %v6669_v35 = vadd.f32 %v8598_v7, %v11972_v36  ;;  %v6663_v45 = vpop.f32.mrb[119].mxu0 }
0x15d6   :  { %v9345_v10 = vpop.eup %9344  ;;  %6748 = vst.msk [vmem:[%s12173_s19 + $0x38] sm:$0xff] %vm383_vm1, %v9343_v24  ;;  %v6721_v20 = vadd.f32 %v11983_v19, %v6700_v43  ;;  %v6664_v52 = vadd.f32 %v6663_v45, %v11977_v41 }
0x15d7   :  { %6747 = vst.msk [vmem:[%s12173_s19 + $0x30] sm:$0xff] %vm383_vm1, %v9345_v10  ;;  %9354 = vtanh.f32 %v6722_v3  ;;  %v6703_v36 = vadd.f32 %v6687_v53, %v6669_v35 }
0x15d8   :  { %9356 = vtanh.f32 %v6721_v20  ;;  %v6702_v30 = vadd.f32 %v6664_v52, %v11981_v9 }
0x15d9   :  { %v9347_v40 = vpop.eup %9346  ;;  %v6724_v6 = vadd.f32 %v11983_v19, %v6703_v36 }
0x15da   :  { %v9349_v1 = vpop.eup %9348  ;;  %6750 = vst.msk [vmem:[%s12173_s19 + $0x48] sm:$0xff] %vm383_vm1, %v9347_v40  ;;  %v6723_v56 = vadd.f32 %v11983_v19, %v6702_v30 }
0x15db   :  { %6749 = vst.msk [vmem:[%s12173_s19 + $0x40] sm:$0xff] %vm383_vm1, %v9349_v1  ;;  %9358 = vtanh.f32 %v6724_v6 }
0x15dc   :  { %9360 = vtanh.f32 %v6723_v56 }
0x15dd   :  { %v9351_v37 = vpop.eup %9350 }
0x15de   :  { %v9353_v41 = vpop.eup %9352  ;;  %6752 = vst.msk [vmem:[%s12173_s19 + $0x58] sm:$0xff] %vm383_vm1, %v9351_v37 }
0x15df   :  { %6751 = vst.msk [vmem:[%s12173_s19 + $0x50] sm:$0xff] %vm383_vm1, %v9353_v41 }
0x15e1   :  { %v9355_v9 = vpop.eup %9354 }
0x15e2   :  { %v9357_v19 = vpop.eup %9356  ;;  %6754 = vst.msk [vmem:[%s12173_s19 + $0x68] sm:$0xff] %vm383_vm1, %v9355_v9 }
0x15e3   :  { %6753 = vst.msk [vmem:[%s12173_s19 + $0x60] sm:$0xff] %vm383_vm1, %v9357_v19 }
0x15e5   :  { %v9359_v13 = vpop.eup %9358 }
0x15e6   :  { %v9361_v28 = vpop.eup %9360  ;;  %6756 = vst.msk [vmem:[%s12173_s19 + $0x78] sm:$0xff] %vm383_vm1, %v9359_v13 }
0x15e7   :  { %6755 = vst.msk [vmem:[%s12173_s19 + $0x70] sm:$0xff] %vm383_vm1, %v9361_v28 }
0x15e8   :  { %6765 = vsyncpa [#allocation3], 1 }
0x15e9   :  { %6766 = vsyncpa [#allocation5], 1 }
0x15ea   :  { %6767 = vsyncpa [#allocation8], 1 }
0x15eb   :  { %6768 = vsyncpa [#allocation11], 1 }
0x15ec   :  { %6769 = vsyncpa [#allocation14], 1 }
0x15ed   :  { %6770 = vsyncpa [#allocation17], 1 }
0x15ee   :  { %6771 = vsyncpa [#allocation20], 1 }
0x15ef   :  { %6772 = vsyncpa [#allocation23], 1 }
0x15f0   :  { %6773 = vsyncpa [#allocation26], 1 }
0x15f1   :  { %6774 = vsyncpa [#allocation29], 1 }
0x15f2   :  { %6775 = vsyncpa [#allocation32], 1 }

</bundles_post_ra>
